<compile_context>
chip_gen: v7x
topology: tpu7x:2x2x1
jax: 0.10.0
libtpu: 0.0.40
codegen_flags: <defaults>
</compile_context>

<pallas_src>
import numpy as np
import jax
import jax.numpy as jnp
from jax.experimental import pallas as pl
from jax.experimental.pallas import tpu as pltpu

_VMEM_LIMIT = 32 * 1024 * 1024   # well above actual use (~5 MB / call), safe on v5e/v6e/v7x


# ----------------------------------------------------------------------------
# Constant shift matrices: tap t = dy*3 + dx;  S[t] @ x_flat gathers the (shifted,
# zero-padded) 8x8 window needed by that tap.  Built once on the host.
# ----------------------------------------------------------------------------

def _make_shift_matrices():
    S = np.zeros((9, 64, 64), np.float32)
    for dy in range(3):
        for dx in range(3):
            t = dy * 3 + dx
            for y in range(8):
                for x in range(8):
                    yy, xx = y + dy - 1, x + dx - 1
                    if 0 <= yy < 8 and 0 <= xx < 8:
                        S[t, y * 8 + x, yy * 8 + xx] = 1.0
    return jnp.asarray(S, jnp.bfloat16)


# ----------------------------------------------------------------------------
# In-kernel helpers
# ----------------------------------------------------------------------------

def _conv3x3(x2d, s_ref, w_ref):
    """3x3 'same' conv on an 8x8 board laid out as (64, Cin).

    x2d:   (64, cin)      bf16 activation
    s_ref: (9, 64, 64)    bf16 constant shift matrices
    w_ref: (9, cin, cout) bf16 weights (tap index = dy*3 + dx, BN scale folded)
    returns (64, cout) f32.
    """
    cout = w_ref.shape[-1]
    acc = jnp.zeros((64, cout), jnp.float32)
    for t in range(9):
        patch = jnp.dot(s_ref[t], x2d, preferred_element_type=jnp.float32)
        acc = acc + jnp.dot(patch.astype(x2d.dtype), w_ref[t],
                            preferred_element_type=jnp.float32)
    return acc


# ----------------------------------------------------------------------------
# Kernels (batch dim squeezed: each grid step handles one board)
# ----------------------------------------------------------------------------

def _conv_in_kernel(x_ref, s_ref, w_ref, b_ref, o_ref):
    """Stem: 3x3 conv (bias) + ReLU."""
    x2 = x_ref[...]                                           # (64, cin) bf16
    acc = _conv3x3(x2, s_ref, w_ref) + b_ref[...]
    acc = jnp.maximum(acc, 0.0)
    o_ref[...] = acc.astype(o_ref.dtype)


def _res_block_kernel(x_ref, s_ref, w1_ref, b1_ref, w2_ref, b2_ref, o_ref):
    """Fused residual block: relu(bn1(conv1(x))); relu(bn2(conv2(h)) + x)."""
    x2 = x_ref[...]                                           # (64, C) bf16
    h = _conv3x3(x2, s_ref, w1_ref) + b1_ref[...]             # conv1 + folded BN1
    h = jnp.maximum(h, 0.0).astype(x2.dtype)                  # ReLU, back to bf16
    y = _conv3x3(h, s_ref, w2_ref) + b2_ref[...]              # conv2 + folded BN2
    y = y + x2.astype(jnp.float32)                            # residual
    y = jnp.maximum(y, 0.0)                                   # ReLU
    o_ref[...] = y.astype(o_ref.dtype)


def _heads_kernel(x_ref, w_ref, b_ref, o_ref):
    """Merged policy/value heads: lane-padded 1x1-conv matmul + fused softmax / tanh.

    Output (64, 128) f32: columns 0/1 = softmax'd policy channels (normalized jointly
    over all 2*64 entries of the batch element), column 2 = tanh(value logit).
    """
    logits = jnp.dot(x_ref[...], w_ref[...],
                     preferred_element_type=jnp.float32) + b_ref[...]   # (64, 128)
    col = jax.lax.broadcasted_iota(jnp.int32, logits.shape, 1)
    is_pol = col < 2

    masked = jnp.where(is_pol, logits, -1e30)                 # padded cols -> ~ -inf
    m = jnp.max(jnp.max(masked, axis=1, keepdims=True), axis=0, keepdims=True)
    e = jnp.exp(masked - m)                                   # padded cols -> exactly 0
    s = jnp.sum(jnp.sum(e, axis=1, keepdims=True), axis=0, keepdims=True)
    probs = e / s

    o_ref[...] = jnp.where(is_pol, probs, jnp.tanh(logits))


# ----------------------------------------------------------------------------
# pallas_call wrappers (grid over batch, weights resident via constant index maps)
# ----------------------------------------------------------------------------

def _compiler_params():
    return pltpu.CompilerParams(dimension_semantics=("parallel",),
                                vmem_limit_bytes=_VMEM_LIMIT)


def _conv_in(x, s_mat, w, b):
    B, _, cin = x.shape
    cout = w.shape[-1]
    return pl.pallas_call(
        _conv_in_kernel,
        out_shape=jax.ShapeDtypeStruct((B, 64, cout), jnp.bfloat16),
        grid=(B,),
        in_specs=[
            pl.BlockSpec((None, 64, cin), lambda i: (i, 0, 0)),
            pl.BlockSpec((9, 64, 64), lambda i: (0, 0, 0)),
            pl.BlockSpec((9, cin, cout), lambda i: (0, 0, 0)),
            pl.BlockSpec((1, cout), lambda i: (0, 0)),
        ],
        out_specs=pl.BlockSpec((None, 64, cout), lambda i: (i, 0, 0)),
        compiler_params=_compiler_params(),
    )(x, s_mat, w, b)


def _res_block(x, s_mat, w1, b1, w2, b2):
    B, _, c = x.shape
    return pl.pallas_call(
        _res_block_kernel,
        out_shape=jax.ShapeDtypeStruct((B, 64, c), jnp.bfloat16),
        grid=(B,),
        in_specs=[
            pl.BlockSpec((None, 64, c), lambda i: (i, 0, 0)),
            pl.BlockSpec((9, 64, 64), lambda i: (0, 0, 0)),
            pl.BlockSpec((9, c, c), lambda i: (0, 0, 0)),
            pl.BlockSpec((1, c), lambda i: (0, 0)),
            pl.BlockSpec((9, c, c), lambda i: (0, 0, 0)),
            pl.BlockSpec((1, c), lambda i: (0, 0)),
        ],
        out_specs=pl.BlockSpec((None, 64, c), lambda i: (i, 0, 0)),
        compiler_params=_compiler_params(),
    )(x, s_mat, w1, b1, w2, b2)


def _heads(x, w, b):
    B, _, c = x.shape
    npad = w.shape[-1]
    return pl.pallas_call(
        _heads_kernel,
        out_shape=jax.ShapeDtypeStruct((B, 64, npad), jnp.float32),
        grid=(B,),
        in_specs=[
            pl.BlockSpec((None, 64, c), lambda i: (i, 0, 0)),
            pl.BlockSpec((c, npad), lambda i: (0, 0)),
            pl.BlockSpec((1, npad), lambda i: (0, 0)),
        ],
        out_specs=pl.BlockSpec((None, 64, npad), lambda i: (i, 0, 0)),
        compiler_params=_compiler_params(),
    )(x, w, b)


# ----------------------------------------------------------------------------
# Parameters (deterministic init, BN folded for inference) and forward pass
# ----------------------------------------------------------------------------

def init_params(key, num_residual_blocks=3, cin=5, ch=256, eps=1e-5):
    keys = iter(jax.random.split(key, 12 * num_residual_blocks + 16))

    def conv_w(kh, kw, ci, co):
        return jax.random.normal(next(keys), (kh, kw, ci, co), jnp.float32) / jnp.sqrt(
            float(kh * kw * ci))

    def vec(n, scale=0.05):
        return scale * jax.random.normal(next(keys), (n,), jnp.float32)

    cin_pad = 8
    w_in = conv_w(3, 3, cin, ch)                                   # HWIO
    w_in = jnp.pad(w_in, ((0, 0), (0, 0), (0, cin_pad - cin), (0, 0)))
    params = {
        "shift": _make_shift_matrices(),                           # (9, 64, 64) bf16
        "cin_pad": cin_pad,
        "conv_in_w": w_in.reshape(9, cin_pad, ch).astype(jnp.bfloat16),
        "conv_in_b": vec(ch).reshape(1, ch),
        "blocks": [],
    }

    # Residual tower: BN (eval mode) folded -- scale into weights, bias into f32 vector.
    for _ in range(num_residual_blocks):
        blk = {}
        for tag in ("1", "2"):
            w = conv_w(3, 3, ch, ch).reshape(9, ch, ch)
            b = vec(ch)
            gamma = 1.0 + vec(ch)
            beta = vec(ch)
            mean = vec(ch)
            var = 1.0 + jnp.abs(vec(ch))
            s = gamma / jnp.sqrt(var + eps)
            blk["w" + tag] = (w * s[None, None, :]).astype(jnp.bfloat16)
            blk["b" + tag] = ((b - mean) * s + beta).reshape(1, ch)
        params["blocks"].append(blk)

    # Heads: policy (ch->2) and value (ch->1) 1x1 convs merged into one lane-padded
    # (ch, 128) matmul: columns 0/1 = policy channels, column 2 = value.
    pw = conv_w(1, 1, ch, 2).reshape(ch, 2)
    pb = vec(2)
    vw = conv_w(1, 1, ch, 1).reshape(ch, 1)
    vb = vec(1)
    hw = jnp.zeros((ch, 128), jnp.float32).at[:, 0:2].set(pw).at[:, 2:3].set(vw)
    hb = jnp.zeros((1, 128), jnp.float32).at[0, 0:2].set(pb).at[0, 2:3].set(vb)
    params["heads_w"] = hw.astype(jnp.bfloat16)
    params["heads_b"] = hb
    return params


def alphazero_forward(params, x_nchw):
    B = x_nchw.shape[0]
    cin_pad = params["conv_in_w"].shape[1]

    # NCHW (PyTorch) -> NHWC -> (B, 64, Cin_pad), bf16 activations between kernels.
    x = jnp.transpose(x_nchw, (0, 2, 3, 1)).astype(jnp.bfloat16)
    if x.shape[-1] != cin_pad:
        x = jnp.pad(x, ((0, 0), (0, 0), (0, 0), (0, cin_pad - x.shape[-1])))
    x = x.reshape(B, 64, cin_pad)

    s_mat = params["shift"]

    # conv_input + ReLU
    x = _conv_in(x, s_mat, params["conv_in_w"], params["conv_in_b"])

    # residual tower (one fused pallas_call per block)
    for blk in params["blocks"]:
        x = _res_block(x, s_mat, blk["w1"], blk["b1"], blk["w2"], blk["b2"])

    # merged heads: (B, 64, 128) f32; cols 0/1 = softmax policy, col 2 = tanh(value)
    heads = _heads(x, params["heads_w"], params["heads_b"])

    # Match PyTorch NCHW .view(-1, C*H*W) flattening order (tiny XLA reshuffle).
    policy = jnp.transpose(heads[:, :, 0:2], (0, 2, 1)).reshape(B, 2 * 8 * 8)
    value = heads[:, :, 2].reshape(B, 8 * 8)
    return policy, value


# ----------------------------------------------------------------------------
# Main
# ----------------------------------------------------------------------------

if __name__ == "__main__":
    key = jax.random.PRNGKey(0)
    pkey, xkey = jax.random.split(key)

    # Small config: 3 residual blocks (module default is 19), 8x8 board, 5 planes.
    params = init_params(pkey, num_residual_blocks=3, cin=5, ch=256)
    x = jax.random.normal(xkey, (2, 5, 8, 8), jnp.float32)   # NCHW like PyTorch

    fwd = jax.jit(alphazero_forward)
    policy, value = fwd(params, x)
    policy = jax.block_until_ready(policy)
    value = jax.block_until_ready(value)

    assert policy.shape == (2, 128) and value.shape == (2, 64)
    assert bool(jnp.all(jnp.isfinite(policy))) and bool(jnp.all(jnp.isfinite(value)))
    assert bool(jnp.all(jnp.abs(jnp.sum(policy, axis=-1) - 1.0) < 1e-2))
    assert bool(jnp.all(jnp.abs(value) <= 1.0))
    print("KERNEL_OK")
</pallas_src>

<mosaic_0001>
module attributes {stable_mosaic.version = 11 : i64} {
  func.func @_conv_in_kernel(%arg0: i32, %arg1: memref<1x64x8xbf16, #tpu.memory_space<vmem>>, %arg2: memref<9x64x64xbf16, #tpu.memory_space<vmem>>, %arg3: memref<9x8x256xbf16, #tpu.memory_space<vmem>>, %arg4: memref<1x256xf32, #tpu.memory_space<vmem>>, %arg5: memref<1x64x256xbf16, #tpu.memory_space<vmem>>) attributes {dimension_semantics = [#tpu.dimension_semantics<parallel>], iteration_bounds = array<i64: 2>, scalar_prefetch = 0 : i64, scratch_operands = 0 : i64, tpu.core_type = #tpu.core_type<tc>, window_params = [{transform_indices = @transform_0, window_bounds = array<i64: 1, 64, 8>}, {pipeline_mode = #tpu.pipeline_mode<synchronous>, transform_indices = @transform_1, window_bounds = array<i64: 9, 64, 64>}, {pipeline_mode = #tpu.pipeline_mode<synchronous>, transform_indices = @transform_2, window_bounds = array<i64: 9, 8, 256>}, {pipeline_mode = #tpu.pipeline_mode<synchronous>, transform_indices = @transform_3, window_bounds = array<i64: 1, 256>}, {transform_indices = @transform_4, window_bounds = array<i64: 1, 64, 256>}]} {
    %c0 = arith.constant 0 : index
    %c0_0 = arith.constant 0 : index
    %c0_1 = arith.constant 0 : index
    %0 = vector.load %arg1[%c0, %c0_0, %c0_1] : memref<1x64x8xbf16, #tpu.memory_space<vmem>>, vector<1x64x8xbf16>
    %1 = vector.shape_cast %0 : vector<1x64x8xbf16> to vector<64x8xbf16>
    %cst = arith.constant 0.000000e+00 : f32
    %2 = vector.broadcast %cst : f32 to vector<64x256xf32>
    %c0_2 = arith.constant 0 : index
    %c0_3 = arith.constant 0 : index
    %c0_4 = arith.constant 0 : index
    %3 = vector.load %arg2[%c0_2, %c0_3, %c0_4] : memref<9x64x64xbf16, #tpu.memory_space<vmem>>, vector<1x64x64xbf16>
    %4 = vector.shape_cast %3 : vector<1x64x64xbf16> to vector<64x64xbf16>
    %cst_5 = arith.constant dense<0.000000e+00> : vector<64x8xf32>
    %5 = tpu.matmul %4, %1, %cst_5 {dimension_numbers = #tpu.dot_dimension_numbers<[1], [0], [0], [1], [0, 0, 1, 1], [], []>} : vector<64x64xbf16>, vector<64x8xbf16>, vector<64x8xf32> -> vector<64x8xf32>
    %6 = arith.truncf %5 : vector<64x8xf32> to vector<64x8xbf16>
    %c0_6 = arith.constant 0 : index
    %c0_7 = arith.constant 0 : index
    %c0_8 = arith.constant 0 : index
    %7 = vector.load %arg3[%c0_6, %c0_7, %c0_8] : memref<9x8x256xbf16, #tpu.memory_space<vmem>>, vector<1x8x256xbf16>
    %8 = vector.shape_cast %7 : vector<1x8x256xbf16> to vector<8x256xbf16>
    %cst_9 = arith.constant dense<0.000000e+00> : vector<64x256xf32>
    %9 = tpu.matmul %6, %8, %cst_9 {dimension_numbers = #tpu.dot_dimension_numbers<[1], [0], [0], [1], [0, 0, 1, 1], [], []>} : vector<64x8xbf16>, vector<8x256xbf16>, vector<64x256xf32> -> vector<64x256xf32>
    %10 = arith.addf %2, %9 : vector<64x256xf32>
    %c1 = arith.constant 1 : index
    %c0_10 = arith.constant 0 : index
    %c0_11 = arith.constant 0 : index
    %11 = vector.load %arg2[%c1, %c0_10, %c0_11] : memref<9x64x64xbf16, #tpu.memory_space<vmem>>, vector<1x64x64xbf16>
    %12 = vector.shape_cast %11 : vector<1x64x64xbf16> to vector<64x64xbf16>
    %cst_12 = arith.constant dense<0.000000e+00> : vector<64x8xf32>
    %13 = tpu.matmul %12, %1, %cst_12 {dimension_numbers = #tpu.dot_dimension_numbers<[1], [0], [0], [1], [0, 0, 1, 1], [], []>} : vector<64x64xbf16>, vector<64x8xbf16>, vector<64x8xf32> -> vector<64x8xf32>
    %14 = arith.truncf %13 : vector<64x8xf32> to vector<64x8xbf16>
    %c1_13 = arith.constant 1 : index
    %c0_14 = arith.constant 0 : index
    %c0_15 = arith.constant 0 : index
    %15 = vector.load %arg3[%c1_13, %c0_14, %c0_15] : memref<9x8x256xbf16, #tpu.memory_space<vmem>>, vector<1x8x256xbf16>
    %16 = vector.shape_cast %15 : vector<1x8x256xbf16> to vector<8x256xbf16>
    %cst_16 = arith.constant dense<0.000000e+00> : vector<64x256xf32>
    %17 = tpu.matmul %14, %16, %cst_16 {dimension_numbers = #tpu.dot_dimension_numbers<[1], [0], [0], [1], [0, 0, 1, 1], [], []>} : vector<64x8xbf16>, vector<8x256xbf16>, vector<64x256xf32> -> vector<64x256xf32>
    %18 = arith.addf %10, %17 : vector<64x256xf32>
    %c2 = arith.constant 2 : index
    %c0_17 = arith.constant 0 : index
    %c0_18 = arith.constant 0 : index
    %19 = vector.load %arg2[%c2, %c0_17, %c0_18] : memref<9x64x64xbf16, #tpu.memory_space<vmem>>, vector<1x64x64xbf16>
    %20 = vector.shape_cast %19 : vector<1x64x64xbf16> to vector<64x64xbf16>
    %cst_19 = arith.constant dense<0.000000e+00> : vector<64x8xf32>
    %21 = tpu.matmul %20, %1, %cst_19 {dimension_numbers = #tpu.dot_dimension_numbers<[1], [0], [0], [1], [0, 0, 1, 1], [], []>} : vector<64x64xbf16>, vector<64x8xbf16>, vector<64x8xf32> -> vector<64x8xf32>
    %22 = arith.truncf %21 : vector<64x8xf32> to vector<64x8xbf16>
    %c2_20 = arith.constant 2 : index
    %c0_21 = arith.constant 0 : index
    %c0_22 = arith.constant 0 : index
    %23 = vector.load %arg3[%c2_20, %c0_21, %c0_22] : memref<9x8x256xbf16, #tpu.memory_space<vmem>>, vector<1x8x256xbf16>
    %24 = vector.shape_cast %23 : vector<1x8x256xbf16> to vector<8x256xbf16>
    %cst_23 = arith.constant dense<0.000000e+00> : vector<64x256xf32>
    %25 = tpu.matmul %22, %24, %cst_23 {dimension_numbers = #tpu.dot_dimension_numbers<[1], [0], [0], [1], [0, 0, 1, 1], [], []>} : vector<64x8xbf16>, vector<8x256xbf16>, vector<64x256xf32> -> vector<64x256xf32>
    %26 = arith.addf %18, %25 : vector<64x256xf32>
    %c3 = arith.constant 3 : index
    %c0_24 = arith.constant 0 : index
    %c0_25 = arith.constant 0 : index
    %27 = vector.load %arg2[%c3, %c0_24, %c0_25] : memref<9x64x64xbf16, #tpu.memory_space<vmem>>, vector<1x64x64xbf16>
    %28 = vector.shape_cast %27 : vector<1x64x64xbf16> to vector<64x64xbf16>
    %cst_26 = arith.constant dense<0.000000e+00> : vector<64x8xf32>
    %29 = tpu.matmul %28, %1, %cst_26 {dimension_numbers = #tpu.dot_dimension_numbers<[1], [0], [0], [1], [0, 0, 1, 1], [], []>} : vector<64x64xbf16>, vector<64x8xbf16>, vector<64x8xf32> -> vector<64x8xf32>
    %30 = arith.truncf %29 : vector<64x8xf32> to vector<64x8xbf16>
    %c3_27 = arith.constant 3 : index
    %c0_28 = arith.constant 0 : index
    %c0_29 = arith.constant 0 : index
    %31 = vector.load %arg3[%c3_27, %c0_28, %c0_29] : memref<9x8x256xbf16, #tpu.memory_space<vmem>>, vector<1x8x256xbf16>
    %32 = vector.shape_cast %31 : vector<1x8x256xbf16> to vector<8x256xbf16>
    %cst_30 = arith.constant dense<0.000000e+00> : vector<64x256xf32>
    %33 = tpu.matmul %30, %32, %cst_30 {dimension_numbers = #tpu.dot_dimension_numbers<[1], [0], [0], [1], [0, 0, 1, 1], [], []>} : vector<64x8xbf16>, vector<8x256xbf16>, vector<64x256xf32> -> vector<64x256xf32>
    %34 = arith.addf %26, %33 : vector<64x256xf32>
    %c4 = arith.constant 4 : index
    %c0_31 = arith.constant 0 : index
    %c0_32 = arith.constant 0 : index
    %35 = vector.load %arg2[%c4, %c0_31, %c0_32] : memref<9x64x64xbf16, #tpu.memory_space<vmem>>, vector<1x64x64xbf16>
    %36 = vector.shape_cast %35 : vector<1x64x64xbf16> to vector<64x64xbf16>
    %cst_33 = arith.constant dense<0.000000e+00> : vector<64x8xf32>
    %37 = tpu.matmul %36, %1, %cst_33 {dimension_numbers = #tpu.dot_dimension_numbers<[1], [0], [0], [1], [0, 0, 1, 1], [], []>} : vector<64x64xbf16>, vector<64x8xbf16>, vector<64x8xf32> -> vector<64x8xf32>
    %38 = arith.truncf %37 : vector<64x8xf32> to vector<64x8xbf16>
    %c4_34 = arith.constant 4 : index
    %c0_35 = arith.constant 0 : index
    %c0_36 = arith.constant 0 : index
    %39 = vector.load %arg3[%c4_34, %c0_35, %c0_36] : memref<9x8x256xbf16, #tpu.memory_space<vmem>>, vector<1x8x256xbf16>
    %40 = vector.shape_cast %39 : vector<1x8x256xbf16> to vector<8x256xbf16>
    %cst_37 = arith.constant dense<0.000000e+00> : vector<64x256xf32>
    %41 = tpu.matmul %38, %40, %cst_37 {dimension_numbers = #tpu.dot_dimension_numbers<[1], [0], [0], [1], [0, 0, 1, 1], [], []>} : vector<64x8xbf16>, vector<8x256xbf16>, vector<64x256xf32> -> vector<64x256xf32>
    %42 = arith.addf %34, %41 : vector<64x256xf32>
    %c5 = arith.constant 5 : index
    %c0_38 = arith.constant 0 : index
    %c0_39 = arith.constant 0 : index
    %43 = vector.load %arg2[%c5, %c0_38, %c0_39] : memref<9x64x64xbf16, #tpu.memory_space<vmem>>, vector<1x64x64xbf16>
    %44 = vector.shape_cast %43 : vector<1x64x64xbf16> to vector<64x64xbf16>
    %cst_40 = arith.constant dense<0.000000e+00> : vector<64x8xf32>
    %45 = tpu.matmul %44, %1, %cst_40 {dimension_numbers = #tpu.dot_dimension_numbers<[1], [0], [0], [1], [0, 0, 1, 1], [], []>} : vector<64x64xbf16>, vector<64x8xbf16>, vector<64x8xf32> -> vector<64x8xf32>
    %46 = arith.truncf %45 : vector<64x8xf32> to vector<64x8xbf16>
    %c5_41 = arith.constant 5 : index
    %c0_42 = arith.constant 0 : index
    %c0_43 = arith.constant 0 : index
    %47 = vector.load %arg3[%c5_41, %c0_42, %c0_43] : memref<9x8x256xbf16, #tpu.memory_space<vmem>>, vector<1x8x256xbf16>
    %48 = vector.shape_cast %47 : vector<1x8x256xbf16> to vector<8x256xbf16>
    %cst_44 = arith.constant dense<0.000000e+00> : vector<64x256xf32>
    %49 = tpu.matmul %46, %48, %cst_44 {dimension_numbers = #tpu.dot_dimension_numbers<[1], [0], [0], [1], [0, 0, 1, 1], [], []>} : vector<64x8xbf16>, vector<8x256xbf16>, vector<64x256xf32> -> vector<64x256xf32>
    %50 = arith.addf %42, %49 : vector<64x256xf32>
    %c6 = arith.constant 6 : index
    %c0_45 = arith.constant 0 : index
    %c0_46 = arith.constant 0 : index
    %51 = vector.load %arg2[%c6, %c0_45, %c0_46] : memref<9x64x64xbf16, #tpu.memory_space<vmem>>, vector<1x64x64xbf16>
    %52 = vector.shape_cast %51 : vector<1x64x64xbf16> to vector<64x64xbf16>
    %cst_47 = arith.constant dense<0.000000e+00> : vector<64x8xf32>
    %53 = tpu.matmul %52, %1, %cst_47 {dimension_numbers = #tpu.dot_dimension_numbers<[1], [0], [0], [1], [0, 0, 1, 1], [], []>} : vector<64x64xbf16>, vector<64x8xbf16>, vector<64x8xf32> -> vector<64x8xf32>
    %54 = arith.truncf %53 : vector<64x8xf32> to vector<64x8xbf16>
    %c6_48 = arith.constant 6 : index
    %c0_49 = arith.constant 0 : index
    %c0_50 = arith.constant 0 : index
    %55 = vector.load %arg3[%c6_48, %c0_49, %c0_50] : memref<9x8x256xbf16, #tpu.memory_space<vmem>>, vector<1x8x256xbf16>
    %56 = vector.shape_cast %55 : vector<1x8x256xbf16> to vector<8x256xbf16>
    %cst_51 = arith.constant dense<0.000000e+00> : vector<64x256xf32>
    %57 = tpu.matmul %54, %56, %cst_51 {dimension_numbers = #tpu.dot_dimension_numbers<[1], [0], [0], [1], [0, 0, 1, 1], [], []>} : vector<64x8xbf16>, vector<8x256xbf16>, vector<64x256xf32> -> vector<64x256xf32>
    %58 = arith.addf %50, %57 : vector<64x256xf32>
    %c7 = arith.constant 7 : index
    %c0_52 = arith.constant 0 : index
    %c0_53 = arith.constant 0 : index
    %59 = vector.load %arg2[%c7, %c0_52, %c0_53] : memref<9x64x64xbf16, #tpu.memory_space<vmem>>, vector<1x64x64xbf16>
    %60 = vector.shape_cast %59 : vector<1x64x64xbf16> to vector<64x64xbf16>
    %cst_54 = arith.constant dense<0.000000e+00> : vector<64x8xf32>
    %61 = tpu.matmul %60, %1, %cst_54 {dimension_numbers = #tpu.dot_dimension_numbers<[1], [0], [0], [1], [0, 0, 1, 1], [], []>} : vector<64x64xbf16>, vector<64x8xbf16>, vector<64x8xf32> -> vector<64x8xf32>
    %62 = arith.truncf %61 : vector<64x8xf32> to vector<64x8xbf16>
    %c7_55 = arith.constant 7 : index
    %c0_56 = arith.constant 0 : index
    %c0_57 = arith.constant 0 : index
    %63 = vector.load %arg3[%c7_55, %c0_56, %c0_57] : memref<9x8x256xbf16, #tpu.memory_space<vmem>>, vector<1x8x256xbf16>
    %64 = vector.shape_cast %63 : vector<1x8x256xbf16> to vector<8x256xbf16>
    %cst_58 = arith.constant dense<0.000000e+00> : vector<64x256xf32>
    %65 = tpu.matmul %62, %64, %cst_58 {dimension_numbers = #tpu.dot_dimension_numbers<[1], [0], [0], [1], [0, 0, 1, 1], [], []>} : vector<64x8xbf16>, vector<8x256xbf16>, vector<64x256xf32> -> vector<64x256xf32>
    %66 = arith.addf %58, %65 : vector<64x256xf32>
    %c8 = arith.constant 8 : index
    %c0_59 = arith.constant 0 : index
    %c0_60 = arith.constant 0 : index
    %67 = vector.load %arg2[%c8, %c0_59, %c0_60] : memref<9x64x64xbf16, #tpu.memory_space<vmem>>, vector<1x64x64xbf16>
    %68 = vector.shape_cast %67 : vector<1x64x64xbf16> to vector<64x64xbf16>
    %cst_61 = arith.constant dense<0.000000e+00> : vector<64x8xf32>
    %69 = tpu.matmul %68, %1, %cst_61 {dimension_numbers = #tpu.dot_dimension_numbers<[1], [0], [0], [1], [0, 0, 1, 1], [], []>} : vector<64x64xbf16>, vector<64x8xbf16>, vector<64x8xf32> -> vector<64x8xf32>
    %70 = arith.truncf %69 : vector<64x8xf32> to vector<64x8xbf16>
    %c8_62 = arith.constant 8 : index
    %c0_63 = arith.constant 0 : index
    %c0_64 = arith.constant 0 : index
    %71 = vector.load %arg3[%c8_62, %c0_63, %c0_64] : memref<9x8x256xbf16, #tpu.memory_space<vmem>>, vector<1x8x256xbf16>
    %72 = vector.shape_cast %71 : vector<1x8x256xbf16> to vector<8x256xbf16>
    %cst_65 = arith.constant dense<0.000000e+00> : vector<64x256xf32>
    %73 = tpu.matmul %70, %72, %cst_65 {dimension_numbers = #tpu.dot_dimension_numbers<[1], [0], [0], [1], [0, 0, 1, 1], [], []>} : vector<64x8xbf16>, vector<8x256xbf16>, vector<64x256xf32> -> vector<64x256xf32>
    %74 = arith.addf %66, %73 : vector<64x256xf32>
    %c0_66 = arith.constant 0 : index
    %c0_67 = arith.constant 0 : index
    %75 = vector.load %arg4[%c0_66, %c0_67] : memref<1x256xf32, #tpu.memory_space<vmem>>, vector<1x256xf32>
    %76 = vector.broadcast %75 : vector<1x256xf32> to vector<64x256xf32>
    %77 = arith.addf %74, %76 : vector<64x256xf32>
    %cst_68 = arith.constant 0.000000e+00 : f32
    %78 = vector.broadcast %cst_68 : f32 to vector<64x256xf32>
    %79 = arith.maximumf %77, %78 : vector<64x256xf32>
    %80 = arith.truncf %79 : vector<64x256xf32> to vector<64x256xbf16>
    %c0_69 = arith.constant 0 : index
    %c0_70 = arith.constant 0 : index
    %c0_71 = arith.constant 0 : index
    %81 = vector.load %arg5[%c0_69, %c0_70, %c0_71] : memref<1x64x256xbf16, #tpu.memory_space<vmem>>, vector<1x64x256xbf16>
    %82 = vector.shape_cast %81 : vector<1x64x256xbf16> to vector<64x256xbf16>
    %83 = vector.shape_cast %80 : vector<64x256xbf16> to vector<1x64x256xbf16>
    tpu.vector_store %arg5[%c0_69, %c0_70, %c0_71], %83 {strides = array<i32>} : memref<1x64x256xbf16, #tpu.memory_space<vmem>>, vector<1x64x256xbf16>,
    return
  }
  func.func @transform_0(%arg0: i32) -> (i32, i32, i32) {
    %c0_i32 = arith.constant 0 : i32
    %c0_i32_0 = arith.constant 0 : i32
    %c0_i32_1 = arith.constant 0 : i32
    return %arg0, %c0_i32, %c0_i32_0 : i32, i32, i32
  }
  func.func @transform_1(%arg0: i32) -> (i32, i32, i32) {
    %c0_i32 = arith.constant 0 : i32
    %c0_i32_0 = arith.constant 0 : i32
    %c0_i32_1 = arith.constant 0 : i32
    %c0_i32_2 = arith.constant 0 : i32
    return %c0_i32, %c0_i32_0, %c0_i32_1 : i32, i32, i32
  }
  func.func @transform_2(%arg0: i32) -> (i32, i32, i32) {
    %c0_i32 = arith.constant 0 : i32
    %c0_i32_0 = arith.constant 0 : i32
    %c0_i32_1 = arith.constant 0 : i32
    %c0_i32_2 = arith.constant 0 : i32
    return %c0_i32, %c0_i32_0, %c0_i32_1 : i32, i32, i32
  }
  func.func @transform_3(%arg0: i32) -> (i32, i32) {
    %c0_i32 = arith.constant 0 : i32
    %c0_i32_0 = arith.constant 0 : i32
    %c0_i32_1 = arith.constant 0 : i32
    return %c0_i32, %c0_i32_0 : i32, i32
  }
  func.func @transform_4(%arg0: i32) -> (i32, i32, i32) {
    %c0_i32 = arith.constant 0 : i32
    %c0_i32_0 = arith.constant 0 : i32
    %c0_i32_1 = arith.constant 0 : i32
    return %arg0, %c0_i32, %c0_i32_0 : i32, i32, i32
  }
}

module attributes {stable_mosaic.version = 11 : i64} {
  func.func @_res_block_kernel(%arg0: i32, %arg1: memref<1x64x256xbf16, #tpu.memory_space<vmem>>, %arg2: memref<9x64x64xbf16, #tpu.memory_space<vmem>>, %arg3: memref<9x256x256xbf16, #tpu.memory_space<vmem>>, %arg4: memref<1x256xf32, #tpu.memory_space<vmem>>, %arg5: memref<9x256x256xbf16, #tpu.memory_space<vmem>>, %arg6: memref<1x256xf32, #tpu.memory_space<vmem>>, %arg7: memref<1x64x256xbf16, #tpu.memory_space<vmem>>) attributes {dimension_semantics = [#tpu.dimension_semantics<parallel>], iteration_bounds = array<i64: 2>, scalar_prefetch = 0 : i64, scratch_operands = 0 : i64, tpu.core_type = #tpu.core_type<tc>, window_params = [{transform_indices = @transform_0, window_bounds = array<i64: 1, 64, 256>}, {pipeline_mode = #tpu.pipeline_mode<synchronous>, transform_indices = @transform_1, window_bounds = array<i64: 9, 64, 64>}, {pipeline_mode = #tpu.pipeline_mode<synchronous>, transform_indices = @transform_2, window_bounds = array<i64: 9, 256, 256>}, {pipeline_mode = #tpu.pipeline_mode<synchronous>, transform_indices = @transform_3, window_bounds = array<i64: 1, 256>}, {pipeline_mode = #tpu.pipeline_mode<synchronous>, transform_indices = @transform_4, window_bounds = array<i64: 9, 256, 256>}, {pipeline_mode = #tpu.pipeline_mode<synchronous>, transform_indices = @transform_5, window_bounds = array<i64: 1, 256>}, {transform_indices = @transform_6, window_bounds = array<i64: 1, 64, 256>}]} {
    %c0 = arith.constant 0 : index
    %c0_0 = arith.constant 0 : index
    %c0_1 = arith.constant 0 : index
    %0 = vector.load %arg1[%c0, %c0_0, %c0_1] : memref<1x64x256xbf16, #tpu.memory_space<vmem>>, vector<1x64x256xbf16>
    %1 = vector.shape_cast %0 : vector<1x64x256xbf16> to vector<64x256xbf16>
    %cst = arith.constant 0.000000e+00 : f32
    %2 = vector.broadcast %cst : f32 to vector<64x256xf32>
    %c0_2 = arith.constant 0 : index
    %c0_3 = arith.constant 0 : index
    %c0_4 = arith.constant 0 : index
    %3 = vector.load %arg2[%c0_2, %c0_3, %c0_4] : memref<9x64x64xbf16, #tpu.memory_space<vmem>>, vector<1x64x64xbf16>
    %4 = vector.shape_cast %3 : vector<1x64x64xbf16> to vector<64x64xbf16>
    %cst_5 = arith.constant dense<0.000000e+00> : vector<64x256xf32>
    %5 = tpu.matmul %4, %1, %cst_5 {dimension_numbers = #tpu.dot_dimension_numbers<[1], [0], [0], [1], [0, 0, 1, 1], [], []>} : vector<64x64xbf16>, vector<64x256xbf16>, vector<64x256xf32> -> vector<64x256xf32>
    %6 = arith.truncf %5 : vector<64x256xf32> to vector<64x256xbf16>
    %c0_6 = arith.constant 0 : index
    %c0_7 = arith.constant 0 : index
    %c0_8 = arith.constant 0 : index
    %7 = vector.load %arg3[%c0_6, %c0_7, %c0_8] : memref<9x256x256xbf16, #tpu.memory_space<vmem>>, vector<1x256x256xbf16>
    %8 = vector.shape_cast %7 : vector<1x256x256xbf16> to vector<256x256xbf16>
    %cst_9 = arith.constant dense<0.000000e+00> : vector<64x256xf32>
    %9 = tpu.matmul %6, %8, %cst_9 {dimension_numbers = #tpu.dot_dimension_numbers<[1], [0], [0], [1], [0, 0, 1, 1], [], []>} : vector<64x256xbf16>, vector<256x256xbf16>, vector<64x256xf32> -> vector<64x256xf32>
    %10 = arith.addf %2, %9 : vector<64x256xf32>
    %c1 = arith.constant 1 : index
    %c0_10 = arith.constant 0 : index
    %c0_11 = arith.constant 0 : index
    %11 = vector.load %arg2[%c1, %c0_10, %c0_11] : memref<9x64x64xbf16, #tpu.memory_space<vmem>>, vector<1x64x64xbf16>
    %12 = vector.shape_cast %11 : vector<1x64x64xbf16> to vector<64x64xbf16>
    %cst_12 = arith.constant dense<0.000000e+00> : vector<64x256xf32>
    %13 = tpu.matmul %12, %1, %cst_12 {dimension_numbers = #tpu.dot_dimension_numbers<[1], [0], [0], [1], [0, 0, 1, 1], [], []>} : vector<64x64xbf16>, vector<64x256xbf16>, vector<64x256xf32> -> vector<64x256xf32>
    %14 = arith.truncf %13 : vector<64x256xf32> to vector<64x256xbf16>
    %c1_13 = arith.constant 1 : index
    %c0_14 = arith.constant 0 : index
    %c0_15 = arith.constant 0 : index
    %15 = vector.load %arg3[%c1_13, %c0_14, %c0_15] : memref<9x256x256xbf16, #tpu.memory_space<vmem>>, vector<1x256x256xbf16>
    %16 = vector.shape_cast %15 : vector<1x256x256xbf16> to vector<256x256xbf16>
    %cst_16 = arith.constant dense<0.000000e+00> : vector<64x256xf32>
    %17 = tpu.matmul %14, %16, %cst_16 {dimension_numbers = #tpu.dot_dimension_numbers<[1], [0], [0], [1], [0, 0, 1, 1], [], []>} : vector<64x256xbf16>, vector<256x256xbf16>, vector<64x256xf32> -> vector<64x256xf32>
    %18 = arith.addf %10, %17 : vector<64x256xf32>
    %c2 = arith.constant 2 : index
    %c0_17 = arith.constant 0 : index
    %c0_18 = arith.constant 0 : index
    %19 = vector.load %arg2[%c2, %c0_17, %c0_18] : memref<9x64x64xbf16, #tpu.memory_space<vmem>>, vector<1x64x64xbf16>
    %20 = vector.shape_cast %19 : vector<1x64x64xbf16> to vector<64x64xbf16>
    %cst_19 = arith.constant dense<0.000000e+00> : vector<64x256xf32>
    %21 = tpu.matmul %20, %1, %cst_19 {dimension_numbers = #tpu.dot_dimension_numbers<[1], [0], [0], [1], [0, 0, 1, 1], [], []>} : vector<64x64xbf16>, vector<64x256xbf16>, vector<64x256xf32> -> vector<64x256xf32>
    %22 = arith.truncf %21 : vector<64x256xf32> to vector<64x256xbf16>
    %c2_20 = arith.constant 2 : index
    %c0_21 = arith.constant 0 : index
    %c0_22 = arith.constant 0 : index
    %23 = vector.load %arg3[%c2_20, %c0_21, %c0_22] : memref<9x256x256xbf16, #tpu.memory_space<vmem>>, vector<1x256x256xbf16>
    %24 = vector.shape_cast %23 : vector<1x256x256xbf16> to vector<256x256xbf16>
    %cst_23 = arith.constant dense<0.000000e+00> : vector<64x256xf32>
    %25 = tpu.matmul %22, %24, %cst_23 {dimension_numbers = #tpu.dot_dimension_numbers<[1], [0], [0], [1], [0, 0, 1, 1], [], []>} : vector<64x256xbf16>, vector<256x256xbf16>, vector<64x256xf32> -> vector<64x256xf32>
    %26 = arith.addf %18, %25 : vector<64x256xf32>
    %c3 = arith.constant 3 : index
    %c0_24 = arith.constant 0 : index
    %c0_25 = arith.constant 0 : index
    %27 = vector.load %arg2[%c3, %c0_24, %c0_25] : memref<9x64x64xbf16, #tpu.memory_space<vmem>>, vector<1x64x64xbf16>
    %28 = vector.shape_cast %27 : vector<1x64x64xbf16> to vector<64x64xbf16>
    %cst_26 = arith.constant dense<0.000000e+00> : vector<64x256xf32>
    %29 = tpu.matmul %28, %1, %cst_26 {dimension_numbers = #tpu.dot_dimension_numbers<[1], [0], [0], [1], [0, 0, 1, 1], [], []>} : vector<64x64xbf16>, vector<64x256xbf16>, vector<64x256xf32> -> vector<64x256xf32>
    %30 = arith.truncf %29 : vector<64x256xf32> to vector<64x256xbf16>
    %c3_27 = arith.constant 3 : index
    %c0_28 = arith.constant 0 : index
    %c0_29 = arith.constant 0 : index
    %31 = vector.load %arg3[%c3_27, %c0_28, %c0_29] : memref<9x256x256xbf16, #tpu.memory_space<vmem>>, vector<1x256x256xbf16>
    %32 = vector.shape_cast %31 : vector<1x256x256xbf16> to vector<256x256xbf16>
    %cst_30 = arith.constant dense<0.000000e+00> : vector<64x256xf32>
    %33 = tpu.matmul %30, %32, %cst_30 {dimension_numbers = #tpu.dot_dimension_numbers<[1], [0], [0], [1], [0, 0, 1, 1], [], []>} : vector<64x256xbf16>, vector<256x256xbf16>, vector<64x256xf32> -> vector<64x256xf32>
    %34 = arith.addf %26, %33 : vector<64x256xf32>
    %c4 = arith.constant 4 : index
    %c0_31 = arith.constant 0 : index
    %c0_32 = arith.constant 0 : index
    %35 = vector.load %arg2[%c4, %c0_31, %c0_32] : memref<9x64x64xbf16, #tpu.memory_space<vmem>>, vector<1x64x64xbf16>
    %36 = vector.shape_cast %35 : vector<1x64x64xbf16> to vector<64x64xbf16>
    %cst_33 = arith.constant dense<0.000000e+00> : vector<64x256xf32>
    %37 = tpu.matmul %36, %1, %cst_33 {dimension_numbers = #tpu.dot_dimension_numbers<[1], [0], [0], [1], [0, 0, 1, 1], [], []>} : vector<64x64xbf16>, vector<64x256xbf16>, vector<64x256xf32> -> vector<64x256xf32>
    %38 = arith.truncf %37 : vector<64x256xf32> to vector<64x256xbf16>
    %c4_34 = arith.constant 4 : index
    %c0_35 = arith.constant 0 : index
    %c0_36 = arith.constant 0 : index
    %39 = vector.load %arg3[%c4_34, %c0_35, %c0_36] : memref<9x256x256xbf16, #tpu.memory_space<vmem>>, vector<1x256x256xbf16>
    %40 = vector.shape_cast %39 : vector<1x256x256xbf16> to vector<256x256xbf16>
    %cst_37 = arith.constant dense<0.000000e+00> : vector<64x256xf32>
    %41 = tpu.matmul %38, %40, %cst_37 {dimension_numbers = #tpu.dot_dimension_numbers<[1], [0], [0], [1], [0, 0, 1, 1], [], []>} : vector<64x256xbf16>, vector<256x256xbf16>, vector<64x256xf32> -> vector<64x256xf32>
    %42 = arith.addf %34, %41 : vector<64x256xf32>
    %c5 = arith.constant 5 : index
    %c0_38 = arith.constant 0 : index
    %c0_39 = arith.constant 0 : index
    %43 = vector.load %arg2[%c5, %c0_38, %c0_39] : memref<9x64x64xbf16, #tpu.memory_space<vmem>>, vector<1x64x64xbf16>
    %44 = vector.shape_cast %43 : vector<1x64x64xbf16> to vector<64x64xbf16>
    %cst_40 = arith.constant dense<0.000000e+00> : vector<64x256xf32>
    %45 = tpu.matmul %44, %1, %cst_40 {dimension_numbers = #tpu.dot_dimension_numbers<[1], [0], [0], [1], [0, 0, 1, 1], [], []>} : vector<64x64xbf16>, vector<64x256xbf16>, vector<64x256xf32> -> vector<64x256xf32>
    %46 = arith.truncf %45 : vector<64x256xf32> to vector<64x256xbf16>
    %c5_41 = arith.constant 5 : index
    %c0_42 = arith.constant 0 : index
    %c0_43 = arith.constant 0 : index
    %47 = vector.load %arg3[%c5_41, %c0_42, %c0_43] : memref<9x256x256xbf16, #tpu.memory_space<vmem>>, vector<1x256x256xbf16>
    %48 = vector.shape_cast %47 : vector<1x256x256xbf16> to vector<256x256xbf16>
    %cst_44 = arith.constant dense<0.000000e+00> : vector<64x256xf32>
    %49 = tpu.matmul %46, %48, %cst_44 {dimension_numbers = #tpu.dot_dimension_numbers<[1], [0], [0], [1], [0, 0, 1, 1], [], []>} : vector<64x256xbf16>, vector<256x256xbf16>, vector<64x256xf32> -> vector<64x256xf32>
    %50 = arith.addf %42, %49 : vector<64x256xf32>
    %c6 = arith.constant 6 : index
    %c0_45 = arith.constant 0 : index
    %c0_46 = arith.constant 0 : index
    %51 = vector.load %arg2[%c6, %c0_45, %c0_46] : memref<9x64x64xbf16, #tpu.memory_space<vmem>>, vector<1x64x64xbf16>
    %52 = vector.shape_cast %51 : vector<1x64x64xbf16> to vector<64x64xbf16>
    %cst_47 = arith.constant dense<0.000000e+00> : vector<64x256xf32>
    %53 = tpu.matmul %52, %1, %cst_47 {dimension_numbers = #tpu.dot_dimension_numbers<[1], [0], [0], [1], [0, 0, 1, 1], [], []>} : vector<64x64xbf16>, vector<64x256xbf16>, vector<64x256xf32> -> vector<64x256xf32>
    %54 = arith.truncf %53 : vector<64x256xf32> to vector<64x256xbf16>
    %c6_48 = arith.constant 6 : index
    %c0_49 = arith.constant 0 : index
    %c0_50 = arith.constant 0 : index
    %55 = vector.load %arg3[%c6_48, %c0_49, %c0_50] : memref<9x256x256xbf16, #tpu.memory_space<vmem>>, vector<1x256x256xbf16>
    %56 = vector.shape_cast %55 : vector<1x256x256xbf16> to vector<256x256xbf16>
    %cst_51 = arith.constant dense<0.000000e+00> : vector<64x256xf32>
    %57 = tpu.matmul %54, %56, %cst_51 {dimension_numbers = #tpu.dot_dimension_numbers<[1], [0], [0], [1], [0, 0, 1, 1], [], []>} : vector<64x256xbf16>, vector<256x256xbf16>, vector<64x256xf32> -> vector<64x256xf32>
    %58 = arith.addf %50, %57 : vector<64x256xf32>
    %c7 = arith.constant 7 : index
    %c0_52 = arith.constant 0 : index
    %c0_53 = arith.constant 0 : index
    %59 = vector.load %arg2[%c7, %c0_52, %c0_53] : memref<9x64x64xbf16, #tpu.memory_space<vmem>>, vector<1x64x64xbf16>
    %60 = vector.shape_cast %59 : vector<1x64x64xbf16> to vector<64x64xbf16>
    %cst_54 = arith.constant dense<0.000000e+00> : vector<64x256xf32>
    %61 = tpu.matmul %60, %1, %cst_54 {dimension_numbers = #tpu.dot_dimension_numbers<[1], [0], [0], [1], [0, 0, 1, 1], [], []>} : vector<64x64xbf16>, vector<64x256xbf16>, vector<64x256xf32> -> vector<64x256xf32>
    %62 = arith.truncf %61 : vector<64x256xf32> to vector<64x256xbf16>
    %c7_55 = arith.constant 7 : index
    %c0_56 = arith.constant 0 : index
    %c0_57 = arith.constant 0 : index
    %63 = vector.load %arg3[%c7_55, %c0_56, %c0_57] : memref<9x256x256xbf16, #tpu.memory_space<vmem>>, vector<1x256x256xbf16>
    %64 = vector.shape_cast %63 : vector<1x256x256xbf16> to vector<256x256xbf16>
    %cst_58 = arith.constant dense<0.000000e+00> : vector<64x256xf32>
    %65 = tpu.matmul %62, %64, %cst_58 {dimension_numbers = #tpu.dot_dimension_numbers<[1], [0], [0], [1], [0, 0, 1, 1], [], []>} : vector<64x256xbf16>, vector<256x256xbf16>, vector<64x256xf32> -> vector<64x256xf32>
    %66 = arith.addf %58, %65 : vector<64x256xf32>
    %c8 = arith.constant 8 : index
    %c0_59 = arith.constant 0 : index
    %c0_60 = arith.constant 0 : index
    %67 = vector.load %arg2[%c8, %c0_59, %c0_60] : memref<9x64x64xbf16, #tpu.memory_space<vmem>>, vector<1x64x64xbf16>
    %68 = vector.shape_cast %67 : vector<1x64x64xbf16> to vector<64x64xbf16>
    %cst_61 = arith.constant dense<0.000000e+00> : vector<64x256xf32>
    %69 = tpu.matmul %68, %1, %cst_61 {dimension_numbers = #tpu.dot_dimension_numbers<[1], [0], [0], [1], [0, 0, 1, 1], [], []>} : vector<64x64xbf16>, vector<64x256xbf16>, vector<64x256xf32> -> vector<64x256xf32>
    %70 = arith.truncf %69 : vector<64x256xf32> to vector<64x256xbf16>
    %c8_62 = arith.constant 8 : index
    %c0_63 = arith.constant 0 : index
    %c0_64 = arith.constant 0 : index
    %71 = vector.load %arg3[%c8_62, %c0_63, %c0_64] : memref<9x256x256xbf16, #tpu.memory_space<vmem>>, vector<1x256x256xbf16>
    %72 = vector.shape_cast %71 : vector<1x256x256xbf16> to vector<256x256xbf16>
    %cst_65 = arith.constant dense<0.000000e+00> : vector<64x256xf32>
    %73 = tpu.matmul %70, %72, %cst_65 {dimension_numbers = #tpu.dot_dimension_numbers<[1], [0], [0], [1], [0, 0, 1, 1], [], []>} : vector<64x256xbf16>, vector<256x256xbf16>, vector<64x256xf32> -> vector<64x256xf32>
    %74 = arith.addf %66, %73 : vector<64x256xf32>
    %c0_66 = arith.constant 0 : index
    %c0_67 = arith.constant 0 : index
    %75 = vector.load %arg4[%c0_66, %c0_67] : memref<1x256xf32, #tpu.memory_space<vmem>>, vector<1x256xf32>
    %76 = vector.broadcast %75 : vector<1x256xf32> to vector<64x256xf32>
    %77 = arith.addf %74, %76 : vector<64x256xf32>
    %cst_68 = arith.constant 0.000000e+00 : f32
    %78 = vector.broadcast %cst_68 : f32 to vector<64x256xf32>
    %79 = arith.maximumf %77, %78 : vector<64x256xf32>
    %80 = arith.truncf %79 : vector<64x256xf32> to vector<64x256xbf16>
    %cst_69 = arith.constant 0.000000e+00 : f32
    %81 = vector.broadcast %cst_69 : f32 to vector<64x256xf32>
    %c0_70 = arith.constant 0 : index
    %c0_71 = arith.constant 0 : index
    %c0_72 = arith.constant 0 : index
    %82 = vector.load %arg2[%c0_70, %c0_71, %c0_72] : memref<9x64x64xbf16, #tpu.memory_space<vmem>>, vector<1x64x64xbf16>
    %83 = vector.shape_cast %82 : vector<1x64x64xbf16> to vector<64x64xbf16>
    %cst_73 = arith.constant dense<0.000000e+00> : vector<64x256xf32>
    %84 = tpu.matmul %83, %80, %cst_73 {dimension_numbers = #tpu.dot_dimension_numbers<[1], [0], [0], [1], [0, 0, 1, 1], [], []>} : vector<64x64xbf16>, vector<64x256xbf16>, vector<64x256xf32> -> vector<64x256xf32>
    %85 = arith.truncf %84 : vector<64x256xf32> to vector<64x256xbf16>
    %c0_74 = arith.constant 0 : index
    %c0_75 = arith.constant 0 : index
    %c0_76 = arith.constant 0 : index
    %86 = vector.load %arg5[%c0_74, %c0_75, %c0_76] : memref<9x256x256xbf16, #tpu.memory_space<vmem>>, vector<1x256x256xbf16>
    %87 = vector.shape_cast %86 : vector<1x256x256xbf16> to vector<256x256xbf16>
    %cst_77 = arith.constant dense<0.000000e+00> : vector<64x256xf32>
    %88 = tpu.matmul %85, %87, %cst_77 {dimension_numbers = #tpu.dot_dimension_numbers<[1], [0], [0], [1], [0, 0, 1, 1], [], []>} : vector<64x256xbf16>, vector<256x256xbf16>, vector<64x256xf32> -> vector<64x256xf32>
    %89 = arith.addf %81, %88 : vector<64x256xf32>
    %c1_78 = arith.constant 1 : index
    %c0_79 = arith.constant 0 : index
    %c0_80 = arith.constant 0 : index
    %90 = vector.load %arg2[%c1_78, %c0_79, %c0_80] : memref<9x64x64xbf16, #tpu.memory_space<vmem>>, vector<1x64x64xbf16>
    %91 = vector.shape_cast %90 : vector<1x64x64xbf16> to vector<64x64xbf16>
    %cst_81 = arith.constant dense<0.000000e+00> : vector<64x256xf32>
    %92 = tpu.matmul %91, %80, %cst_81 {dimension_numbers = #tpu.dot_dimension_numbers<[1], [0], [0], [1], [0, 0, 1, 1], [], []>} : vector<64x64xbf16>, vector<64x256xbf16>, vector<64x256xf32> -> vector<64x256xf32>
    %93 = arith.truncf %92 : vector<64x256xf32> to vector<64x256xbf16>
    %c1_82 = arith.constant 1 : index
    %c0_83 = arith.constant 0 : index
    %c0_84 = arith.constant 0 : index
    %94 = vector.load %arg5[%c1_82, %c0_83, %c0_84] : memref<9x256x256xbf16, #tpu.memory_space<vmem>>, vector<1x256x256xbf16>
    %95 = vector.shape_cast %94 : vector<1x256x256xbf16> to vector<256x256xbf16>
    %cst_85 = arith.constant dense<0.000000e+00> : vector<64x256xf32>
    %96 = tpu.matmul %93, %95, %cst_85 {dimension_numbers = #tpu.dot_dimension_numbers<[1], [0], [0], [1], [0, 0, 1, 1], [], []>} : vector<64x256xbf16>, vector<256x256xbf16>, vector<64x256xf32> -> vector<64x256xf32>
    %97 = arith.addf %89, %96 : vector<64x256xf32>
    %c2_86 = arith.constant 2 : index
    %c0_87 = arith.constant 0 : index
    %c0_88 = arith.constant 0 : index
    %98 = vector.load %arg2[%c2_86, %c0_87, %c0_88] : memref<9x64x64xbf16, #tpu.memory_space<vmem>>, vector<1x64x64xbf16>
    %99 = vector.shape_cast %98 : vector<1x64x64xbf16> to vector<64x64xbf16>
    %cst_89 = arith.constant dense<0.000000e+00> : vector<64x256xf32>
    %100 = tpu.matmul %99, %80, %cst_89 {dimension_numbers = #tpu.dot_dimension_numbers<[1], [0], [0], [1], [0, 0, 1, 1], [], []>} : vector<64x64xbf16>, vector<64x256xbf16>, vector<64x256xf32> -> vector<64x256xf32>
    %101 = arith.truncf %100 : vector<64x256xf32> to vector<64x256xbf16>
    %c2_90 = arith.constant 2 : index
    %c0_91 = arith.constant 0 : index
    %c0_92 = arith.constant 0 : index
    %102 = vector.load %arg5[%c2_90, %c0_91, %c0_92] : memref<9x256x256xbf16, #tpu.memory_space<vmem>>, vector<1x256x256xbf16>
    %103 = vector.shape_cast %102 : vector<1x256x256xbf16> to vector<256x256xbf16>
    %cst_93 = arith.constant dense<0.000000e+00> : vector<64x256xf32>
    %104 = tpu.matmul %101, %103, %cst_93 {dimension_numbers = #tpu.dot_dimension_numbers<[1], [0], [0], [1], [0, 0, 1, 1], [], []>} : vector<64x256xbf16>, vector<256x256xbf16>, vector<64x256xf32> -> vector<64x256xf32>
    %105 = arith.addf %97, %104 : vector<64x256xf32>
    %c3_94 = arith.constant 3 : index
    %c0_95 = arith.constant 0 : index
    %c0_96 = arith.constant 0 : index
    %106 = vector.load %arg2[%c3_94, %c0_95, %c0_96] : memref<9x64x64xbf16, #tpu.memory_space<vmem>>, vector<1x64x64xbf16>
    %107 = vector.shape_cast %106 : vector<1x64x64xbf16> to vector<64x64xbf16>
    %cst_97 = arith.constant dense<0.000000e+00> : vector<64x256xf32>
    %108 = tpu.matmul %107, %80, %cst_97 {dimension_numbers = #tpu.dot_dimension_numbers<[1], [0], [0], [1], [0, 0, 1, 1], [], []>} : vector<64x64xbf16>, vector<64x256xbf16>, vector<64x256xf32> -> vector<64x256xf32>
    %109 = arith.truncf %108 : vector<64x256xf32> to vector<64x256xbf16>
    %c3_98 = arith.constant 3 : index
    %c0_99 = arith.constant 0 : index
    %c0_100 = arith.constant 0 : index
    %110 = vector.load %arg5[%c3_98, %c0_99, %c0_100] : memref<9x256x256xbf16, #tpu.memory_space<vmem>>, vector<1x256x256xbf16>
    %111 = vector.shape_cast %110 : vector<1x256x256xbf16> to vector<256x256xbf16>
    %cst_101 = arith.constant dense<0.000000e+00> : vector<64x256xf32>
    %112 = tpu.matmul %109, %111, %cst_101 {dimension_numbers = #tpu.dot_dimension_numbers<[1], [0], [0], [1], [0, 0, 1, 1], [], []>} : vector<64x256xbf16>, vector<256x256xbf16>, vector<64x256xf32> -> vector<64x256xf32>
    %113 = arith.addf %105, %112 : vector<64x256xf32>
    %c4_102 = arith.constant 4 : index
    %c0_103 = arith.constant 0 : index
    %c0_104 = arith.constant 0 : index
    %114 = vector.load %arg2[%c4_102, %c0_103, %c0_104] : memref<9x64x64xbf16, #tpu.memory_space<vmem>>, vector<1x64x64xbf16>
    %115 = vector.shape_cast %114 : vector<1x64x64xbf16> to vector<64x64xbf16>
    %cst_105 = arith.constant dense<0.000000e+00> : vector<64x256xf32>
    %116 = tpu.matmul %115, %80, %cst_105 {dimension_numbers = #tpu.dot_dimension_numbers<[1], [0], [0], [1], [0, 0, 1, 1], [], []>} : vector<64x64xbf16>, vector<64x256xbf16>, vector<64x256xf32> -> vector<64x256xf32>
    %117 = arith.truncf %116 : vector<64x256xf32> to vector<64x256xbf16>
    %c4_106 = arith.constant 4 : index
    %c0_107 = arith.constant 0 : index
    %c0_108 = arith.constant 0 : index
    %118 = vector.load %arg5[%c4_106, %c0_107, %c0_108] : memref<9x256x256xbf16, #tpu.memory_space<vmem>>, vector<1x256x256xbf16>
    %119 = vector.shape_cast %118 : vector<1x256x256xbf16> to vector<256x256xbf16>
    %cst_109 = arith.constant dense<0.000000e+00> : vector<64x256xf32>
    %120 = tpu.matmul %117, %119, %cst_109 {dimension_numbers = #tpu.dot_dimension_numbers<[1], [0], [0], [1], [0, 0, 1, 1], [], []>} : vector<64x256xbf16>, vector<256x256xbf16>, vector<64x256xf32> -> vector<64x256xf32>
    %121 = arith.addf %113, %120 : vector<64x256xf32>
    %c5_110 = arith.constant 5 : index
    %c0_111 = arith.constant 0 : index
    %c0_112 = arith.constant 0 : index
    %122 = vector.load %arg2[%c5_110, %c0_111, %c0_112] : memref<9x64x64xbf16, #tpu.memory_space<vmem>>, vector<1x64x64xbf16>
    %123 = vector.shape_cast %122 : vector<1x64x64xbf16> to vector<64x64xbf16>
    %cst_113 = arith.constant dense<0.000000e+00> : vector<64x256xf32>
    %124 = tpu.matmul %123, %80, %cst_113 {dimension_numbers = #tpu.dot_dimension_numbers<[1], [0], [0], [1], [0, 0, 1, 1], [], []>} : vector<64x64xbf16>, vector<64x256xbf16>, vector<64x256xf32> -> vector<64x256xf32>
    %125 = arith.truncf %124 : vector<64x256xf32> to vector<64x256xbf16>
    %c5_114 = arith.constant 5 : index
    %c0_115 = arith.constant 0 : index
    %c0_116 = arith.constant 0 : index
    %126 = vector.load %arg5[%c5_114, %c0_115, %c0_116] : memref<9x256x256xbf16, #tpu.memory_space<vmem>>, vector<1x256x256xbf16>
    %127 = vector.shape_cast %126 : vector<1x256x256xbf16> to vector<256x256xbf16>
    %cst_117 = arith.constant dense<0.000000e+00> : vector<64x256xf32>
    %128 = tpu.matmul %125, %127, %cst_117 {dimension_numbers = #tpu.dot_dimension_numbers<[1], [0], [0], [1], [0, 0, 1, 1], [], []>} : vector<64x256xbf16>, vector<256x256xbf16>, vector<64x256xf32> -> vector<64x256xf32>
    %129 = arith.addf %121, %128 : vector<64x256xf32>
    %c6_118 = arith.constant 6 : index
    %c0_119 = arith.constant 0 : index
    %c0_120 = arith.constant 0 : index
    %130 = vector.load %arg2[%c6_118, %c0_119, %c0_120] : memref<9x64x64xbf16, #tpu.memory_space<vmem>>, vector<1x64x64xbf16>
    %131 = vector.shape_cast %130 : vector<1x64x64xbf16> to vector<64x64xbf16>
    %cst_121 = arith.constant dense<0.000000e+00> : vector<64x256xf32>
    %132 = tpu.matmul %131, %80, %cst_121 {dimension_numbers = #tpu.dot_dimension_numbers<[1], [0], [0], [1], [0, 0, 1, 1], [], []>} : vector<64x64xbf16>, vector<64x256xbf16>, vector<64x256xf32> -> vector<64x256xf32>
    %133 = arith.truncf %132 : vector<64x256xf32> to vector<64x256xbf16>
    %c6_122 = arith.constant 6 : index
    %c0_123 = arith.constant 0 : index
    %c0_124 = arith.constant 0 : index
    %134 = vector.load %arg5[%c6_122, %c0_123, %c0_124] : memref<9x256x256xbf16, #tpu.memory_space<vmem>>, vector<1x256x256xbf16>
    %135 = vector.shape_cast %134 : vector<1x256x256xbf16> to vector<256x256xbf16>
    %cst_125 = arith.constant dense<0.000000e+00> : vector<64x256xf32>
    %136 = tpu.matmul %133, %135, %cst_125 {dimension_numbers = #tpu.dot_dimension_numbers<[1], [0], [0], [1], [0, 0, 1, 1], [], []>} : vector<64x256xbf16>, vector<256x256xbf16>, vector<64x256xf32> -> vector<64x256xf32>
    %137 = arith.addf %129, %136 : vector<64x256xf32>
    %c7_126 = arith.constant 7 : index
    %c0_127 = arith.constant 0 : index
    %c0_128 = arith.constant 0 : index
    %138 = vector.load %arg2[%c7_126, %c0_127, %c0_128] : memref<9x64x64xbf16, #tpu.memory_space<vmem>>, vector<1x64x64xbf16>
    %139 = vector.shape_cast %138 : vector<1x64x64xbf16> to vector<64x64xbf16>
    %cst_129 = arith.constant dense<0.000000e+00> : vector<64x256xf32>
    %140 = tpu.matmul %139, %80, %cst_129 {dimension_numbers = #tpu.dot_dimension_numbers<[1], [0], [0], [1], [0, 0, 1, 1], [], []>} : vector<64x64xbf16>, vector<64x256xbf16>, vector<64x256xf32> -> vector<64x256xf32>
    %141 = arith.truncf %140 : vector<64x256xf32> to vector<64x256xbf16>
    %c7_130 = arith.constant 7 : index
    %c0_131 = arith.constant 0 : index
    %c0_132 = arith.constant 0 : index
    %142 = vector.load %arg5[%c7_130, %c0_131, %c0_132] : memref<9x256x256xbf16, #tpu.memory_space<vmem>>, vector<1x256x256xbf16>
    %143 = vector.shape_cast %142 : vector<1x256x256xbf16> to vector<256x256xbf16>
    %cst_133 = arith.constant dense<0.000000e+00> : vector<64x256xf32>
    %144 = tpu.matmul %141, %143, %cst_133 {dimension_numbers = #tpu.dot_dimension_numbers<[1], [0], [0], [1], [0, 0, 1, 1], [], []>} : vector<64x256xbf16>, vector<256x256xbf16>, vector<64x256xf32> -> vector<64x256xf32>
    %145 = arith.addf %137, %144 : vector<64x256xf32>
    %c8_134 = arith.constant 8 : index
    %c0_135 = arith.constant 0 : index
    %c0_136 = arith.constant 0 : index
    %146 = vector.load %arg2[%c8_134, %c0_135, %c0_136] : memref<9x64x64xbf16, #tpu.memory_space<vmem>>, vector<1x64x64xbf16>
    %147 = vector.shape_cast %146 : vector<1x64x64xbf16> to vector<64x64xbf16>
    %cst_137 = arith.constant dense<0.000000e+00> : vector<64x256xf32>
    %148 = tpu.matmul %147, %80, %cst_137 {dimension_numbers = #tpu.dot_dimension_numbers<[1], [0], [0], [1], [0, 0, 1, 1], [], []>} : vector<64x64xbf16>, vector<64x256xbf16>, vector<64x256xf32> -> vector<64x256xf32>
    %149 = arith.truncf %148 : vector<64x256xf32> to vector<64x256xbf16>
    %c8_138 = arith.constant 8 : index
    %c0_139 = arith.constant 0 : index
    %c0_140 = arith.constant 0 : index
    %150 = vector.load %arg5[%c8_138, %c0_139, %c0_140] : memref<9x256x256xbf16, #tpu.memory_space<vmem>>, vector<1x256x256xbf16>
    %151 = vector.shape_cast %150 : vector<1x256x256xbf16> to vector<256x256xbf16>
    %cst_141 = arith.constant dense<0.000000e+00> : vector<64x256xf32>
    %152 = tpu.matmul %149, %151, %cst_141 {dimension_numbers = #tpu.dot_dimension_numbers<[1], [0], [0], [1], [0, 0, 1, 1], [], []>} : vector<64x256xbf16>, vector<256x256xbf16>, vector<64x256xf32> -> vector<64x256xf32>
    %153 = arith.addf %145, %152 : vector<64x256xf32>
    %c0_142 = arith.constant 0 : index
    %c0_143 = arith.constant 0 : index
    %154 = vector.load %arg6[%c0_142, %c0_143] : memref<1x256xf32, #tpu.memory_space<vmem>>, vector<1x256xf32>
    %155 = vector.broadcast %154 : vector<1x256xf32> to vector<64x256xf32>
    %156 = arith.addf %153, %155 : vector<64x256xf32>
    %157 = arith.extf %1 : vector<64x256xbf16> to vector<64x256xf32>
    %158 = arith.addf %156, %157 : vector<64x256xf32>
    %cst_144 = arith.constant 0.000000e+00 : f32
    %159 = vector.broadcast %cst_144 : f32 to vector<64x256xf32>
    %160 = arith.maximumf %158, %159 : vector<64x256xf32>
    %161 = arith.truncf %160 : vector<64x256xf32> to vector<64x256xbf16>
    %c0_145 = arith.constant 0 : index
    %c0_146 = arith.constant 0 : index
    %c0_147 = arith.constant 0 : index
    %162 = vector.load %arg7[%c0_145, %c0_146, %c0_147] : memref<1x64x256xbf16, #tpu.memory_space<vmem>>, vector<1x64x256xbf16>
    %163 = vector.shape_cast %162 : vector<1x64x256xbf16> to vector<64x256xbf16>
    %164 = vector.shape_cast %161 : vector<64x256xbf16> to vector<1x64x256xbf16>
    tpu.vector_store %arg7[%c0_145, %c0_146, %c0_147], %164 {strides = array<i32>} : memref<1x64x256xbf16, #tpu.memory_space<vmem>>, vector<1x64x256xbf16>,
    return
  }
  func.func @transform_0(%arg0: i32) -> (i32, i32, i32) {
    %c0_i32 = arith.constant 0 : i32
    %c0_i32_0 = arith.constant 0 : i32
    %c0_i32_1 = arith.constant 0 : i32
    return %arg0, %c0_i32, %c0_i32_0 : i32, i32, i32
  }
  func.func @transform_1(%arg0: i32) -> (i32, i32, i32) {
    %c0_i32 = arith.constant 0 : i32
    %c0_i32_0 = arith.constant 0 : i32
    %c0_i32_1 = arith.constant 0 : i32
    %c0_i32_2 = arith.constant 0 : i32
    return %c0_i32, %c0_i32_0, %c0_i32_1 : i32, i32, i32
  }
  func.func @transform_2(%arg0: i32) -> (i32, i32, i32) {
    %c0_i32 = arith.constant 0 : i32
    %c0_i32_0 = arith.constant 0 : i32
    %c0_i32_1 = arith.constant 0 : i32
    %c0_i32_2 = arith.constant 0 : i32
    return %c0_i32, %c0_i32_0, %c0_i32_1 : i32, i32, i32
  }
  func.func @transform_3(%arg0: i32) -> (i32, i32) {
    %c0_i32 = arith.constant 0 : i32
    %c0_i32_0 = arith.constant 0 : i32
    %c0_i32_1 = arith.constant 0 : i32
    return %c0_i32, %c0_i32_0 : i32, i32
  }
  func.func @transform_4(%arg0: i32) -> (i32, i32, i32) {
    %c0_i32 = arith.constant 0 : i32
    %c0_i32_0 = arith.constant 0 : i32
    %c0_i32_1 = arith.constant 0 : i32
    %c0_i32_2 = arith.constant 0 : i32
    return %c0_i32, %c0_i32_0, %c0_i32_1 : i32, i32, i32
  }
  func.func @transform_5(%arg0: i32) -> (i32, i32) {
    %c0_i32 = arith.constant 0 : i32
    %c0_i32_0 = arith.constant 0 : i32
    %c0_i32_1 = arith.constant 0 : i32
    return %c0_i32, %c0_i32_0 : i32, i32
  }
  func.func @transform_6(%arg0: i32) -> (i32, i32, i32) {
    %c0_i32 = arith.constant 0 : i32
    %c0_i32_0 = arith.constant 0 : i32
    %c0_i32_1 = arith.constant 0 : i32
    return %arg0, %c0_i32, %c0_i32_0 : i32, i32, i32
  }
}

module attributes {stable_mosaic.version = 11 : i64} {
  func.func @_res_block_kernel(%arg0: i32, %arg1: memref<1x64x256xbf16, #tpu.memory_space<vmem>>, %arg2: memref<9x64x64xbf16, #tpu.memory_space<vmem>>, %arg3: memref<9x256x256xbf16, #tpu.memory_space<vmem>>, %arg4: memref<1x256xf32, #tpu.memory_space<vmem>>, %arg5: memref<9x256x256xbf16, #tpu.memory_space<vmem>>, %arg6: memref<1x256xf32, #tpu.memory_space<vmem>>, %arg7: memref<1x64x256xbf16, #tpu.memory_space<vmem>>) attributes {dimension_semantics = [#tpu.dimension_semantics<parallel>], iteration_bounds = array<i64: 2>, scalar_prefetch = 0 : i64, scratch_operands = 0 : i64, tpu.core_type = #tpu.core_type<tc>, window_params = [{transform_indices = @transform_0, window_bounds = array<i64: 1, 64, 256>}, {pipeline_mode = #tpu.pipeline_mode<synchronous>, transform_indices = @transform_1, window_bounds = array<i64: 9, 64, 64>}, {pipeline_mode = #tpu.pipeline_mode<synchronous>, transform_indices = @transform_2, window_bounds = array<i64: 9, 256, 256>}, {pipeline_mode = #tpu.pipeline_mode<synchronous>, transform_indices = @transform_3, window_bounds = array<i64: 1, 256>}, {pipeline_mode = #tpu.pipeline_mode<synchronous>, transform_indices = @transform_4, window_bounds = array<i64: 9, 256, 256>}, {pipeline_mode = #tpu.pipeline_mode<synchronous>, transform_indices = @transform_5, window_bounds = array<i64: 1, 256>}, {transform_indices = @transform_6, window_bounds = array<i64: 1, 64, 256>}]} {
    %c0 = arith.constant 0 : index
    %c0_0 = arith.constant 0 : index
    %c0_1 = arith.constant 0 : index
    %0 = vector.load %arg1[%c0, %c0_0, %c0_1] : memref<1x64x256xbf16, #tpu.memory_space<vmem>>, vector<1x64x256xbf16>
    %1 = vector.shape_cast %0 : vector<1x64x256xbf16> to vector<64x256xbf16>
    %cst = arith.constant 0.000000e+00 : f32
    %2 = vector.broadcast %cst : f32 to vector<64x256xf32>
    %c0_2 = arith.constant 0 : index
    %c0_3 = arith.constant 0 : index
    %c0_4 = arith.constant 0 : index
    %3 = vector.load %arg2[%c0_2, %c0_3, %c0_4] : memref<9x64x64xbf16, #tpu.memory_space<vmem>>, vector<1x64x64xbf16>
    %4 = vector.shape_cast %3 : vector<1x64x64xbf16> to vector<64x64xbf16>
    %cst_5 = arith.constant dense<0.000000e+00> : vector<64x256xf32>
    %5 = tpu.matmul %4, %1, %cst_5 {dimension_numbers = #tpu.dot_dimension_numbers<[1], [0], [0], [1], [0, 0, 1, 1], [], []>} : vector<64x64xbf16>, vector<64x256xbf16>, vector<64x256xf32> -> vector<64x256xf32>
    %6 = arith.truncf %5 : vector<64x256xf32> to vector<64x256xbf16>
    %c0_6 = arith.constant 0 : index
    %c0_7 = arith.constant 0 : index
    %c0_8 = arith.constant 0 : index
    %7 = vector.load %arg3[%c0_6, %c0_7, %c0_8] : memref<9x256x256xbf16, #tpu.memory_space<vmem>>, vector<1x256x256xbf16>
    %8 = vector.shape_cast %7 : vector<1x256x256xbf16> to vector<256x256xbf16>
    %cst_9 = arith.constant dense<0.000000e+00> : vector<64x256xf32>
    %9 = tpu.matmul %6, %8, %cst_9 {dimension_numbers = #tpu.dot_dimension_numbers<[1], [0], [0], [1], [0, 0, 1, 1], [], []>} : vector<64x256xbf16>, vector<256x256xbf16>, vector<64x256xf32> -> vector<64x256xf32>
    %10 = arith.addf %2, %9 : vector<64x256xf32>
    %c1 = arith.constant 1 : index
    %c0_10 = arith.constant 0 : index
    %c0_11 = arith.constant 0 : index
    %11 = vector.load %arg2[%c1, %c0_10, %c0_11] : memref<9x64x64xbf16, #tpu.memory_space<vmem>>, vector<1x64x64xbf16>
    %12 = vector.shape_cast %11 : vector<1x64x64xbf16> to vector<64x64xbf16>
    %cst_12 = arith.constant dense<0.000000e+00> : vector<64x256xf32>
    %13 = tpu.matmul %12, %1, %cst_12 {dimension_numbers = #tpu.dot_dimension_numbers<[1], [0], [0], [1], [0, 0, 1, 1], [], []>} : vector<64x64xbf16>, vector<64x256xbf16>, vector<64x256xf32> -> vector<64x256xf32>
    %14 = arith.truncf %13 : vector<64x256xf32> to vector<64x256xbf16>
    %c1_13 = arith.constant 1 : index
    %c0_14 = arith.constant 0 : index
    %c0_15 = arith.constant 0 : index
    %15 = vector.load %arg3[%c1_13, %c0_14, %c0_15] : memref<9x256x256xbf16, #tpu.memory_space<vmem>>, vector<1x256x256xbf16>
    %16 = vector.shape_cast %15 : vector<1x256x256xbf16> to vector<256x256xbf16>
    %cst_16 = arith.constant dense<0.000000e+00> : vector<64x256xf32>
    %17 = tpu.matmul %14, %16, %cst_16 {dimension_numbers = #tpu.dot_dimension_numbers<[1], [0], [0], [1], [0, 0, 1, 1], [], []>} : vector<64x256xbf16>, vector<256x256xbf16>, vector<64x256xf32> -> vector<64x256xf32>
    %18 = arith.addf %10, %17 : vector<64x256xf32>
    %c2 = arith.constant 2 : index
    %c0_17 = arith.constant 0 : index
    %c0_18 = arith.constant 0 : index
    %19 = vector.load %arg2[%c2, %c0_17, %c0_18] : memref<9x64x64xbf16, #tpu.memory_space<vmem>>, vector<1x64x64xbf16>
    %20 = vector.shape_cast %19 : vector<1x64x64xbf16> to vector<64x64xbf16>
    %cst_19 = arith.constant dense<0.000000e+00> : vector<64x256xf32>
    %21 = tpu.matmul %20, %1, %cst_19 {dimension_numbers = #tpu.dot_dimension_numbers<[1], [0], [0], [1], [0, 0, 1, 1], [], []>} : vector<64x64xbf16>, vector<64x256xbf16>, vector<64x256xf32> -> vector<64x256xf32>
    %22 = arith.truncf %21 : vector<64x256xf32> to vector<64x256xbf16>
    %c2_20 = arith.constant 2 : index
    %c0_21 = arith.constant 0 : index
    %c0_22 = arith.constant 0 : index
    %23 = vector.load %arg3[%c2_20, %c0_21, %c0_22] : memref<9x256x256xbf16, #tpu.memory_space<vmem>>, vector<1x256x256xbf16>
    %24 = vector.shape_cast %23 : vector<1x256x256xbf16> to vector<256x256xbf16>
    %cst_23 = arith.constant dense<0.000000e+00> : vector<64x256xf32>
    %25 = tpu.matmul %22, %24, %cst_23 {dimension_numbers = #tpu.dot_dimension_numbers<[1], [0], [0], [1], [0, 0, 1, 1], [], []>} : vector<64x256xbf16>, vector<256x256xbf16>, vector<64x256xf32> -> vector<64x256xf32>
    %26 = arith.addf %18, %25 : vector<64x256xf32>
    %c3 = arith.constant 3 : index
    %c0_24 = arith.constant 0 : index
    %c0_25 = arith.constant 0 : index
    %27 = vector.load %arg2[%c3, %c0_24, %c0_25] : memref<9x64x64xbf16, #tpu.memory_space<vmem>>, vector<1x64x64xbf16>
    %28 = vector.shape_cast %27 : vector<1x64x64xbf16> to vector<64x64xbf16>
    %cst_26 = arith.constant dense<0.000000e+00> : vector<64x256xf32>
    %29 = tpu.matmul %28, %1, %cst_26 {dimension_numbers = #tpu.dot_dimension_numbers<[1], [0], [0], [1], [0, 0, 1, 1], [], []>} : vector<64x64xbf16>, vector<64x256xbf16>, vector<64x256xf32> -> vector<64x256xf32>
    %30 = arith.truncf %29 : vector<64x256xf32> to vector<64x256xbf16>
    %c3_27 = arith.constant 3 : index
    %c0_28 = arith.constant 0 : index
    %c0_29 = arith.constant 0 : index
    %31 = vector.load %arg3[%c3_27, %c0_28, %c0_29] : memref<9x256x256xbf16, #tpu.memory_space<vmem>>, vector<1x256x256xbf16>
    %32 = vector.shape_cast %31 : vector<1x256x256xbf16> to vector<256x256xbf16>
    %cst_30 = arith.constant dense<0.000000e+00> : vector<64x256xf32>
    %33 = tpu.matmul %30, %32, %cst_30 {dimension_numbers = #tpu.dot_dimension_numbers<[1], [0], [0], [1], [0, 0, 1, 1], [], []>} : vector<64x256xbf16>, vector<256x256xbf16>, vector<64x256xf32> -> vector<64x256xf32>
    %34 = arith.addf %26, %33 : vector<64x256xf32>
    %c4 = arith.constant 4 : index
    %c0_31 = arith.constant 0 : index
    %c0_32 = arith.constant 0 : index
    %35 = vector.load %arg2[%c4, %c0_31, %c0_32] : memref<9x64x64xbf16, #tpu.memory_space<vmem>>, vector<1x64x64xbf16>
    %36 = vector.shape_cast %35 : vector<1x64x64xbf16> to vector<64x64xbf16>
    %cst_33 = arith.constant dense<0.000000e+00> : vector<64x256xf32>
    %37 = tpu.matmul %36, %1, %cst_33 {dimension_numbers = #tpu.dot_dimension_numbers<[1], [0], [0], [1], [0, 0, 1, 1], [], []>} : vector<64x64xbf16>, vector<64x256xbf16>, vector<64x256xf32> -> vector<64x256xf32>
    %38 = arith.truncf %37 : vector<64x256xf32> to vector<64x256xbf16>
    %c4_34 = arith.constant 4 : index
    %c0_35 = arith.constant 0 : index
    %c0_36 = arith.constant 0 : index
    %39 = vector.load %arg3[%c4_34, %c0_35, %c0_36] : memref<9x256x256xbf16, #tpu.memory_space<vmem>>, vector<1x256x256xbf16>
    %40 = vector.shape_cast %39 : vector<1x256x256xbf16> to vector<256x256xbf16>
    %cst_37 = arith.constant dense<0.000000e+00> : vector<64x256xf32>
    %41 = tpu.matmul %38, %40, %cst_37 {dimension_numbers = #tpu.dot_dimension_numbers<[1], [0], [0], [1], [0, 0, 1, 1], [], []>} : vector<64x256xbf16>, vector<256x256xbf16>, vector<64x256xf32> -> vector<64x256xf32>
    %42 = arith.addf %34, %41 : vector<64x256xf32>
    %c5 = arith.constant 5 : index
    %c0_38 = arith.constant 0 : index
    %c0_39 = arith.constant 0 : index
    %43 = vector.load %arg2[%c5, %c0_38, %c0_39] : memref<9x64x64xbf16, #tpu.memory_space<vmem>>, vector<1x64x64xbf16>
    %44 = vector.shape_cast %43 : vector<1x64x64xbf16> to vector<64x64xbf16>
    %cst_40 = arith.constant dense<0.000000e+00> : vector<64x256xf32>
    %45 = tpu.matmul %44, %1, %cst_40 {dimension_numbers = #tpu.dot_dimension_numbers<[1], [0], [0], [1], [0, 0, 1, 1], [], []>} : vector<64x64xbf16>, vector<64x256xbf16>, vector<64x256xf32> -> vector<64x256xf32>
    %46 = arith.truncf %45 : vector<64x256xf32> to vector<64x256xbf16>
    %c5_41 = arith.constant 5 : index
    %c0_42 = arith.constant 0 : index
    %c0_43 = arith.constant 0 : index
    %47 = vector.load %arg3[%c5_41, %c0_42, %c0_43] : memref<9x256x256xbf16, #tpu.memory_space<vmem>>, vector<1x256x256xbf16>
    %48 = vector.shape_cast %47 : vector<1x256x256xbf16> to vector<256x256xbf16>
    %cst_44 = arith.constant dense<0.000000e+00> : vector<64x256xf32>
    %49 = tpu.matmul %46, %48, %cst_44 {dimension_numbers = #tpu.dot_dimension_numbers<[1], [0], [0], [1], [0, 0, 1, 1], [], []>} : vector<64x256xbf16>, vector<256x256xbf16>, vector<64x256xf32> -> vector<64x256xf32>
    %50 = arith.addf %42, %49 : vector<64x256xf32>
    %c6 = arith.constant 6 : index
    %c0_45 = arith.constant 0 : index
    %c0_46 = arith.constant 0 : index
    %51 = vector.load %arg2[%c6, %c0_45, %c0_46] : memref<9x64x64xbf16, #tpu.memory_space<vmem>>, vector<1x64x64xbf16>
    %52 = vector.shape_cast %51 : vector<1x64x64xbf16> to vector<64x64xbf16>
    %cst_47 = arith.constant dense<0.000000e+00> : vector<64x256xf32>
    %53 = tpu.matmul %52, %1, %cst_47 {dimension_numbers = #tpu.dot_dimension_numbers<[1], [0], [0], [1], [0, 0, 1, 1], [], []>} : vector<64x64xbf16>, vector<64x256xbf16>, vector<64x256xf32> -> vector<64x256xf32>
    %54 = arith.truncf %53 : vector<64x256xf32> to vector<64x256xbf16>
    %c6_48 = arith.constant 6 : index
    %c0_49 = arith.constant 0 : index
    %c0_50 = arith.constant 0 : index
    %55 = vector.load %arg3[%c6_48, %c0_49, %c0_50] : memref<9x256x256xbf16, #tpu.memory_space<vmem>>, vector<1x256x256xbf16>
    %56 = vector.shape_cast %55 : vector<1x256x256xbf16> to vector<256x256xbf16>
    %cst_51 = arith.constant dense<0.000000e+00> : vector<64x256xf32>
    %57 = tpu.matmul %54, %56, %cst_51 {dimension_numbers = #tpu.dot_dimension_numbers<[1], [0], [0], [1], [0, 0, 1, 1], [], []>} : vector<64x256xbf16>, vector<256x256xbf16>, vector<64x256xf32> -> vector<64x256xf32>
    %58 = arith.addf %50, %57 : vector<64x256xf32>
    %c7 = arith.constant 7 : index
    %c0_52 = arith.constant 0 : index
    %c0_53 = arith.constant 0 : index
    %59 = vector.load %arg2[%c7, %c0_52, %c0_53] : memref<9x64x64xbf16, #tpu.memory_space<vmem>>, vector<1x64x64xbf16>
    %60 = vector.shape_cast %59 : vector<1x64x64xbf16> to vector<64x64xbf16>
    %cst_54 = arith.constant dense<0.000000e+00> : vector<64x256xf32>
    %61 = tpu.matmul %60, %1, %cst_54 {dimension_numbers = #tpu.dot_dimension_numbers<[1], [0], [0], [1], [0, 0, 1, 1], [], []>} : vector<64x64xbf16>, vector<64x256xbf16>, vector<64x256xf32> -> vector<64x256xf32>
    %62 = arith.truncf %61 : vector<64x256xf32> to vector<64x256xbf16>
    %c7_55 = arith.constant 7 : index
    %c0_56 = arith.constant 0 : index
    %c0_57 = arith.constant 0 : index
    %63 = vector.load %arg3[%c7_55, %c0_56, %c0_57] : memref<9x256x256xbf16, #tpu.memory_space<vmem>>, vector<1x256x256xbf16>
    %64 = vector.shape_cast %63 : vector<1x256x256xbf16> to vector<256x256xbf16>
    %cst_58 = arith.constant dense<0.000000e+00> : vector<64x256xf32>
    %65 = tpu.matmul %62, %64, %cst_58 {dimension_numbers = #tpu.dot_dimension_numbers<[1], [0], [0], [1], [0, 0, 1, 1], [], []>} : vector<64x256xbf16>, vector<256x256xbf16>, vector<64x256xf32> -> vector<64x256xf32>
    %66 = arith.addf %58, %65 : vector<64x256xf32>
    %c8 = arith.constant 8 : index
    %c0_59 = arith.constant 0 : index
    %c0_60 = arith.constant 0 : index
    %67 = vector.load %arg2[%c8, %c0_59, %c0_60] : memref<9x64x64xbf16, #tpu.memory_space<vmem>>, vector<1x64x64xbf16>
    %68 = vector.shape_cast %67 : vector<1x64x64xbf16> to vector<64x64xbf16>
    %cst_61 = arith.constant dense<0.000000e+00> : vector<64x256xf32>
    %69 = tpu.matmul %68, %1, %cst_61 {dimension_numbers = #tpu.dot_dimension_numbers<[1], [0], [0], [1], [0, 0, 1, 1], [], []>} : vector<64x64xbf16>, vector<64x256xbf16>, vector<64x256xf32> -> vector<64x256xf32>
    %70 = arith.truncf %69 : vector<64x256xf32> to vector<64x256xbf16>
    %c8_62 = arith.constant 8 : index
    %c0_63 = arith.constant 0 : index
    %c0_64 = arith.constant 0 : index
    %71 = vector.load %arg3[%c8_62, %c0_63, %c0_64] : memref<9x256x256xbf16, #tpu.memory_space<vmem>>, vector<1x256x256xbf16>
    %72 = vector.shape_cast %71 : vector<1x256x256xbf16> to vector<256x256xbf16>
    %cst_65 = arith.constant dense<0.000000e+00> : vector<64x256xf32>
    %73 = tpu.matmul %70, %72, %cst_65 {dimension_numbers = #tpu.dot_dimension_numbers<[1], [0], [0], [1], [0, 0, 1, 1], [], []>} : vector<64x256xbf16>, vector<256x256xbf16>, vector<64x256xf32> -> vector<64x256xf32>
    %74 = arith.addf %66, %73 : vector<64x256xf32>
    %c0_66 = arith.constant 0 : index
    %c0_67 = arith.constant 0 : index
    %75 = vector.load %arg4[%c0_66, %c0_67] : memref<1x256xf32, #tpu.memory_space<vmem>>, vector<1x256xf32>
    %76 = vector.broadcast %75 : vector<1x256xf32> to vector<64x256xf32>
    %77 = arith.addf %74, %76 : vector<64x256xf32>
    %cst_68 = arith.constant 0.000000e+00 : f32
    %78 = vector.broadcast %cst_68 : f32 to vector<64x256xf32>
    %79 = arith.maximumf %77, %78 : vector<64x256xf32>
    %80 = arith.truncf %79 : vector<64x256xf32> to vector<64x256xbf16>
    %cst_69 = arith.constant 0.000000e+00 : f32
    %81 = vector.broadcast %cst_69 : f32 to vector<64x256xf32>
    %c0_70 = arith.constant 0 : index
    %c0_71 = arith.constant 0 : index
    %c0_72 = arith.constant 0 : index
    %82 = vector.load %arg2[%c0_70, %c0_71, %c0_72] : memref<9x64x64xbf16, #tpu.memory_space<vmem>>, vector<1x64x64xbf16>
    %83 = vector.shape_cast %82 : vector<1x64x64xbf16> to vector<64x64xbf16>
    %cst_73 = arith.constant dense<0.000000e+00> : vector<64x256xf32>
    %84 = tpu.matmul %83, %80, %cst_73 {dimension_numbers = #tpu.dot_dimension_numbers<[1], [0], [0], [1], [0, 0, 1, 1], [], []>} : vector<64x64xbf16>, vector<64x256xbf16>, vector<64x256xf32> -> vector<64x256xf32>
    %85 = arith.truncf %84 : vector<64x256xf32> to vector<64x256xbf16>
    %c0_74 = arith.constant 0 : index
    %c0_75 = arith.constant 0 : index
    %c0_76 = arith.constant 0 : index
    %86 = vector.load %arg5[%c0_74, %c0_75, %c0_76] : memref<9x256x256xbf16, #tpu.memory_space<vmem>>, vector<1x256x256xbf16>
    %87 = vector.shape_cast %86 : vector<1x256x256xbf16> to vector<256x256xbf16>
    %cst_77 = arith.constant dense<0.000000e+00> : vector<64x256xf32>
    %88 = tpu.matmul %85, %87, %cst_77 {dimension_numbers = #tpu.dot_dimension_numbers<[1], [0], [0], [1], [0, 0, 1, 1], [], []>} : vector<64x256xbf16>, vector<256x256xbf16>, vector<64x256xf32> -> vector<64x256xf32>
    %89 = arith.addf %81, %88 : vector<64x256xf32>
    %c1_78 = arith.constant 1 : index
    %c0_79 = arith.constant 0 : index
    %c0_80 = arith.constant 0 : index
    %90 = vector.load %arg2[%c1_78, %c0_79, %c0_80] : memref<9x64x64xbf16, #tpu.memory_space<vmem>>, vector<1x64x64xbf16>
    %91 = vector.shape_cast %90 : vector<1x64x64xbf16> to vector<64x64xbf16>
    %cst_81 = arith.constant dense<0.000000e+00> : vector<64x256xf32>
    %92 = tpu.matmul %91, %80, %cst_81 {dimension_numbers = #tpu.dot_dimension_numbers<[1], [0], [0], [1], [0, 0, 1, 1], [], []>} : vector<64x64xbf16>, vector<64x256xbf16>, vector<64x256xf32> -> vector<64x256xf32>
    %93 = arith.truncf %92 : vector<64x256xf32> to vector<64x256xbf16>
    %c1_82 = arith.constant 1 : index
    %c0_83 = arith.constant 0 : index
    %c0_84 = arith.constant 0 : index
    %94 = vector.load %arg5[%c1_82, %c0_83, %c0_84] : memref<9x256x256xbf16, #tpu.memory_space<vmem>>, vector<1x256x256xbf16>
    %95 = vector.shape_cast %94 : vector<1x256x256xbf16> to vector<256x256xbf16>
    %cst_85 = arith.constant dense<0.000000e+00> : vector<64x256xf32>
    %96 = tpu.matmul %93, %95, %cst_85 {dimension_numbers = #tpu.dot_dimension_numbers<[1], [0], [0], [1], [0, 0, 1, 1], [], []>} : vector<64x256xbf16>, vector<256x256xbf16>, vector<64x256xf32> -> vector<64x256xf32>
    %97 = arith.addf %89, %96 : vector<64x256xf32>
    %c2_86 = arith.constant 2 : index
    %c0_87 = arith.constant 0 : index
    %c0_88 = arith.constant 0 : index
    %98 = vector.load %arg2[%c2_86, %c0_87, %c0_88] : memref<9x64x64xbf16, #tpu.memory_space<vmem>>, vector<1x64x64xbf16>
    %99 = vector.shape_cast %98 : vector<1x64x64xbf16> to vector<64x64xbf16>
    %cst_89 = arith.constant dense<0.000000e+00> : vector<64x256xf32>
    %100 = tpu.matmul %99, %80, %cst_89 {dimension_numbers = #tpu.dot_dimension_numbers<[1], [0], [0], [1], [0, 0, 1, 1], [], []>} : vector<64x64xbf16>, vector<64x256xbf16>, vector<64x256xf32> -> vector<64x256xf32>
    %101 = arith.truncf %100 : vector<64x256xf32> to vector<64x256xbf16>
    %c2_90 = arith.constant 2 : index
    %c0_91 = arith.constant 0 : index
    %c0_92 = arith.constant 0 : index
    %102 = vector.load %arg5[%c2_90, %c0_91, %c0_92] : memref<9x256x256xbf16, #tpu.memory_space<vmem>>, vector<1x256x256xbf16>
    %103 = vector.shape_cast %102 : vector<1x256x256xbf16> to vector<256x256xbf16>
    %cst_93 = arith.constant dense<0.000000e+00> : vector<64x256xf32>
    %104 = tpu.matmul %101, %103, %cst_93 {dimension_numbers = #tpu.dot_dimension_numbers<[1], [0], [0], [1], [0, 0, 1, 1], [], []>} : vector<64x256xbf16>, vector<256x256xbf16>, vector<64x256xf32> -> vector<64x256xf32>
    %105 = arith.addf %97, %104 : vector<64x256xf32>
    %c3_94 = arith.constant 3 : index
    %c0_95 = arith.constant 0 : index
    %c0_96 = arith.constant 0 : index
    %106 = vector.load %arg2[%c3_94, %c0_95, %c0_96] : memref<9x64x64xbf16, #tpu.memory_space<vmem>>, vector<1x64x64xbf16>
    %107 = vector.shape_cast %106 : vector<1x64x64xbf16> to vector<64x64xbf16>
    %cst_97 = arith.constant dense<0.000000e+00> : vector<64x256xf32>
    %108 = tpu.matmul %107, %80, %cst_97 {dimension_numbers = #tpu.dot_dimension_numbers<[1], [0], [0], [1], [0, 0, 1, 1], [], []>} : vector<64x64xbf16>, vector<64x256xbf16>, vector<64x256xf32> -> vector<64x256xf32>
    %109 = arith.truncf %108 : vector<64x256xf32> to vector<64x256xbf16>
    %c3_98 = arith.constant 3 : index
    %c0_99 = arith.constant 0 : index
    %c0_100 = arith.constant 0 : index
    %110 = vector.load %arg5[%c3_98, %c0_99, %c0_100] : memref<9x256x256xbf16, #tpu.memory_space<vmem>>, vector<1x256x256xbf16>
    %111 = vector.shape_cast %110 : vector<1x256x256xbf16> to vector<256x256xbf16>
    %cst_101 = arith.constant dense<0.000000e+00> : vector<64x256xf32>
    %112 = tpu.matmul %109, %111, %cst_101 {dimension_numbers = #tpu.dot_dimension_numbers<[1], [0], [0], [1], [0, 0, 1, 1], [], []>} : vector<64x256xbf16>, vector<256x256xbf16>, vector<64x256xf32> -> vector<64x256xf32>
    %113 = arith.addf %105, %112 : vector<64x256xf32>
    %c4_102 = arith.constant 4 : index
    %c0_103 = arith.constant 0 : index
    %c0_104 = arith.constant 0 : index
    %114 = vector.load %arg2[%c4_102, %c0_103, %c0_104] : memref<9x64x64xbf16, #tpu.memory_space<vmem>>, vector<1x64x64xbf16>
    %115 = vector.shape_cast %114 : vector<1x64x64xbf16> to vector<64x64xbf16>
    %cst_105 = arith.constant dense<0.000000e+00> : vector<64x256xf32>
    %116 = tpu.matmul %115, %80, %cst_105 {dimension_numbers = #tpu.dot_dimension_numbers<[1], [0], [0], [1], [0, 0, 1, 1], [], []>} : vector<64x64xbf16>, vector<64x256xbf16>, vector<64x256xf32> -> vector<64x256xf32>
    %117 = arith.truncf %116 : vector<64x256xf32> to vector<64x256xbf16>
    %c4_106 = arith.constant 4 : index
    %c0_107 = arith.constant 0 : index
    %c0_108 = arith.constant 0 : index
    %118 = vector.load %arg5[%c4_106, %c0_107, %c0_108] : memref<9x256x256xbf16, #tpu.memory_space<vmem>>, vector<1x256x256xbf16>
    %119 = vector.shape_cast %118 : vector<1x256x256xbf16> to vector<256x256xbf16>
    %cst_109 = arith.constant dense<0.000000e+00> : vector<64x256xf32>
    %120 = tpu.matmul %117, %119, %cst_109 {dimension_numbers = #tpu.dot_dimension_numbers<[1], [0], [0], [1], [0, 0, 1, 1], [], []>} : vector<64x256xbf16>, vector<256x256xbf16>, vector<64x256xf32> -> vector<64x256xf32>
    %121 = arith.addf %113, %120 : vector<64x256xf32>
    %c5_110 = arith.constant 5 : index
    %c0_111 = arith.constant 0 : index
    %c0_112 = arith.constant 0 : index
    %122 = vector.load %arg2[%c5_110, %c0_111, %c0_112] : memref<9x64x64xbf16, #tpu.memory_space<vmem>>, vector<1x64x64xbf16>
    %123 = vector.shape_cast %122 : vector<1x64x64xbf16> to vector<64x64xbf16>
    %cst_113 = arith.constant dense<0.000000e+00> : vector<64x256xf32>
    %124 = tpu.matmul %123, %80, %cst_113 {dimension_numbers = #tpu.dot_dimension_numbers<[1], [0], [0], [1], [0, 0, 1, 1], [], []>} : vector<64x64xbf16>, vector<64x256xbf16>, vector<64x256xf32> -> vector<64x256xf32>
    %125 = arith.truncf %124 : vector<64x256xf32> to vector<64x256xbf16>
    %c5_114 = arith.constant 5 : index
    %c0_115 = arith.constant 0 : index
    %c0_116 = arith.constant 0 : index
    %126 = vector.load %arg5[%c5_114, %c0_115, %c0_116] : memref<9x256x256xbf16, #tpu.memory_space<vmem>>, vector<1x256x256xbf16>
    %127 = vector.shape_cast %126 : vector<1x256x256xbf16> to vector<256x256xbf16>
    %cst_117 = arith.constant dense<0.000000e+00> : vector<64x256xf32>
    %128 = tpu.matmul %125, %127, %cst_117 {dimension_numbers = #tpu.dot_dimension_numbers<[1], [0], [0], [1], [0, 0, 1, 1], [], []>} : vector<64x256xbf16>, vector<256x256xbf16>, vector<64x256xf32> -> vector<64x256xf32>
    %129 = arith.addf %121, %128 : vector<64x256xf32>
    %c6_118 = arith.constant 6 : index
    %c0_119 = arith.constant 0 : index
    %c0_120 = arith.constant 0 : index
    %130 = vector.load %arg2[%c6_118, %c0_119, %c0_120] : memref<9x64x64xbf16, #tpu.memory_space<vmem>>, vector<1x64x64xbf16>
    %131 = vector.shape_cast %130 : vector<1x64x64xbf16> to vector<64x64xbf16>
    %cst_121 = arith.constant dense<0.000000e+00> : vector<64x256xf32>
    %132 = tpu.matmul %131, %80, %cst_121 {dimension_numbers = #tpu.dot_dimension_numbers<[1], [0], [0], [1], [0, 0, 1, 1], [], []>} : vector<64x64xbf16>, vector<64x256xbf16>, vector<64x256xf32> -> vector<64x256xf32>
    %133 = arith.truncf %132 : vector<64x256xf32> to vector<64x256xbf16>
    %c6_122 = arith.constant 6 : index
    %c0_123 = arith.constant 0 : index
    %c0_124 = arith.constant 0 : index
    %134 = vector.load %arg5[%c6_122, %c0_123, %c0_124] : memref<9x256x256xbf16, #tpu.memory_space<vmem>>, vector<1x256x256xbf16>
    %135 = vector.shape_cast %134 : vector<1x256x256xbf16> to vector<256x256xbf16>
    %cst_125 = arith.constant dense<0.000000e+00> : vector<64x256xf32>
    %136 = tpu.matmul %133, %135, %cst_125 {dimension_numbers = #tpu.dot_dimension_numbers<[1], [0], [0], [1], [0, 0, 1, 1], [], []>} : vector<64x256xbf16>, vector<256x256xbf16>, vector<64x256xf32> -> vector<64x256xf32>
    %137 = arith.addf %129, %136 : vector<64x256xf32>
    %c7_126 = arith.constant 7 : index
    %c0_127 = arith.constant 0 : index
    %c0_128 = arith.constant 0 : index
    %138 = vector.load %arg2[%c7_126, %c0_127, %c0_128] : memref<9x64x64xbf16, #tpu.memory_space<vmem>>, vector<1x64x64xbf16>
    %139 = vector.shape_cast %138 : vector<1x64x64xbf16> to vector<64x64xbf16>
    %cst_129 = arith.constant dense<0.000000e+00> : vector<64x256xf32>
    %140 = tpu.matmul %139, %80, %cst_129 {dimension_numbers = #tpu.dot_dimension_numbers<[1], [0], [0], [1], [0, 0, 1, 1], [], []>} : vector<64x64xbf16>, vector<64x256xbf16>, vector<64x256xf32> -> vector<64x256xf32>
    %141 = arith.truncf %140 : vector<64x256xf32> to vector<64x256xbf16>
    %c7_130 = arith.constant 7 : index
    %c0_131 = arith.constant 0 : index
    %c0_132 = arith.constant 0 : index
    %142 = vector.load %arg5[%c7_130, %c0_131, %c0_132] : memref<9x256x256xbf16, #tpu.memory_space<vmem>>, vector<1x256x256xbf16>
    %143 = vector.shape_cast %142 : vector<1x256x256xbf16> to vector<256x256xbf16>
    %cst_133 = arith.constant dense<0.000000e+00> : vector<64x256xf32>
    %144 = tpu.matmul %141, %143, %cst_133 {dimension_numbers = #tpu.dot_dimension_numbers<[1], [0], [0], [1], [0, 0, 1, 1], [], []>} : vector<64x256xbf16>, vector<256x256xbf16>, vector<64x256xf32> -> vector<64x256xf32>
    %145 = arith.addf %137, %144 : vector<64x256xf32>
    %c8_134 = arith.constant 8 : index
    %c0_135 = arith.constant 0 : index
    %c0_136 = arith.constant 0 : index
    %146 = vector.load %arg2[%c8_134, %c0_135, %c0_136] : memref<9x64x64xbf16, #tpu.memory_space<vmem>>, vector<1x64x64xbf16>
    %147 = vector.shape_cast %146 : vector<1x64x64xbf16> to vector<64x64xbf16>
    %cst_137 = arith.constant dense<0.000000e+00> : vector<64x256xf32>
    %148 = tpu.matmul %147, %80, %cst_137 {dimension_numbers = #tpu.dot_dimension_numbers<[1], [0], [0], [1], [0, 0, 1, 1], [], []>} : vector<64x64xbf16>, vector<64x256xbf16>, vector<64x256xf32> -> vector<64x256xf32>
    %149 = arith.truncf %148 : vector<64x256xf32> to vector<64x256xbf16>
    %c8_138 = arith.constant 8 : index
    %c0_139 = arith.constant 0 : index
    %c0_140 = arith.constant 0 : index
    %150 = vector.load %arg5[%c8_138, %c0_139, %c0_140] : memref<9x256x256xbf16, #tpu.memory_space<vmem>>, vector<1x256x256xbf16>
    %151 = vector.shape_cast %150 : vector<1x256x256xbf16> to vector<256x256xbf16>
    %cst_141 = arith.constant dense<0.000000e+00> : vector<64x256xf32>
    %152 = tpu.matmul %149, %151, %cst_141 {dimension_numbers = #tpu.dot_dimension_numbers<[1], [0], [0], [1], [0, 0, 1, 1], [], []>} : vector<64x256xbf16>, vector<256x256xbf16>, vector<64x256xf32> -> vector<64x256xf32>
    %153 = arith.addf %145, %152 : vector<64x256xf32>
    %c0_142 = arith.constant 0 : index
    %c0_143 = arith.constant 0 : index
    %154 = vector.load %arg6[%c0_142, %c0_143] : memref<1x256xf32, #tpu.memory_space<vmem>>, vector<1x256xf32>
    %155 = vector.broadcast %154 : vector<1x256xf32> to vector<64x256xf32>
    %156 = arith.addf %153, %155 : vector<64x256xf32>
    %157 = arith.extf %1 : vector<64x256xbf16> to vector<64x256xf32>
    %158 = arith.addf %156, %157 : vector<64x256xf32>
    %cst_144 = arith.constant 0.000000e+00 : f32
    %159 = vector.broadcast %cst_144 : f32 to vector<64x256xf32>
    %160 = arith.maximumf %158, %159 : vector<64x256xf32>
    %161 = arith.truncf %160 : vector<64x256xf32> to vector<64x256xbf16>
    %c0_145 = arith.constant 0 : index
    %c0_146 = arith.constant 0 : index
    %c0_147 = arith.constant 0 : index
    %162 = vector.load %arg7[%c0_145, %c0_146, %c0_147] : memref<1x64x256xbf16, #tpu.memory_space<vmem>>, vector<1x64x256xbf16>
    %163 = vector.shape_cast %162 : vector<1x64x256xbf16> to vector<64x256xbf16>
    %164 = vector.shape_cast %161 : vector<64x256xbf16> to vector<1x64x256xbf16>
    tpu.vector_store %arg7[%c0_145, %c0_146, %c0_147], %164 {strides = array<i32>} : memref<1x64x256xbf16, #tpu.memory_space<vmem>>, vector<1x64x256xbf16>,
    return
  }
  func.func @transform_0(%arg0: i32) -> (i32, i32, i32) {
    %c0_i32 = arith.constant 0 : i32
    %c0_i32_0 = arith.constant 0 : i32
    %c0_i32_1 = arith.constant 0 : i32
    return %arg0, %c0_i32, %c0_i32_0 : i32, i32, i32
  }
  func.func @transform_1(%arg0: i32) -> (i32, i32, i32) {
    %c0_i32 = arith.constant 0 : i32
    %c0_i32_0 = arith.constant 0 : i32
    %c0_i32_1 = arith.constant 0 : i32
    %c0_i32_2 = arith.constant 0 : i32
    return %c0_i32, %c0_i32_0, %c0_i32_1 : i32, i32, i32
  }
  func.func @transform_2(%arg0: i32) -> (i32, i32, i32) {
    %c0_i32 = arith.constant 0 : i32
    %c0_i32_0 = arith.constant 0 : i32
    %c0_i32_1 = arith.constant 0 : i32
    %c0_i32_2 = arith.constant 0 : i32
    return %c0_i32, %c0_i32_0, %c0_i32_1 : i32, i32, i32
  }
  func.func @transform_3(%arg0: i32) -> (i32, i32) {
    %c0_i32 = arith.constant 0 : i32
    %c0_i32_0 = arith.constant 0 : i32
    %c0_i32_1 = arith.constant 0 : i32
    return %c0_i32, %c0_i32_0 : i32, i32
  }
  func.func @transform_4(%arg0: i32) -> (i32, i32, i32) {
    %c0_i32 = arith.constant 0 : i32
    %c0_i32_0 = arith.constant 0 : i32
    %c0_i32_1 = arith.constant 0 : i32
    %c0_i32_2 = arith.constant 0 : i32
    return %c0_i32, %c0_i32_0, %c0_i32_1 : i32, i32, i32
  }
  func.func @transform_5(%arg0: i32) -> (i32, i32) {
    %c0_i32 = arith.constant 0 : i32
    %c0_i32_0 = arith.constant 0 : i32
    %c0_i32_1 = arith.constant 0 : i32
    return %c0_i32, %c0_i32_0 : i32, i32
  }
  func.func @transform_6(%arg0: i32) -> (i32, i32, i32) {
    %c0_i32 = arith.constant 0 : i32
    %c0_i32_0 = arith.constant 0 : i32
    %c0_i32_1 = arith.constant 0 : i32
    return %arg0, %c0_i32, %c0_i32_0 : i32, i32, i32
  }
}

module attributes {stable_mosaic.version = 11 : i64} {
  func.func @_heads_kernel(%arg0: i32, %arg1: memref<1x64x256xbf16, #tpu.memory_space<vmem>>, %arg2: memref<256x128xbf16, #tpu.memory_space<vmem>>, %arg3: memref<1x128xf32, #tpu.memory_space<vmem>>, %arg4: memref<1x64x128xf32, #tpu.memory_space<vmem>>) attributes {dimension_semantics = [#tpu.dimension_semantics<parallel>], iteration_bounds = array<i64: 2>, scalar_prefetch = 0 : i64, scratch_operands = 0 : i64, tpu.core_type = #tpu.core_type<tc>, window_params = [{transform_indices = @transform_0, window_bounds = array<i64: 1, 64, 256>}, {pipeline_mode = #tpu.pipeline_mode<synchronous>, transform_indices = @transform_1, window_bounds = array<i64: 256, 128>}, {pipeline_mode = #tpu.pipeline_mode<synchronous>, transform_indices = @transform_2, window_bounds = array<i64: 1, 128>}, {transform_indices = @transform_3, window_bounds = array<i64: 1, 64, 128>}]} {
    %c0 = arith.constant 0 : index
    %c0_0 = arith.constant 0 : index
    %c0_1 = arith.constant 0 : index
    %0 = vector.load %arg1[%c0, %c0_0, %c0_1] : memref<1x64x256xbf16, #tpu.memory_space<vmem>>, vector<1x64x256xbf16>
    %1 = vector.shape_cast %0 : vector<1x64x256xbf16> to vector<64x256xbf16>
    %c0_2 = arith.constant 0 : index
    %c0_3 = arith.constant 0 : index
    %2 = vector.load %arg2[%c0_2, %c0_3] : memref<256x128xbf16, #tpu.memory_space<vmem>>, vector<256x128xbf16>
    %cst = arith.constant dense<0.000000e+00> : vector<64x128xf32>
    %3 = tpu.matmul %1, %2, %cst {dimension_numbers = #tpu.dot_dimension_numbers<[1], [0], [0], [1], [0, 0, 1, 1], [], []>} : vector<64x256xbf16>, vector<256x128xbf16>, vector<64x128xf32> -> vector<64x128xf32>
    %c0_4 = arith.constant 0 : index
    %c0_5 = arith.constant 0 : index
    %4 = vector.load %arg3[%c0_4, %c0_5] : memref<1x128xf32, #tpu.memory_space<vmem>>, vector<1x128xf32>
    %5 = vector.broadcast %4 : vector<1x128xf32> to vector<64x128xf32>
    %6 = arith.addf %3, %5 : vector<64x128xf32>
    %7 = tpu.iota {dimensions = array<i32: 1>} : vector<64x128xi32>
    %c2_i32 = arith.constant 2 : i32
    %8 = vector.broadcast %c2_i32 : i32 to vector<64x128xi32>
    %9 = arith.cmpi slt, %7, %8 : vector<64x128xi32>
    %cst_6 = arith.constant -1.000000e+30 : f32
    %10 = vector.broadcast %cst_6 : f32 to vector<64x128xf32>
    %11 = arith.select %9, %6, %10 : vector<64x128xi1>, vector<64x128xf32>
    %cst_7 = arith.constant dense<0xFF800000> : vector<64xf32>
    %12 = vector.multi_reduction <maximumf>, %11, %cst_7 [1] : vector<64x128xf32> to vector<64xf32>
    %13 = vector.shape_cast %12 : vector<64xf32> to vector<64x1xf32>
    %cst_8 = arith.constant dense<0xFF800000> : vector<1xf32>
    %14 = vector.multi_reduction <maximumf>, %13, %cst_8 [0] : vector<64x1xf32> to vector<1xf32>
    %15 = vector.shape_cast %14 : vector<1xf32> to vector<1x1xf32>
    %16 = vector.broadcast %15 : vector<1x1xf32> to vector<64x128xf32>
    %17 = arith.subf %11, %16 : vector<64x128xf32>
    %18 = math.exp %17 : vector<64x128xf32>
    %cst_9 = arith.constant dense<0.000000e+00> : vector<64xf32>
    %19 = vector.multi_reduction <add>, %18, %cst_9 [1] : vector<64x128xf32> to vector<64xf32>
    %20 = vector.shape_cast %19 : vector<64xf32> to vector<64x1xf32>
    %cst_10 = arith.constant dense<0.000000e+00> : vector<1xf32>
    %21 = vector.multi_reduction <add>, %20, %cst_10 [0] : vector<64x1xf32> to vector<1xf32>
    %22 = vector.shape_cast %21 : vector<1xf32> to vector<1x1xf32>
    %23 = vector.broadcast %22 : vector<1x1xf32> to vector<64x128xf32>
    %24 = arith.divf %18, %23 : vector<64x128xf32>
    %25 = math.tanh %6 : vector<64x128xf32>
    %26 = arith.select %9, %24, %25 : vector<64x128xi1>, vector<64x128xf32>
    %c0_11 = arith.constant 0 : index
    %c0_12 = arith.constant 0 : index
    %c0_13 = arith.constant 0 : index
    %27 = vector.load %arg4[%c0_11, %c0_12, %c0_13] : memref<1x64x128xf32, #tpu.memory_space<vmem>>, vector<1x64x128xf32>
    %28 = vector.shape_cast %27 : vector<1x64x128xf32> to vector<64x128xf32>
    %29 = vector.shape_cast %26 : vector<64x128xf32> to vector<1x64x128xf32>
    tpu.vector_store %arg4[%c0_11, %c0_12, %c0_13], %29 {strides = array<i32>} : memref<1x64x128xf32, #tpu.memory_space<vmem>>, vector<1x64x128xf32>,
    return
  }
  func.func @transform_0(%arg0: i32) -> (i32, i32, i32) {
    %c0_i32 = arith.constant 0 : i32
    %c0_i32_0 = arith.constant 0 : i32
    %c0_i32_1 = arith.constant 0 : i32
    return %arg0, %c0_i32, %c0_i32_0 : i32, i32, i32
  }
  func.func @transform_1(%arg0: i32) -> (i32, i32) {
    %c0_i32 = arith.constant 0 : i32
    %c0_i32_0 = arith.constant 0 : i32
    %c0_i32_1 = arith.constant 0 : i32
    return %c0_i32, %c0_i32_0 : i32, i32
  }
  func.func @transform_2(%arg0: i32) -> (i32, i32) {
    %c0_i32 = arith.constant 0 : i32
    %c0_i32_0 = arith.constant 0 : i32
    %c0_i32_1 = arith.constant 0 : i32
    return %c0_i32, %c0_i32_0 : i32, i32
  }
  func.func @transform_3(%arg0: i32) -> (i32, i32, i32) {
    %c0_i32 = arith.constant 0 : i32
    %c0_i32_0 = arith.constant 0 : i32
    %c0_i32_1 = arith.constant 0 : i32
    return %arg0, %c0_i32, %c0_i32_0 : i32, i32, i32
  }
}

</mosaic_0001>

<bundles_post_ra>
// kernel: alphazero_forward.9
= control target key start
LH: loop header
LB: loop body
LE: loop exit
PB: predicated region body
PF: predicated region fallthrough
CT: control target
= control target key end

     0   :  { %s793_s12 = smov 0   ;;  %s949_s0 = inlined_call_operand.vmem [shape: bf16[2,64,256], index: 0, kind: input, shape index: {}]   ;;  %s950_s1 = inlined_call_operand.vmem [shape: bf16[256,128], index: 1, kind: input, shape index: {}]   ;;  %s951_s2 = inlined_call_operand.vmem [shape: f32[1,128], index: 2, kind: input, shape index: {}]   ;;  %s952_s3 = inlined_call_operand.vmem [shape: f32[2,64,128], index: 3, kind: output, shape index: {}]  }
   0x1 LB: > { %s601_s13 = sadd.s32 4294967295, %s771_s12   ;;  %p605_p0 = scmp.ge.s32.totalorder %s771_s12, 1  ;;  %s771_s12 = sphi %s793_s12, %s13_s12  }
   0x2   : > { %p137_p1 = scmp.lt.s32.totalorder %s771_s12, 3 }
   0x4   : > { %p138_p2 = pnand %p605_p0, %p137_p1 }
   0x5   : > { %v703_v0 = vld [vmem:[%s950_s1 + $0x40] sm:$0xff] (!%p138_p2)   ;;  %v705_v2 = vld [vmem:[%s950_s1 + $0x48] sm:$0xff] (!%p138_p2)   ;;  %p161_p3 = scmp.lt.s32.totalorder (!%p138_p2), %s601_s13, 1  ;;  %v707_v4 = vld [vmem:[%s950_s1 + $0x50] sm:$0xff] (!%p138_p2)   ;;  %v420_v24 = vlaneseq (!%p138_p2) }
   0x6   : > { %141 = sbr.rel (%p138_p2) target bundleno = 637 (0x27d), region = 32  ;;  %v704_v1 = vld [vmem:[%s950_s1] sm:$0xff] (!%p138_p2)   ;;  %639 = vmatprep.subr.bf16.mxu0 (!%p138_p2), %v703_v0  ;;  %679 = vmatprep.subr.bf16.mxu1 (!%p138_p2), %v703_v0  ;;  %v706_v3 = vld [vmem:[%s950_s1 + $0x8] sm:$0xff] (!%p138_p2)   ;;  %v708_v5 = vld [vmem:[%s950_s1 + $0x10] sm:$0xff] (!%p138_p2)  }
   0x7   : > { %640 = vmatpush3.bf16.msra.mxu0 (!%p138_p2), %v704_v1  ;;  %687 = vmatpush3.bf16.msra.mxu1 (!%p138_p2), %v704_v1  ;;  %v709_v6 = vld [vmem:[%s950_s1 + $0x58] sm:$0xff] (!%p138_p2)   ;;  %v711_v8 = vld [vmem:[%s950_s1 + $0x60] sm:$0xff] (!%p138_p2)   ;;  %v713_v10 = vld [vmem:[%s950_s1 + $0x68] sm:$0xff] (!%p138_p2)   ;;  %v867_v25 = vand.u32 (!%p138_p2), 127, %v420_v24 }
   0x8   : > { %641 = vmatprep.subr.bf16.mxu0 (!%p138_p2), %v705_v2  ;;  %680 = vmatprep.subr.bf16.mxu1 (!%p138_p2), %v705_v2  ;;  %v710_v7 = vld [vmem:[%s950_s1 + $0x18] sm:$0xff] (!%p138_p2)   ;;  %v712_v9 = vld [vmem:[%s950_s1 + $0x20] sm:$0xff] (!%p138_p2)   ;;  %v714_v13 = vld [vmem:[%s950_s1 + $0x28] sm:$0xff] (!%p138_p2)  }
   0x9   : > { %v715_v14 = vld [vmem:[%s950_s1 + $0x70] sm:$0xff] (!%p138_p2)   ;;  %v717_v16 = vld [vmem:[%s950_s1 + $0x78] sm:$0xff] (!%p138_p2)   ;;  %v610_v30 = vld [vmem:[%s951_s2] ss:$0 sm:$0xff] (!%p138_p2)  ;;  %vm422_vm0 = vcmp.lt.s32.totalorder (!%p138_p2), %v867_v25, 2 }
   0xa   : > { %v716_v15 = vld [vmem:[%s950_s1 + $0x30] sm:$0xff] (!%p138_p2)   ;;  %v718_v17 = vld [vmem:[%s950_s1 + $0x38] sm:$0xff] (!%p138_p2)  }
   0xb   : > { %642 = vmatpush3.bf16.msra.mxu0 (!%p138_p2), %v706_v3  ;;  %688 = vmatpush3.bf16.msra.mxu1 (!%p138_p2), %v706_v3 }
   0xc   : > { %643 = vmatprep.subr.bf16.mxu0 (!%p138_p2), %v707_v4  ;;  %681 = vmatprep.subr.bf16.mxu1 (!%p138_p2), %v707_v4 }
   0xd   : > { %s954_s13 = smov (!%p161_p3, %s601_s13), 1 }
   0xe   : > { %s637_s30 = sshll.u32 %s954_s13, 6 }
   0xf   : > { %644 = vmatpush3.bf16.msra.mxu0 %v708_v5  ;;  %689 = vmatpush3.bf16.msra.mxu1 %v708_v5  ;;  %s836_s8 = scalar_lea.vmem %s949_s0, %s637_s30  ;;  %s170_s29 = scalar_lea.vmem %s952_s3, %s637_s30 }
  0x10   : > { %645 = vmatprep.subr.bf16.mxu0 %v709_v6  ;;  %682 = vmatprep.subr.bf16.mxu1 %v709_v6  ;;  %v721_v11 = vld [vmem:[%s836_s8 + $0x4] ss:$8 sps:$4 sm:$0xff]   ;;  %v719_v18 = vld [vmem:[%s836_s8] ss:$8 sps:$4 sm:$0xff]   ;;  %v725_v20 = vld [vmem:[%s836_s8 + $0x14] ss:$8 sps:$4 sm:$0xff]  }
  0x11   : > { %v724_v12 = vld [vmem:[%s836_s8 + $0x24] ss:$8 sps:$4 sm:$0xff]   ;;  %387 = vmatprep.mubr.bf16.mxu0 %v721_v11  ;;  %v722_v19 = vld [vmem:[%s836_s8 + $0x20] ss:$8 sps:$4 sm:$0xff]   ;;  %v728_v21 = vld [vmem:[%s836_s8 + $0x34] ss:$8 sps:$4 sm:$0xff]  }
  0x12   : > { %403 = vmatprep.mubr.bf16.mxu1 %v724_v12  ;;  %v727_v22 = vld [vmem:[%s836_s8 + $0x10] ss:$8 sps:$4 sm:$0xff]  }
  0x13   : > { %646 = vmatpush3.bf16.msra.mxu0 %v710_v7  ;;  %690 = vmatpush3.bf16.msra.mxu1 %v710_v7  ;;  %v730_v23 = vld [vmem:[%s836_s8 + $0x30] ss:$8 sps:$4 sm:$0xff]  }
  0x14   : > { %647 = vmatprep.subr.bf16.mxu0 %v711_v8  ;;  %683 = vmatprep.subr.bf16.mxu1 %v711_v8 }
  0x17   : > { %648 = vmatpush3.bf16.msra.mxu0 %v712_v9  ;;  %691 = vmatpush3.bf16.msra.mxu1 %v712_v9 }
  0x18   : > { %649 = vmatprep.subr.bf16.mxu0 %v713_v10  ;;  %684 = vmatprep.subr.bf16.mxu1 %v713_v10 }
  0x1b   : > { %650 = vmatpush3.bf16.msra.mxu0 %v714_v13  ;;  %692 = vmatpush3.bf16.msra.mxu1 %v714_v13 }
  0x1c   : > { %651 = vmatprep.subr.bf16.mxu0 %v715_v14  ;;  %685 = vmatprep.subr.bf16.mxu1 %v715_v14 }
  0x1f   : > { %652 = vmatpush3.bf16.msra.mxu0 %v716_v15  ;;  %693 = vmatpush3.bf16.msra.mxu1 %v716_v15 }
  0x20   : > { %653 = vmatprep.subr.bf16.mxu0 %v717_v16  ;;  %686 = vmatprep.subr.bf16.mxu1 %v717_v16 }
  0x23   : > { %654 = vmatpush3.bf16.msra.mxu0 %v718_v17  ;;  %694 = vmatpush3.bf16.msra.mxu1 %v718_v17 }
  0x26   : > { %388 = vmatmul.mubr.bf16.vlgmr.msra.gmra.mrb[0].mxu0 %v719_v18  ;;  %404 = vmatmul.mubr.bf16.vlgmr.msra.gmra.mrb[0].mxu1 %v722_v19 }
  0x27   : > { %395 = vmatprep.mubr.bf16.mxu0 %v725_v20  ;;  %411 = vmatprep.mubr.bf16.mxu1 %v728_v21 }
  0x2e   : > { %396 = vmatmul.mubr.bf16.gmra.mrb[4].mxu0 %v727_v22  ;;  %412 = vmatmul.mubr.bf16.gmra.mrb[4].mxu1 %v730_v23 }
  0xf9   : > { %v655_v26 = vpop.f32.mrb[0].mxu0  ;;  %v667_v27 = vpop.f32.mrb[0].mxu1 }
  0xfa   : > { %v656_v28 = vpop.f32.mrb[1].mxu0  ;;  %v668_v29 = vpop.f32.mrb[1].mxu1 }
  0xfb   : > { %v657_v31 = vadd.f32 %v656_v28, %v655_v26  ;;  %v669_v32 = vadd.f32 %v668_v29, %v667_v27  ;;  %v658_v33 = vpop.f32.mrb[2].mxu0  ;;  %v670_v34 = vpop.f32.mrb[2].mxu1 }
  0xfc   : > { %v659_v35 = vpop.f32.mrb[3].mxu0  ;;  %v671_v36 = vpop.f32.mrb[3].mxu1 }
  0xfd   : > { %v660_v37 = vadd.f32 %v659_v35, %v658_v33  ;;  %v672_v38 = vadd.f32 %v671_v36, %v670_v34  ;;  %v873_v39 = vadd.f32 %v657_v31, %v610_v30  ;;  %v880_v42 = vadd.f32 %v669_v32, %v610_v30 }
  0xff   : > { %v423_v40 = vsel %vm422_vm0, %v873_v39, -1e+30  ;;  %v878_v41 = vadd.f32 %v672_v38, %v610_v30  ;;  %v427_v50 = vsel %vm422_vm0, %v880_v42, -1e+30  ;;  %v891_v53 = vadd.f32 %v660_v37, %v610_v30 }
 0x100   : > { %431 = vmax.xlane.f32.xlu0 %v423_v40 }
 0x101   : > { %v661_v43 = vpop.f32.mrb[4].mxu0  ;;  %v885_v44 = vsel %vm422_vm0, %v878_v41, -1e+30  ;;  %v673_v45 = vpop.f32.mrb[4].mxu1  ;;  %v424_v61 = vsel %vm422_vm0, %v891_v53, -1e+30 }
 0x102   : > { %441 = vmax.xlane.f32.xlu1 %v885_v44  ;;  %v662_v46 = vpop.f32.mrb[5].mxu0  ;;  %v674_v47 = vpop.f32.mrb[5].mxu1 }
 0x103   : > { %v663_v48 = vadd.f32 %v662_v46, %v661_v43  ;;  %v664_v49 = vpop.f32.mrb[6].mxu0  ;;  %v675_v51 = vadd.f32 %v674_v47, %v673_v45  ;;  %v676_v52 = vpop.f32.mrb[6].mxu1 }
 0x104   : > { %v665_v54 = vpop.f32.mrb[7].mxu0  ;;  %439 = vmax.xlane.f32.xlu0 %v427_v50  ;;  %v677_v55 = vpop.f32.mrb[7].mxu1 }
 0x105   : > { %v666_v56 = vadd.f32 %v665_v54, %v664_v49  ;;  %v678_v57 = vadd.f32 %v677_v55, %v676_v52  ;;  %v893_v58 = vadd.f32 %v663_v48, %v610_v30  ;;  %v895_v59 = vadd.f32 %v675_v51, %v610_v30 }
 0x107   : > { %v425_v60 = vsel %vm422_vm0, %v893_v58, -1e+30  ;;  %v903_v62 = vadd.f32 %v666_v56, %v610_v30  ;;  %v429_v63 = vsel %vm422_vm0, %v895_v59, -1e+30  ;;  %v911_v1 = vadd.f32 %v678_v57, %v610_v30 }
 0x108   : > { %435 = vmax.xlane.f32.xlu1 %v425_v60  ;;  %433 = vmax.xlane.f32.xlu0 %v424_v61 }
 0x109   : > { %v426_v0 = vsel %vm422_vm0, %v903_v62, -1e+30  ;;  %v430_v2 = vsel %vm422_vm0, %v911_v1, -1e+30 }
 0x10c   : > { %437 = vmax.xlane.f32.xlu1 %v426_v0  ;;  %443 = vmax.xlane.f32.xlu0 %v429_v63 }
 0x110   : > { %445 = vmax.xlane.f32.xlu1 %v430_v2 }
 0x18d   : > { %v432_v3 = vpop.xlane.xlu0 %431 }
 0x18f   : > { %v442_v4 = vpop.xlane.xlu1 %441 }
 0x191   : > { %v440_v5 = vpop.xlane.xlu0 %439 }
 0x192   : > { %v447_v12 = vmax.f32 %v432_v3, %v440_v5 }
 0x195   : > { %v436_v6 = vpop.xlane.xlu1 %435  ;;  %v434_v7 = vpop.xlane.xlu0 %433 }
 0x196   : > { %v448_v10 = vmax.f32 %v434_v7, %v442_v4 }
 0x198   : > { %v451_v15 = vmax.f32 %v447_v12, %v448_v10 }
 0x199   : > { %v438_v8 = vpop.xlane.xlu1 %437  ;;  %v444_v9 = vpop.xlane.xlu0 %443 }
 0x19a   : > { %v449_v13 = vmax.f32 %v436_v6, %v444_v9 }
 0x19d   : > { %v446_v11 = vpop.xlane.xlu1 %445 }
 0x19e   : > { %v450_v14 = vmax.f32 %v438_v8, %v446_v11 }
 0x1a0   : > { %v452_v16 = vmax.f32 %v449_v13, %v450_v14 }
 0x1a2   : > { %v453_v17 = vmax.f32 %v451_v15, %v452_v16 }
 0x1a4   : > { %v454_v18 = vrot.slane %v453_v17, 4 }
 0x1a6   : > { %v455_v19 = vmax.f32 %v453_v17, %v454_v18 }
 0x1a8   : > { %v456_v20 = vrot.slane %v455_v19, 2 }
 0x1aa   : > { %v457_v21 = vmax.f32 %v455_v19, %v456_v20 }
 0x1ac   : > { %v458_v22 = vrot.slane %v457_v21, 1 }
 0x1ae   : > { %v459_v23 = vmax.f32 %v457_v21, %v458_v22 }
 0x1b0   : > { %v461_v24 = vsub.f32 %v424_v61, %v459_v23  ;;  %v460_v26 = vsub.f32 %v423_v40, %v459_v23  ;;  %v463_v27 = vsub.f32 %v426_v0, %v459_v23  ;;  %v462_v28 = vsub.f32 %v425_v60, %v459_v23 }
 0x1b1   : > { %v465_v32 = vsub.f32 %v885_v44, %v459_v23  ;;  %v464_v34 = vsub.f32 %v427_v50, %v459_v23  ;;  %v467_v36 = vsub.f32 %v430_v2, %v459_v23  ;;  %v466_v38 = vsub.f32 %v429_v63, %v459_v23 }
 0x1b2   : > { %v470_v29 = vmul.f32 1.442695, %v461_v24  ;;  %v468_v30 = vmul.f32 1.442695, %v460_v26  ;;  %v474_v31 = vmul.f32 1.442695, %v463_v27 }
 0x1b3   : > { %v472_v33 = vmul.f32 1.442695, %v462_v28  ;;  %v478_v35 = vmul.f32 1.442695, %v465_v32  ;;  %v476_v37 = vmul.f32 1.442695, %v464_v34 }
 0x1b4   : > { %731 = vpow2.f32 %v470_v29  ;;  %v482_v43 = vmul.f32 1.442695, %v467_v36  ;;  %v480_v40 = vmul.f32 1.442695, %v466_v38 }
 0x1b5   : > { %733 = vpow2.f32 %v468_v30 }
 0x1b6   : > { %735 = vpow2.f32 %v474_v31 }
 0x1b7   : > { %737 = vpow2.f32 %v472_v33 }
 0x1b8   : > { %739 = vpow2.f32 %v478_v35 }
 0x1b9   : > { %741 = vpow2.f32 %v476_v37 }
 0x1ba   : > { %743 = vpow2.f32 %v482_v43 }
 0x1bb   : > { %745 = vpow2.f32 %v480_v40 }
 0x1bc   : > { %747 = vtanh.f32 %v873_v39 }
 0x1bd   : > { %749 = vtanh.f32 %v880_v42 }
 0x1be   : > { %v732_v45 = vpop.eup %731  ;;  %751 = vtanh.f32 %v878_v41 }
 0x1bf   : > { %v734_v46 = vpop.eup %733  ;;  %486 = vadd.xlane.f32.xlu1 %v732_v45  ;;  %753 = vtanh.f32 %v891_v53 }
 0x1c0   : > { %484 = vadd.xlane.f32.xlu0 %v734_v46  ;;  %v736_v44 = vpop.eup %735  ;;  %755 = vtanh.f32 %v893_v58 }
 0x1c1   : > { %v738_v47 = vpop.eup %737 }
 0x1c2   : > { %v740_v48 = vpop.eup %739 }
 0x1c3   : > { %490 = vadd.xlane.f32.xlu1 %v736_v44  ;;  %v742_v49 = vpop.eup %741 }
 0x1c4   : > { %488 = vadd.xlane.f32.xlu0 %v738_v47  ;;  %v744_v50 = vpop.eup %743 }
 0x1c5   : > { %v746_v51 = vpop.eup %745 }
 0x1c6   : > { %v748_v14 = vpop.eup %747 }
 0x1c7   : > { %494 = vadd.xlane.f32.xlu1 %v740_v48  ;;  %v750_v39 = vpop.eup %749 }
 0x1c8   : > { %492 = vadd.xlane.f32.xlu0 %v742_v49  ;;  %v752_v15 = vpop.eup %751 }
 0x1c9   : > { %v754_v42 = vpop.eup %753 }
 0x1ca   : > { %v756_v16 = vpop.eup %755 }
 0x1cb   : > { %498 = vadd.xlane.f32.xlu1 %v744_v50 }
 0x1cc   : > { %496 = vadd.xlane.f32.xlu0 %v746_v51 }
 0x24c   : > { %v487_v52 = vpop.xlane.xlu1 %486 }
 0x24d   : > { %v485_v54 = vpop.xlane.xlu0 %484 }
 0x24e   : > { %v500_v55 = vadd.f32 %v487_v52, %v485_v54 }
 0x250   : > { %v491_v56 = vpop.xlane.xlu1 %490 }
 0x251   : > { %v489_v57 = vpop.xlane.xlu0 %488 }
 0x252   : > { %v501_v60 = vadd.f32 %v500_v55, %v489_v57 }
 0x254   : > { %v502_v61 = vadd.f32 %v501_v60, %v491_v56  ;;  %v495_v63 = vpop.xlane.xlu1 %494 }
 0x255   : > { %v493_v0 = vpop.xlane.xlu0 %492 }
 0x256   : > { %v503_v2 = vadd.f32 %v502_v61, %v493_v0 }
 0x258   : > { %v504_v3 = vadd.f32 %v503_v2, %v495_v63  ;;  %v499_v6 = vpop.xlane.xlu1 %498 }
 0x259   : > { %v497_v4 = vpop.xlane.xlu0 %496 }
 0x25a   : > { %v505_v5 = vadd.f32 %v504_v3, %v497_v4 }
 0x25c   : > { %v506_v7 = vadd.f32 %v505_v5, %v499_v6 }
 0x25e   : > { %v507_v8 = vrot.slane %v506_v7, 4 }
 0x260   : > { %v508_v9 = vadd.f32 %v507_v8, %v506_v7 }
 0x262   : > { %v509_v10 = vrot.slane %v508_v9, 2 }
 0x264   : > { %v510_v11 = vadd.f32 %v509_v10, %v508_v9 }
 0x266   : > { %v511_v12 = vrot.slane %v510_v11, 1 }
 0x268   : > { %v512_v13 = vadd.f32 %v511_v12, %v510_v11 }
 0x26a   : > { %757 = vrcp.f32 %v512_v13 }
 0x26b   : > { %759 = vtanh.f32 %v895_v59 }
 0x26c   : > { %761 = vtanh.f32 %v903_v62 }
 0x26d   : > { %763 = vtanh.f32 %v911_v1 }
 0x274   : > { %v758_v17 = vpop.eup %757 }
 0x275   : > { %v760_v18 = vpop.eup %759  ;;  %v514_v41 = vmul.f32 %v758_v17, %v734_v46  ;;  %v515_v53 = vmul.f32 %v758_v17, %v732_v45  ;;  %v516_v58 = vmul.f32 %v758_v17, %v738_v47  ;;  %v517_v59 = vmul.f32 %v758_v17, %v736_v44 }
 0x276   : > { %v762_v19 = vpop.eup %761  ;;  %v518_v62 = vmul.f32 %v758_v17, %v742_v49  ;;  %v519_v20 = vmul.f32 %v758_v17, %v740_v48  ;;  %v520_v1 = vmul.f32 %v758_v17, %v746_v51  ;;  %v521_v21 = vmul.f32 %v758_v17, %v744_v50 }
 0x277   : > { %v764_v22 = vpop.eup %763  ;;  %v530_v23 = vsel %vm422_vm0, %v514_v41, %v748_v14  ;;  %v531_v24 = vsel %vm422_vm0, %v515_v53, %v754_v42  ;;  %v532_v26 = vsel %vm422_vm0, %v516_v58, %v756_v16  ;;  %v533_v27 = vsel %vm422_vm0, %v517_v59, %v762_v19 }
 0x278   : > { %v534_v28 = vsel %vm422_vm0, %v518_v62, %v750_v39  ;;  %v535_v29 = vsel %vm422_vm0, %v519_v20, %v752_v15  ;;  %v536_v30 = vsel %vm422_vm0, %v520_v1, %v760_v18  ;;  %v537_v31 = vsel %vm422_vm0, %v521_v21, %v764_v22  ;;  %538 = vst [vmem:[%s170_s29] sm:$0xff] %v530_v23 }
 0x279   : > { %539 = vst [vmem:[%s170_s29 + $0x8] sm:$0xff] %v531_v24  ;;  %540 = vst [vmem:[%s170_s29 + $0x10] sm:$0xff] %v532_v26 }
 0x27a   : > { %541 = vst [vmem:[%s170_s29 + $0x18] sm:$0xff] %v533_v27  ;;  %542 = vst [vmem:[%s170_s29 + $0x20] sm:$0xff] %v534_v28 }
 0x27b   : > { %543 = vst [vmem:[%s170_s29 + $0x28] sm:$0xff] %v535_v29  ;;  %544 = vst [vmem:[%s170_s29 + $0x30] sm:$0xff] %v536_v30 }
 0x27c   : > { %545 = vst [vmem:[%s170_s29 + $0x38] sm:$0xff] %v537_v31 }
 0x27d PF: > { %s13_s12 = sadd.s32 1, %s771_s12  }
 0x27e   : > { %p10_p4 = scmp.ge.s32.totalorder %s13_s12, 4  }
 0x280   :  { %12 = sbr.rel (!%p10_p4) target bundleno = 1 (0x1), region = 62 }

// kernel: alphazero_forward.5
= control target key start
LH: loop header
LB: loop body
LE: loop exit
PB: predicated region body
PF: predicated region fallthrough
CT: control target
= control target key end

     0   :  { %9 = vsyncpa [#allocation3], 0  ;;  %s3654_s0 = inlined_call_operand.vmem [shape: bf16[2,64,8], index: 0, kind: input, shape index: {}]   ;;  %s3655_s1 = inlined_call_operand.hbm [shape: bf16[9,64,64], index: 1, kind: input, shape index: {}]   ;;  %s3656_s2 = inlined_call_operand.hbm [shape: bf16[9,8,256], index: 2, kind: input, shape index: {}]   ;;  %s3657_s3 = inlined_call_operand.hbm [shape: f32[1,256], index: 3, kind: input, shape index: {}]   ;;  %s3658_s4 = inlined_call_operand.vmem [shape: bf16[2,64,256], index: 4, kind: output, shape index: {}]  }
   0x1   :  { %10 = vsyncpa [#allocation5], 0  ;;  %s3197_s15 = smov 0  }
   0x2 LB: > { %s3164_s16 = smov [#allocation4]   ;;  %s3203_s18 = sadd.s32 4294967295, %s3162_s15   ;;  %s3162_s15 = sphi %s3197_s15, %s16_s15  }
   0x3   : > { %s161_s17 = sshll.u32 %s3164_s16, 4  ;;  %p2446_p0 = scmp.ge.s32.totalorder %s3162_s15, 1  ;;  %s3212_s17 = int_to_ptr.vmem [resolvable:$true] %s161_s17 }
   0x4   : > { %p136_p1 = scmp.lt.s32.totalorder %s3162_s15, 3  ;;  %p3659_p2 = scmp.eq.s32.totalorder %s3203_s18, 0 }
   0x5   : > { %s3165_s20 = smov [#allocation2]   ;;  %s3166_s23 = smov [#allocation6]  }
   0x6   : > { %p3208_p3 = pnand %p2446_p0, %p136_p1  ;;  %s148_s21 = sshll.u32 %s3165_s20, 4  ;;  %s3216_s21 = int_to_ptr.vmem [resolvable:$true] %s148_s21 }
   0x7   : > { %s3224_s24 = sshll.u32 %s3166_s23, 4  ;;  %s3064_s27 = scalar_lea.hbm %s3656_s2, 1152  ;;  %s176_s24 = int_to_ptr.vmem [resolvable:$true] %s3224_s24 }
   0x8   : > { %s3661_s19 = scalar_select %p3208_p3, 1, 0 }
   0x9   : > { %p2974_p4 = pneg %p3208_p3  ;;  %p3065_p6 = scmp.ne.s32.totalorder %s3656_s2, %s3064_s27 }
   0xa   : > { %p3071_p10 = scmp.lt.u32.totalorder %s3064_s27, %s3656_s2 }
   0xb   : > { %p3220_p5 = pnand %p3659_p2, %p2974_p4 }
   0xd   : > { %p3234_p7 = pneg %p3220_p5 }
   0xf   : > { %p3067_p8 = pnand %p3234_p7, %p3065_p6 }
  0x11   : > { %p3068_p9 = pneg %p3067_p8 }
  0x13   : > { %p3073_p11 = pnand %p3071_p10, %p3068_p9 }
  0x15   : > { %3076 = shalt.err (!%p3073_p11)
}
  0x16   : > { %s3077_s7 = scalar_lea.vmem %s3212_s17, 1152  ;;  %p3085_p1 = scmp.lt.s32.totalorder %s3212_s17, %s3212_s17 }
  0x17   : > { %p3078_p12 = scmp.ne.s32.totalorder %s3212_s17, %s3077_s7  ;;  %p3086_p4 = scmp.lt.s32.totalorder %s3077_s7, %s3077_s7 }
  0x19   : > { %p3080_p13 = pnand %p3078_p12, %p3234_p7  ;;  %p3087_p6 = por %p3086_p4, %p3085_p1 }
  0x1b   : > { %p3081_p0 = pneg %p3080_p13 }
  0x1d   : > { %p3088_p8 = pnand %p3087_p6, %p3081_p0 }
  0x1f   : > { %3091 = shalt.err (!%p3088_p8)
}
  0x20   : > { %s3167_s8 = smov 128   ;;  %s3168_s9 = smov 8  }
  0x21   : > { %2980 = dma.hbm_to_vmem [thread:$0]  (!%p3220_p5), %s3656_s2, 1152, %s3212_s17, [#allocation5], %s3167_s8, %s3167_s8, %s3168_s9  }
  0x22   : > { %s3092_s14 = scalar_lea.hbm %s3655_s1, 4608 }
  0x23   : > { %p3093_p9 = scmp.ne.s32.totalorder %s3655_s1, %s3092_s14  ;;  %p3099_p12 = scmp.lt.u32.totalorder %s3092_s14, %s3655_s1 }
  0x25   : > { %p3095_p10 = pnand %p3093_p9, %p3234_p7 }
  0x27   : > { %p3096_p11 = pneg %p3095_p10 }
  0x29   : > { %p3101_p13 = pnand %p3099_p12, %p3096_p11 }
  0x2b   : > { %3104 = shalt.err (!%p3101_p13)
}
  0x2c   : > { %s3105_s17 = scalar_lea.vmem %s3216_s21, 4608  ;;  %p3113_p6 = scmp.lt.s32.totalorder %s3216_s21, %s3216_s21 }
  0x2d   : > { %p3106_p0 = scmp.ne.s32.totalorder %s3216_s21, %s3105_s17  ;;  %p3114_p8 = scmp.lt.s32.totalorder %s3105_s17, %s3105_s17 }
  0x2f   : > { %p3108_p1 = pnand %p3106_p0, %p3234_p7  ;;  %p3115_p9 = por %p3114_p8, %p3113_p6 }
  0x31   : > { %p3109_p4 = pneg %p3108_p1 }
  0x33   : > { %p3116_p10 = pnand %p3115_p9, %p3109_p4 }
  0x35   : > { %3119 = shalt.err (!%p3116_p10)
}
  0x36   : > { %s3169_s26 = smov 64   ;;  %s3170_s27 = smov 4  }
  0x37   : > { %2977 = dma.hbm_to_vmem [thread:$0]  (!%p3220_p5), %s3655_s1, 4608, %s3216_s21, [#allocation3], %s3169_s26, %s3169_s26, %s3170_s27  }
  0x38   : > { %s3120_s7 = scalar_lea.hbm %s3657_s3, 32 }
  0x39   : > { %p3121_p11 = scmp.ne.s32.totalorder %s3657_s3, %s3120_s7  ;;  %p3127_p0 = scmp.lt.u32.totalorder %s3120_s7, %s3657_s3 }
  0x3b   : > { %p3123_p12 = pnand %p3121_p11, %p3234_p7 }
  0x3d   : > { %p3124_p13 = pneg %p3123_p12 }
  0x3f   : > { %p3129_p1 = pnand %p3127_p0, %p3124_p13 }
  0x41   : > { %3132 = shalt.err (!%p3129_p1)
}
  0x42   : > { %s3133_s12 = scalar_lea.vmem %s176_s24, 32  ;;  %p3141_p9 = scmp.lt.s32.totalorder %s176_s24, %s176_s24 }
  0x43   : > { %p3134_p4 = scmp.ne.s32.totalorder %s176_s24, %s3133_s12  ;;  %p3142_p10 = scmp.lt.s32.totalorder %s3133_s12, %s3133_s12 }
  0x45   : > { %p3136_p6 = pnand %p3134_p4, %p3234_p7  ;;  %p3143_p2 = por %p3142_p10, %p3141_p9 }
  0x47   : > { %p3137_p8 = pneg %p3136_p6 }
  0x49   : > { %p3144_p3 = pnand %p3143_p2, %p3137_p8 }
  0x4b   : > { %3147 = shalt.err (!%p3144_p3)
}
  0x4c   : > { %2983 = dma.hbm_to_vmem [thread:$0]  (!%p3220_p5), %s3657_s3, 32, %s176_s24, [#allocation5]  }
  0x4d   : > { %p3664_p11 = scmp.ne.s32.totalorder %s3661_s19, 0 }
  0x4e   : > { %p3665_p12 = scmp.eq.s32.totalorder (!%p3664_p11), %s3203_s18, 0 }
  0x4f   : > { %196 = sbr.rel (%p3664_p11) target bundleno = 1067 (0x42b), region = 36 }
  0x56   : > { %3153 = dma.done.wait (%p3665_p12), [#allocation3], 4608   ;;  %p3666_p7 = pmov %p3665_p12 }
  0x58   : > { %3155 = vsyncadd (%p3666_p7), [#allocation3], 4294962688  ;;  %p3667_p13 = pmov %p3666_p7 }
  0x59   : > { %p3668_p2 = pmov %p3666_p7 }
  0x5a   : > { %3157 = dma.done.wait (%p3667_p13), [#allocation5], 1184  }
  0x5b   : > { %3159 = vsyncadd (%p3668_p2), [#allocation5], 4294966112  ;;  %p230_p3 = scmp.lt.s32.totalorder %s3203_s18, 1  ;;  %vm301_vm0 = vcmask 523264   ;;  %v3010_v3 = vld [vmem:[#allocation2] sm:$0xff]   ;;  %v3011_v5 = vld [vmem:[#allocation2 + $0x8] sm:$0xff]  }
  0x5c   : > { %2698 = vmatprep.mubr.msk.bf16.mxu1 %vm301_vm0, %v3010_v3  ;;  %v3012_v6 = vld [vmem:[#allocation2 + $0x10] sm:$0xff]   ;;  %v3013_v7 = vld [vmem:[#allocation2 + $0x18] sm:$0xff]   ;;  %v3014_v8 = vld [vmem:[#allocation2 + $0x20] sm:$0xff]   ;;  %vm514_vm1 = vcmask 1043456   ;;  %v3171_v16 = vmov 0   ;;  %vm501_vm2 = vcmask 64512  }
  0x5d   : > { %s3670_s18 = smov (!%p230_p3, %s3203_s18), 1  ;;  %v3015_v9 = vld [vmem:[#allocation2 + $0x28] sm:$0xff]   ;;  %v3016_v10 = vld [vmem:[#allocation2 + $0x30] sm:$0xff]   ;;  %v3017_v11 = vld [vmem:[#allocation2 + $0x38] sm:$0xff]   ;;  %857 = vmatprep.mubr.bf16.mxu0 %v3171_v16 }
  0x5e   : > { %s2608_s19 = sshll.u32 %s3670_s18, 5  ;;  %v495_v12 = vld [vmem:[#allocation4 + $0x8] sm:$0xff]  ;;  %v383_v17 = vld [vmem:[#allocation4] sm:$0xff]  ;;  %v3024_v47 = vld [vmem:[#allocation2 + $0x50] sm:$0xff]   ;;  %s2609_s14 = sshll.u32 %s3670_s18, 6 }
  0x5f   : > { %s234_s30 = scalar_lea.vmem %s3654_s0, %s2608_s19  ;;  %v2480_v13 = vcombine.high %v495_v12, %v495_v12  ;;  %v2479_v14 = vcombine.low %v495_v12, %v495_v12  ;;  %v2487_v18 = vcombine.high %v383_v17, %v383_v17  ;;  %v2486_v32 = vcombine.low %v383_v17, %v383_v17  ;;  %v3022_v45 = vld [vmem:[#allocation2 + $0x40] sm:$0xff]   ;;  %v3023_v46 = vld [vmem:[#allocation2 + $0x48] sm:$0xff]   ;;  %v3025_v48 = vld [vmem:[#allocation2 + $0x58] sm:$0xff]   ;;  %s3617_s23 = scalar_lea.vmem %s3658_s4, %s2609_s14 }
  0x60   : > { %v3315_v0 = vld [vmem:[%s234_s30] sm:$0xff]   ;;  %v3317_v1 = vld [vmem:[%s234_s30 + $0x8] sm:$0xff]   ;;  %v3321_v2 = vld [vmem:[%s234_s30 + $0x10] sm:$0xff]  }
  0x61   : > { %2690 = vmatprep.subr.bf16.mxu1 %v3315_v0  ;;  %v3327_v4 = vld [vmem:[%s234_s30 + $0x18] sm:$0xff]   ;;  %v516_v15 = vsel %vm514_vm1, %v2479_v14, 0  ;;  %v612_v38 = vsel %vm514_vm1, %v2486_v32, 0  ;;  %v3026_v49 = vld [vmem:[#allocation2 + $0x60] sm:$0xff]   ;;  %v3027_v50 = vld [vmem:[#allocation2 + $0x68] sm:$0xff]  }
  0x62   : > { %2691 = vmatpush3.bf16.msra.mxu1 %v3315_v0  ;;  %v3028_v51 = vld [vmem:[#allocation2 + $0x70] sm:$0xff]   ;;  %v3029_v52 = vld [vmem:[#allocation2 + $0x78] sm:$0xff]   ;;  %v3030_v53 = vld [vmem:[#allocation2 + $0x80] sm:$0xff]  }
  0x63   : > { %2692 = vmatprep.subr.bf16.mxu1 %v3317_v1  ;;  %v3031_v54 = vld [vmem:[#allocation2 + $0x88] sm:$0xff]   ;;  %v3032_v55 = vld [vmem:[#allocation2 + $0x90] sm:$0xff]   ;;  %v3033_v56 = vld [vmem:[#allocation2 + $0x98] sm:$0xff]  }
  0x64   : > { %v3034_v57 = vld [vmem:[#allocation2 + $0xa0] sm:$0xff]   ;;  %v3035_v58 = vld [vmem:[#allocation2 + $0xa8] sm:$0xff]   ;;  %v3036_v59 = vld [vmem:[#allocation2 + $0xb0] sm:$0xff]  }
  0x65   : > { %v3037_v60 = vld [vmem:[#allocation2 + $0xb8] sm:$0xff]   ;;  %v3038_v61 = vld [vmem:[#allocation2 + $0xc0] sm:$0xff]   ;;  %v3039_v62 = vld [vmem:[#allocation2 + $0xc8] sm:$0xff]  }
  0x66   : > { %2693 = vmatpush3.bf16.msra.mxu1 %v3317_v1  ;;  %v3040_v63 = vld [vmem:[#allocation2 + $0xd0] sm:$0xff]   ;;  %v3041_v3 = vld [vmem:[#allocation2 + $0xd8] sm:$0xff]   ;;  %v3046_v12 = vld [vmem:[#allocation2 + $0x100] sm:$0xff]  }
  0x67   : > { %2694 = vmatprep.subr.bf16.mxu1 %v3321_v2  ;;  %v3049_v17 = vld [vmem:[#allocation2 + $0x118] sm:$0xff]  }
  0x6a   : > { %2695 = vmatpush3.bf16.msra.mxu1 %v3321_v2 }
  0x6b   : > { %2696 = vmatprep.subr.bf16.mxu1 %v3327_v4 }
  0x6e   : > { %2697 = vmatpush3.bf16.msra.mxu1 %v3327_v4 }
  0x6f   : > { %2706 = vmatprep.subr.bf16.mxu1 %v3315_v0 }
  0x71   : > { %2699 = vmatmul.mubr.msk.bf16.vlgmr.msra.gmra.mrb[0].mxu1 %vm301_vm0, %v3011_v5  ;;  %v3042_v5 = vld [vmem:[#allocation2 + $0xe0] sm:$0xff]  }
  0x72   : > { %2707 = vmatpush3.bf16.msra.mxu1 %v3315_v0  ;;  %2702 = vmatprep.mubr.msk.bf16.mxu1 %vm301_vm0, %v3012_v6  ;;  %v3043_v6 = vld [vmem:[#allocation2 + $0xe8] sm:$0xff]  }
  0x73   : > { %2708 = vmatprep.subr.bf16.mxu1 %v3317_v1 }
  0x76   : > { %2709 = vmatpush3.bf16.msra.mxu1 %v3317_v1 }
  0x77   : > { %2710 = vmatprep.subr.bf16.mxu1 %v3321_v2 }
  0x79   : > { %2703 = vmatmul.mubr.msk.bf16.gmra.mrb[4].mxu1 %vm301_vm0, %v3013_v7  ;;  %v3044_v7 = vld [vmem:[#allocation2 + $0xf0] sm:$0xff]  }
  0x7a   : > { %2711 = vmatpush3.bf16.msra.mxu1 %v3321_v2  ;;  %2714 = vmatprep.mubr.msk.bf16.mxu1 %vm301_vm0, %v3014_v8  ;;  %v801_v8 = vld [vmem:[#allocation4 + $0x10] sm:$0xff] }
  0x7b   : > { %2712 = vmatprep.subr.bf16.mxu1 %v3327_v4 }
  0x7e   : > { %2713 = vmatpush3.bf16.msra.mxu1 %v3327_v4 }
  0x7f   : > { %2481 = vmatprep.subr.msk.bf16.mxu1 %vm514_vm1, %v2480_v13 }
  0x81   : > { %2715 = vmatmul.mubr.msk.bf16.vlgmr.msra.gmra.mrb[8].mxu1 %vm301_vm0, %v3015_v9  ;;  %v2502_v9 = vcombine.high %v801_v8, %v801_v8 }
  0x82   : > { %2718 = vmatprep.mubr.msk.bf16.mxu1 %vm301_vm0, %v3016_v10  ;;  %522 = vmatpush1.bf16.msra.mxu1 %v516_v15  ;;  %v2501_v10 = vcombine.low %v801_v8, %v801_v8  ;;  %v3047_v15 = vld [vmem:[#allocation2 + $0x108] sm:$0xff]  }
  0x83   : > { %2488 = vmatprep.subr.msk.bf16.mxu1 %vm514_vm1, %v2487_v18  ;;  %2503 = vmatprep.subr.msk.bf16.mxu0 %vm514_vm1, %v2502_v9 }
  0x84   : > { %v820_v13 = vsel %vm514_vm1, %v2501_v10, 0 }
  0x85   : > { %826 = vmatpush1.bf16.msra.mxu0 %v820_v13 }
  0x89   : > { %2719 = vmatmul.mubr.msk.bf16.gmra.mrb[12].mxu1 %vm301_vm0, %v3017_v11  ;;  %v3045_v11 = vld [vmem:[#allocation2 + $0xf8] sm:$0xff]  }
  0x8a   : > { %553 = vmatprep.mubr.bf16.mxu1 %v3171_v16 }
 0x144   : > { %v2700_v19 = vpop.f32.mrb[0].mxu1 }
 0x145   : > { %v348_v20 = vpop.f32.mrb[1].mxu1 }
 0x146   : > { %v2701_v21 = vpop.f32.mrb[2].mxu1 }
 0x147   : > { %v380_v22 = vpack.c.bf16 %v2701_v21, %v2700_v19  ;;  %v351_v23 = vpop.f32.mrb[3].mxu1 }
 0x148   : > { %v379_v24 = vpack.c.bf16 %v351_v23, %v348_v20 }
 0x14c   : > { %v2704_v25 = vpop.f32.mrb[4].mxu1 }
 0x14d   : > { %v364_v26 = vpop.f32.mrb[5].mxu1 }
 0x14e   : > { %v2705_v27 = vpop.f32.mrb[6].mxu1 }
 0x14f   : > { %v382_v28 = vpack.c.bf16 %v2705_v27, %v2704_v25  ;;  %v367_v29 = vpop.f32.mrb[7].mxu1 }
 0x150   : > { %v381_v30 = vpack.c.bf16 %v367_v29, %v364_v26 }
 0x154   : > { %v2716_v31 = vpop.f32.mrb[8].mxu1 }
 0x155   : > { %v459_v33 = vpop.f32.mrb[9].mxu1 }
 0x156   : > { %v2717_v34 = vpop.f32.mrb[10].mxu1 }
 0x157   : > { %v491_v35 = vpack.c.bf16 %v2717_v34, %v2716_v31  ;;  %v462_v36 = vpop.f32.mrb[11].mxu1 }
 0x158   : > { %v490_v37 = vpack.c.bf16 %v462_v36, %v459_v33 }
 0x15a   : > { %2482 = vmatmul.mubr.msk.bf16.vlgmr.msra.gmra.mrb[16].mxu1 %vm501_vm2, %v490_v37 }
 0x15b   : > { %618 = vmatpush1.bf16.msra.mxu1 %v612_v38  ;;  %563 = vmatprep.mubr.bf16.mxu1 %v3171_v16 }
 0x15c   : > { %v2720_v39 = vpop.f32.mrb[12].mxu1  ;;  %2722 = vmatprep.subr.bf16.mxu1 %v3315_v0 }
 0x15d   : > { %v475_v40 = vpop.f32.mrb[13].mxu1 }
 0x15e   : > { %v2721_v41 = vpop.f32.mrb[14].mxu1 }
 0x15f   : > { %v493_v42 = vpack.c.bf16 %v2721_v41, %v2720_v39  ;;  %v478_v43 = vpop.f32.mrb[15].mxu1 }
 0x160   : > { %v492_v44 = vpack.c.bf16 %v478_v43, %v475_v40 }
 0x162   : > { %2483 = vmatmul.mubr.msk.bf16.gmra.mrb[20].mxu1 %vm501_vm2, %v491_v35  ;;  %v1249_v35 = vld [vmem:[#allocation4 + $0x20] sm:$0xff] }
 0x163   : > { %573 = vmatprep.mubr.bf16.mxu1 %v3171_v16  ;;  %v2532_v41 = vcombine.high %v1249_v35, %v1249_v35 }
 0x16a   : > { %2484 = vmatmul.mubr.msk.bf16.gmra.mrb[24].mxu1 %vm501_vm2, %v492_v44 }
 0x16b   : > { %583 = vmatprep.mubr.bf16.mxu1 %v3171_v16 }
 0x172   : > { %2485 = vmatmul.mubr.msk.bf16.gmra.mrb[28].mxu1 %vm501_vm2, %v493_v42 }
 0x173   : > { %649 = vmatprep.mubr.bf16.mxu1 %v3171_v16 }
 0x17a   : > { %2489 = vmatmul.mubr.msk.bf16.vlgmr.msra.gmra.mrb[16].mxu1 %vm501_vm2, %v379_v24 }
 0x17b   : > { %2723 = vmatpush3.bf16.msra.mxu1 %v3315_v0  ;;  %659 = vmatprep.mubr.bf16.mxu1 %v3171_v16 }
 0x17c   : > { %2724 = vmatprep.subr.bf16.mxu1 %v3317_v1 }
 0x17f   : > { %2725 = vmatpush3.bf16.msra.mxu1 %v3317_v1 }
 0x180   : > { %2726 = vmatprep.subr.bf16.mxu1 %v3321_v2 }
 0x182   : > { %2490 = vmatmul.mubr.msk.bf16.gmra.mrb[20].mxu1 %vm501_vm2, %v380_v22 }
 0x183   : > { %669 = vmatprep.mubr.bf16.mxu1 %v3171_v16  ;;  %2727 = vmatpush3.bf16.msra.mxu1 %v3321_v2 }
 0x184   : > { %2728 = vmatprep.subr.bf16.mxu1 %v3327_v4 }
 0x187   : > { %2729 = vmatpush3.bf16.msra.mxu1 %v3327_v4 }
 0x188   : > { %2738 = vmatprep.subr.bf16.mxu1 %v3315_v0 }
 0x18a   : > { %2491 = vmatmul.mubr.msk.bf16.gmra.mrb[24].mxu1 %vm501_vm2, %v381_v30 }
 0x18b   : > { %679 = vmatprep.mubr.bf16.mxu1 %v3171_v16 }
 0x192   : > { %2492 = vmatmul.mubr.msk.bf16.gmra.mrb[28].mxu1 %vm501_vm2, %v382_v28 }
 0x193   : > { %2730 = vmatprep.mubr.msk.bf16.mxu1 %vm301_vm0, %v3022_v45 }
 0x19a   : > { %2731 = vmatmul.mubr.msk.bf16.vlgmr.msra.gmra.mrb[32].mxu1 %vm301_vm0, %v3023_v46 }
 0x19b   : > { %2734 = vmatprep.mubr.msk.bf16.mxu1 %vm301_vm0, %v3024_v47  ;;  %2739 = vmatpush3.bf16.msra.mxu1 %v3315_v0 }
 0x19c   : > { %2740 = vmatprep.subr.bf16.mxu1 %v3317_v1 }
 0x19f   : > { %2741 = vmatpush3.bf16.msra.mxu1 %v3317_v1 }
 0x1a0   : > { %2742 = vmatprep.subr.bf16.mxu1 %v3321_v2 }
 0x1a2   : > { %2735 = vmatmul.mubr.msk.bf16.gmra.mrb[36].mxu1 %vm301_vm0, %v3025_v48 }
 0x1a3   : > { %2743 = vmatpush3.bf16.msra.mxu1 %v3321_v2  ;;  %2746 = vmatprep.mubr.msk.bf16.mxu1 %vm301_vm0, %v3026_v49 }
 0x1a4   : > { %2744 = vmatprep.subr.bf16.mxu1 %v3327_v4 }
 0x1a7   : > { %2745 = vmatpush3.bf16.msra.mxu1 %v3327_v4 }
 0x1a8   : > { %2754 = vmatprep.subr.bf16.mxu1 %v3315_v0 }
 0x1aa   : > { %2747 = vmatmul.mubr.msk.bf16.vlgmr.msra.gmra.mrb[40].mxu1 %vm301_vm0, %v3027_v50 }
 0x1ab   : > { %2750 = vmatprep.mubr.msk.bf16.mxu1 %vm301_vm0, %v3028_v51  ;;  %2755 = vmatpush3.bf16.msra.mxu1 %v3315_v0 }
 0x1ac   : > { %2756 = vmatprep.subr.bf16.mxu1 %v3317_v1 }
 0x1af   : > { %2757 = vmatpush3.bf16.msra.mxu1 %v3317_v1 }
 0x1b0   : > { %2758 = vmatprep.subr.bf16.mxu1 %v3321_v2 }
 0x1b2   : > { %2751 = vmatmul.mubr.msk.bf16.gmra.mrb[44].mxu1 %vm301_vm0, %v3029_v52 }
 0x1b3   : > { %2759 = vmatpush3.bf16.msra.mxu1 %v3321_v2  ;;  %2762 = vmatprep.mubr.msk.bf16.mxu1 %vm301_vm0, %v3030_v53 }
 0x1b4   : > { %2760 = vmatprep.subr.bf16.mxu1 %v3327_v4 }
 0x1b7   : > { %2761 = vmatpush3.bf16.msra.mxu1 %v3327_v4 }
 0x1b8   : > { %2770 = vmatprep.subr.bf16.mxu1 %v3315_v0 }
 0x1ba   : > { %2763 = vmatmul.mubr.msk.bf16.vlgmr.msra.gmra.mrb[48].mxu1 %vm301_vm0, %v3031_v54 }
 0x1bb   : > { %2766 = vmatprep.mubr.msk.bf16.mxu1 %vm301_vm0, %v3032_v55  ;;  %2771 = vmatpush3.bf16.msra.mxu1 %v3315_v0 }
 0x1bc   : > { %2772 = vmatprep.subr.bf16.mxu1 %v3317_v1 }
 0x1bf   : > { %2773 = vmatpush3.bf16.msra.mxu1 %v3317_v1 }
 0x1c0   : > { %2774 = vmatprep.subr.bf16.mxu1 %v3321_v2 }
 0x1c2   : > { %2767 = vmatmul.mubr.msk.bf16.gmra.mrb[52].mxu1 %vm301_vm0, %v3033_v56 }
 0x1c3   : > { %2775 = vmatpush3.bf16.msra.mxu1 %v3321_v2  ;;  %2778 = vmatprep.mubr.msk.bf16.mxu1 %vm301_vm0, %v3034_v57 }
 0x1c4   : > { %2776 = vmatprep.subr.bf16.mxu1 %v3327_v4 }
 0x1c7   : > { %2777 = vmatpush3.bf16.msra.mxu1 %v3327_v4 }
 0x1c8   : > { %2786 = vmatprep.subr.bf16.mxu1 %v3315_v0 }
 0x1ca   : > { %2779 = vmatmul.mubr.msk.bf16.vlgmr.msra.gmra.mrb[56].mxu1 %vm301_vm0, %v3035_v58 }
 0x1cb   : > { %2782 = vmatprep.mubr.msk.bf16.mxu1 %vm301_vm0, %v3036_v59  ;;  %2787 = vmatpush3.bf16.msra.mxu1 %v3315_v0 }
 0x1cc   : > { %2788 = vmatprep.subr.bf16.mxu1 %v3317_v1 }
 0x1cf   : > { %2789 = vmatpush3.bf16.msra.mxu1 %v3317_v1 }
 0x1d0   : > { %2790 = vmatprep.subr.bf16.mxu1 %v3321_v2 }
 0x1d2   : > { %2783 = vmatmul.mubr.msk.bf16.gmra.mrb[60].mxu1 %vm301_vm0, %v3037_v60  ;;  %v2531_v60 = vcombine.low %v1249_v35, %v1249_v35 }
 0x1d3   : > { %2791 = vmatpush3.bf16.msra.mxu1 %v3321_v2  ;;  %2794 = vmatprep.mubr.msk.bf16.mxu1 %vm301_vm0, %v3038_v61 }
 0x1d4   : > { %2792 = vmatprep.subr.bf16.mxu1 %v3327_v4 }
 0x1d7   : > { %2793 = vmatpush3.bf16.msra.mxu1 %v3327_v4 }
 0x1d8   : > { %2802 = vmatprep.subr.bf16.mxu1 %v3315_v0 }
 0x1da   : > { %2795 = vmatmul.mubr.msk.bf16.vlgmr.msra.gmra.mrb[64].mxu1 %vm301_vm0, %v3039_v62 }
 0x1db   : > { %2798 = vmatprep.mubr.msk.bf16.mxu1 %vm301_vm0, %v3040_v63  ;;  %2803 = vmatpush3.bf16.msra.mxu1 %v3315_v0  ;;  %v1473_v63 = vld [vmem:[#allocation4 + $0x28] sm:$0xff] }
 0x1dc   : > { %2804 = vmatprep.subr.bf16.mxu1 %v3317_v1  ;;  %v2547_v9 = vcombine.high %v1473_v63, %v1473_v63 }
 0x1df   : > { %2805 = vmatpush3.bf16.msra.mxu1 %v3317_v1 }
 0x1e0   : > { %2806 = vmatprep.subr.bf16.mxu1 %v3321_v2 }
 0x1e2   : > { %2799 = vmatmul.mubr.msk.bf16.gmra.mrb[68].mxu1 %vm301_vm0, %v3041_v3 }
 0x1e3   : > { %2807 = vmatpush3.bf16.msra.mxu1 %v3321_v2  ;;  %2810 = vmatprep.mubr.msk.bf16.mxu1 %vm301_vm0, %v3042_v5 }
 0x1e4   : > { %2808 = vmatprep.subr.bf16.mxu1 %v3327_v4 }
 0x1e7   : > { %2809 = vmatpush3.bf16.msra.mxu1 %v3327_v4 }
 0x1e8   : > { %2818 = vmatprep.subr.bf16.mxu1 %v3315_v0 }
 0x1ea   : > { %2811 = vmatmul.mubr.msk.bf16.vlgmr.msra.gmra.mrb[72].mxu1 %vm301_vm0, %v3043_v6 }
 0x1eb   : > { %2814 = vmatprep.mubr.msk.bf16.mxu1 %vm301_vm0, %v3044_v7  ;;  %2819 = vmatpush3.bf16.msra.mxu1 %v3315_v0  ;;  %v1025_v0 = vld [vmem:[#allocation4 + $0x18] sm:$0xff]  ;;  %v1268_v7 = vsel %vm514_vm1, %v2531_v60, 0 }
 0x1ec   : > { %2820 = vmatprep.subr.bf16.mxu1 %v3317_v1  ;;  %v2517_v14 = vcombine.high %v1025_v0, %v1025_v0  ;;  %v2516_v33 = vcombine.low %v1025_v0, %v1025_v0 }
 0x1ee   : > { %2518 = vmatprep.subr.msk.bf16.mxu0 %vm514_vm1, %v2517_v14  ;;  %v1044_v40 = vsel %vm514_vm1, %v2516_v33, 0 }
 0x1ef   : > { %2821 = vmatpush3.bf16.msra.mxu1 %v3317_v1  ;;  %v3048_v1 = vld [vmem:[#allocation2 + $0x110] sm:$0xff]  }
 0x1f0   : > { %2822 = vmatprep.subr.bf16.mxu1 %v3321_v2 }
 0x1f2   : > { %2815 = vmatmul.mubr.msk.bf16.gmra.mrb[76].mxu1 %vm301_vm0, %v3045_v11 }
 0x1f3   : > { %2823 = vmatpush3.bf16.msra.mxu1 %v3321_v2  ;;  %2826 = vmatprep.mubr.msk.bf16.mxu1 %vm301_vm0, %v3046_v12 }
 0x1f4   : > { %2824 = vmatprep.subr.bf16.mxu1 %v3327_v4 }
 0x1f7   : > { %2825 = vmatpush3.bf16.msra.mxu1 %v3327_v4 }
 0x1fa   : > { %2827 = vmatmul.mubr.msk.bf16.vlgmr.msra.gmra.mrb[80].mxu1 %vm301_vm0, %v3047_v15 }
 0x1fb   : > { %2830 = vmatprep.mubr.msk.bf16.mxu1 %vm301_vm0, %v3048_v1 }
 0x202   : > { %2831 = vmatmul.mubr.msk.bf16.gmra.mrb[84].mxu1 %vm301_vm0, %v3049_v17 }
 0x24d   : > { %v3455_v2 = vpop.f32.mrb[16].mxu1 }
 0x24e   : > { %v3457_v18 = vpop.f32.mrb[17].mxu1 }
 0x24f   : > { %v3459_v19 = vpop.f32.mrb[18].mxu1 }
 0x250   : > { %v3461_v20 = vpop.f32.mrb[19].mxu1 }
 0x255   : > { %v3463_v21 = vpop.f32.mrb[20].mxu1 }
 0x256   : > { %v3465_v22 = vpop.f32.mrb[21].mxu1 }
 0x257   : > { %v3467_v4 = vpop.f32.mrb[22].mxu1 }
 0x258   : > { %v3469_v23 = vpop.f32.mrb[23].mxu1 }
 0x25d   : > { %v3471_v24 = vpop.f32.mrb[24].mxu1 }
 0x25e   : > { %v3473_v25 = vpop.f32.mrb[25].mxu1 }
 0x25f   : > { %v3475_v26 = vpop.f32.mrb[26].mxu1 }
 0x260   : > { %v3477_v27 = vpop.f32.mrb[27].mxu1 }
 0x265   : > { %v3479_v28 = vpop.f32.mrb[28].mxu1 }
 0x266   : > { %v3481_v29 = vpop.f32.mrb[29].mxu1 }
 0x267   : > { %v3483_v30 = vpop.f32.mrb[30].mxu1 }
 0x268   : > { %v3485_v31 = vpop.f32.mrb[31].mxu1 }
 0x26d   : > { %v2732_v32 = vpop.f32.mrb[32].mxu1 }
 0x26e   : > { %v765_v34 = vpop.f32.mrb[33].mxu1 }
 0x26f   : > { %v2733_v36 = vpop.f32.mrb[34].mxu1 }
 0x270   : > { %v797_v37 = vpack.c.bf16 %v2733_v36, %v2732_v32  ;;  %v768_v38 = vpop.f32.mrb[35].mxu1 }
 0x271   : > { %v796_v39 = vpack.c.bf16 %v768_v38, %v765_v34 }
 0x273   : > { %2504 = vmatmul.mubr.msk.bf16.vlgmr.msra.gmra.mrb[0].mxu0 %vm501_vm2, %v796_v39 }
 0x274   : > { %1050 = vmatpush1.bf16.msra.mxu0 %v1044_v40  ;;  %867 = vmatprep.mubr.bf16.mxu0 %v3171_v16 }
 0x275   : > { %v2736_v42 = vpop.f32.mrb[36].mxu1  ;;  %2533 = vmatprep.subr.msk.bf16.mxu0 %vm514_vm1, %v2532_v41  ;;  %v2546_v41 = vcombine.low %v1473_v63, %v1473_v63 }
 0x276   : > { %v781_v43 = vpop.f32.mrb[37].mxu1 }
 0x277   : > { %v2737_v44 = vpop.f32.mrb[38].mxu1 }
 0x278   : > { %v799_v45 = vpack.c.bf16 %v2737_v44, %v2736_v42  ;;  %v784_v46 = vpop.f32.mrb[39].mxu1 }
 0x279   : > { %v798_v47 = vpack.c.bf16 %v784_v46, %v781_v43  ;;  %v1697_v43 = vld [vmem:[#allocation4 + $0x30] sm:$0xff] }
 0x27b   : > { %2505 = vmatmul.mubr.msk.bf16.gmra.mrb[4].mxu0 %vm501_vm2, %v797_v37 }
 0x27c   : > { %877 = vmatprep.mubr.bf16.mxu0 %v3171_v16 }
 0x27d   : > { %v2748_v48 = vpop.f32.mrb[40].mxu1 }
 0x27e   : > { %v989_v49 = vpop.f32.mrb[41].mxu1 }
 0x27f   : > { %v2749_v50 = vpop.f32.mrb[42].mxu1 }
 0x280   : > { %v1021_v51 = vpack.c.bf16 %v2749_v50, %v2748_v48  ;;  %v992_v52 = vpop.f32.mrb[43].mxu1  ;;  %v1492_v48 = vsel %vm514_vm1, %v2546_v41, 0 }
 0x281   : > { %v1020_v53 = vpack.c.bf16 %v992_v52, %v989_v49  ;;  %v2562_v49 = vcombine.high %v1697_v43, %v1697_v43 }
 0x283   : > { %2506 = vmatmul.mubr.msk.bf16.gmra.mrb[8].mxu0 %vm501_vm2, %v798_v47 }
 0x284   : > { %887 = vmatprep.mubr.bf16.mxu0 %v3171_v16 }
 0x285   : > { %v2752_v54 = vpop.f32.mrb[44].mxu1 }
 0x286   : > { %v1005_v55 = vpop.f32.mrb[45].mxu1 }
 0x287   : > { %v2753_v56 = vpop.f32.mrb[46].mxu1 }
 0x288   : > { %v1023_v57 = vpack.c.bf16 %v2753_v56, %v2752_v54  ;;  %v1008_v58 = vpop.f32.mrb[47].mxu1 }
 0x289   : > { %v1022_v59 = vpack.c.bf16 %v1008_v58, %v1005_v55 }
 0x28b   : > { %2507 = vmatmul.mubr.msk.bf16.gmra.mrb[12].mxu0 %vm501_vm2, %v799_v45 }
 0x28c   : > { %1081 = vmatprep.mubr.bf16.mxu0 %v3171_v16 }
 0x28d   : > { %v2764_v61 = vpop.f32.mrb[48].mxu1 }
 0x28e   : > { %v1213_v62 = vpop.f32.mrb[49].mxu1 }
 0x28f   : > { %v2765_v3 = vpop.f32.mrb[50].mxu1 }
 0x290   : > { %v1245_v5 = vpack.c.bf16 %v2765_v3, %v2764_v61  ;;  %v1216_v6 = vpop.f32.mrb[51].mxu1 }
 0x291   : > { %v1244_v8 = vpack.c.bf16 %v1216_v6, %v1213_v62 }
 0x293   : > { %2519 = vmatmul.mubr.msk.bf16.vlgmr.msra.gmra.mrb[0].mxu0 %vm501_vm2, %v1020_v53 }
 0x294   : > { %1274 = vmatpush1.bf16.msra.mxu0 %v1268_v7  ;;  %1091 = vmatprep.mubr.bf16.mxu0 %v3171_v16 }
 0x295   : > { %2548 = vmatprep.subr.msk.bf16.mxu0 %vm514_vm1, %v2547_v9  ;;  %v2768_v10 = vpop.f32.mrb[52].mxu1 }
 0x296   : > { %v1229_v11 = vpop.f32.mrb[53].mxu1 }
 0x297   : > { %v2769_v12 = vpop.f32.mrb[54].mxu1 }
 0x298   : > { %v1247_v13 = vpack.c.bf16 %v2769_v12, %v2768_v10  ;;  %v1232_v0 = vpop.f32.mrb[55].mxu1 }
 0x299   : > { %v1246_v14 = vpack.c.bf16 %v1232_v0, %v1229_v11  ;;  %v1921_v11 = vld [vmem:[#allocation4 + $0x38] sm:$0xff] }
 0x29a   : > { %v2577_v41 = vcombine.high %v1921_v11, %v1921_v11 }
 0x29b   : > { %2520 = vmatmul.mubr.msk.bf16.gmra.mrb[4].mxu0 %vm501_vm2, %v1021_v51 }
 0x29c   : > { %1101 = vmatprep.mubr.bf16.mxu0 %v3171_v16 }
 0x29d   : > { %v3503_v15 = vpop.f32.mrb[56].mxu1 }
 0x29e   : > { %v3505_v1 = vpop.f32.mrb[57].mxu1 }
 0x29f   : > { %v3507_v17 = vpop.f32.mrb[58].mxu1 }
 0x2a0   : > { %v1469_v32 = vpack.c.bf16 %v3507_v17, %v3503_v15  ;;  %v1440_v33 = vpop.f32.mrb[59].mxu1  ;;  %v2145_v15 = vld [vmem:[#allocation4 + $0x40] sm:$0xff] }
 0x2a1   : > { %v1468_v34 = vpack.c.bf16 %v1440_v33, %v3505_v1 }
 0x2a3   : > { %2521 = vmatmul.mubr.msk.bf16.gmra.mrb[8].mxu0 %vm501_vm2, %v1022_v59 }
 0x2a4   : > { %1111 = vmatprep.mubr.bf16.mxu0 %v3171_v16 }
 0x2a5   : > { %v3514_v35 = vpop.f32.mrb[60].mxu1 }
 0x2a6   : > { %v3516_v36 = vpop.f32.mrb[61].mxu1 }
 0x2a7   : > { %v3518_v37 = vpop.f32.mrb[62].mxu1 }
 0x2a8   : > { %v1471_v38 = vpack.c.bf16 %v3518_v37, %v3514_v35  ;;  %v3522_v39 = vpop.f32.mrb[63].mxu1  ;;  %v2591_v35 = vcombine.low %v2145_v15, %v2145_v15  ;;  %v2260_v37 = vlaneseq }
 0x2a9   : > { %v1470_v40 = vpack.c.bf16 %v3522_v39, %v3516_v36 }
 0x2aa   : > { %v2164_v36 = vsel %vm514_vm1, %v2591_v35, 0 }
 0x2ab   : > { %2522 = vmatmul.mubr.msk.bf16.gmra.mrb[12].mxu0 %vm501_vm2, %v1023_v57 }
 0x2ac   : > { %1305 = vmatprep.mubr.bf16.mxu0 %v3171_v16 }
 0x2ad   : > { %v3528_v42 = vpop.f32.mrb[64].mxu1 }
 0x2ae   : > { %v3530_v44 = vpop.f32.mrb[65].mxu1 }
 0x2af   : > { %v3532_v45 = vpop.f32.mrb[66].mxu1 }
 0x2b0   : > { %v1693_v46 = vpack.c.bf16 %v3532_v45, %v3528_v42  ;;  %v3536_v47 = vpop.f32.mrb[67].mxu1 }
 0x2b1   : > { %v1692_v50 = vpack.c.bf16 %v3536_v47, %v3530_v44 }
 0x2b3   : > { %2534 = vmatmul.mubr.msk.bf16.vlgmr.msra.gmra.mrb[0].mxu0 %vm501_vm2, %v1244_v8 }
 0x2b4   : > { %1498 = vmatpush1.bf16.msra.mxu0 %v1492_v48  ;;  %1315 = vmatprep.mubr.bf16.mxu0 %v3171_v16 }
 0x2b5   : > { %2563 = vmatprep.subr.msk.bf16.mxu0 %vm514_vm1, %v2562_v49  ;;  %v3544_v51 = vpop.f32.mrb[68].mxu1 }
 0x2b6   : > { %v1677_v52 = vpop.f32.mrb[69].mxu1 }
 0x2b7   : > { %v2801_v53 = vpop.f32.mrb[70].mxu1 }
 0x2b8   : > { %v1695_v54 = vpack.c.bf16 %v2801_v53, %v3544_v51  ;;  %v1680_v55 = vpop.f32.mrb[71].mxu1 }
 0x2b9   : > { %v1694_v56 = vpack.c.bf16 %v1680_v55, %v1677_v52 }
 0x2bb   : > { %2535 = vmatmul.mubr.msk.bf16.gmra.mrb[4].mxu0 %vm501_vm2, %v1245_v5  ;;  %v2561_v5 = vcombine.low %v1697_v43, %v1697_v43 }
 0x2bc   : > { %1325 = vmatprep.mubr.bf16.mxu0 %v3171_v16 }
 0x2bd   : > { %v2812_v57 = vpop.f32.mrb[72].mxu1 }
 0x2be   : > { %v1885_v58 = vpop.f32.mrb[73].mxu1 }
 0x2bf   : > { %v2813_v59 = vpop.f32.mrb[74].mxu1 }
 0x2c0   : > { %v1917_v60 = vpack.c.bf16 %v2813_v59, %v2812_v57  ;;  %v1888_v61 = vpop.f32.mrb[75].mxu1 }
 0x2c1   : > { %v1916_v62 = vpack.c.bf16 %v1888_v61, %v1885_v58 }
 0x2c3   : > { %2536 = vmatmul.mubr.msk.bf16.gmra.mrb[8].mxu0 %vm501_vm2, %v1246_v14  ;;  %v1716_v14 = vsel %vm514_vm1, %v2561_v5, 0 }
 0x2c4   : > { %1335 = vmatprep.mubr.bf16.mxu0 %v3171_v16 }
 0x2c5   : > { %v2816_v63 = vpop.f32.mrb[76].mxu1 }
 0x2c6   : > { %v1901_v3 = vpop.f32.mrb[77].mxu1 }
 0x2c7   : > { %v2817_v6 = vpop.f32.mrb[78].mxu1 }
 0x2c8   : > { %v1919_v7 = vpack.c.bf16 %v2817_v6, %v2816_v63  ;;  %v1904_v8 = vpop.f32.mrb[79].mxu1 }
 0x2c9   : > { %v1918_v9 = vpack.c.bf16 %v1904_v8, %v1901_v3 }
 0x2cb   : > { %2537 = vmatmul.mubr.msk.bf16.gmra.mrb[12].mxu0 %vm501_vm2, %v1247_v13 }
 0x2cc   : > { %1529 = vmatprep.mubr.bf16.mxu0 %v3171_v16 }
 0x2cd   : > { %v2828_v10 = vpop.f32.mrb[80].mxu1 }
 0x2ce   : > { %v2109_v12 = vpop.f32.mrb[81].mxu1 }
 0x2cf   : > { %v2829_v0 = vpop.f32.mrb[82].mxu1 }
 0x2d0   : > { %v2141_v1 = vpack.c.bf16 %v2829_v0, %v2828_v10  ;;  %v2112_v33 = vpop.f32.mrb[83].mxu1 }
 0x2d1   : > { %v2140_v44 = vpack.c.bf16 %v2112_v33, %v2109_v12 }
 0x2d3   : > { %2549 = vmatmul.mubr.msk.bf16.vlgmr.msra.gmra.mrb[0].mxu0 %vm501_vm2, %v1468_v34  ;;  %v2576_v34 = vcombine.low %v1921_v11, %v1921_v11 }
 0x2d4   : > { %1722 = vmatpush1.bf16.msra.mxu0 %v1716_v14  ;;  %1539 = vmatprep.mubr.bf16.mxu0 %v3171_v16 }
 0x2d5   : > { %2578 = vmatprep.subr.msk.bf16.mxu0 %vm514_vm1, %v2577_v41  ;;  %v2832_v13 = vpop.f32.mrb[84].mxu1  ;;  %v1940_v17 = vsel %vm514_vm1, %v2576_v34, 0 }
 0x2d6   : > { %v2125_v47 = vpop.f32.mrb[85].mxu1 }
 0x2d7   : > { %v2833_v43 = vpop.f32.mrb[86].mxu1 }
 0x2d8   : > { %v2143_v48 = vpack.c.bf16 %v2833_v43, %v2832_v13  ;;  %v2128_v49 = vpop.f32.mrb[87].mxu1 }
 0x2d9   : > { %v2142_v51 = vpack.c.bf16 %v2128_v49, %v2125_v47 }
 0x2db   : > { %2550 = vmatmul.mubr.msk.bf16.gmra.mrb[4].mxu0 %vm501_vm2, %v1469_v32  ;;  %v2592_v32 = vcombine.high %v2145_v15, %v2145_v15 }
 0x2dc   : > { %1549 = vmatprep.mubr.bf16.mxu0 %v3171_v16 }
 0x2e3   : > { %2551 = vmatmul.mubr.msk.bf16.gmra.mrb[8].mxu0 %vm501_vm2, %v1470_v40  ;;  %v2258_v40 = vld [vmem:[#allocation6] sm:$0x3] }
 0x2e4   : > { %1559 = vmatprep.mubr.bf16.mxu0 %v3171_v16 }
 0x2eb   : > { %2552 = vmatmul.mubr.msk.bf16.gmra.mrb[12].mxu0 %vm501_vm2, %v1471_v38  ;;  %v2261_v38 = vshrl.u32 %v2260_v37, 7 }
 0x2ec   : > { %1753 = vmatprep.mubr.bf16.mxu0 %v3171_v16 }
 0x2ed   : > { %v2262_v39 = vsub.s32 0, %v2261_v38  ;;  %v2266_v42 = vsub.s32 1, %v2261_v38 }
 0x2ef   : > { %v3601_v45 = vrot.slane %v2258_v40, %v2262_v39 }
 0x2f3   : > { %2564 = vmatmul.mubr.msk.bf16.vlgmr.msra.gmra.mrb[0].mxu0 %vm501_vm2, %v1692_v50  ;;  %v3603_v50 = vrot.slane %v2258_v40, %v2266_v42 }
 0x2f4   : > { %1946 = vmatpush1.bf16.msra.mxu0 %v1940_v17  ;;  %1763 = vmatprep.mubr.bf16.mxu0 %v3171_v16 }
 0x2f5   : > { %2593 = vmatprep.subr.msk.bf16.mxu0 %vm514_vm1, %v2592_v32 }
 0x2fb   : > { %2565 = vmatmul.mubr.msk.bf16.gmra.mrb[4].mxu0 %vm501_vm2, %v1693_v46 }
 0x2fc   : > { %1773 = vmatprep.mubr.bf16.mxu0 %v3171_v16 }
 0x303   : > { %2566 = vmatmul.mubr.msk.bf16.gmra.mrb[8].mxu0 %vm501_vm2, %v1694_v56 }
 0x304   : > { %1783 = vmatprep.mubr.bf16.mxu0 %v3171_v16 }
 0x30b   : > { %2567 = vmatmul.mubr.msk.bf16.gmra.mrb[12].mxu0 %vm501_vm2, %v1695_v54 }
 0x30c   : > { %1977 = vmatprep.mubr.bf16.mxu0 %v3171_v16 }
 0x313   : > { %2579 = vmatmul.mubr.msk.bf16.vlgmr.msra.gmra.mrb[0].mxu0 %vm501_vm2, %v1916_v62 }
 0x314   : > { %2170 = vmatpush1.bf16.msra.mxu0 %v2164_v36  ;;  %1987 = vmatprep.mubr.bf16.mxu0 %v3171_v16 }
 0x31b   : > { %2580 = vmatmul.mubr.msk.bf16.gmra.mrb[4].mxu0 %vm501_vm2, %v1917_v60 }
 0x31c   : > { %1997 = vmatprep.mubr.bf16.mxu0 %v3171_v16 }
 0x323   : > { %2581 = vmatmul.mubr.msk.bf16.gmra.mrb[8].mxu0 %vm501_vm2, %v1918_v9 }
 0x324   : > { %2007 = vmatprep.mubr.bf16.mxu0 %v3171_v16 }
 0x32b   : > { %2582 = vmatmul.mubr.msk.bf16.gmra.mrb[12].mxu0 %vm501_vm2, %v1919_v7 }
 0x32c   : > { %2201 = vmatprep.mubr.bf16.mxu0 %v3171_v16 }
 0x333   : > { %2594 = vmatmul.mubr.msk.bf16.vlgmr.msra.gmra.mrb[0].mxu0 %vm501_vm2, %v2140_v44 }
 0x334   : > { %2211 = vmatprep.mubr.bf16.mxu0 %v3171_v16 }
 0x33b   : > { %2595 = vmatmul.mubr.msk.bf16.gmra.mrb[4].mxu0 %vm501_vm2, %v2141_v1 }
 0x33c   : > { %2221 = vmatprep.mubr.bf16.mxu0 %v3171_v16 }
 0x343   : > { %2596 = vmatmul.mubr.msk.bf16.gmra.mrb[8].mxu0 %vm501_vm2, %v2142_v51 }
 0x344   : > { %2231 = vmatprep.mubr.bf16.mxu0 %v3171_v16 }
 0x34b   : > { %2597 = vmatmul.mubr.msk.bf16.gmra.mrb[12].mxu0 %vm501_vm2, %v2143_v48 }
 0x406   : > { %v2203_v46 = vpop.f32.mrb[0].mxu0 }
 0x407   : > { %v2834_v52 = vadd.f32 %v2203_v46, %v3455_v2  ;;  %v2205_v53 = vpop.f32.mrb[1].mxu0 }
 0x408   : > { %v2835_v54 = vadd.f32 %v2205_v53, %v3457_v18  ;;  %v2207_v55 = vpop.f32.mrb[2].mxu0 }
 0x409   : > { %v2270_v16 = vadd.f32 %v2834_v52, %v3601_v45  ;;  %v2836_v56 = vadd.f32 %v2207_v55, %v3459_v19  ;;  %v2209_v57 = vpop.f32.mrb[3].mxu0 }
 0x40a   : > { %v2271_v58 = vadd.f32 %v2835_v54, %v3603_v50  ;;  %v2837_v59 = vadd.f32 %v2209_v57, %v3461_v20 }
 0x40b   : > { %v2286_v60 = vmax.f32 %v2270_v16, 0.0  ;;  %v2272_v61 = vadd.f32 %v2836_v56, %v3601_v45 }
 0x40c   : > { %v2287_v62 = vmax.f32 %v2271_v58, 0.0  ;;  %v2273_v2 = vadd.f32 %v2837_v59, %v3603_v50 }
 0x40d   : > { %v2288_v18 = vmax.f32 %v2272_v61, 0.0 }
 0x40e   : > { %v2610_v19 = vpack.c.bf16 %v2287_v62, %v2286_v60  ;;  %v2289_v63 = vmax.f32 %v2273_v2, 0.0  ;;  %v2213_v3 = vpop.f32.mrb[4].mxu0 }
 0x40f   : > { %v2838_v6 = vadd.f32 %v2213_v3, %v3463_v21  ;;  %v2215_v20 = vpop.f32.mrb[5].mxu0 }
 0x410   : > { %2350 = vst [vmem:[%s3617_s23] sm:$0xff] %v2610_v19  ;;  %v2611_v7 = vpack.c.bf16 %v2289_v63, %v2288_v18  ;;  %v2839_v8 = vadd.f32 %v2215_v20, %v3465_v22  ;;  %v2217_v9 = vpop.f32.mrb[6].mxu0 }
 0x411   : > { %v2274_v5 = vadd.f32 %v2838_v6, %v3601_v45  ;;  %v2840_v10 = vadd.f32 %v2217_v9, %v3467_v4  ;;  %v2219_v11 = vpop.f32.mrb[7].mxu0 }
 0x412   : > { %2351 = vst [vmem:[%s3617_s23 + $0x8] sm:$0xff] %v2611_v7  ;;  %v2275_v12 = vadd.f32 %v2839_v8, %v3603_v50  ;;  %v2841_v0 = vadd.f32 %v2219_v11, %v3469_v23 }
 0x413   : > { %v2290_v1 = vmax.f32 %v2274_v5, 0.0  ;;  %v2276_v21 = vadd.f32 %v2840_v10, %v3601_v45 }
 0x414   : > { %v2291_v33 = vmax.f32 %v2275_v12, 0.0  ;;  %v2277_v14 = vadd.f32 %v2841_v0, %v3603_v50 }
 0x415   : > { %v2292_v22 = vmax.f32 %v2276_v21, 0.0 }
 0x416   : > { %v2612_v41 = vpack.c.bf16 %v2291_v33, %v2290_v1  ;;  %v2293_v44 = vmax.f32 %v2277_v14, 0.0  ;;  %v2223_v13 = vpop.f32.mrb[8].mxu0 }
 0x417   : > { %v2842_v47 = vadd.f32 %v2223_v13, %v3471_v24  ;;  %v2225_v4 = vpop.f32.mrb[9].mxu0 }
 0x418   : > { %2352 = vst [vmem:[%s3617_s23 + $0x10] sm:$0xff] %v2612_v41  ;;  %v2613_v43 = vpack.c.bf16 %v2293_v44, %v2292_v22  ;;  %v2843_v48 = vadd.f32 %v2225_v4, %v3473_v25  ;;  %v2227_v49 = vpop.f32.mrb[10].mxu0 }
 0x419   : > { %v2278_v23 = vadd.f32 %v2842_v47, %v3601_v45  ;;  %v2844_v51 = vadd.f32 %v2227_v49, %v3475_v26  ;;  %v2229_v34 = vpop.f32.mrb[11].mxu0 }
 0x41a   : > { %2353 = vst [vmem:[%s3617_s23 + $0x18] sm:$0xff] %v2613_v43  ;;  %v2279_v15 = vadd.f32 %v2843_v48, %v3603_v50  ;;  %v2845_v17 = vadd.f32 %v2229_v34, %v3477_v27 }
 0x41b   : > { %v2294_v32 = vmax.f32 %v2278_v23, 0.0  ;;  %v2280_v24 = vadd.f32 %v2844_v51, %v3601_v45 }
 0x41c   : > { %v2295_v35 = vmax.f32 %v2279_v15, 0.0  ;;  %v2281_v36 = vadd.f32 %v2845_v17, %v3603_v50 }
 0x41d   : > { %v2296_v25 = vmax.f32 %v2280_v24, 0.0 }
 0x41e   : > { %v2614_v37 = vpack.c.bf16 %v2295_v35, %v2294_v32  ;;  %v2297_v38 = vmax.f32 %v2281_v36, 0.0  ;;  %v2233_v39 = vpop.f32.mrb[12].mxu0 }
 0x41f   : > { %v2846_v40 = vadd.f32 %v2233_v39, %v3479_v28  ;;  %v2235_v26 = vpop.f32.mrb[13].mxu0 }
 0x420   : > { %2354 = vst [vmem:[%s3617_s23 + $0x20] sm:$0xff] %v2614_v37  ;;  %v2615_v42 = vpack.c.bf16 %v2297_v38, %v2296_v25  ;;  %v2847_v46 = vadd.f32 %v2235_v26, %v3481_v29  ;;  %v2237_v27 = vpop.f32.mrb[14].mxu0 }
 0x421   : > { %v2282_v52 = vadd.f32 %v2846_v40, %v3601_v45  ;;  %v2848_v53 = vadd.f32 %v2237_v27, %v3483_v30  ;;  %v2239_v54 = vpop.f32.mrb[15].mxu0 }
 0x422   : > { %2355 = vst [vmem:[%s3617_s23 + $0x28] sm:$0xff] %v2615_v42  ;;  %v2283_v55 = vadd.f32 %v2847_v46, %v3603_v50  ;;  %v2849_v16 = vadd.f32 %v2239_v54, %v3485_v31 }
 0x423   : > { %v2298_v56 = vmax.f32 %v2282_v52, 0.0  ;;  %v2284_v28 = vadd.f32 %v2848_v53, %v3601_v45 }
 0x424   : > { %v2299_v57 = vmax.f32 %v2283_v55, 0.0  ;;  %v2285_v58 = vadd.f32 %v2849_v16, %v3603_v50 }
 0x425   : > { %v2300_v59 = vmax.f32 %v2284_v28, 0.0 }
 0x426   : > { %v2616_v29 = vpack.c.bf16 %v2299_v57, %v2298_v56  ;;  %v2301_v60 = vmax.f32 %v2285_v58, 0.0 }
 0x428   : > { %2356 = vst [vmem:[%s3617_s23 + $0x30] sm:$0xff] %v2616_v29  ;;  %v2617_v61 = vpack.c.bf16 %v2301_v60, %v2300_v59 }
 0x42a   : > { %2357 = vst [vmem:[%s3617_s23 + $0x38] sm:$0xff] %v2617_v61 }
 0x42b PF: > { %s16_s15 = sadd.s32 1, %s3162_s15  }
 0x42c   : > { %p13_p5 = scmp.ge.s32.totalorder %s16_s15, 4  }
 0x42e   :  { %15 = sbr.rel (!%p13_p5) target bundleno = 2 (0x2), region = 95 }
 0x435   :  { %2379 = vsyncpa [#allocation3], 1 }
 0x436   :  { %2381 = vsyncpa [#allocation3 + $0x1], 1 }
 0x437   :  { %2382 = vsyncpa [#allocation5], 1 }

// kernel: alphazero_forward.7
= control target key start
LH: loop header
LB: loop body
LE: loop exit
PB: predicated region body
PF: predicated region fallthrough
CT: control target
= control target key end

     0   :  { %s9935_s21 = smov 0   ;;  %s13273_s0 = inlined_call_operand.vmem [shape: bf16[2,64,256], index: 0, kind: input, shape index: {}]   ;;  %s13274_s1 = inlined_call_operand.vmem [shape: bf16[9,64,64], index: 1, kind: input, shape index: {}]   ;;  %s13275_s2 = inlined_call_operand.vmem [shape: bf16[9,256,256], index: 2, kind: input, shape index: {}]   ;;  %s13276_s3 = inlined_call_operand.vmem [shape: f32[1,256], index: 3, kind: input, shape index: {}]   ;;  %s13277_s4 = inlined_call_operand.vmem [shape: bf16[9,256,256], index: 4, kind: input, shape index: {}]   ;;  %s13278_s5 = inlined_call_operand.vmem [shape: f32[1,256], index: 5, kind: input, shape index: {}]   ;;  %s13279_s6 = inlined_call_operand.vmem [shape: bf16[2,64,256], index: 6, kind: output, shape index: {}]  }
   0x1 LB: > { %s7377_s22 = sadd.s32 4294967295, %s9897_s21   ;;  %p7381_p0 = scmp.ge.s32.totalorder %s9897_s21, 1  ;;  %s9897_s21 = sphi %s9935_s21, %s16_s21  }
   0x2   : > { %p212_p1 = scmp.lt.s32.totalorder %s9897_s21, 3 }
   0x4   : > { %p213_p2 = pnand %p7381_p0, %p212_p1 }
   0x5   : > { %p242_p3 = scmp.lt.s32.totalorder (!%p213_p2), %s7377_s22, 1  ;;  %v9899_v0 = vmov (!%p213_p2), 0   ;;  %v8947_v17 = vld [vmem:[%s13274_s1] sm:$0xff] (!%p213_p2)   ;;  %vm329_vm0 = vcmask (!%p213_p2), 523264   ;;  %v8948_v19 = vld [vmem:[%s13274_s1 + $0x8] sm:$0xff] (!%p213_p2)   ;;  %v8949_v22 = vld [vmem:[%s13274_s1 + $0x10] sm:$0xff] (!%p213_p2)  }
   0x6   : > { %216 = sbr.rel (%p213_p2) target bundleno = 2334 (0x91e), region = 44  ;;  %374 = vmatprep.mubr.bf16.mxu0 (!%p213_p2), %v9899_v0  ;;  %1149 = vmatprep.mubr.bf16.mxu1 (!%p213_p2), %v9899_v0  ;;  %v8955_v18 = vld [vmem:[%s13274_s1 + $0x40] sm:$0xff] (!%p213_p2)   ;;  %v8965_v20 = vld [vmem:[%s13274_s1 + $0x48] sm:$0xff] (!%p213_p2)   ;;  %v8972_v23 = vld [vmem:[%s13274_s1 + $0x50] sm:$0xff] (!%p213_p2)  }
   0x7   : > { %v8958_v21 = vld [vmem:[%s13275_s2 + $0x104] ss:$8 sps:$4 sm:$0xff] (!%p213_p2)   ;;  %v8950_v24 = vld [vmem:[%s13274_s1 + $0x18] sm:$0xff] (!%p213_p2)   ;;  %v8956_v26 = vld [vmem:[%s13275_s2 + $0x100] ss:$8 sps:$4 sm:$0xff] (!%p213_p2)  }
   0x8   : > { %v8951_v25 = vld [vmem:[%s13274_s1 + $0x20] sm:$0xff] (!%p213_p2)   ;;  %v8961_v27 = vld [vmem:[%s13275_s2 + $0x114] ss:$8 sps:$4 sm:$0xff] (!%p213_p2)   ;;  %v8959_v28 = vld [vmem:[%s13275_s2 + $0x110] ss:$8 sps:$4 sm:$0xff] (!%p213_p2)  }
   0x9   : > { %v8964_v29 = vld [vmem:[%s13275_s2 + $0x124] ss:$8 sps:$4 sm:$0xff] (!%p213_p2)   ;;  %v8962_v31 = vld [vmem:[%s13275_s2 + $0x120] ss:$8 sps:$4 sm:$0xff] (!%p213_p2)   ;;  %v8968_v32 = vld [vmem:[%s13275_s2 + $0x134] ss:$8 sps:$4 sm:$0xff] (!%p213_p2)  }
   0xa   : > { %v8952_v30 = vld [vmem:[%s13274_s1 + $0x28] sm:$0xff] (!%p213_p2)   ;;  %v8966_v33 = vld [vmem:[%s13275_s2 + $0x130] ss:$8 sps:$4 sm:$0xff] (!%p213_p2)   ;;  %v8975_v37 = vld [vmem:[%s13275_s2 + $0x154] ss:$8 sps:$4 sm:$0xff] (!%p213_p2)  }
   0xb   : > { %v8971_v34 = vld [vmem:[%s13275_s2 + $0x144] ss:$8 sps:$4 sm:$0xff] (!%p213_p2)   ;;  %v8953_v35 = vld [vmem:[%s13274_s1 + $0x30] sm:$0xff] (!%p213_p2)   ;;  %v8969_v36 = vld [vmem:[%s13275_s2 + $0x140] ss:$8 sps:$4 sm:$0xff] (!%p213_p2)  }
   0xc   : > { %v8973_v38 = vld [vmem:[%s13275_s2 + $0x150] ss:$8 sps:$4 sm:$0xff] (!%p213_p2)   ;;  %v8978_v39 = vld [vmem:[%s13275_s2 + $0x164] ss:$8 sps:$4 sm:$0xff] (!%p213_p2)   ;;  %v8976_v41 = vld [vmem:[%s13275_s2 + $0x160] ss:$8 sps:$4 sm:$0xff] (!%p213_p2)  }
   0xd   : > { %s13307_s22 = smov (!%p242_p3, %s7377_s22), 1  ;;  %v8954_v40 = vld [vmem:[%s13274_s1 + $0x38] sm:$0xff]   ;;  %v8983_v45 = vld [vmem:[%s13275_s2 + $0x180] ss:$8 sps:$4 sm:$0xff]   ;;  %v8985_v46 = vld [vmem:[%s13275_s2 + $0x184] ss:$8 sps:$4 sm:$0xff]  }
   0xe   : > { %s8664_s23 = sshll.u32 %s13307_s22, 6  ;;  %v8979_v42 = vld [vmem:[%s13274_s1 + $0x58] sm:$0xff]   ;;  %v8989_v48 = vld [vmem:[%s13274_s1 + $0x60] sm:$0xff]   ;;  %v9017_v63 = vld [vmem:[%s13274_s1 + $0x68] sm:$0xff]  }
   0xf   : > { %s9953_s26 = scalar_lea.vmem %s13273_s0, %s8664_s23  ;;  %v8982_v43 = vld [vmem:[%s13275_s2 + $0x174] ss:$8 sps:$4 sm:$0xff]   ;;  %v8980_v44 = vld [vmem:[%s13275_s2 + $0x170] ss:$8 sps:$4 sm:$0xff]   ;;  %v8990_v50 = vld [vmem:[%s13275_s2 + $0x1a0] ss:$8 sps:$4 sm:$0xff]   ;;  %s13230_s29 = scalar_lea.vmem %s13279_s6, %s8664_s23 }
  0x10   : > { %v253_v1 = vld [vmem:[%s9953_s26] sm:$0xff]  ;;  %v254_v2 = vld [vmem:[%s9953_s26 + $0x8] sm:$0xff]  ;;  %v255_v3 = vld [vmem:[%s9953_s26 + $0x10] sm:$0xff] }
  0x11   : > { %v9958_v4 = vcombine.high %v253_v1, %v254_v2  ;;  %v9960_v5 = vcombine.low %v253_v1, %v254_v2  ;;  %v256_v6 = vld [vmem:[%s9953_s26 + $0x18] sm:$0xff]  ;;  %v257_v8 = vld [vmem:[%s9953_s26 + $0x20] sm:$0xff]  ;;  %v258_v9 = vld [vmem:[%s9953_s26 + $0x28] sm:$0xff] }
  0x12   : > { %v9963_v7 = vcombine.high %v255_v3, %v256_v6  ;;  %v9970_v10 = vcombine.low %v255_v3, %v256_v6  ;;  %v9974_v11 = vcombine.high %v257_v8, %v258_v9  ;;  %v259_v12 = vld [vmem:[%s9953_s26 + $0x30] sm:$0xff]  ;;  %v260_v13 = vld [vmem:[%s9953_s26 + $0x38] sm:$0xff]  ;;  %v9980_v14 = vcombine.low %v257_v8, %v258_v9  ;;  %v8992_v51 = vld [vmem:[%s13275_s2 + $0x1a4] ss:$8 sps:$4 sm:$0xff]  }
  0x13   : > { %342 = vmatprep.subr.bf16.mxu0 %v9958_v4  ;;  %1117 = vmatprep.subr.bf16.mxu1 %v9958_v4  ;;  %v9984_v15 = vcombine.high %v259_v12, %v260_v13  ;;  %v9988_v16 = vcombine.low %v259_v12, %v260_v13  ;;  %v8988_v47 = vld [vmem:[%s13275_s2 + $0x194] ss:$8 sps:$4 sm:$0xff]   ;;  %v8986_v49 = vld [vmem:[%s13275_s2 + $0x190] ss:$8 sps:$4 sm:$0xff]   ;;  %v8996_v54 = vld [vmem:[%s13275_s2 + $0x1c0] ss:$8 sps:$4 sm:$0xff]  }
  0x14   : > { %343 = vmatpush1.bf16.msra.mxu0 %v9960_v5  ;;  %1118 = vmatpush1.bf16.msra.mxu1 %v9960_v5  ;;  %v8995_v52 = vld [vmem:[%s13275_s2 + $0x1b4] ss:$8 sps:$4 sm:$0xff]   ;;  %v8993_v53 = vld [vmem:[%s13275_s2 + $0x1b0] ss:$8 sps:$4 sm:$0xff]   ;;  %v8998_v55 = vld [vmem:[%s13275_s2 + $0x1c4] ss:$8 sps:$4 sm:$0xff]  }
  0x15   : > { %344 = vmatprep.subr.bf16.mxu0 %v9963_v7  ;;  %1119 = vmatprep.subr.bf16.mxu1 %v9963_v7  ;;  %v9001_v56 = vld [vmem:[%s13275_s2 + $0x1d4] ss:$8 sps:$4 sm:$0xff]   ;;  %v8999_v57 = vld [vmem:[%s13275_s2 + $0x1d0] ss:$8 sps:$4 sm:$0xff]   ;;  %v9002_v58 = vld [vmem:[%s13275_s2 + $0x1e0] ss:$8 sps:$4 sm:$0xff]  }
  0x16   : > { %v9004_v59 = vld [vmem:[%s13275_s2 + $0x1e4] ss:$8 sps:$4 sm:$0xff]   ;;  %v9007_v60 = vld [vmem:[%s13275_s2 + $0x1f4] ss:$8 sps:$4 sm:$0xff]   ;;  %v9005_v61 = vld [vmem:[%s13275_s2 + $0x1f0] ss:$8 sps:$4 sm:$0xff]  }
  0x17   : > { %v9010_v62 = vld [vmem:[%s13275_s2 + $0x4] ss:$8 sps:$4 sm:$0xff]   ;;  %v9024_v1 = vld [vmem:[%s13274_s1 + $0x70] sm:$0xff]   ;;  %v9031_v2 = vld [vmem:[%s13274_s1 + $0x78] sm:$0xff]  }
  0x18   : > { %345 = vmatpush1.bf16.msra.mxu0 %v9970_v10  ;;  %1120 = vmatpush1.bf16.msra.mxu1 %v9970_v10  ;;  %v9041_v3 = vld [vmem:[%s13274_s1 + $0x80] sm:$0xff]   ;;  %v9069_v6 = vld [vmem:[%s13274_s1 + $0x88] sm:$0xff]   ;;  %v9076_v8 = vld [vmem:[%s13274_s1 + $0x90] sm:$0xff]  }
  0x19   : > { %346 = vmatprep.subr.bf16.mxu0 %v9974_v11  ;;  %1121 = vmatprep.subr.bf16.mxu1 %v9974_v11  ;;  %v9083_v12 = vld [vmem:[%s13274_s1 + $0x98] sm:$0xff]  }
  0x1c   : > { %347 = vmatpush1.bf16.msra.mxu0 %v9980_v14  ;;  %1122 = vmatpush1.bf16.msra.mxu1 %v9980_v14 }
  0x1d   : > { %348 = vmatprep.subr.bf16.mxu0 %v9984_v15  ;;  %1123 = vmatprep.subr.bf16.mxu1 %v9984_v15 }
  0x20   : > { %349 = vmatpush1.bf16.msra.mxu0 %v9988_v16  ;;  %1124 = vmatpush1.bf16.msra.mxu1 %v9988_v16 }
  0x21   : > { %496 = vmatprep.subr.bf16.mxu0 %v9958_v4  ;;  %1521 = vmatprep.subr.bf16.mxu1 %v9958_v4 }
  0x23   : > { %7398 = vmatmul.mubr.msk.bf16.vlgmr.msra.gmra.mrb[0].mxu0 %vm329_vm0, %v8947_v17  ;;  %7526 = vmatmul.mubr.msk.bf16.vlgmr.msra.gmra.mrb[0].mxu1 %vm329_vm0, %v8955_v18 }
  0x24   : > { %497 = vmatpush1.bf16.msra.mxu0 %v9960_v5  ;;  %384 = vmatprep.mubr.bf16.mxu0 %v9899_v0 }
  0x25   : > { %498 = vmatprep.subr.bf16.mxu0 %v9963_v7  ;;  %1159 = vmatprep.mubr.bf16.mxu1 %v9899_v0 }
  0x26   : > { %1522 = vmatpush1.bf16.msra.mxu1 %v9960_v5 }
  0x27   : > { %1523 = vmatprep.subr.bf16.mxu1 %v9963_v7 }
  0x28   : > { %499 = vmatpush1.bf16.msra.mxu0 %v9970_v10 }
  0x29   : > { %500 = vmatprep.subr.bf16.mxu0 %v9974_v11 }
  0x2a   : > { %1524 = vmatpush1.bf16.msra.mxu1 %v9970_v10 }
  0x2b   : > { %7399 = vmatmul.mubr.msk.bf16.gmra.mrb[4].mxu0 %vm329_vm0, %v8948_v19  ;;  %7527 = vmatmul.mubr.msk.bf16.gmra.mrb[4].mxu1 %vm329_vm0, %v8965_v20 }
  0x2c   : > { %394 = vmatprep.mubr.bf16.mxu0 %v9899_v0  ;;  %501 = vmatpush1.bf16.msra.mxu0 %v9980_v14 }
  0x2d   : > { %502 = vmatprep.subr.bf16.mxu0 %v9984_v15  ;;  %1169 = vmatprep.mubr.bf16.mxu1 %v9899_v0 }
  0x2e   : > { %1525 = vmatprep.subr.bf16.mxu1 %v9974_v11 }
  0x2f   : > { %1526 = vmatpush1.bf16.msra.mxu1 %v9980_v14 }
  0x30   : > { %503 = vmatpush1.bf16.msra.mxu0 %v9988_v16  ;;  %1527 = vmatprep.subr.bf16.mxu1 %v9984_v15 }
  0x31   : > { %770 = vmatprep.subr.bf16.mxu0 %v8958_v21 }
  0x33   : > { %7400 = vmatmul.mubr.msk.bf16.gmra.mrb[8].mxu0 %vm329_vm0, %v8949_v22  ;;  %7528 = vmatmul.mubr.msk.bf16.gmra.mrb[8].mxu1 %vm329_vm0, %v8972_v23  ;;  %v9093_v23 = vld [vmem:[%s13274_s1 + $0xa0] sm:$0xff]  }
  0x34   : > { %404 = vmatprep.mubr.bf16.mxu0 %v9899_v0  ;;  %1179 = vmatprep.mubr.bf16.mxu1 %v9899_v0 }
  0x35   : > { %1528 = vmatpush1.bf16.msra.mxu1 %v9988_v16 }
  0x36   : > { %1925 = vmatprep.subr.bf16.mxu1 %v9958_v4 }
  0x3b   : > { %7401 = vmatmul.mubr.msk.bf16.gmra.mrb[12].mxu0 %vm329_vm0, %v8950_v24  ;;  %7529 = vmatmul.mubr.msk.bf16.gmra.mrb[12].mxu1 %vm329_vm0, %v8979_v42 }
  0x3c   : > { %528 = vmatprep.mubr.bf16.mxu0 %v9899_v0  ;;  %1553 = vmatprep.mubr.bf16.mxu1 %v9899_v0 }
  0x43   : > { %7414 = vmatmul.mubr.msk.bf16.vlgmr.msra.gmra.mrb[16].mxu0 %vm329_vm0, %v8951_v25  ;;  %7606 = vmatmul.mubr.msk.bf16.vlgmr.msra.gmra.mrb[16].mxu1 %vm329_vm0, %v8989_v48 }
  0x44   : > { %538 = vmatprep.mubr.bf16.mxu0 %v9899_v0  ;;  %771 = vmatpush1.bf16.msra.mxu0 %v8956_v26 }
  0x45   : > { %772 = vmatprep.subr.bf16.mxu0 %v8961_v27  ;;  %1563 = vmatprep.mubr.bf16.mxu1 %v9899_v0 }
  0x46   : > { %1926 = vmatpush1.bf16.msra.mxu1 %v9960_v5 }
  0x47   : > { %1927 = vmatprep.subr.bf16.mxu1 %v9963_v7 }
  0x48   : > { %773 = vmatpush1.bf16.msra.mxu0 %v8959_v28 }
  0x49   : > { %774 = vmatprep.subr.bf16.mxu0 %v8964_v29 }
  0x4a   : > { %1928 = vmatpush1.bf16.msra.mxu1 %v9970_v10 }
  0x4b   : > { %7415 = vmatmul.mubr.msk.bf16.gmra.mrb[20].mxu0 %vm329_vm0, %v8952_v30  ;;  %1929 = vmatprep.subr.bf16.mxu1 %v9974_v11 }
  0x4c   : > { %548 = vmatprep.mubr.bf16.mxu0 %v9899_v0  ;;  %775 = vmatpush1.bf16.msra.mxu0 %v8962_v31 }
  0x4d   : > { %776 = vmatprep.subr.bf16.mxu0 %v8968_v32  ;;  %7607 = vmatmul.mubr.msk.bf16.gmra.mrb[20].mxu1 %vm329_vm0, %v9017_v63  ;;  %v9020_v63 = vld [vmem:[%s13275_s2 + $0x34] ss:$8 sps:$4 sm:$0xff]  }
  0x4e   : > { %1930 = vmatpush1.bf16.msra.mxu1 %v9980_v14  ;;  %1573 = vmatprep.mubr.bf16.mxu1 %v9899_v0 }
  0x4f   : > { %1931 = vmatprep.subr.bf16.mxu1 %v9984_v15 }
  0x50   : > { %777 = vmatpush1.bf16.msra.mxu0 %v8966_v33 }
  0x51   : > { %778 = vmatprep.subr.bf16.mxu0 %v8971_v34 }
  0x52   : > { %1932 = vmatpush1.bf16.msra.mxu1 %v9988_v16 }
  0x53   : > { %7416 = vmatmul.mubr.msk.bf16.gmra.mrb[24].mxu0 %vm329_vm0, %v8953_v35  ;;  %2329 = vmatprep.subr.bf16.mxu1 %v9958_v4 }
  0x54   : > { %558 = vmatprep.mubr.bf16.mxu0 %v9899_v0  ;;  %779 = vmatpush1.bf16.msra.mxu0 %v8969_v36 }
  0x55   : > { %780 = vmatprep.subr.bf16.mxu0 %v8975_v37  ;;  %7608 = vmatmul.mubr.msk.bf16.gmra.mrb[24].mxu1 %vm329_vm0, %v9024_v1 }
  0x56   : > { %1583 = vmatprep.mubr.bf16.mxu1 %v9899_v0 }
  0x58   : > { %781 = vmatpush1.bf16.msra.mxu0 %v8973_v38 }
  0x59   : > { %782 = vmatprep.subr.bf16.mxu0 %v8978_v39 }
  0x5b   : > { %7417 = vmatmul.mubr.msk.bf16.gmra.mrb[28].mxu0 %vm329_vm0, %v8954_v40 }
  0x5c   : > { %783 = vmatpush1.bf16.msra.mxu0 %v8976_v41 }
  0x5d   : > { %784 = vmatprep.subr.bf16.mxu0 %v8982_v43  ;;  %7609 = vmatmul.mubr.msk.bf16.gmra.mrb[28].mxu1 %vm329_vm0, %v9031_v2  ;;  %v9018_v2 = vld [vmem:[%s13275_s2 + $0x30] ss:$8 sps:$4 sm:$0xff]  }
  0x5e   : > { %1957 = vmatprep.mubr.bf16.mxu1 %v9899_v0 }
  0x60   : > { %785 = vmatpush1.bf16.msra.mxu0 %v8980_v44 }
  0x61   : > { %786 = vmatprep.subr.bf16.mxu0 %v8985_v46 }
  0x64   : > { %787 = vmatpush1.bf16.msra.mxu0 %v8983_v45 }
  0x65   : > { %788 = vmatprep.subr.bf16.mxu0 %v8988_v47  ;;  %7686 = vmatmul.mubr.msk.bf16.vlgmr.msra.gmra.mrb[32].mxu1 %vm329_vm0, %v9041_v3  ;;  %v9121_v3 = vld [vmem:[%s13274_s1 + $0xa8] sm:$0xff]  }
  0x66   : > { %1967 = vmatprep.mubr.bf16.mxu1 %v9899_v0  ;;  %2330 = vmatpush1.bf16.msra.mxu1 %v9960_v5 }
  0x67   : > { %2331 = vmatprep.subr.bf16.mxu1 %v9963_v7 }
  0x68   : > { %789 = vmatpush1.bf16.msra.mxu0 %v8986_v49 }
  0x69   : > { %790 = vmatprep.subr.bf16.mxu0 %v8992_v51 }
  0x6a   : > { %2332 = vmatpush1.bf16.msra.mxu1 %v9970_v10 }
  0x6b   : > { %2333 = vmatprep.subr.bf16.mxu1 %v9974_v11 }
  0x6c   : > { %791 = vmatpush1.bf16.msra.mxu0 %v8990_v50 }
  0x6d   : > { %792 = vmatprep.subr.bf16.mxu0 %v8995_v52  ;;  %7687 = vmatmul.mubr.msk.bf16.gmra.mrb[36].mxu1 %vm329_vm0, %v9069_v6  ;;  %v9008_v52 = vld [vmem:[%s13275_s2] ss:$8 sps:$4 sm:$0xff]  }
  0x6e   : > { %2334 = vmatpush1.bf16.msra.mxu1 %v9980_v14  ;;  %1977 = vmatprep.mubr.bf16.mxu1 %v9899_v0 }
  0x6f   : > { %2335 = vmatprep.subr.bf16.mxu1 %v9984_v15 }
  0x70   : > { %793 = vmatpush1.bf16.msra.mxu0 %v8993_v53  ;;  %v9013_v53 = vld [vmem:[%s13275_s2 + $0x14] ss:$8 sps:$4 sm:$0xff]  }
  0x71   : > { %794 = vmatprep.subr.bf16.mxu0 %v8998_v55  ;;  %v9011_v55 = vld [vmem:[%s13275_s2 + $0x10] ss:$8 sps:$4 sm:$0xff]  }
  0x72   : > { %2336 = vmatpush1.bf16.msra.mxu1 %v9988_v16 }
  0x73   : > { %2733 = vmatprep.subr.bf16.mxu1 %v9958_v4 }
  0x74   : > { %795 = vmatpush1.bf16.msra.mxu0 %v8996_v54 }
  0x75   : > { %796 = vmatprep.subr.bf16.mxu0 %v9001_v56  ;;  %7688 = vmatmul.mubr.msk.bf16.gmra.mrb[40].mxu1 %vm329_vm0, %v9076_v8  ;;  %v9023_v8 = vld [vmem:[%s13275_s2 + $0x44] ss:$8 sps:$4 sm:$0xff]  }
  0x76   : > { %1987 = vmatprep.mubr.bf16.mxu1 %v9899_v0 }
  0x78   : > { %797 = vmatpush1.bf16.msra.mxu0 %v8999_v57  ;;  %v9016_v57 = vld [vmem:[%s13275_s2 + $0x24] ss:$8 sps:$4 sm:$0xff]  }
  0x79   : > { %798 = vmatprep.subr.bf16.mxu0 %v9004_v59 }
  0x7c   : > { %799 = vmatpush1.bf16.msra.mxu0 %v9002_v58 }
  0x7d   : > { %800 = vmatprep.subr.bf16.mxu0 %v9007_v60  ;;  %7689 = vmatmul.mubr.msk.bf16.gmra.mrb[44].mxu1 %vm329_vm0, %v9083_v12 }
  0x7e   : > { %2361 = vmatprep.mubr.bf16.mxu1 %v9899_v0 }
  0x80   : > { %801 = vmatpush1.bf16.msra.mxu0 %v9005_v61 }
  0x81   : > { %1003 = vmatprep.subr.bf16.mxu0 %v9010_v62  ;;  %v9014_v62 = vld [vmem:[%s13275_s2 + $0x20] ss:$8 sps:$4 sm:$0xff]  }
  0x85   : > { %7766 = vmatmul.mubr.msk.bf16.vlgmr.msra.gmra.mrb[48].mxu1 %vm329_vm0, %v9093_v23 }
  0x86   : > { %2371 = vmatprep.mubr.bf16.mxu1 %v9899_v0  ;;  %2734 = vmatpush1.bf16.msra.mxu1 %v9960_v5 }
  0x87   : > { %2735 = vmatprep.subr.bf16.mxu1 %v9963_v7 }
  0x8a   : > { %2736 = vmatpush1.bf16.msra.mxu1 %v9970_v10 }
  0x8b   : > { %2737 = vmatprep.subr.bf16.mxu1 %v9974_v11 }
  0x8d   : > { %7767 = vmatmul.mubr.msk.bf16.gmra.mrb[52].mxu1 %vm329_vm0, %v9121_v3 }
  0x8e   : > { %2738 = vmatpush1.bf16.msra.mxu1 %v9980_v14  ;;  %2381 = vmatprep.mubr.bf16.mxu1 %v9899_v0 }
  0x8f   : > { %2739 = vmatprep.subr.bf16.mxu1 %v9984_v15 }
  0x92   : > { %2740 = vmatpush1.bf16.msra.mxu1 %v9988_v16 }
  0x93   : > { %3137 = vmatprep.subr.bf16.mxu1 %v9958_v4 }
  0xf6   : > { %v10221_v9 = vpop.f32.mrb[0].mxu0  ;;  %v10287_v40 = vpop.f32.mrb[0].mxu1 }
  0xf7   : > { %v10226_v13 = vpop.f32.mrb[1].mxu0  ;;  %v10289_v41 = vpop.f32.mrb[1].mxu1 }
  0xf8   : > { %v10228_v17 = vpop.f32.mrb[2].mxu0  ;;  %v10291_v42 = vpop.f32.mrb[2].mxu1 }
  0xf9   : > { %v415_v18 = vpack.c.bf16 %v10228_v17, %v10221_v9  ;;  %v10233_v19 = vpop.f32.mrb[3].mxu0  ;;  %v1190_v43 = vpack.c.bf16 %v10291_v42, %v10287_v40  ;;  %v10295_v45 = vpop.f32.mrb[3].mxu1  ;;  %v9066_v9 = vld [vmem:[%s13275_s2 + $0x220] ss:$8 sps:$4 sm:$0xff]   ;;  %v9072_v17 = vld [vmem:[%s13275_s2 + $0x234] ss:$8 sps:$4 sm:$0xff]  }
  0xfa   : > { %v416_v20 = vpack.c.bf16 %v10233_v19, %v10226_v13  ;;  %v1191_v47 = vpack.c.bf16 %v10295_v45, %v10289_v41  ;;  %v9035_v13 = vld [vmem:[%s13275_s2 + $0x80] ss:$8 sps:$4 sm:$0xff]   ;;  %v9124_v42 = vld [vmem:[%s13275_s2 + $0x334] ss:$8 sps:$4 sm:$0xff]  }
  0xfb   : > { %v9118_v40 = vld [vmem:[%s13275_s2 + $0x320] ss:$8 sps:$4 sm:$0xff]  }
  0xfe   : > { %v10238_v21 = vpop.f32.mrb[4].mxu0  ;;  %v10368_v19 = vpop.f32.mrb[4].mxu1 }
  0xff   : > { %v10240_v22 = vpop.f32.mrb[5].mxu0 }
 0x100   : > { %v10245_v24 = vpop.f32.mrb[6].mxu0 }
 0x101   : > { %v417_v25 = vpack.c.bf16 %v10245_v24, %v10238_v21  ;;  %v10249_v26 = vpop.f32.mrb[7].mxu0  ;;  %v9073_v21 = vld [vmem:[%s13275_s2 + $0x240] ss:$8 sps:$4 sm:$0xff]   ;;  %v9079_v24 = vld [vmem:[%s13275_s2 + $0x254] ss:$8 sps:$4 sm:$0xff]  }
 0x102   : > { %v418_v27 = vpack.c.bf16 %v10249_v26, %v10240_v22  ;;  %v9173_v22 = vld [vmem:[%s13274_s1 + $0xc8] sm:$0xff]  }
 0x103   : > { %v9075_v26 = vld [vmem:[%s13275_s2 + $0x244] ss:$8 sps:$4 sm:$0xff]  }
 0x106   : > { %v10257_v28 = vpop.f32.mrb[8].mxu0 }
 0x107   : > { %v10260_v29 = vpop.f32.mrb[9].mxu0 }
 0x108   : > { %v10263_v30 = vpop.f32.mrb[10].mxu0 }
 0x109   : > { %v419_v31 = vpack.c.bf16 %v10263_v30, %v10257_v28  ;;  %v10267_v32 = vpop.f32.mrb[11].mxu0  ;;  %v9080_v28 = vld [vmem:[%s13275_s2 + $0x260] ss:$8 sps:$4 sm:$0xff]   ;;  %v9086_v30 = vld [vmem:[%s13275_s2 + $0x274] ss:$8 sps:$4 sm:$0xff]  }
 0x10a   : > { %v420_v33 = vpack.c.bf16 %v10267_v32, %v10260_v29  ;;  %v9082_v29 = vld [vmem:[%s13275_s2 + $0x264] ss:$8 sps:$4 sm:$0xff]   ;;  %v9187_v32 = vld [vmem:[%s13274_s1 + $0xd8] sm:$0xff]  }
 0x10e   : > { %v10273_v34 = vpop.f32.mrb[12].mxu0 }
 0x10f   : > { %v10276_v35 = vpop.f32.mrb[13].mxu0 }
 0x110   : > { %v10279_v36 = vpop.f32.mrb[14].mxu0 }
 0x111   : > { %v421_v37 = vpack.c.bf16 %v10279_v36, %v10273_v34  ;;  %v10283_v38 = vpop.f32.mrb[15].mxu0  ;;  %v9087_v34 = vld [vmem:[%s13275_s2 + $0x280] ss:$8 sps:$4 sm:$0xff]  }
 0x112   : > { %v422_v39 = vpack.c.bf16 %v10283_v38, %v10276_v35  ;;  %v9092_v35 = vld [vmem:[%s13275_s2 + $0x294] ss:$8 sps:$4 sm:$0xff]  }
 0x116   : > { %v530_v44 = vpop.f32.mrb[16].mxu0 }
 0x117   : > { %v532_v46 = vpop.f32.mrb[17].mxu0 }
 0x118   : > { %v534_v48 = vpop.f32.mrb[18].mxu0 }
 0x119   : > { %v569_v49 = vpack.c.bf16 %v534_v48, %v530_v44  ;;  %v536_v50 = vpop.f32.mrb[19].mxu0  ;;  %v9021_v48 = vld [vmem:[%s13275_s2 + $0x40] ss:$8 sps:$4 sm:$0xff]  }
 0x11a   : > { %v570_v51 = vpack.c.bf16 %v536_v50, %v532_v46 }
 0x11c   : > { %802 = vmatprep.mubr.bf16.mxu0 %v570_v51  ;;  %v9025_v51 = vld [vmem:[%s13275_s2 + $0x50] ss:$8 sps:$4 sm:$0xff]  }
 0x11d   : > { %803 = vmatmul.mubr.bf16.vlgmr.msra.gmra.mrb[32].mxu0 %v569_v49  ;;  %v9027_v49 = vld [vmem:[%s13275_s2 + $0x54] ss:$8 sps:$4 sm:$0xff]  }
 0x11e   : > { %1004 = vmatpush1.bf16.msra.mxu0 %v9008_v52  ;;  %v540_v54 = vpop.f32.mrb[20].mxu0  ;;  %v9128_v52 = vld [vmem:[%s13274_s1 + $0xb0] sm:$0xff]  }
 0x11f   : > { %v542_v56 = vpop.f32.mrb[21].mxu0  ;;  %1005 = vmatprep.subr.bf16.mxu0 %v9013_v53  ;;  %7768 = vmatmul.mubr.msk.bf16.gmra.mrb[56].mxu1 %vm329_vm0, %v9128_v52 }
 0x120   : > { %v544_v58 = vpop.f32.mrb[22].mxu0  ;;  %2391 = vmatprep.mubr.bf16.mxu1 %v9899_v0 }
 0x121   : > { %v571_v59 = vpack.c.bf16 %v544_v58, %v540_v54  ;;  %v546_v60 = vpop.f32.mrb[23].mxu0  ;;  %v9030_v54 = vld [vmem:[%s13275_s2 + $0x64] ss:$8 sps:$4 sm:$0xff]  }
 0x122   : > { %v572_v61 = vpack.c.bf16 %v546_v60, %v542_v56  ;;  %1006 = vmatpush1.bf16.msra.mxu0 %v9011_v55  ;;  %v9034_v60 = vld [vmem:[%s13275_s2 + $0x74] ss:$8 sps:$4 sm:$0xff]  }
 0x123   : > { %1007 = vmatprep.subr.bf16.mxu0 %v9016_v57 }
 0x124   : > { %812 = vmatprep.mubr.bf16.mxu0 %v572_v61  ;;  %v9032_v61 = vld [vmem:[%s13275_s2 + $0x70] ss:$8 sps:$4 sm:$0xff]  }
 0x125   : > { %813 = vmatmul.mubr.bf16.gmra.mrb[36].mxu0 %v571_v59  ;;  %v9028_v59 = vld [vmem:[%s13275_s2 + $0x60] ss:$8 sps:$4 sm:$0xff]  }
 0x126   : > { %1008 = vmatpush1.bf16.msra.mxu0 %v9014_v62  ;;  %v550_v1 = vpop.f32.mrb[24].mxu0  ;;  %v9135_v62 = vld [vmem:[%s13274_s1 + $0xb8] sm:$0xff]  }
 0x127   : > { %v552_v6 = vpop.f32.mrb[25].mxu0  ;;  %1009 = vmatprep.subr.bf16.mxu0 %v9020_v63  ;;  %v9037_v63 = vld [vmem:[%s13275_s2 + $0x84] ss:$8 sps:$4 sm:$0xff]   ;;  %7769 = vmatmul.mubr.msk.bf16.gmra.mrb[60].mxu1 %vm329_vm0, %v9135_v62 }
 0x128   : > { %v554_v12 = vpop.f32.mrb[26].mxu0  ;;  %2765 = vmatprep.mubr.bf16.mxu1 %v9899_v0 }
 0x129   : > { %v573_v23 = vpack.c.bf16 %v554_v12, %v550_v1  ;;  %v556_v44 = vpop.f32.mrb[27].mxu0  ;;  %v10373_v1 = vpop.f32.mrb[5].mxu1 }
 0x12a   : > { %v574_v46 = vpack.c.bf16 %v556_v44, %v552_v6  ;;  %1010 = vmatpush1.bf16.msra.mxu0 %v9018_v2  ;;  %v10375_v2 = vpop.f32.mrb[6].mxu1  ;;  %v9145_v44 = vld [vmem:[%s13274_s1 + $0xc0] sm:$0xff]  }
 0x12b   : > { %1011 = vmatprep.subr.bf16.mxu0 %v9023_v8  ;;  %v1192_v3 = vpack.c.bf16 %v10375_v2, %v10368_v19  ;;  %v10379_v6 = vpop.f32.mrb[7].mxu1  ;;  %v9038_v8 = vld [vmem:[%s13275_s2 + $0x90] ss:$8 sps:$4 sm:$0xff]   ;;  %v9125_v19 = vld [vmem:[%s13275_s2 + $0x340] ss:$8 sps:$4 sm:$0xff]  }
 0x12c   : > { %822 = vmatprep.mubr.bf16.mxu0 %v574_v46  ;;  %v1193_v12 = vpack.c.bf16 %v10379_v6, %v10373_v1  ;;  %v9042_v46 = vld [vmem:[%s13275_s2 + $0xa0] ss:$8 sps:$4 sm:$0xff]   ;;  %v9122_v1 = vld [vmem:[%s13275_s2 + $0x330] ss:$8 sps:$4 sm:$0xff]   ;;  %v9127_v6 = vld [vmem:[%s13275_s2 + $0x344] ss:$8 sps:$4 sm:$0xff]  }
 0x12d   : > { %823 = vmatmul.mubr.bf16.gmra.mrb[40].mxu0 %v573_v23  ;;  %v9044_v23 = vld [vmem:[%s13275_s2 + $0xa4] ss:$8 sps:$4 sm:$0xff]   ;;  %v9131_v2 = vld [vmem:[%s13275_s2 + $0x354] ss:$8 sps:$4 sm:$0xff]  }
 0x12e   : > { %1012 = vmatpush1.bf16.msra.mxu0 %v9021_v48  ;;  %v560_v50 = vpop.f32.mrb[28].mxu0  ;;  %v10396_v48 = vpop.f32.mrb[8].mxu1 }
 0x12f   : > { %v562_v53 = vpop.f32.mrb[29].mxu0  ;;  %1013 = vmatprep.subr.bf16.mxu0 %v9027_v49  ;;  %7846 = vmatmul.mubr.msk.bf16.vlgmr.msra.gmra.mrb[64].mxu1 %vm329_vm0, %v9145_v44  ;;  %v9047_v49 = vld [vmem:[%s13275_s2 + $0xb4] ss:$8 sps:$4 sm:$0xff]  }
 0x130   : > { %v564_v55 = vpop.f32.mrb[30].mxu0  ;;  %2775 = vmatprep.mubr.bf16.mxu1 %v9899_v0  ;;  %3138 = vmatpush1.bf16.msra.mxu1 %v9960_v5  ;;  %v9059_v44 = vld [vmem:[%s13275_s2 + $0xf4] ss:$8 sps:$4 sm:$0xff]  }
 0x131   : > { %v575_v56 = vpack.c.bf16 %v564_v55, %v560_v50  ;;  %v566_v57 = vpop.f32.mrb[31].mxu0  ;;  %v10402_v50 = vpop.f32.mrb[9].mxu1  ;;  %3139 = vmatprep.subr.bf16.mxu1 %v9963_v7 }
 0x132   : > { %v576_v58 = vpack.c.bf16 %v566_v57, %v562_v53  ;;  %1014 = vmatpush1.bf16.msra.mxu0 %v9025_v51  ;;  %v10405_v51 = vpop.f32.mrb[10].mxu1  ;;  %v9048_v57 = vld [vmem:[%s13275_s2 + $0xc0] ss:$8 sps:$4 sm:$0xff]  }
 0x133   : > { %1015 = vmatprep.subr.bf16.mxu0 %v9030_v54  ;;  %v1194_v52 = vpack.c.bf16 %v10405_v51, %v10396_v48  ;;  %v10410_v53 = vpop.f32.mrb[11].mxu1  ;;  %v9045_v54 = vld [vmem:[%s13275_s2 + $0xb0] ss:$8 sps:$4 sm:$0xff]   ;;  %v9132_v48 = vld [vmem:[%s13275_s2 + $0x360] ss:$8 sps:$4 sm:$0xff]  }
 0x134   : > { %832 = vmatprep.mubr.bf16.mxu0 %v576_v58  ;;  %v1195_v55 = vpack.c.bf16 %v10410_v53, %v10402_v50  ;;  %3140 = vmatpush1.bf16.msra.mxu1 %v9970_v10  ;;  %v10425_v58 = vpop.f32.mrb[12].mxu1  ;;  %v9134_v50 = vld [vmem:[%s13275_s2 + $0x364] ss:$8 sps:$4 sm:$0xff]   ;;  %v9138_v51 = vld [vmem:[%s13275_s2 + $0x374] ss:$8 sps:$4 sm:$0xff]  }
 0x135   : > { %833 = vmatmul.mubr.bf16.gmra.mrb[44].mxu0 %v575_v56  ;;  %v9050_v56 = vld [vmem:[%s13275_s2 + $0xc4] ss:$8 sps:$4 sm:$0xff]   ;;  %3141 = vmatprep.subr.bf16.mxu1 %v9974_v11  ;;  %v9136_v53 = vld [vmem:[%s13275_s2 + $0x370] ss:$8 sps:$4 sm:$0xff]  }
 0x136   : > { %1016 = vmatpush1.bf16.msra.mxu0 %v9028_v59  ;;  %1035 = vmatprep.mubr.bf16.mxu0 %v416_v20  ;;  %v9040_v20 = vld [vmem:[%s13275_s2 + $0x94] ss:$8 sps:$4 sm:$0xff]  }
 0x137   : > { %1017 = vmatprep.subr.bf16.mxu0 %v9034_v60  ;;  %v9053_v59 = vld [vmem:[%s13275_s2 + $0xd4] ss:$8 sps:$4 sm:$0xff]   ;;  %v10430_v60 = vpop.f32.mrb[13].mxu1  ;;  %7847 = vmatmul.mubr.msk.bf16.gmra.mrb[68].mxu1 %vm329_vm0, %v9173_v22 }
 0x138   : > { %3142 = vmatpush1.bf16.msra.mxu1 %v9980_v14  ;;  %2785 = vmatprep.mubr.bf16.mxu1 %v9899_v0 }
 0x139   : > { %3143 = vmatprep.subr.bf16.mxu1 %v9984_v15 }
 0x13a   : > { %1018 = vmatpush1.bf16.msra.mxu0 %v9032_v61  ;;  %v10433_v61 = vpop.f32.mrb[14].mxu1 }
 0x13b   : > { %1019 = vmatprep.subr.bf16.mxu0 %v9037_v63  ;;  %v1196_v62 = vpack.c.bf16 %v10433_v61, %v10425_v58  ;;  %v10438_v63 = vpop.f32.mrb[15].mxu1  ;;  %v9139_v58 = vld [vmem:[%s13275_s2 + $0x380] ss:$8 sps:$4 sm:$0xff]  }
 0x13c   : > { %3144 = vmatpush1.bf16.msra.mxu1 %v9988_v16 }
 0x13d   : > { %3541 = vmatprep.subr.bf16.mxu1 %v9958_v4  ;;  %v9057_v4 = vld [vmem:[%s13275_s2 + $0xf0] ss:$8 sps:$4 sm:$0xff]  }
 0x13e   : > { %1020 = vmatpush1.bf16.msra.mxu0 %v9035_v13  ;;  %v9051_v13 = vld [vmem:[%s13275_s2 + $0xd0] ss:$8 sps:$4 sm:$0xff]  }
 0x13f   : > { %1021 = vmatprep.subr.bf16.mxu0 %v9040_v20  ;;  %v1197_v20 = vpack.c.bf16 %v10438_v63, %v10430_v60  ;;  %v9144_v60 = vld [vmem:[%s13275_s2 + $0x394] ss:$8 sps:$4 sm:$0xff]  }
 0x142   : > { %1022 = vmatpush1.bf16.msra.mxu0 %v9038_v8  ;;  %v9056_v8 = vld [vmem:[%s13275_s2 + $0xe4] ss:$8 sps:$4 sm:$0xff]  }
 0x143   : > { %1023 = vmatprep.subr.bf16.mxu0 %v9044_v23  ;;  %v9054_v23 = vld [vmem:[%s13275_s2 + $0xe0] ss:$8 sps:$4 sm:$0xff]  }
 0x146   : > { %1024 = vmatpush1.bf16.msra.mxu0 %v9042_v46  ;;  %v10456_v46 = vpop.f32.mrb[16].mxu1 }
 0x147   : > { %1025 = vmatprep.subr.bf16.mxu0 %v9047_v49  ;;  %v10458_v49 = vpop.f32.mrb[17].mxu1 }
 0x14a   : > { %1026 = vmatpush1.bf16.msra.mxu0 %v9045_v54  ;;  %v10460_v54 = vpop.f32.mrb[18].mxu1 }
 0x14b   : > { %1027 = vmatprep.subr.bf16.mxu0 %v9050_v56  ;;  %v1594_v56 = vpack.c.bf16 %v10460_v54, %v10456_v46  ;;  %v9170_v46 = vld [vmem:[%s13275_s2 + $0x420] ss:$8 sps:$4 sm:$0xff]   ;;  %v9176_v54 = vld [vmem:[%s13275_s2 + $0x434] ss:$8 sps:$4 sm:$0xff]  }
 0x14e   : > { %1028 = vmatpush1.bf16.msra.mxu0 %v9048_v57  ;;  %v10467_v57 = vpop.f32.mrb[19].mxu1 }
 0x14f   : > { %1029 = vmatprep.subr.bf16.mxu0 %v9053_v59  ;;  %v9062_v59 = vld [vmem:[%s13275_s2 + $0x204] ss:$8 sps:$4 sm:$0xff]   ;;  %v10567_v36 = vpop.f32.mrb[20].mxu1 }
 0x152   : > { %1030 = vmatpush1.bf16.msra.mxu0 %v9051_v13  ;;  %v1595_v13 = vpack.c.bf16 %v10467_v57, %v10458_v49 }
 0x153   : > { %1031 = vmatprep.subr.bf16.mxu0 %v9056_v8  ;;  %v9060_v8 = vld [vmem:[%s13275_s2 + $0x200] ss:$8 sps:$4 sm:$0xff]  }
 0x156   : > { %1032 = vmatpush1.bf16.msra.mxu0 %v9054_v23  ;;  %v9065_v23 = vld [vmem:[%s13275_s2 + $0x214] ss:$8 sps:$4 sm:$0xff]  }
 0x157   : > { %1033 = vmatprep.subr.bf16.mxu0 %v9059_v44  ;;  %v9063_v44 = vld [vmem:[%s13275_s2 + $0x210] ss:$8 sps:$4 sm:$0xff]  }
 0x15a   : > { %1034 = vmatpush1.bf16.msra.mxu0 %v9057_v4  ;;  %v9068_v4 = vld [vmem:[%s13275_s2 + $0x224] ss:$8 sps:$4 sm:$0xff]  }
 0x15b   : > { %1391 = vmatprep.subr.bf16.mxu0 %v9062_v59 }
 0x15d   : > { %1036 = vmatmul.mubr.bf16.vlgmr.msra.gmra.mrb[32].mxu0 %v415_v18  ;;  %v9070_v18 = vld [vmem:[%s13275_s2 + $0x230] ss:$8 sps:$4 sm:$0xff]  }
 0x15e   : > { %1045 = vmatprep.mubr.bf16.mxu0 %v418_v27  ;;  %1392 = vmatpush1.bf16.msra.mxu0 %v9060_v8  ;;  %v9180_v27 = vld [vmem:[%s13274_s1 + $0xd0] sm:$0xff]   ;;  %v9197_v8 = vld [vmem:[%s13274_s1 + $0xe0] sm:$0xff]  }
 0x15f   : > { %1393 = vmatprep.subr.bf16.mxu0 %v9065_v23  ;;  %7848 = vmatmul.mubr.msk.bf16.gmra.mrb[72].mxu1 %vm329_vm0, %v9180_v27  ;;  %v9094_v23 = vld [vmem:[%s13275_s2 + $0x2a0] ss:$8 sps:$4 sm:$0xff]  }
 0x160   : > { %2795 = vmatprep.mubr.bf16.mxu1 %v9899_v0 }
 0x162   : > { %1394 = vmatpush1.bf16.msra.mxu0 %v9063_v44  ;;  %v9099_v44 = vld [vmem:[%s13275_s2 + $0x2b4] ss:$8 sps:$4 sm:$0xff]  }
 0x163   : > { %1395 = vmatprep.subr.bf16.mxu0 %v9068_v4 }
 0x165   : > { %1046 = vmatmul.mubr.bf16.gmra.mrb[36].mxu0 %v417_v25  ;;  %v9077_v25 = vld [vmem:[%s13275_s2 + $0x250] ss:$8 sps:$4 sm:$0xff]  }
 0x166   : > { %1055 = vmatprep.mubr.bf16.mxu0 %v420_v33  ;;  %1396 = vmatpush1.bf16.msra.mxu0 %v9066_v9  ;;  %v9089_v33 = vld [vmem:[%s13275_s2 + $0x284] ss:$8 sps:$4 sm:$0xff]  }
 0x167   : > { %1397 = vmatprep.subr.bf16.mxu0 %v9072_v17  ;;  %7849 = vmatmul.mubr.msk.bf16.gmra.mrb[76].mxu1 %vm329_vm0, %v9187_v32 }
 0x168   : > { %3169 = vmatprep.mubr.bf16.mxu1 %v9899_v0 }
 0x16a   : > { %1398 = vmatpush1.bf16.msra.mxu0 %v9070_v18  ;;  %v9097_v18 = vld [vmem:[%s13275_s2 + $0x2b0] ss:$8 sps:$4 sm:$0xff]  }
 0x16b   : > { %1399 = vmatprep.subr.bf16.mxu0 %v9075_v26 }
 0x16d   : > { %1056 = vmatmul.mubr.bf16.gmra.mrb[40].mxu0 %v419_v31  ;;  %v9084_v31 = vld [vmem:[%s13275_s2 + $0x270] ss:$8 sps:$4 sm:$0xff]  }
 0x16e   : > { %1065 = vmatprep.mubr.bf16.mxu0 %v422_v39  ;;  %1400 = vmatpush1.bf16.msra.mxu0 %v9073_v21  ;;  %v9090_v39 = vld [vmem:[%s13275_s2 + $0x290] ss:$8 sps:$4 sm:$0xff]   ;;  %v9100_v21 = vld [vmem:[%s13275_s2 + $0x2c0] ss:$8 sps:$4 sm:$0xff]  }
 0x16f   : > { %1401 = vmatprep.subr.bf16.mxu0 %v9079_v24  ;;  %7926 = vmatmul.mubr.msk.bf16.vlgmr.msra.gmra.mrb[80].mxu1 %vm329_vm0, %v9197_v8  ;;  %v9105_v24 = vld [vmem:[%s13275_s2 + $0x2d4] ss:$8 sps:$4 sm:$0xff]  }
 0x170   : > { %3179 = vmatprep.mubr.bf16.mxu1 %v9899_v0  ;;  %3542 = vmatpush1.bf16.msra.mxu1 %v9960_v5  ;;  %v9102_v5 = vld [vmem:[%s13275_s2 + $0x2c4] ss:$8 sps:$4 sm:$0xff]  }
 0x171   : > { %3543 = vmatprep.subr.bf16.mxu1 %v9963_v7 }
 0x172   : > { %1402 = vmatpush1.bf16.msra.mxu0 %v9077_v25 }
 0x173   : > { %1403 = vmatprep.subr.bf16.mxu0 %v9082_v29 }
 0x174   : > { %3544 = vmatpush1.bf16.msra.mxu1 %v9970_v10 }
 0x175   : > { %1066 = vmatmul.mubr.bf16.gmra.mrb[44].mxu0 %v421_v37  ;;  %v10569_v37 = vpop.f32.mrb[21].mxu1  ;;  %3545 = vmatprep.subr.bf16.mxu1 %v9974_v11  ;;  %v9103_v11 = vld [vmem:[%s13275_s2 + $0x2d0] ss:$8 sps:$4 sm:$0xff]  }
 0x176   : > { %1404 = vmatpush1.bf16.msra.mxu0 %v9080_v28  ;;  %1423 = vmatprep.mubr.bf16.mxu0 %v1191_v47  ;;  %v10571_v38 = vpop.f32.mrb[22].mxu1  ;;  %v9096_v47 = vld [vmem:[%s13275_s2 + $0x2a4] ss:$8 sps:$4 sm:$0xff]  }
 0x177   : > { %1405 = vmatprep.subr.bf16.mxu0 %v9086_v30  ;;  %v1596_v41 = vpack.c.bf16 %v10571_v38, %v10567_v36  ;;  %v10578_v45 = vpop.f32.mrb[23].mxu1  ;;  %v9106_v30 = vld [vmem:[%s13275_s2 + $0x2e0] ss:$8 sps:$4 sm:$0xff]   ;;  %v9183_v38 = vld [vmem:[%s13275_s2 + $0x454] ss:$8 sps:$4 sm:$0xff]  }
 0x178   : > { %v1597_v59 = vpack.c.bf16 %v10578_v45, %v10569_v37  ;;  %v10596_v4 = vpop.f32.mrb[24].mxu1  ;;  %3546 = vmatpush1.bf16.msra.mxu1 %v9980_v14  ;;  %v9108_v14 = vld [vmem:[%s13275_s2 + $0x2e4] ss:$8 sps:$4 sm:$0xff]   ;;  %v9177_v36 = vld [vmem:[%s13275_s2 + $0x440] ss:$8 sps:$4 sm:$0xff]  }
 0x179   : > { %v10599_v9 = vpop.f32.mrb[25].mxu1  ;;  %3547 = vmatprep.subr.bf16.mxu1 %v9984_v15  ;;  %v9179_v37 = vld [vmem:[%s13275_s2 + $0x444] ss:$8 sps:$4 sm:$0xff]  }
 0x17a   : > { %1406 = vmatpush1.bf16.msra.mxu0 %v9084_v31  ;;  %v10602_v17 = vpop.f32.mrb[26].mxu1  ;;  %v9111_v31 = vld [vmem:[%s13275_s2 + $0x2f4] ss:$8 sps:$4 sm:$0xff]   ;;  %v9186_v45 = vld [vmem:[%s13275_s2 + $0x464] ss:$8 sps:$4 sm:$0xff]  }
 0x17b   : > { %1407 = vmatprep.subr.bf16.mxu0 %v9089_v33  ;;  %v1598_v22 = vpack.c.bf16 %v10602_v17, %v10596_v4  ;;  %v10609_v26 = vpop.f32.mrb[27].mxu1  ;;  %v9190_v4 = vld [vmem:[%s13275_s2 + $0x474] ss:$8 sps:$4 sm:$0xff]   ;;  %v9193_v17 = vld [vmem:[%s13275_s2 + $0x484] ss:$8 sps:$4 sm:$0xff]  }
 0x17c   : > { %v1599_v7 = vpack.c.bf16 %v10609_v26, %v10599_v9  ;;  %v10624_v25 = vpop.f32.mrb[28].mxu1  ;;  %3548 = vmatpush1.bf16.msra.mxu1 %v9988_v16  ;;  %v9188_v9 = vld [vmem:[%s13275_s2 + $0x470] ss:$8 sps:$4 sm:$0xff]   ;;  %v9196_v26 = vld [vmem:[%s13275_s2 + $0x494] ss:$8 sps:$4 sm:$0xff]  }
 0x17d   : > { %v10627_v27 = vpop.f32.mrb[29].mxu1 }
 0x17e   : > { %1408 = vmatpush1.bf16.msra.mxu0 %v9087_v34  ;;  %v10630_v10 = vpop.f32.mrb[30].mxu1  ;;  %v9109_v34 = vld [vmem:[%s13275_s2 + $0x2f0] ss:$8 sps:$4 sm:$0xff]  }
 0x17f   : > { %1409 = vmatprep.subr.bf16.mxu0 %v9092_v35  ;;  %v1600_v29 = vpack.c.bf16 %v10630_v10, %v10624_v25  ;;  %v10637_v28 = vpop.f32.mrb[31].mxu1  ;;  %v9114_v35 = vld [vmem:[%s13275_s2 + $0x304] ss:$8 sps:$4 sm:$0xff]   ;;  %v9194_v10 = vld [vmem:[%s13275_s2 + $0x490] ss:$8 sps:$4 sm:$0xff]  }
 0x180   : > { %v1601_v15 = vpack.c.bf16 %v10637_v28, %v10627_v27  ;;  %v10651_v32 = vpop.f32.mrb[32].mxu1 }
 0x181   : > { %v10653_v33 = vpop.f32.mrb[33].mxu1 }
 0x182   : > { %1410 = vmatpush1.bf16.msra.mxu0 %v9090_v39  ;;  %v10658_v16 = vpop.f32.mrb[34].mxu1 }
 0x183   : > { %1411 = vmatprep.subr.bf16.mxu0 %v9096_v47  ;;  %v1998_v39 = vpack.c.bf16 %v10658_v16, %v10651_v32  ;;  %v10665_v47 = vpop.f32.mrb[35].mxu1  ;;  %v9222_v32 = vld [vmem:[%s13275_s2 + $0x520] ss:$8 sps:$4 sm:$0xff]   ;;  %v9228_v16 = vld [vmem:[%s13275_s2 + $0x534] ss:$8 sps:$4 sm:$0xff]  }
 0x184   : > { %v1999_v8 = vpack.c.bf16 %v10665_v47, %v10653_v33  ;;  %v10762_v61 = vpop.f32.mrb[36].mxu1  ;;  %v9198_v47 = vld [vmem:[%s13275_s2 + $0x4a0] ss:$8 sps:$4 sm:$0xff]  }
 0x186   : > { %1412 = vmatpush1.bf16.msra.mxu0 %v9094_v23  ;;  %v9112_v23 = vld [vmem:[%s13275_s2 + $0x300] ss:$8 sps:$4 sm:$0xff]  }
 0x187   : > { %1413 = vmatprep.subr.bf16.mxu0 %v9099_v44  ;;  %v9117_v44 = vld [vmem:[%s13275_s2 + $0x314] ss:$8 sps:$4 sm:$0xff]  }
 0x18a   : > { %1414 = vmatpush1.bf16.msra.mxu0 %v9097_v18  ;;  %v9115_v18 = vld [vmem:[%s13275_s2 + $0x310] ss:$8 sps:$4 sm:$0xff]  }
 0x18b   : > { %1415 = vmatprep.subr.bf16.mxu0 %v9102_v5  ;;  %v9120_v5 = vld [vmem:[%s13275_s2 + $0x324] ss:$8 sps:$4 sm:$0xff]  }
 0x18e   : > { %1416 = vmatpush1.bf16.msra.mxu0 %v9100_v21  ;;  %v9148_v21 = vld [vmem:[%s13275_s2 + $0x3a4] ss:$8 sps:$4 sm:$0xff]  }
 0x18f   : > { %1417 = vmatprep.subr.bf16.mxu0 %v9105_v24 }
 0x192   : > { %1418 = vmatpush1.bf16.msra.mxu0 %v9103_v11  ;;  %v9146_v11 = vld [vmem:[%s13275_s2 + $0x3a0] ss:$8 sps:$4 sm:$0xff]  }
 0x193   : > { %1419 = vmatprep.subr.bf16.mxu0 %v9108_v14  ;;  %v9151_v14 = vld [vmem:[%s13275_s2 + $0x3b4] ss:$8 sps:$4 sm:$0xff]  }
 0x196   : > { %1420 = vmatpush1.bf16.msra.mxu0 %v9106_v30 }
 0x197   : > { %1421 = vmatprep.subr.bf16.mxu0 %v9111_v31 }
 0x19a   : > { %1422 = vmatpush1.bf16.msra.mxu0 %v9109_v34 }
 0x19b   : > { %1795 = vmatprep.subr.bf16.mxu0 %v9114_v35  ;;  %v9149_v35 = vld [vmem:[%s13275_s2 + $0x3b0] ss:$8 sps:$4 sm:$0xff]  }
 0x19d   : > { %1424 = vmatmul.mubr.bf16.vlgmr.msra.gmra.mrb[32].mxu0 %v1190_v43  ;;  %v9225_v43 = vld [vmem:[%s13274_s1 + $0xe8] sm:$0xff]  }
 0x19e   : > { %1796 = vmatpush1.bf16.msra.mxu0 %v9112_v23  ;;  %1433 = vmatprep.mubr.bf16.mxu0 %v1193_v12  ;;  %v9129_v12 = vld [vmem:[%s13275_s2 + $0x350] ss:$8 sps:$4 sm:$0xff]  }
 0x19f   : > { %1797 = vmatprep.subr.bf16.mxu0 %v9117_v44  ;;  %7927 = vmatmul.mubr.msk.bf16.gmra.mrb[84].mxu1 %vm329_vm0, %v9225_v43  ;;  %v9157_v43 = vld [vmem:[%s13275_s2 + $0x3d4] ss:$8 sps:$4 sm:$0xff]  }
 0x1a0   : > { %3189 = vmatprep.mubr.bf16.mxu1 %v9899_v0 }
 0x1a2   : > { %1798 = vmatpush1.bf16.msra.mxu0 %v9115_v18  ;;  %v9253_v18 = vld [vmem:[%s13274_s1 + $0x108] sm:$0xff]  }
 0x1a3   : > { %1799 = vmatprep.subr.bf16.mxu0 %v9120_v5  ;;  %v9154_v5 = vld [vmem:[%s13275_s2 + $0x3c4] ss:$8 sps:$4 sm:$0xff]  }
 0x1a5   : > { %1434 = vmatmul.mubr.bf16.gmra.mrb[36].mxu0 %v1192_v3  ;;  %v9232_v3 = vld [vmem:[%s13274_s1 + $0xf0] sm:$0xff]  }
 0x1a6   : > { %1800 = vmatpush1.bf16.msra.mxu0 %v9118_v40  ;;  %1443 = vmatprep.mubr.bf16.mxu0 %v1195_v55  ;;  %v9141_v55 = vld [vmem:[%s13275_s2 + $0x384] ss:$8 sps:$4 sm:$0xff]  }
 0x1a7   : > { %1801 = vmatprep.subr.bf16.mxu0 %v9124_v42  ;;  %7928 = vmatmul.mubr.msk.bf16.gmra.mrb[88].mxu1 %vm329_vm0, %v9232_v3  ;;  %v9152_v42 = vld [vmem:[%s13275_s2 + $0x3c0] ss:$8 sps:$4 sm:$0xff]  }
 0x1a8   : > { %3199 = vmatprep.mubr.bf16.mxu1 %v9899_v0 }
 0x1aa   : > { %1802 = vmatpush1.bf16.msra.mxu0 %v9122_v1 }
 0x1ab   : > { %1803 = vmatprep.subr.bf16.mxu0 %v9127_v6 }
 0x1ad   : > { %1444 = vmatmul.mubr.bf16.gmra.mrb[40].mxu0 %v1194_v52  ;;  %v9239_v52 = vld [vmem:[%s13274_s1 + $0xf8] sm:$0xff]  }
 0x1ae   : > { %1804 = vmatpush1.bf16.msra.mxu0 %v9125_v19  ;;  %1453 = vmatprep.mubr.bf16.mxu0 %v1197_v20  ;;  %v9142_v20 = vld [vmem:[%s13275_s2 + $0x390] ss:$8 sps:$4 sm:$0xff]  }
 0x1af   : > { %1805 = vmatprep.subr.bf16.mxu0 %v9131_v2  ;;  %7929 = vmatmul.mubr.msk.bf16.gmra.mrb[92].mxu1 %vm329_vm0, %v9239_v52  ;;  %v9155_v2 = vld [vmem:[%s13275_s2 + $0x3d0] ss:$8 sps:$4 sm:$0xff]   ;;  %v9158_v52 = vld [vmem:[%s13275_s2 + $0x3e0] ss:$8 sps:$4 sm:$0xff]  }
 0x1b0   : > { %3573 = vmatprep.mubr.bf16.mxu1 %v9899_v0 }
 0x1b2   : > { %1806 = vmatpush1.bf16.msra.mxu0 %v9129_v12 }
 0x1b3   : > { %1807 = vmatprep.subr.bf16.mxu0 %v9134_v50  ;;  %v9260_v50 = vld [vmem:[%s13274_s1 + $0x110] sm:$0xff]  }
 0x1b5   : > { %1454 = vmatmul.mubr.bf16.gmra.mrb[44].mxu0 %v1196_v62  ;;  %v10764_v62 = vpop.f32.mrb[37].mxu1 }
 0x1b6   : > { %1808 = vmatpush1.bf16.msra.mxu0 %v9132_v48  ;;  %1827 = vmatprep.mubr.bf16.mxu0 %v1595_v13  ;;  %v10766_v63 = vpop.f32.mrb[38].mxu1  ;;  %v9246_v13 = vld [vmem:[%s13274_s1 + $0x100] sm:$0xff]  }
 0x1b7   : > { %1809 = vmatprep.subr.bf16.mxu0 %v9138_v51  ;;  %v2000_v49 = vpack.c.bf16 %v10766_v63, %v10762_v61  ;;  %v10773_v57 = vpop.f32.mrb[39].mxu1  ;;  %8006 = vmatmul.mubr.msk.bf16.vlgmr.msra.gmra.mrb[96].mxu1 %vm329_vm0, %v9246_v13  ;;  %v9160_v48 = vld [vmem:[%s13275_s2 + $0x3e4] ss:$8 sps:$4 sm:$0xff]   ;;  %v9267_v13 = vld [vmem:[%s13274_s1 + $0x118] sm:$0xff]   ;;  %v9229_v61 = vld [vmem:[%s13275_s2 + $0x540] ss:$8 sps:$4 sm:$0xff]  }
 0x1b8   : > { %v2001_v24 = vpack.c.bf16 %v10773_v57, %v10764_v62  ;;  %3583 = vmatprep.mubr.bf16.mxu1 %v9899_v0  ;;  %v10791_v30 = vpop.f32.mrb[40].mxu1  ;;  %v9231_v62 = vld [vmem:[%s13275_s2 + $0x544] ss:$8 sps:$4 sm:$0xff]   ;;  %v9235_v63 = vld [vmem:[%s13275_s2 + $0x554] ss:$8 sps:$4 sm:$0xff]  }
 0x1b9   : > { %v10793_v31 = vpop.f32.mrb[41].mxu1  ;;  %v9238_v57 = vld [vmem:[%s13275_s2 + $0x564] ss:$8 sps:$4 sm:$0xff]  }
 0x1ba   : > { %1810 = vmatpush1.bf16.msra.mxu0 %v9136_v53  ;;  %v10795_v34 = vpop.f32.mrb[42].mxu1  ;;  %v9163_v53 = vld [vmem:[%s13275_s2 + $0x3f4] ss:$8 sps:$4 sm:$0xff]  }
 0x1bb   : > { %1811 = vmatprep.subr.bf16.mxu0 %v9141_v55  ;;  %v2002_v23 = vpack.c.bf16 %v10795_v34, %v10791_v30  ;;  %v10802_v44 = vpop.f32.mrb[43].mxu1  ;;  %v9242_v30 = vld [vmem:[%s13275_s2 + $0x574] ss:$8 sps:$4 sm:$0xff]   ;;  %v9245_v34 = vld [vmem:[%s13275_s2 + $0x584] ss:$8 sps:$4 sm:$0xff]  }
 0x1bc   : > { %v2003_v40 = vpack.c.bf16 %v10802_v44, %v10793_v31  ;;  %v10820_v1 = vpop.f32.mrb[44].mxu1  ;;  %v9240_v31 = vld [vmem:[%s13275_s2 + $0x570] ss:$8 sps:$4 sm:$0xff]   ;;  %v9249_v44 = vld [vmem:[%s13275_s2 + $0x594] ss:$8 sps:$4 sm:$0xff]  }
 0x1bd   : > { %v10822_v6 = vpop.f32.mrb[45].mxu1 }
 0x1be   : > { %1812 = vmatpush1.bf16.msra.mxu0 %v9139_v58  ;;  %v10824_v19 = vpop.f32.mrb[46].mxu1 }
 0x1bf   : > { %1813 = vmatprep.subr.bf16.mxu0 %v9144_v60  ;;  %8007 = vmatmul.mubr.msk.bf16.gmra.mrb[100].mxu1 %vm329_vm0, %v9253_v18  ;;  %v2004_v3 = vpack.c.bf16 %v10824_v19, %v10820_v1  ;;  %v10831_v12 = vpop.f32.mrb[47].mxu1  ;;  %v9161_v60 = vld [vmem:[%s13275_s2 + $0x3f0] ss:$8 sps:$4 sm:$0xff]   ;;  %v9164_v18 = vld [vmem:[%s13275_s2 + $0x400] ss:$8 sps:$4 sm:$0xff]  }
 0x1c0   : > { %3593 = vmatprep.mubr.bf16.mxu1 %v9899_v0  ;;  %v2005_v51 = vpack.c.bf16 %v10831_v12, %v10822_v6  ;;  %v10849_v55 = vpop.f32.mrb[48].mxu1  ;;  %v9247_v19 = vld [vmem:[%s13275_s2 + $0x590] ss:$8 sps:$4 sm:$0xff]  }
 0x1c1   : > { %v10851_v58 = vpop.f32.mrb[49].mxu1 }
 0x1c2   : > { %1814 = vmatpush1.bf16.msra.mxu0 %v9142_v20  ;;  %v10856_v20 = vpop.f32.mrb[50].mxu1 }
 0x1c3   : > { %1815 = vmatprep.subr.bf16.mxu0 %v9148_v21  ;;  %v9166_v21 = vld [vmem:[%s13275_s2 + $0x404] ss:$8 sps:$4 sm:$0xff]  }
 0x1c6   : > { %1816 = vmatpush1.bf16.msra.mxu0 %v9146_v11  ;;  %v2402_v11 = vpack.c.bf16 %v10856_v20, %v10849_v55  ;;  %v9277_v55 = vld [vmem:[%s13275_s2 + $0x620] ss:$8 sps:$4 sm:$0xff]   ;;  %v9282_v20 = vld [vmem:[%s13275_s2 + $0x634] ss:$8 sps:$4 sm:$0xff]  }
 0x1c7   : > { %1817 = vmatprep.subr.bf16.mxu0 %v9151_v14  ;;  %8008 = vmatmul.mubr.msk.bf16.gmra.mrb[104].mxu1 %vm329_vm0, %v9260_v50  ;;  %v10866_v14 = vpop.f32.mrb[51].mxu1 }
 0x1c8   : > { %3603 = vmatprep.mubr.bf16.mxu1 %v9899_v0 }
 0x1ca   : > { %1818 = vmatpush1.bf16.msra.mxu0 %v9149_v35  ;;  %v2403_v35 = vpack.c.bf16 %v10866_v14, %v10851_v58  ;;  %v9250_v14 = vld [vmem:[%s13275_s2 + $0x5a0] ss:$8 sps:$4 sm:$0xff]  }
 0x1cb   : > { %1819 = vmatprep.subr.bf16.mxu0 %v9154_v5  ;;  %v9169_v5 = vld [vmem:[%s13275_s2 + $0x414] ss:$8 sps:$4 sm:$0xff]  }
 0x1ce   : > { %1820 = vmatpush1.bf16.msra.mxu0 %v9152_v42  ;;  %v9167_v42 = vld [vmem:[%s13275_s2 + $0x410] ss:$8 sps:$4 sm:$0xff]  }
 0x1cf   : > { %1821 = vmatprep.subr.bf16.mxu0 %v9157_v43  ;;  %8009 = vmatmul.mubr.msk.bf16.gmra.mrb[108].mxu1 %vm329_vm0, %v9267_v13  ;;  %v9172_v43 = vld [vmem:[%s13275_s2 + $0x424] ss:$8 sps:$4 sm:$0xff]  }
 0x1d0   : > { %3988 = vmatprep.mubr.bf16.mxu1 %v9899_v0  ;;  %v9206_v13 = vld [vmem:[%s13275_s2 + $0x4c4] ss:$8 sps:$4 sm:$0xff]  }
 0x1d2   : > { %1822 = vmatpush1.bf16.msra.mxu0 %v9155_v2 }
 0x1d3   : > { %1823 = vmatprep.subr.bf16.mxu0 %v9160_v48 }
 0x1d6   : > { %1824 = vmatpush1.bf16.msra.mxu0 %v9158_v52  ;;  %v9201_v52 = vld [vmem:[%s13275_s2 + $0x4b0] ss:$8 sps:$4 sm:$0xff]  }
 0x1d7   : > { %1825 = vmatprep.subr.bf16.mxu0 %v9163_v53 }
 0x1da   : > { %1826 = vmatpush1.bf16.msra.mxu0 %v9161_v60 }
 0x1db   : > { %2199 = vmatprep.subr.bf16.mxu0 %v9166_v21 }
 0x1dd   : > { %1828 = vmatmul.mubr.bf16.vlgmr.msra.gmra.mrb[32].mxu0 %v1594_v56  ;;  %v9174_v56 = vld [vmem:[%s13275_s2 + $0x430] ss:$8 sps:$4 sm:$0xff]  }
 0x1de   : > { %2200 = vmatpush1.bf16.msra.mxu0 %v9164_v18  ;;  %1837 = vmatprep.mubr.bf16.mxu0 %v1597_v59  ;;  %v9184_v59 = vld [vmem:[%s13275_s2 + $0x460] ss:$8 sps:$4 sm:$0xff]  }
 0x1df   : > { %2201 = vmatprep.subr.bf16.mxu0 %v9169_v5  ;;  %v9204_v18 = vld [vmem:[%s13275_s2 + $0x4c0] ss:$8 sps:$4 sm:$0xff]   ;;  %v9209_v5 = vld [vmem:[%s13275_s2 + $0x4d4] ss:$8 sps:$4 sm:$0xff]  }
 0x1e2   : > { %2202 = vmatpush1.bf16.msra.mxu0 %v9167_v42 }
 0x1e3   : > { %2203 = vmatprep.subr.bf16.mxu0 %v9172_v43 }
 0x1e5   : > { %1838 = vmatmul.mubr.bf16.gmra.mrb[36].mxu0 %v1596_v41  ;;  %v9181_v41 = vld [vmem:[%s13275_s2 + $0x450] ss:$8 sps:$4 sm:$0xff]  }
 0x1e6   : > { %2204 = vmatpush1.bf16.msra.mxu0 %v9170_v46  ;;  %1847 = vmatprep.mubr.bf16.mxu0 %v1599_v7  ;;  %v10950_v7 = vpop.f32.mrb[52].mxu1 }
 0x1e7   : > { %2205 = vmatprep.subr.bf16.mxu0 %v9176_v54  ;;  %v10952_v25 = vpop.f32.mrb[53].mxu1  ;;  %v9207_v54 = vld [vmem:[%s13275_s2 + $0x4d0] ss:$8 sps:$4 sm:$0xff]  }
 0x1e8   : > { %v10954_v27 = vpop.f32.mrb[54].mxu1 }
 0x1e9   : > { %v10961_v28 = vpop.f32.mrb[55].mxu1 }
 0x1ea   : > { %2206 = vmatpush1.bf16.msra.mxu0 %v9174_v56  ;;  %v2405_v33 = vpack.c.bf16 %v10961_v28, %v10952_v25  ;;  %v9285_v25 = vld [vmem:[%s13275_s2 + $0x644] ss:$8 sps:$4 sm:$0xff]  }
 0x1eb   : > { %2207 = vmatprep.subr.bf16.mxu0 %v9179_v37  ;;  %v9291_v28 = vld [vmem:[%s13275_s2 + $0x664] ss:$8 sps:$4 sm:$0xff]  }
 0x1ed   : > { %1848 = vmatmul.mubr.bf16.gmra.mrb[40].mxu0 %v1598_v22  ;;  %v9191_v22 = vld [vmem:[%s13275_s2 + $0x480] ss:$8 sps:$4 sm:$0xff]  }
 0x1ee   : > { %2208 = vmatpush1.bf16.msra.mxu0 %v9177_v36  ;;  %1857 = vmatprep.mubr.bf16.mxu0 %v1601_v15  ;;  %v9200_v15 = vld [vmem:[%s13275_s2 + $0x4a4] ss:$8 sps:$4 sm:$0xff]  }
 0x1ef   : > { %2209 = vmatprep.subr.bf16.mxu0 %v9183_v38  ;;  %v9212_v36 = vld [vmem:[%s13275_s2 + $0x4e4] ss:$8 sps:$4 sm:$0xff]  }
 0x1f2   : > { %2210 = vmatpush1.bf16.msra.mxu0 %v9181_v41  ;;  %v10974_v2 = vpop.f32.mrb[56].mxu1  ;;  %v9210_v41 = vld [vmem:[%s13275_s2 + $0x4e0] ss:$8 sps:$4 sm:$0xff]  }
 0x1f3   : > { %2211 = vmatprep.subr.bf16.mxu0 %v9186_v45  ;;  %v10976_v50 = vpop.f32.mrb[57].mxu1  ;;  %v9215_v45 = vld [vmem:[%s13275_s2 + $0x4f4] ss:$8 sps:$4 sm:$0xff]  }
 0x1f4   : > { %v10978_v48 = vpop.f32.mrb[58].mxu1 }
 0x1f5   : > { %1858 = vmatmul.mubr.bf16.gmra.mrb[44].mxu0 %v1600_v29  ;;  %v2404_v29 = vpack.c.bf16 %v10954_v27, %v10950_v7  ;;  %v2406_v53 = vpack.c.bf16 %v10978_v48, %v10974_v2  ;;  %v10985_v60 = vpop.f32.mrb[59].mxu1  ;;  %v9283_v7 = vld [vmem:[%s13275_s2 + $0x640] ss:$8 sps:$4 sm:$0xff]   ;;  %v9288_v27 = vld [vmem:[%s13275_s2 + $0x654] ss:$8 sps:$4 sm:$0xff]  }
 0x1f6   : > { %2212 = vmatpush1.bf16.msra.mxu0 %v9184_v59  ;;  %2231 = vmatprep.mubr.bf16.mxu0 %v1999_v8  ;;  %v9203_v8 = vld [vmem:[%s13275_s2 + $0x4b4] ss:$8 sps:$4 sm:$0xff]   ;;  %v2407_v21 = vpack.c.bf16 %v10985_v60, %v10976_v50  ;;  %v9292_v50 = vld [vmem:[%s13275_s2 + $0x670] ss:$8 sps:$4 sm:$0xff]   ;;  %v9297_v48 = vld [vmem:[%s13275_s2 + $0x684] ss:$8 sps:$4 sm:$0xff]  }
 0x1f7   : > { %2213 = vmatprep.subr.bf16.mxu0 %v9190_v4  ;;  %v9294_v2 = vld [vmem:[%s13275_s2 + $0x674] ss:$8 sps:$4 sm:$0xff]  }
 0x1fa   : > { %2214 = vmatpush1.bf16.msra.mxu0 %v9188_v9  ;;  %v10998_v42 = vpop.f32.mrb[60].mxu1  ;;  %v9213_v9 = vld [vmem:[%s13275_s2 + $0x4f0] ss:$8 sps:$4 sm:$0xff]  }
 0x1fb   : > { %2215 = vmatprep.subr.bf16.mxu0 %v9193_v17  ;;  %v11000_v43 = vpop.f32.mrb[61].mxu1 }
 0x1fc   : > { %v11002_v46 = vpop.f32.mrb[62].mxu1 }
 0x1fd   : > { %v2408_v56 = vpack.c.bf16 %v11002_v46, %v10998_v42  ;;  %v11009_v37 = vpop.f32.mrb[63].mxu1 }
 0x1fe   : > { %2216 = vmatpush1.bf16.msra.mxu0 %v9191_v22  ;;  %v2409_v38 = vpack.c.bf16 %v11009_v37, %v11000_v43  ;;  %v9218_v22 = vld [vmem:[%s13275_s2 + $0x504] ss:$8 sps:$4 sm:$0xff]   ;;  %v9298_v37 = vld [vmem:[%s13275_s2 + $0x690] ss:$8 sps:$4 sm:$0xff]  }
 0x1ff   : > { %2217 = vmatprep.subr.bf16.mxu0 %v9196_v26 }
 0x202   : > { %2218 = vmatpush1.bf16.msra.mxu0 %v9194_v10  ;;  %v11022_v59 = vpop.f32.mrb[64].mxu1 }
 0x203   : > { %2219 = vmatprep.subr.bf16.mxu0 %v9200_v15  ;;  %v11024_v4 = vpop.f32.mrb[65].mxu1 }
 0x204   : > { %v11029_v17 = vpop.f32.mrb[66].mxu1 }
 0x205   : > { %v2806_v26 = vpack.c.bf16 %v11029_v17, %v11022_v59  ;;  %v11036_v10 = vpop.f32.mrb[67].mxu1  ;;  %v9327_v59 = vld [vmem:[%s13275_s2 + $0x724] ss:$8 sps:$4 sm:$0xff]  }
 0x206   : > { %2220 = vmatpush1.bf16.msra.mxu0 %v9198_v47  ;;  %v2807_v15 = vpack.c.bf16 %v11036_v10, %v11024_v4  ;;  %v9216_v47 = vld [vmem:[%s13275_s2 + $0x500] ss:$8 sps:$4 sm:$0xff]   ;;  %v9303_v4 = vld [vmem:[%s13275_s2 + $0x6a4] ss:$8 sps:$4 sm:$0xff]  }
 0x207   : > { %2221 = vmatprep.subr.bf16.mxu0 %v9203_v8  ;;  %v9221_v8 = vld [vmem:[%s13275_s2 + $0x514] ss:$8 sps:$4 sm:$0xff]   ;;  %v9301_v10 = vld [vmem:[%s13275_s2 + $0x6a0] ss:$8 sps:$4 sm:$0xff]  }
 0x20a   : > { %2222 = vmatpush1.bf16.msra.mxu0 %v9201_v52  ;;  %v9219_v52 = vld [vmem:[%s13275_s2 + $0x510] ss:$8 sps:$4 sm:$0xff]  }
 0x20b   : > { %2223 = vmatprep.subr.bf16.mxu0 %v9206_v13  ;;  %v9224_v13 = vld [vmem:[%s13275_s2 + $0x524] ss:$8 sps:$4 sm:$0xff]  }
 0x20e   : > { %2224 = vmatpush1.bf16.msra.mxu0 %v9204_v18 }
 0x20f   : > { %2225 = vmatprep.subr.bf16.mxu0 %v9209_v5 }
 0x212   : > { %2226 = vmatpush1.bf16.msra.mxu0 %v9207_v54 }
 0x213   : > { %2227 = vmatprep.subr.bf16.mxu0 %v9212_v36  ;;  %v9254_v36 = vld [vmem:[%s13275_s2 + $0x5b0] ss:$8 sps:$4 sm:$0xff]  }
 0x216   : > { %2228 = vmatpush1.bf16.msra.mxu0 %v9210_v41 }
 0x217   : > { %2229 = vmatprep.subr.bf16.mxu0 %v9215_v45 }
 0x21a   : > { %2230 = vmatpush1.bf16.msra.mxu0 %v9213_v9  ;;  %v9259_v9 = vld [vmem:[%s13275_s2 + $0x5c4] ss:$8 sps:$4 sm:$0xff]  }
 0x21b   : > { %2603 = vmatprep.subr.bf16.mxu0 %v9218_v22 }
 0x21d   : > { %2232 = vmatmul.mubr.bf16.vlgmr.msra.gmra.mrb[32].mxu0 %v1998_v39  ;;  %v9226_v39 = vld [vmem:[%s13275_s2 + $0x530] ss:$8 sps:$4 sm:$0xff]  }
 0x21e   : > { %2604 = vmatpush1.bf16.msra.mxu0 %v9216_v47  ;;  %2241 = vmatprep.mubr.bf16.mxu0 %v2001_v24  ;;  %v9236_v24 = vld [vmem:[%s13275_s2 + $0x560] ss:$8 sps:$4 sm:$0xff]  }
 0x21f   : > { %2605 = vmatprep.subr.bf16.mxu0 %v9221_v8  ;;  %v9257_v47 = vld [vmem:[%s13275_s2 + $0x5c0] ss:$8 sps:$4 sm:$0xff]   ;;  %v9263_v8 = vld [vmem:[%s13275_s2 + $0x5d4] ss:$8 sps:$4 sm:$0xff]  }
 0x222   : > { %2606 = vmatpush1.bf16.msra.mxu0 %v9219_v52 }
 0x223   : > { %2607 = vmatprep.subr.bf16.mxu0 %v9224_v13 }
 0x225   : > { %2242 = vmatmul.mubr.bf16.gmra.mrb[36].mxu0 %v2000_v49  ;;  %v9233_v49 = vld [vmem:[%s13275_s2 + $0x550] ss:$8 sps:$4 sm:$0xff]  }
 0x226   : > { %2608 = vmatpush1.bf16.msra.mxu0 %v9222_v32  ;;  %2251 = vmatprep.mubr.bf16.mxu0 %v2003_v40  ;;  %v11118_v40 = vpop.f32.mrb[68].mxu1 }
 0x227   : > { %2609 = vmatprep.subr.bf16.mxu0 %v9228_v16  ;;  %v11120_v1 = vpop.f32.mrb[69].mxu1  ;;  %v9261_v16 = vld [vmem:[%s13275_s2 + $0x5d0] ss:$8 sps:$4 sm:$0xff]  }
 0x228   : > { %v11122_v6 = vpop.f32.mrb[70].mxu1 }
 0x229   : > { %v11129_v12 = vpop.f32.mrb[71].mxu1 }
 0x22a   : > { %2610 = vmatpush1.bf16.msra.mxu0 %v9226_v39  ;;  %v2809_v58 = vpack.c.bf16 %v11129_v12, %v11120_v1  ;;  %v9330_v1 = vld [vmem:[%s13275_s2 + $0x734] ss:$8 sps:$4 sm:$0xff]  }
 0x22b   : > { %2611 = vmatprep.subr.bf16.mxu0 %v9231_v62 }
 0x22d   : > { %2252 = vmatmul.mubr.bf16.gmra.mrb[40].mxu0 %v2002_v23  ;;  %v9243_v23 = vld [vmem:[%s13275_s2 + $0x580] ss:$8 sps:$4 sm:$0xff]  }
 0x22e   : > { %2612 = vmatpush1.bf16.msra.mxu0 %v9229_v61  ;;  %2261 = vmatprep.mubr.bf16.mxu0 %v2005_v51  ;;  %v9252_v51 = vld [vmem:[%s13275_s2 + $0x5a4] ss:$8 sps:$4 sm:$0xff]  }
 0x22f   : > { %2613 = vmatprep.subr.bf16.mxu0 %v9235_v63  ;;  %v9266_v61 = vld [vmem:[%s13275_s2 + $0x5e4] ss:$8 sps:$4 sm:$0xff]  }
 0x232   : > { %2614 = vmatpush1.bf16.msra.mxu0 %v9233_v49  ;;  %v11142_v18 = vpop.f32.mrb[72].mxu1  ;;  %v9264_v49 = vld [vmem:[%s13275_s2 + $0x5e0] ss:$8 sps:$4 sm:$0xff]  }
 0x233   : > { %2615 = vmatprep.subr.bf16.mxu0 %v9238_v57  ;;  %v11144_v5 = vpop.f32.mrb[73].mxu1  ;;  %v9270_v57 = vld [vmem:[%s13275_s2 + $0x5f4] ss:$8 sps:$4 sm:$0xff]  }
 0x234   : > { %v11146_v54 = vpop.f32.mrb[74].mxu1 }
 0x235   : > { %2262 = vmatmul.mubr.bf16.gmra.mrb[44].mxu0 %v2004_v3  ;;  %v2808_v3 = vpack.c.bf16 %v11122_v6, %v11118_v40  ;;  %v2810_v41 = vpack.c.bf16 %v11146_v54, %v11142_v18  ;;  %v11153_v45 = vpop.f32.mrb[75].mxu1  ;;  %v9333_v40 = vld [vmem:[%s13275_s2 + $0x744] ss:$8 sps:$4 sm:$0xff]  }
 0x236   : > { %2616 = vmatpush1.bf16.msra.mxu0 %v9236_v24  ;;  %2635 = vmatprep.mubr.bf16.mxu0 %v2403_v35  ;;  %v9256_v35 = vld [vmem:[%s13275_s2 + $0x5b4] ss:$8 sps:$4 sm:$0xff]   ;;  %v2811_v22 = vpack.c.bf16 %v11153_v45, %v11144_v5  ;;  %v9339_v18 = vld [vmem:[%s13275_s2 + $0x764] ss:$8 sps:$4 sm:$0xff]  }
 0x237   : > { %2617 = vmatprep.subr.bf16.mxu0 %v9242_v30  ;;  %v9336_v5 = vld [vmem:[%s13275_s2 + $0x754] ss:$8 sps:$4 sm:$0xff]  }
 0x23a   : > { %2618 = vmatpush1.bf16.msra.mxu0 %v9240_v31  ;;  %v11166_v52 = vpop.f32.mrb[76].mxu1  ;;  %v9268_v31 = vld [vmem:[%s13275_s2 + $0x5f0] ss:$8 sps:$4 sm:$0xff]  }
 0x23b   : > { %2619 = vmatprep.subr.bf16.mxu0 %v9245_v34  ;;  %v11168_v13 = vpop.f32.mrb[77].mxu1 }
 0x23c   : > { %v11170_v32 = vpop.f32.mrb[78].mxu1 }
 0x23d   : > { %v2812_v39 = vpack.c.bf16 %v11170_v32, %v11166_v52  ;;  %v11177_v62 = vpop.f32.mrb[79].mxu1  ;;  %v9343_v52 = vld [vmem:[%s13275_s2 + $0x780] ss:$8 sps:$4 sm:$0xff]   ;;  %v9348_v32 = vld [vmem:[%s13275_s2 + $0x794] ss:$8 sps:$4 sm:$0xff]  }
 0x23e   : > { %2620 = vmatpush1.bf16.msra.mxu0 %v9243_v23  ;;  %v2813_v63 = vpack.c.bf16 %v11177_v62, %v11168_v13  ;;  %v9273_v23 = vld [vmem:[%s13275_s2 + $0x604] ss:$8 sps:$4 sm:$0xff]   ;;  %v9342_v13 = vld [vmem:[%s13275_s2 + $0x774] ss:$8 sps:$4 sm:$0xff]   ;;  %v9340_v62 = vld [vmem:[%s13275_s2 + $0x770] ss:$8 sps:$4 sm:$0xff]  }
 0x23f   : > { %2621 = vmatprep.subr.bf16.mxu0 %v9249_v44 }
 0x242   : > { %2622 = vmatpush1.bf16.msra.mxu0 %v9247_v19  ;;  %v11190_v24 = vpop.f32.mrb[80].mxu1 }
 0x243   : > { %2623 = vmatprep.subr.bf16.mxu0 %v9252_v51  ;;  %v11192_v30 = vpop.f32.mrb[81].mxu1 }
 0x244   : > { %v11197_v34 = vpop.f32.mrb[82].mxu1 }
 0x245   : > { %v3210_v44 = vpack.c.bf16 %v11197_v34, %v11190_v24  ;;  %v11204_v19 = vpop.f32.mrb[83].mxu1  ;;  %v9373_v24 = vld [vmem:[%s13275_s2 + $0x820] ss:$8 sps:$4 sm:$0xff]   ;;  %v9378_v34 = vld [vmem:[%s13275_s2 + $0x834] ss:$8 sps:$4 sm:$0xff]  }
 0x246   : > { %2624 = vmatpush1.bf16.msra.mxu0 %v9250_v14  ;;  %v3211_v51 = vpack.c.bf16 %v11204_v19, %v11192_v30  ;;  %v9271_v14 = vld [vmem:[%s13275_s2 + $0x600] ss:$8 sps:$4 sm:$0xff]   ;;  %v9351_v30 = vld [vmem:[%s13275_s2 + $0x7a4] ss:$8 sps:$4 sm:$0xff]  }
 0x247   : > { %2625 = vmatprep.subr.bf16.mxu0 %v9256_v35  ;;  %v9276_v35 = vld [vmem:[%s13275_s2 + $0x614] ss:$8 sps:$4 sm:$0xff]   ;;  %v9349_v19 = vld [vmem:[%s13275_s2 + $0x7a0] ss:$8 sps:$4 sm:$0xff]  }
 0x24a   : > { %2626 = vmatpush1.bf16.msra.mxu0 %v9254_v36  ;;  %v9274_v36 = vld [vmem:[%s13275_s2 + $0x610] ss:$8 sps:$4 sm:$0xff]  }
 0x24b   : > { %2627 = vmatprep.subr.bf16.mxu0 %v9259_v9  ;;  %v9279_v9 = vld [vmem:[%s13275_s2 + $0x624] ss:$8 sps:$4 sm:$0xff]  }
 0x24e   : > { %2628 = vmatpush1.bf16.msra.mxu0 %v9257_v47  ;;  %v9306_v47 = vld [vmem:[%s13275_s2 + $0x6b4] ss:$8 sps:$4 sm:$0xff]  }
 0x24f   : > { %2629 = vmatprep.subr.bf16.mxu0 %v9263_v8 }
 0x252   : > { %2630 = vmatpush1.bf16.msra.mxu0 %v9261_v16 }
 0x253   : > { %2631 = vmatprep.subr.bf16.mxu0 %v9266_v61 }
 0x256   : > { %2632 = vmatpush1.bf16.msra.mxu0 %v9264_v49 }
 0x257   : > { %2633 = vmatprep.subr.bf16.mxu0 %v9270_v57  ;;  %v9304_v57 = vld [vmem:[%s13275_s2 + $0x6b0] ss:$8 sps:$4 sm:$0xff]  }
 0x25a   : > { %2634 = vmatpush1.bf16.msra.mxu0 %v9268_v31 }
 0x25b   : > { %3007 = vmatprep.subr.bf16.mxu0 %v9273_v23  ;;  %v9309_v23 = vld [vmem:[%s13275_s2 + $0x6c4] ss:$8 sps:$4 sm:$0xff]  }
 0x25d   : > { %2636 = vmatmul.mubr.bf16.vlgmr.msra.gmra.mrb[32].mxu0 %v2402_v11  ;;  %v9280_v11 = vld [vmem:[%s13275_s2 + $0x630] ss:$8 sps:$4 sm:$0xff]  }
 0x25e   : > { %3008 = vmatpush1.bf16.msra.mxu0 %v9271_v14  ;;  %2645 = vmatprep.mubr.bf16.mxu0 %v2405_v33  ;;  %v9289_v33 = vld [vmem:[%s13275_s2 + $0x660] ss:$8 sps:$4 sm:$0xff]  }
 0x25f   : > { %3009 = vmatprep.subr.bf16.mxu0 %v9276_v35  ;;  %v9307_v14 = vld [vmem:[%s13275_s2 + $0x6c0] ss:$8 sps:$4 sm:$0xff]  }
 0x262   : > { %3010 = vmatpush1.bf16.msra.mxu0 %v9274_v36  ;;  %v9312_v36 = vld [vmem:[%s13275_s2 + $0x6d4] ss:$8 sps:$4 sm:$0xff]  }
 0x263   : > { %3011 = vmatprep.subr.bf16.mxu0 %v9279_v9 }
 0x265   : > { %2646 = vmatmul.mubr.bf16.gmra.mrb[36].mxu0 %v2404_v29  ;;  %v9286_v29 = vld [vmem:[%s13275_s2 + $0x650] ss:$8 sps:$4 sm:$0xff]  }
 0x266   : > { %3012 = vmatpush1.bf16.msra.mxu0 %v9277_v55  ;;  %2655 = vmatprep.mubr.bf16.mxu0 %v2407_v21  ;;  %v9300_v21 = vld [vmem:[%s13275_s2 + $0x694] ss:$8 sps:$4 sm:$0xff]  }
 0x267   : > { %3013 = vmatprep.subr.bf16.mxu0 %v9282_v20 }
 0x26a   : > { %3014 = vmatpush1.bf16.msra.mxu0 %v9280_v11 }
 0x26b   : > { %3015 = vmatprep.subr.bf16.mxu0 %v9285_v25  ;;  %v9310_v25 = vld [vmem:[%s13275_s2 + $0x6d0] ss:$8 sps:$4 sm:$0xff]  }
 0x26d   : > { %2656 = vmatmul.mubr.bf16.gmra.mrb[40].mxu0 %v2406_v53  ;;  %v9295_v53 = vld [vmem:[%s13275_s2 + $0x680] ss:$8 sps:$4 sm:$0xff]  }
 0x26e   : > { %3016 = vmatpush1.bf16.msra.mxu0 %v9283_v7  ;;  %2665 = vmatprep.mubr.bf16.mxu0 %v2409_v38 }
 0x26f   : > { %3017 = vmatprep.subr.bf16.mxu0 %v9288_v27  ;;  %v9315_v27 = vld [vmem:[%s13275_s2 + $0x6e4] ss:$8 sps:$4 sm:$0xff]  }
 0x272   : > { %3018 = vmatpush1.bf16.msra.mxu0 %v9286_v29  ;;  %v11283_v60 = vpop.f32.mrb[84].mxu1  ;;  %v9313_v29 = vld [vmem:[%s13275_s2 + $0x6e0] ss:$8 sps:$4 sm:$0xff]  }
 0x273   : > { %3019 = vmatprep.subr.bf16.mxu0 %v9291_v28  ;;  %v11288_v42 = vpop.f32.mrb[85].mxu1  ;;  %v9318_v28 = vld [vmem:[%s13275_s2 + $0x6f4] ss:$8 sps:$4 sm:$0xff]  }
 0x274   : > { %v11290_v43 = vpop.f32.mrb[86].mxu1 }
 0x275   : > { %2666 = vmatmul.mubr.bf16.gmra.mrb[44].mxu0 %v2408_v56  ;;  %v3212_v46 = vpack.c.bf16 %v11290_v43, %v11283_v60  ;;  %v11294_v56 = vpop.f32.mrb[87].mxu1  ;;  %v9379_v60 = vld [vmem:[%s13275_s2 + $0x840] ss:$8 sps:$4 sm:$0xff]   ;;  %v9384_v43 = vld [vmem:[%s13275_s2 + $0x854] ss:$8 sps:$4 sm:$0xff]  }
 0x276   : > { %3020 = vmatpush1.bf16.msra.mxu0 %v9289_v33  ;;  %3039 = vmatprep.mubr.bf16.mxu0 %v2807_v15  ;;  %v3213_v38 = vpack.c.bf16 %v11294_v56, %v11288_v42  ;;  %v9381_v42 = vld [vmem:[%s13275_s2 + $0x844] ss:$8 sps:$4 sm:$0xff]  }
 0x277   : > { %3021 = vmatprep.subr.bf16.mxu0 %v9294_v2  ;;  %v9387_v56 = vld [vmem:[%s13275_s2 + $0x864] ss:$8 sps:$4 sm:$0xff]  }
 0x27a   : > { %3022 = vmatpush1.bf16.msra.mxu0 %v9292_v50  ;;  %v11307_v15 = vpop.f32.mrb[88].mxu1 }
 0x27b   : > { %3023 = vmatprep.subr.bf16.mxu0 %v9297_v48  ;;  %v11312_v8 = vpop.f32.mrb[89].mxu1  ;;  %v9316_v48 = vld [vmem:[%s13275_s2 + $0x6f0] ss:$8 sps:$4 sm:$0xff]  }
 0x27c   : > { %v11314_v16 = vpop.f32.mrb[90].mxu1 }
 0x27d   : > { %v3214_v61 = vpack.c.bf16 %v11314_v16, %v11307_v15  ;;  %v11318_v49 = vpop.f32.mrb[91].mxu1  ;;  %v9390_v15 = vld [vmem:[%s13275_s2 + $0x874] ss:$8 sps:$4 sm:$0xff]   ;;  %v9393_v16 = vld [vmem:[%s13275_s2 + $0x884] ss:$8 sps:$4 sm:$0xff]  }
 0x27e   : > { %3024 = vmatpush1.bf16.msra.mxu0 %v9295_v53  ;;  %v3215_v31 = vpack.c.bf16 %v11318_v49, %v11312_v8  ;;  %v9388_v8 = vld [vmem:[%s13275_s2 + $0x870] ss:$8 sps:$4 sm:$0xff]   ;;  %v9396_v49 = vld [vmem:[%s13275_s2 + $0x894] ss:$8 sps:$4 sm:$0xff]  }
 0x27f   : > { %3025 = vmatprep.subr.bf16.mxu0 %v9300_v21 }
 0x282   : > { %3026 = vmatpush1.bf16.msra.mxu0 %v9298_v37  ;;  %v11331_v35 = vpop.f32.mrb[92].mxu1  ;;  %v9321_v37 = vld [vmem:[%s13275_s2 + $0x704] ss:$8 sps:$4 sm:$0xff]  }
 0x283   : > { %3027 = vmatprep.subr.bf16.mxu0 %v9303_v4  ;;  %v11336_v9 = vpop.f32.mrb[93].mxu1 }
 0x284   : > { %v11338_v55 = vpop.f32.mrb[94].mxu1 }
 0x285   : > { %v3216_v20 = vpack.c.bf16 %v11338_v55, %v11331_v35  ;;  %v11342_v11 = vpop.f32.mrb[95].mxu1  ;;  %v9399_v35 = vld [vmem:[%s13275_s2 + $0x8a4] ss:$8 sps:$4 sm:$0xff]   ;;  %v9402_v55 = vld [vmem:[%s13275_s2 + $0x8b4] ss:$8 sps:$4 sm:$0xff]  }
 0x286   : > { %3028 = vmatpush1.bf16.msra.mxu0 %v9301_v10  ;;  %v3217_v7 = vpack.c.bf16 %v11342_v11, %v11336_v9  ;;  %v9319_v10 = vld [vmem:[%s13275_s2 + $0x700] ss:$8 sps:$4 sm:$0xff]   ;;  %v9405_v11 = vld [vmem:[%s13275_s2 + $0x8c4] ss:$8 sps:$4 sm:$0xff]  }
 0x287   : > { %3029 = vmatprep.subr.bf16.mxu0 %v9306_v47  ;;  %v9324_v47 = vld [vmem:[%s13275_s2 + $0x714] ss:$8 sps:$4 sm:$0xff]   ;;  %v9397_v9 = vld [vmem:[%s13275_s2 + $0x8a0] ss:$8 sps:$4 sm:$0xff]  }
 0x28a   : > { %3030 = vmatpush1.bf16.msra.mxu0 %v9304_v57  ;;  %v11358_v33 = vpop.f32.mrb[96].mxu1 }
 0x28b   : > { %3031 = vmatprep.subr.bf16.mxu0 %v9309_v23  ;;  %v11360_v2 = vpop.f32.mrb[97].mxu1 }
 0x28c   : > { %v11362_v50 = vpop.f32.mrb[98].mxu1 }
 0x28d   : > { %v3614_v53 = vpack.c.bf16 %v11362_v50, %v11358_v33  ;;  %v11369_v21 = vpop.f32.mrb[99].mxu1  ;;  %v9421_v33 = vld [vmem:[%s13277_s4 + $0x120] ss:$8 sps:$4 sm:$0xff]   ;;  %v9426_v50 = vld [vmem:[%s13277_s4 + $0x134] ss:$8 sps:$4 sm:$0xff]  }
 0x28e   : > { %3032 = vmatpush1.bf16.msra.mxu0 %v9307_v14  ;;  %v3615_v4 = vpack.c.bf16 %v11369_v21, %v11360_v2  ;;  %v9408_v2 = vld [vmem:[%s13275_s2 + $0x8d4] ss:$8 sps:$4 sm:$0xff]   ;;  %v9406_v21 = vld [vmem:[%s13275_s2 + $0x8d0] ss:$8 sps:$4 sm:$0xff]  }
 0x28f   : > { %3033 = vmatprep.subr.bf16.mxu0 %v9312_v36  ;;  %v9322_v36 = vld [vmem:[%s13275_s2 + $0x710] ss:$8 sps:$4 sm:$0xff]  }
 0x292   : > { %3034 = vmatpush1.bf16.msra.mxu0 %v9310_v25  ;;  %v11382_v57 = vpop.f32.mrb[100].mxu1 }
 0x293   : > { %3035 = vmatprep.subr.bf16.mxu0 %v9315_v27  ;;  %v11384_v23 = vpop.f32.mrb[101].mxu1 }
 0x294   : > { %v11389_v14 = vpop.f32.mrb[102].mxu1 }
 0x295   : > { %v3616_v25 = vpack.c.bf16 %v11389_v14, %v11382_v57  ;;  %v11399_v27 = vpop.f32.mrb[103].mxu1  ;;  %v9427_v57 = vld [vmem:[%s13277_s4 + $0x140] ss:$8 sps:$4 sm:$0xff]   ;;  %v9432_v14 = vld [vmem:[%s13277_s4 + $0x154] ss:$8 sps:$4 sm:$0xff]  }
 0x296   : > { %3036 = vmatpush1.bf16.msra.mxu0 %v9313_v29  ;;  %v3617_v17 = vpack.c.bf16 %v11399_v27, %v11384_v23  ;;  %v9429_v23 = vld [vmem:[%s13277_s4 + $0x144] ss:$8 sps:$4 sm:$0xff]  }
 0x297   : > { %3037 = vmatprep.subr.bf16.mxu0 %v9318_v28  ;;  %v9328_v28 = vld [vmem:[%s13275_s2 + $0x730] ss:$8 sps:$4 sm:$0xff]   ;;  %v9435_v27 = vld [vmem:[%s13277_s4 + $0x164] ss:$8 sps:$4 sm:$0xff]  }
 0x29a   : > { %3038 = vmatpush1.bf16.msra.mxu0 %v9316_v48  ;;  %v11412_v12 = vpop.f32.mrb[104].mxu1 }
 0x29b   : > { %3411 = vmatprep.subr.bf16.mxu0 %v9321_v37 }
 0x29d   : > { %3040 = vmatmul.mubr.bf16.vlgmr.msra.gmra.mrb[32].mxu0 %v2806_v26  ;;  %v9325_v26 = vld [vmem:[%s13275_s2 + $0x720] ss:$8 sps:$4 sm:$0xff]  }
 0x29e   : > { %3412 = vmatpush1.bf16.msra.mxu0 %v9319_v10  ;;  %3049 = vmatprep.mubr.bf16.mxu0 %v2809_v58  ;;  %v11414_v58 = vpop.f32.mrb[105].mxu1 }
 0x29f   : > { %3413 = vmatprep.subr.bf16.mxu0 %v9324_v47  ;;  %v11419_v29 = vpop.f32.mrb[106].mxu1  ;;  %v9334_v47 = vld [vmem:[%s13275_s2 + $0x750] ss:$8 sps:$4 sm:$0xff]  }
 0x2a0   : > { %v3618_v48 = vpack.c.bf16 %v11419_v29, %v11412_v12  ;;  %v11429_v37 = vpop.f32.mrb[107].mxu1  ;;  %v9438_v12 = vld [vmem:[%s13277_s4 + $0x174] ss:$8 sps:$4 sm:$0xff]   ;;  %v9441_v29 = vld [vmem:[%s13277_s4 + $0x184] ss:$8 sps:$4 sm:$0xff]  }
 0x2a1   : > { %v3619_v6 = vpack.c.bf16 %v11429_v37, %v11414_v58  ;;  %v9436_v58 = vld [vmem:[%s13277_s4 + $0x170] ss:$8 sps:$4 sm:$0xff]   ;;  %v9444_v37 = vld [vmem:[%s13277_s4 + $0x194] ss:$8 sps:$4 sm:$0xff]  }
 0x2a2   : > { %3414 = vmatpush1.bf16.msra.mxu0 %v9322_v36  ;;  %v11442_v45 = vpop.f32.mrb[108].mxu1 }
 0x2a3   : > { %3415 = vmatprep.subr.bf16.mxu0 %v9327_v59 }
 0x2a5   : > { %3050 = vmatmul.mubr.bf16.gmra.mrb[36].mxu0 %v2808_v3  ;;  %v9331_v3 = vld [vmem:[%s13275_s2 + $0x740] ss:$8 sps:$4 sm:$0xff]  }
 0x2a6   : > { %3416 = vmatpush1.bf16.msra.mxu0 %v9325_v26  ;;  %3059 = vmatprep.mubr.bf16.mxu0 %v2811_v22  ;;  %v11444_v22 = vpop.f32.mrb[109].mxu1  ;;  %v9352_v26 = vld [vmem:[%s13275_s2 + $0x7b0] ss:$8 sps:$4 sm:$0xff]  }
 0x2a7   : > { %3417 = vmatprep.subr.bf16.mxu0 %v9330_v1  ;;  %v11449_v10 = vpop.f32.mrb[110].mxu1  ;;  %v9357_v1 = vld [vmem:[%s13275_s2 + $0x7c4] ss:$8 sps:$4 sm:$0xff]  }
 0x2a8   : > { %v3620_v36 = vpack.c.bf16 %v11449_v10, %v11442_v45  ;;  %v11459_v59 = vpop.f32.mrb[111].mxu1  ;;  %v9447_v45 = vld [vmem:[%s13277_s4 + $0x1a4] ss:$8 sps:$4 sm:$0xff]   ;;  %v9450_v10 = vld [vmem:[%s13277_s4 + $0x1b4] ss:$8 sps:$4 sm:$0xff]  }
 0x2a9   : > { %v3621_v54 = vpack.c.bf16 %v11459_v59, %v11444_v22  ;;  %v9445_v22 = vld [vmem:[%s13277_s4 + $0x1a0] ss:$8 sps:$4 sm:$0xff]   ;;  %v9453_v59 = vld [vmem:[%s13277_s4 + $0x1c4] ss:$8 sps:$4 sm:$0xff]  }
 0x2aa   : > { %3418 = vmatpush1.bf16.msra.mxu0 %v9328_v28  ;;  %v9355_v28 = vld [vmem:[%s13275_s2 + $0x7c0] ss:$8 sps:$4 sm:$0xff]  }
 0x2ab   : > { %3419 = vmatprep.subr.bf16.mxu0 %v9333_v40  ;;  %v9360_v40 = vld [vmem:[%s13275_s2 + $0x7d4] ss:$8 sps:$4 sm:$0xff]  }
 0x2ad   : > { %3060 = vmatmul.mubr.bf16.gmra.mrb[40].mxu0 %v2810_v41  ;;  %v9337_v41 = vld [vmem:[%s13275_s2 + $0x760] ss:$8 sps:$4 sm:$0xff]  }
 0x2ae   : > { %3420 = vmatpush1.bf16.msra.mxu0 %v9331_v3  ;;  %3069 = vmatprep.mubr.bf16.mxu0 %v2813_v63  ;;  %v9345_v63 = vld [vmem:[%s13275_s2 + $0x784] ss:$8 sps:$4 sm:$0xff]   ;;  %v9358_v3 = vld [vmem:[%s13275_s2 + $0x7d0] ss:$8 sps:$4 sm:$0xff]  }
 0x2af   : > { %3421 = vmatprep.subr.bf16.mxu0 %v9336_v5  ;;  %v9363_v5 = vld [vmem:[%s13275_s2 + $0x7e4] ss:$8 sps:$4 sm:$0xff]  }
 0x2b2   : > { %3422 = vmatpush1.bf16.msra.mxu0 %v9334_v47  ;;  %v9361_v47 = vld [vmem:[%s13275_s2 + $0x7e0] ss:$8 sps:$4 sm:$0xff]  }
 0x2b3   : > { %3423 = vmatprep.subr.bf16.mxu0 %v9339_v18  ;;  %v9366_v18 = vld [vmem:[%s13275_s2 + $0x7f4] ss:$8 sps:$4 sm:$0xff]  }
 0x2b5   : > { %3070 = vmatmul.mubr.bf16.gmra.mrb[44].mxu0 %v2812_v39  ;;  %v9346_v39 = vld [vmem:[%s13275_s2 + $0x790] ss:$8 sps:$4 sm:$0xff]  }
 0x2b6   : > { %3424 = vmatpush1.bf16.msra.mxu0 %v9337_v41  ;;  %3443 = vmatprep.mubr.bf16.mxu0 %v3211_v51  ;;  %v9354_v51 = vld [vmem:[%s13275_s2 + $0x7b4] ss:$8 sps:$4 sm:$0xff]   ;;  %v9364_v41 = vld [vmem:[%s13275_s2 + $0x7f0] ss:$8 sps:$4 sm:$0xff]  }
 0x2b7   : > { %3425 = vmatprep.subr.bf16.mxu0 %v9342_v13  ;;  %v9369_v13 = vld [vmem:[%s13275_s2 + $0x804] ss:$8 sps:$4 sm:$0xff]  }
 0x2ba   : > { %3426 = vmatpush1.bf16.msra.mxu0 %v9340_v62  ;;  %v9367_v62 = vld [vmem:[%s13275_s2 + $0x800] ss:$8 sps:$4 sm:$0xff]  }
 0x2bb   : > { %3427 = vmatprep.subr.bf16.mxu0 %v9345_v63  ;;  %v9372_v63 = vld [vmem:[%s13275_s2 + $0x814] ss:$8 sps:$4 sm:$0xff]  }
 0x2be   : > { %3428 = vmatpush1.bf16.msra.mxu0 %v9343_v52  ;;  %v9370_v52 = vld [vmem:[%s13275_s2 + $0x810] ss:$8 sps:$4 sm:$0xff]  }
 0x2bf   : > { %3429 = vmatprep.subr.bf16.mxu0 %v9348_v32  ;;  %v9375_v32 = vld [vmem:[%s13275_s2 + $0x824] ss:$8 sps:$4 sm:$0xff]  }
 0x2c2   : > { %3430 = vmatpush1.bf16.msra.mxu0 %v9346_v39  ;;  %v9409_v39 = vld [vmem:[%s13275_s2 + $0x8e0] ss:$8 sps:$4 sm:$0xff]  }
 0x2c3   : > { %3431 = vmatprep.subr.bf16.mxu0 %v9351_v30  ;;  %v9414_v30 = vld [vmem:[%s13275_s2 + $0x8f4] ss:$8 sps:$4 sm:$0xff]  }
 0x2c6   : > { %3432 = vmatpush1.bf16.msra.mxu0 %v9349_v19  ;;  %v9412_v19 = vld [vmem:[%s13275_s2 + $0x8f0] ss:$8 sps:$4 sm:$0xff]  }
 0x2c7   : > { %3433 = vmatprep.subr.bf16.mxu0 %v9354_v51  ;;  %v9417_v51 = vld [vmem:[%s13277_s4 + $0x104] ss:$8 sps:$4 sm:$0xff]  }
 0x2ca   : > { %3434 = vmatpush1.bf16.msra.mxu0 %v9352_v26  ;;  %v9415_v26 = vld [vmem:[%s13277_s4 + $0x100] ss:$8 sps:$4 sm:$0xff]  }
 0x2cb   : > { %3435 = vmatprep.subr.bf16.mxu0 %v9357_v1  ;;  %v9420_v1 = vld [vmem:[%s13277_s4 + $0x114] ss:$8 sps:$4 sm:$0xff]  }
 0x2ce   : > { %3436 = vmatpush1.bf16.msra.mxu0 %v9355_v28  ;;  %v9418_v28 = vld [vmem:[%s13277_s4 + $0x110] ss:$8 sps:$4 sm:$0xff]  }
 0x2cf   : > { %3437 = vmatprep.subr.bf16.mxu0 %v9360_v40  ;;  %v9423_v40 = vld [vmem:[%s13277_s4 + $0x124] ss:$8 sps:$4 sm:$0xff]  }
 0x2d2   : > { %3438 = vmatpush1.bf16.msra.mxu0 %v9358_v3  ;;  %v9456_v3 = vld [vmem:[%s13277_s4 + $0x1d4] ss:$8 sps:$4 sm:$0xff]  }
 0x2d3   : > { %3439 = vmatprep.subr.bf16.mxu0 %v9363_v5  ;;  %v9454_v5 = vld [vmem:[%s13277_s4 + $0x1d0] ss:$8 sps:$4 sm:$0xff]  }
 0x2d6   : > { %3440 = vmatpush1.bf16.msra.mxu0 %v9361_v47  ;;  %v9459_v47 = vld [vmem:[%s13277_s4 + $0x1e4] ss:$8 sps:$4 sm:$0xff]  }
 0x2d7   : > { %3441 = vmatprep.subr.bf16.mxu0 %v9366_v18  ;;  %v9457_v18 = vld [vmem:[%s13277_s4 + $0x1e0] ss:$8 sps:$4 sm:$0xff]  }
 0x2da   : > { %3442 = vmatpush1.bf16.msra.mxu0 %v9364_v41  ;;  %v9462_v41 = vld [vmem:[%s13277_s4 + $0x1f4] ss:$8 sps:$4 sm:$0xff]  }
 0x2db   : > { %3815 = vmatprep.subr.bf16.mxu0 %v9369_v13  ;;  %v9460_v13 = vld [vmem:[%s13277_s4 + $0x1f0] ss:$8 sps:$4 sm:$0xff]  }
 0x2dd   : > { %3444 = vmatmul.mubr.bf16.vlgmr.msra.gmra.mrb[32].mxu0 %v3210_v44  ;;  %v9376_v44 = vld [vmem:[%s13275_s2 + $0x830] ss:$8 sps:$4 sm:$0xff]  }
 0x2de   : > { %3816 = vmatpush1.bf16.msra.mxu0 %v9367_v62  ;;  %3453 = vmatprep.mubr.bf16.mxu0 %v3213_v38  ;;  %v9385_v38 = vld [vmem:[%s13275_s2 + $0x860] ss:$8 sps:$4 sm:$0xff]   ;;  %v3906_v62 = vlaneseq }
 0x2df   : > { %3817 = vmatprep.subr.bf16.mxu0 %v9372_v63 }
 0x2e0   : > { %v11766_v63 = vshrl.u32 %v3906_v62, 7  ;;  %v9847_v62 = vld [vmem:[%s13274_s1] sm:$0xff]  }
 0x2e2   : > { %3818 = vmatpush1.bf16.msra.mxu0 %v9370_v52  ;;  %v13281_v52 = vsub.s32 0, %v11766_v63 }
 0x2e3   : > { %3819 = vmatprep.subr.bf16.mxu0 %v9375_v32  ;;  %v3904_v32 = vld [vmem:[%s13276_s3] sm:$0x3] }
 0x2e5   : > { %3454 = vmatmul.mubr.bf16.gmra.mrb[36].mxu0 %v3212_v46  ;;  %v9382_v46 = vld [vmem:[%s13275_s2 + $0x850] ss:$8 sps:$4 sm:$0xff]  }
 0x2e6   : > { %3820 = vmatpush1.bf16.msra.mxu0 %v9373_v24  ;;  %3463 = vmatprep.mubr.bf16.mxu0 %v3215_v31  ;;  %v9394_v31 = vld [vmem:[%s13275_s2 + $0x890] ss:$8 sps:$4 sm:$0xff]   ;;  %v13280_v24 = vsub.s32 1, %v11766_v63 }
 0x2e7   : > { %3821 = vmatprep.subr.bf16.mxu0 %v9378_v34  ;;  %v3909_v34 = vrot.slane %v3904_v32, %v13281_v52  ;;  %v9654_v52 = vld [vmem:[%s13277_s4 + $0x4f4] ss:$8 sps:$4 sm:$0xff]  }
 0x2ea   : > { %3822 = vmatpush1.bf16.msra.mxu0 %v9376_v44  ;;  %v3913_v44 = vrot.slane %v3904_v32, %v13280_v24  ;;  %v9848_v32 = vld [vmem:[%s13274_s1 + $0x8] sm:$0xff]  }
 0x2eb   : > { %3823 = vmatprep.subr.bf16.mxu0 %v9381_v42 }
 0x2ed   : > { %3464 = vmatmul.mubr.bf16.gmra.mrb[40].mxu0 %v3214_v61  ;;  %v9391_v61 = vld [vmem:[%s13275_s2 + $0x880] ss:$8 sps:$4 sm:$0xff]  }
 0x2ee   : > { %3824 = vmatpush1.bf16.msra.mxu0 %v9379_v60  ;;  %3473 = vmatprep.mubr.bf16.mxu0 %v3217_v7  ;;  %v9403_v7 = vld [vmem:[%s13275_s2 + $0x8c0] ss:$8 sps:$4 sm:$0xff]  }
 0x2ef   : > { %3825 = vmatprep.subr.bf16.mxu0 %v9384_v43 }
 0x2f2   : > { %3826 = vmatpush1.bf16.msra.mxu0 %v9382_v46 }
 0x2f3   : > { %3827 = vmatprep.subr.bf16.mxu0 %v9387_v56 }
 0x2f5   : > { %3474 = vmatmul.mubr.bf16.gmra.mrb[44].mxu0 %v3216_v20  ;;  %v9400_v20 = vld [vmem:[%s13275_s2 + $0x8b0] ss:$8 sps:$4 sm:$0xff]  }
 0x2f6   : > { %3828 = vmatpush1.bf16.msra.mxu0 %v9385_v38  ;;  %3847 = vmatprep.mubr.bf16.mxu0 %v3615_v4  ;;  %v9411_v4 = vld [vmem:[%s13275_s2 + $0x8e4] ss:$8 sps:$4 sm:$0xff]  }
 0x2f7   : > { %3829 = vmatprep.subr.bf16.mxu0 %v9390_v15 }
 0x2fa   : > { %3830 = vmatpush1.bf16.msra.mxu0 %v9388_v8 }
 0x2fb   : > { %3831 = vmatprep.subr.bf16.mxu0 %v9393_v16 }
 0x2fe   : > { %3832 = vmatpush1.bf16.msra.mxu0 %v9391_v61 }
 0x2ff   : > { %3833 = vmatprep.subr.bf16.mxu0 %v9396_v49 }
 0x302   : > { %3834 = vmatpush1.bf16.msra.mxu0 %v9394_v31 }
 0x303   : > { %3835 = vmatprep.subr.bf16.mxu0 %v9399_v35 }
 0x306   : > { %3836 = vmatpush1.bf16.msra.mxu0 %v9397_v9 }
 0x307   : > { %3837 = vmatprep.subr.bf16.mxu0 %v9402_v55 }
 0x30a   : > { %3838 = vmatpush1.bf16.msra.mxu0 %v9400_v20 }
 0x30b   : > { %3839 = vmatprep.subr.bf16.mxu0 %v9405_v11 }
 0x30e   : > { %3840 = vmatpush1.bf16.msra.mxu0 %v9403_v7 }
 0x30f   : > { %3841 = vmatprep.subr.bf16.mxu0 %v9408_v2 }
 0x312   : > { %3842 = vmatpush1.bf16.msra.mxu0 %v9406_v21 }
 0x313   : > { %3843 = vmatprep.subr.bf16.mxu0 %v9411_v4 }
 0x316   : > { %3844 = vmatpush1.bf16.msra.mxu0 %v9409_v39 }
 0x317   : > { %3845 = vmatprep.subr.bf16.mxu0 %v9414_v30 }
 0x31a   : > { %3846 = vmatpush1.bf16.msra.mxu0 %v9412_v19 }
 0x31b   : > { %4343 = vmatprep.subr.bf16.mxu0 %v9417_v51 }
 0x31d   : > { %3848 = vmatmul.mubr.bf16.vlgmr.msra.gmra.mrb[32].mxu0 %v3614_v53  ;;  %v9424_v53 = vld [vmem:[%s13277_s4 + $0x130] ss:$8 sps:$4 sm:$0xff]  }
 0x31e   : > { %3857 = vmatprep.mubr.bf16.mxu0 %v3617_v17  ;;  %4344 = vmatpush1.bf16.msra.mxu0 %v9415_v26  ;;  %v9433_v17 = vld [vmem:[%s13277_s4 + $0x160] ss:$8 sps:$4 sm:$0xff]  }
 0x31f   : > { %4345 = vmatprep.subr.bf16.mxu0 %v9420_v1 }
 0x322   : > { %4346 = vmatpush1.bf16.msra.mxu0 %v9418_v28 }
 0x323   : > { %4347 = vmatprep.subr.bf16.mxu0 %v9423_v40 }
 0x325   : > { %3858 = vmatmul.mubr.bf16.gmra.mrb[36].mxu0 %v3616_v25  ;;  %v9430_v25 = vld [vmem:[%s13277_s4 + $0x150] ss:$8 sps:$4 sm:$0xff]  }
 0x326   : > { %3867 = vmatprep.mubr.bf16.mxu0 %v3619_v6  ;;  %4348 = vmatpush1.bf16.msra.mxu0 %v9421_v33  ;;  %v9442_v6 = vld [vmem:[%s13277_s4 + $0x190] ss:$8 sps:$4 sm:$0xff]  }
 0x327   : > { %4349 = vmatprep.subr.bf16.mxu0 %v9426_v50 }
 0x32a   : > { %4350 = vmatpush1.bf16.msra.mxu0 %v9424_v53 }
 0x32b   : > { %4351 = vmatprep.subr.bf16.mxu0 %v9429_v23 }
 0x32d   : > { %3868 = vmatmul.mubr.bf16.gmra.mrb[40].mxu0 %v3618_v48  ;;  %v9439_v48 = vld [vmem:[%s13277_s4 + $0x180] ss:$8 sps:$4 sm:$0xff]  }
 0x32e   : > { %3877 = vmatprep.mubr.bf16.mxu0 %v3621_v54  ;;  %4352 = vmatpush1.bf16.msra.mxu0 %v9427_v57  ;;  %v9451_v54 = vld [vmem:[%s13277_s4 + $0x1c0] ss:$8 sps:$4 sm:$0xff]  }
 0x32f   : > { %4353 = vmatprep.subr.bf16.mxu0 %v9432_v14 }
 0x332   : > { %4354 = vmatpush1.bf16.msra.mxu0 %v9430_v25 }
 0x333   : > { %4355 = vmatprep.subr.bf16.mxu0 %v9435_v27 }
 0x335   : > { %3878 = vmatmul.mubr.bf16.gmra.mrb[44].mxu0 %v3620_v36  ;;  %v9448_v36 = vld [vmem:[%s13277_s4 + $0x1b0] ss:$8 sps:$4 sm:$0xff]  }
 0x336   : > { %4356 = vmatpush1.bf16.msra.mxu0 %v9433_v17 }
 0x337   : > { %4357 = vmatprep.subr.bf16.mxu0 %v9438_v12 }
 0x33a   : > { %4358 = vmatpush1.bf16.msra.mxu0 %v9436_v58 }
 0x33b   : > { %4359 = vmatprep.subr.bf16.mxu0 %v9441_v29 }
 0x33e   : > { %4360 = vmatpush1.bf16.msra.mxu0 %v9439_v48 }
 0x33f   : > { %4361 = vmatprep.subr.bf16.mxu0 %v9444_v37 }
 0x342   : > { %4362 = vmatpush1.bf16.msra.mxu0 %v9442_v6 }
 0x343   : > { %4363 = vmatprep.subr.bf16.mxu0 %v9447_v45 }
 0x346   : > { %4364 = vmatpush1.bf16.msra.mxu0 %v9445_v22 }
 0x347   : > { %4365 = vmatprep.subr.bf16.mxu0 %v9450_v10 }
 0x34a   : > { %4366 = vmatpush1.bf16.msra.mxu0 %v9448_v36 }
 0x34b   : > { %4367 = vmatprep.subr.bf16.mxu0 %v9453_v59 }
 0x34e   : > { %4368 = vmatpush1.bf16.msra.mxu0 %v9451_v54 }
 0x34f   : > { %4369 = vmatprep.subr.bf16.mxu0 %v9456_v3 }
 0x352   : > { %4370 = vmatpush1.bf16.msra.mxu0 %v9454_v5 }
 0x353   : > { %4371 = vmatprep.subr.bf16.mxu0 %v9459_v47 }
 0x356   : > { %4372 = vmatpush1.bf16.msra.mxu0 %v9457_v18 }
 0x357   : > { %4373 = vmatprep.subr.bf16.mxu0 %v9462_v41 }
 0x35a   : > { %4374 = vmatpush1.bf16.msra.mxu0 %v9460_v13 }
 0x3f0   : > { %v3849_v42 = vpop.f32.mrb[32].mxu0 }
 0x3f1   : > { %v3916_v60 = vadd.f32 %v3909_v34, %v3849_v42  ;;  %v3851_v43 = vpop.f32.mrb[33].mxu0  ;;  %v9850_v42 = vld [vmem:[%s13274_s1 + $0x18] sm:$0xff]  }
 0x3f2   : > { %v3917_v46 = vadd.f32 %v3913_v44, %v3851_v43  ;;  %v3853_v56 = vpop.f32.mrb[34].mxu0  ;;  %v9468_v43 = vld [vmem:[%s13277_s4 + $0x14] ss:$8 sps:$4 sm:$0xff]  }
 0x3f3   : > { %v3918_v38 = vadd.f32 %v3909_v34, %v3853_v56  ;;  %v3855_v15 = vpop.f32.mrb[35].mxu0  ;;  %v3932_v16 = vmax.f32 %v3916_v60, 0.0  ;;  %v9463_v60 = vld [vmem:[%s13277_s4] ss:$8 sps:$4 sm:$0xff]   ;;  %v9466_v56 = vld [vmem:[%s13277_s4 + $0x10] ss:$8 sps:$4 sm:$0xff]  }
 0x3f4   : > { %v3919_v8 = vadd.f32 %v3913_v44, %v3855_v15  ;;  %v3933_v49 = vmax.f32 %v3917_v46, 0.0  ;;  %v9851_v46 = vld [vmem:[%s13274_s1 + $0x20] sm:$0xff]  }
 0x3f5   : > { %v3934_v61 = vmax.f32 %v3918_v38, 0.0  ;;  %v9471_v38 = vld [vmem:[%s13277_s4 + $0x24] ss:$8 sps:$4 sm:$0xff]   ;;  %v9469_v15 = vld [vmem:[%s13277_s4 + $0x20] ss:$8 sps:$4 sm:$0xff]  }
 0x3f6   : > { %v3935_v31 = vmax.f32 %v3919_v8, 0.0  ;;  %v9474_v8 = vld [vmem:[%s13277_s4 + $0x34] ss:$8 sps:$4 sm:$0xff]  }
 0x3f7   : > { %v11777_v35 = vpack.c.bf16 %v3934_v61, %v3932_v16  ;;  %v9852_v16 = vld [vmem:[%s13274_s1 + $0x28] sm:$0xff]   ;;  %v9472_v61 = vld [vmem:[%s13277_s4 + $0x30] ss:$8 sps:$4 sm:$0xff]  }
 0x3f8   : > { %v11779_v9 = vpack.c.bf16 %v3935_v31, %v3933_v49  ;;  %v3859_v55 = vpop.f32.mrb[36].mxu0  ;;  %v9477_v49 = vld [vmem:[%s13277_s4 + $0x44] ss:$8 sps:$4 sm:$0xff]   ;;  %v9475_v31 = vld [vmem:[%s13277_s4 + $0x40] ss:$8 sps:$4 sm:$0xff]  }
 0x3f9   : > { %v3920_v20 = vadd.f32 %v3909_v34, %v3859_v55  ;;  %v3861_v11 = vpop.f32.mrb[37].mxu0  ;;  %v9480_v55 = vld [vmem:[%s13277_s4 + $0x54] ss:$8 sps:$4 sm:$0xff]  }
 0x3fa   : > { %v3921_v7 = vadd.f32 %v3913_v44, %v3861_v11  ;;  %v3863_v2 = vpop.f32.mrb[38].mxu0  ;;  %3956 = vmatprep.subr.bf16.mxu1 %v11779_v9  ;;  %5375 = vmatprep.subr.bf16.mxu0 %v11779_v9  ;;  %v9478_v11 = vld [vmem:[%s13277_s4 + $0x50] ss:$8 sps:$4 sm:$0xff]  }
 0x3fb   : > { %v3922_v21 = vadd.f32 %v3909_v34, %v3863_v2  ;;  %v3865_v4 = vpop.f32.mrb[39].mxu0  ;;  %3957 = vmatpush1.bf16.msra.mxu1 %v11777_v35  ;;  %v3936_v30 = vmax.f32 %v3920_v20, 0.0  ;;  %v9853_v20 = vld [vmem:[%s13274_s1 + $0x30] sm:$0xff]   ;;  %v9481_v2 = vld [vmem:[%s13277_s4 + $0x60] ss:$8 sps:$4 sm:$0xff]  }
 0x3fc   : > { %v3923_v39 = vadd.f32 %v3913_v44, %v3865_v4  ;;  %v3937_v51 = vmax.f32 %v3921_v7, 0.0  ;;  %v9483_v7 = vld [vmem:[%s13277_s4 + $0x64] ss:$8 sps:$4 sm:$0xff]   ;;  %v9854_v4 = vld [vmem:[%s13274_s1 + $0x38] sm:$0xff]  }
 0x3fd   : > { %v3938_v19 = vmax.f32 %v3922_v21, 0.0  ;;  %v9486_v21 = vld [vmem:[%s13277_s4 + $0x74] ss:$8 sps:$4 sm:$0xff]  }
 0x3fe   : > { %v3939_v26 = vmax.f32 %v3923_v39, 0.0  ;;  %v9484_v39 = vld [vmem:[%s13277_s4 + $0x70] ss:$8 sps:$4 sm:$0xff]  }
 0x3ff   : > { %v11784_v1 = vpack.c.bf16 %v3938_v19, %v3936_v30  ;;  %v9489_v30 = vld [vmem:[%s13277_s4 + $0x84] ss:$8 sps:$4 sm:$0xff]   ;;  %v9487_v19 = vld [vmem:[%s13277_s4 + $0x80] ss:$8 sps:$4 sm:$0xff]  }
 0x400   : > { %v11786_v28 = vpack.c.bf16 %v3939_v26, %v3937_v51  ;;  %v3869_v40 = vpop.f32.mrb[40].mxu0  ;;  %v9492_v51 = vld [vmem:[%s13277_s4 + $0x94] ss:$8 sps:$4 sm:$0xff]   ;;  %v9490_v26 = vld [vmem:[%s13277_s4 + $0x90] ss:$8 sps:$4 sm:$0xff]  }
 0x401   : > { %v3924_v33 = vadd.f32 %v3909_v34, %v3869_v40  ;;  %v3871_v50 = vpop.f32.mrb[41].mxu0  ;;  %v9495_v40 = vld [vmem:[%s13277_s4 + $0xa4] ss:$8 sps:$4 sm:$0xff]  }
 0x402   : > { %v3925_v53 = vadd.f32 %v3913_v44, %v3871_v50  ;;  %v3873_v23 = vpop.f32.mrb[42].mxu0  ;;  %3958 = vmatprep.subr.bf16.mxu1 %v11786_v28  ;;  %v9498_v50 = vld [vmem:[%s13277_s4 + $0xb4] ss:$8 sps:$4 sm:$0xff]  }
 0x403   : > { %v3926_v57 = vadd.f32 %v3909_v34, %v3873_v23  ;;  %v3875_v14 = vpop.f32.mrb[43].mxu0  ;;  %3959 = vmatpush1.bf16.msra.mxu1 %v11784_v1  ;;  %v3940_v27 = vmax.f32 %v3924_v33, 0.0  ;;  %v9493_v33 = vld [vmem:[%s13277_s4 + $0xa0] ss:$8 sps:$4 sm:$0xff]   ;;  %v9501_v23 = vld [vmem:[%s13277_s4 + $0xc4] ss:$8 sps:$4 sm:$0xff]  }
 0x404   : > { %v3927_v25 = vadd.f32 %v3913_v44, %v3875_v14  ;;  %v3941_v12 = vmax.f32 %v3925_v53, 0.0  ;;  %v9496_v53 = vld [vmem:[%s13277_s4 + $0xb0] ss:$8 sps:$4 sm:$0xff]   ;;  %v9504_v14 = vld [vmem:[%s13277_s4 + $0xd4] ss:$8 sps:$4 sm:$0xff]  }
 0x405   : > { %v3942_v17 = vmax.f32 %v3926_v57, 0.0  ;;  %v9499_v57 = vld [vmem:[%s13277_s4 + $0xc0] ss:$8 sps:$4 sm:$0xff]  }
 0x406   : > { %v3943_v58 = vmax.f32 %v3927_v25, 0.0  ;;  %v9502_v25 = vld [vmem:[%s13277_s4 + $0xd0] ss:$8 sps:$4 sm:$0xff]  }
 0x407   : > { %v11790_v29 = vpack.c.bf16 %v3942_v17, %v3940_v27  ;;  %v9507_v27 = vld [vmem:[%s13277_s4 + $0xe4] ss:$8 sps:$4 sm:$0xff]   ;;  %v9505_v17 = vld [vmem:[%s13277_s4 + $0xe0] ss:$8 sps:$4 sm:$0xff]  }
 0x408   : > { %v11792_v48 = vpack.c.bf16 %v3943_v58, %v3941_v12  ;;  %v3879_v37 = vpop.f32.mrb[44].mxu0  ;;  %v9510_v12 = vld [vmem:[%s13277_s4 + $0xf4] ss:$8 sps:$4 sm:$0xff]   ;;  %v9508_v58 = vld [vmem:[%s13277_s4 + $0xf0] ss:$8 sps:$4 sm:$0xff]  }
 0x409   : > { %v3928_v6 = vadd.f32 %v3909_v34, %v3879_v37  ;;  %v3881_v45 = vpop.f32.mrb[45].mxu0 }
 0x40a   : > { %v3929_v22 = vadd.f32 %v3913_v44, %v3881_v45  ;;  %v3883_v10 = vpop.f32.mrb[46].mxu0  ;;  %3960 = vmatprep.subr.bf16.mxu1 %v11792_v48 }
 0x40b   : > { %v3930_v36 = vadd.f32 %v3909_v34, %v3883_v10  ;;  %v3885_v59 = vpop.f32.mrb[47].mxu0  ;;  %3961 = vmatpush1.bf16.msra.mxu1 %v11790_v29  ;;  %v3944_v3 = vmax.f32 %v3928_v6, 0.0  ;;  %v9465_v34 = vld [vmem:[%s13277_s4 + $0x4] ss:$8 sps:$4 sm:$0xff]  }
 0x40c   : > { %v3931_v54 = vadd.f32 %v3913_v44, %v3885_v59  ;;  %v3945_v47 = vmax.f32 %v3929_v22, 0.0  ;;  %v9849_v44 = vld [vmem:[%s13274_s1 + $0x10] sm:$0xff]  }
 0x40d   : > { %v3946_v5 = vmax.f32 %v3930_v36, 0.0 }
 0x40e   : > { %v3947_v18 = vmax.f32 %v3931_v54, 0.0 }
 0x40f   : > { %v11796_v41 = vpack.c.bf16 %v3946_v5, %v3944_v3 }
 0x410   : > { %v11798_v13 = vpack.c.bf16 %v3947_v18, %v3945_v47 }
 0x412   : > { %3962 = vmatprep.subr.bf16.mxu1 %v11798_v13 }
 0x413   : > { %3963 = vmatpush1.bf16.msra.mxu1 %v11796_v41 }
 0x414   : > { %4069 = vmatprep.subr.bf16.mxu1 %v11779_v9 }
 0x416   : > { %8074 = vmatmul.mubr.msk.bf16.vlgmr.msra.gmra.mrb[112].mxu1 %vm329_vm0, %v9847_v62 }
 0x417   : > { %4070 = vmatpush1.bf16.msra.mxu1 %v11777_v35  ;;  %3998 = vmatprep.mubr.bf16.mxu1 %v9899_v0 }
 0x418   : > { %4071 = vmatprep.subr.bf16.mxu1 %v11786_v28 }
 0x41b   : > { %4072 = vmatpush1.bf16.msra.mxu1 %v11784_v1 }
 0x41c   : > { %4073 = vmatprep.subr.bf16.mxu1 %v11792_v48 }
 0x41e   : > { %8075 = vmatmul.mubr.msk.bf16.gmra.mrb[116].mxu1 %vm329_vm0, %v9848_v32 }
 0x41f   : > { %4074 = vmatpush1.bf16.msra.mxu1 %v11790_v29  ;;  %4008 = vmatprep.mubr.bf16.mxu1 %v9899_v0 }
 0x420   : > { %4075 = vmatprep.subr.bf16.mxu1 %v11798_v13 }
 0x423   : > { %4076 = vmatpush1.bf16.msra.mxu1 %v11796_v41 }
 0x424   : > { %4576 = vmatprep.subr.bf16.mxu1 %v9465_v34  ;;  %v9513_v34 = vld [vmem:[%s13277_s4 + $0x204] ss:$8 sps:$4 sm:$0xff]  }
 0x426   : > { %8076 = vmatmul.mubr.msk.bf16.gmra.mrb[120].mxu1 %vm329_vm0, %v9849_v44 }
 0x427   : > { %4018 = vmatprep.mubr.bf16.mxu1 %v9899_v0 }
 0x42e   : > { %8077 = vmatmul.mubr.msk.bf16.gmra.mrb[124].mxu1 %vm329_vm0, %v9850_v42 }
 0x42f   : > { %4101 = vmatprep.mubr.bf16.mxu1 %v9899_v0 }
 0x436   : > { %8078 = vmatmul.mubr.msk.bf16.vlgmr.msra.gmra.mrb[128].mxu1 %vm329_vm0, %v9851_v46 }
 0x437   : > { %4577 = vmatpush1.bf16.msra.mxu1 %v9463_v60  ;;  %4111 = vmatprep.mubr.bf16.mxu1 %v9899_v0 }
 0x438   : > { %4578 = vmatprep.subr.bf16.mxu1 %v9468_v43 }
 0x43b   : > { %4579 = vmatpush1.bf16.msra.mxu1 %v9466_v56 }
 0x43c   : > { %4580 = vmatprep.subr.bf16.mxu1 %v9471_v38 }
 0x43e   : > { %8079 = vmatmul.mubr.msk.bf16.gmra.mrb[132].mxu1 %vm329_vm0, %v9852_v16 }
 0x43f   : > { %4581 = vmatpush1.bf16.msra.mxu1 %v9469_v15  ;;  %4121 = vmatprep.mubr.bf16.mxu1 %v9899_v0 }
 0x440   : > { %4582 = vmatprep.subr.bf16.mxu1 %v9474_v8 }
 0x443   : > { %4583 = vmatpush1.bf16.msra.mxu1 %v9472_v61 }
 0x444   : > { %4584 = vmatprep.subr.bf16.mxu1 %v9477_v49 }
 0x446   : > { %8080 = vmatmul.mubr.msk.bf16.gmra.mrb[136].mxu1 %vm329_vm0, %v9853_v20 }
 0x447   : > { %4585 = vmatpush1.bf16.msra.mxu1 %v9475_v31  ;;  %4131 = vmatprep.mubr.bf16.mxu1 %v9899_v0 }
 0x448   : > { %4586 = vmatprep.subr.bf16.mxu1 %v9480_v55 }
 0x44b   : > { %4587 = vmatpush1.bf16.msra.mxu1 %v9478_v11 }
 0x44c   : > { %4588 = vmatprep.subr.bf16.mxu1 %v9483_v7  ;;  %v9511_v7 = vld [vmem:[%s13277_s4 + $0x200] ss:$8 sps:$4 sm:$0xff]  }
 0x44e   : > { %8081 = vmatmul.mubr.msk.bf16.gmra.mrb[140].mxu1 %vm329_vm0, %v9854_v4 }
 0x44f   : > { %4589 = vmatpush1.bf16.msra.mxu1 %v9481_v2  ;;  %v9516_v2 = vld [vmem:[%s13277_s4 + $0x214] ss:$8 sps:$4 sm:$0xff]  }
 0x450   : > { %4590 = vmatprep.subr.bf16.mxu1 %v9486_v21  ;;  %v9855_v21 = vld [vmem:[%s13274_s1 + $0x40] sm:$0xff]  }
 0x453   : > { %4591 = vmatpush1.bf16.msra.mxu1 %v9484_v39  ;;  %v9514_v39 = vld [vmem:[%s13277_s4 + $0x210] ss:$8 sps:$4 sm:$0xff]  }
 0x454   : > { %4592 = vmatprep.subr.bf16.mxu1 %v9489_v30 }
 0x457   : > { %4593 = vmatpush1.bf16.msra.mxu1 %v9487_v19  ;;  %v9519_v19 = vld [vmem:[%s13277_s4 + $0x224] ss:$8 sps:$4 sm:$0xff]  }
 0x458   : > { %4594 = vmatprep.subr.bf16.mxu1 %v9492_v51 }
 0x45b   : > { %4595 = vmatpush1.bf16.msra.mxu1 %v9490_v26 }
 0x45c   : > { %4596 = vmatprep.subr.bf16.mxu1 %v9495_v40 }
 0x45f   : > { %4597 = vmatpush1.bf16.msra.mxu1 %v9493_v33 }
 0x460   : > { %4598 = vmatprep.subr.bf16.mxu1 %v9498_v50  ;;  %v9517_v50 = vld [vmem:[%s13277_s4 + $0x220] ss:$8 sps:$4 sm:$0xff]  }
 0x463   : > { %4599 = vmatpush1.bf16.msra.mxu1 %v9496_v53  ;;  %v9522_v53 = vld [vmem:[%s13277_s4 + $0x234] ss:$8 sps:$4 sm:$0xff]  }
 0x464   : > { %4600 = vmatprep.subr.bf16.mxu1 %v9501_v23  ;;  %v9856_v23 = vld [vmem:[%s13274_s1 + $0x48] sm:$0xff]  }
 0x467   : > { %4601 = vmatpush1.bf16.msra.mxu1 %v9499_v57 }
 0x468   : > { %4602 = vmatprep.subr.bf16.mxu1 %v9504_v14  ;;  %v9520_v14 = vld [vmem:[%s13277_s4 + $0x230] ss:$8 sps:$4 sm:$0xff]  }
 0x46b   : > { %4603 = vmatpush1.bf16.msra.mxu1 %v9502_v25 }
 0x46c   : > { %4604 = vmatprep.subr.bf16.mxu1 %v9507_v27  ;;  %v9525_v27 = vld [vmem:[%s13277_s4 + $0x244] ss:$8 sps:$4 sm:$0xff]  }
 0x46f   : > { %4605 = vmatpush1.bf16.msra.mxu1 %v9505_v17 }
 0x470   : > { %4606 = vmatprep.subr.bf16.mxu1 %v9510_v12 }
 0x473   : > { %4607 = vmatpush1.bf16.msra.mxu1 %v9508_v58 }
 0x474   : > { %4649 = vmatprep.subr.bf16.mxu1 %v11779_v9 }
 0x4e9   : > { %v3990_v37 = vpop.f32.mrb[112].mxu1 }
 0x4ea   : > { %v3992_v6 = vpop.f32.mrb[113].mxu1 }
 0x4eb   : > { %v3994_v45 = vpop.f32.mrb[114].mxu1 }
 0x4ec   : > { %v4029_v22 = vpack.c.bf16 %v3994_v45, %v3990_v37  ;;  %v3996_v10 = vpop.f32.mrb[115].mxu1  ;;  %v9528_v45 = vld [vmem:[%s13277_s4 + $0x254] ss:$8 sps:$4 sm:$0xff]  }
 0x4ed   : > { %v4030_v36 = vpack.c.bf16 %v3996_v10, %v3992_v6  ;;  %v9523_v6 = vld [vmem:[%s13277_s4 + $0x240] ss:$8 sps:$4 sm:$0xff]  }
 0x4ef   : > { %4608 = vmatprep.mubr.bf16.mxu1 %v4030_v36  ;;  %v9526_v36 = vld [vmem:[%s13277_s4 + $0x250] ss:$8 sps:$4 sm:$0xff]  }
 0x4f0   : > { %4609 = vmatmul.mubr.bf16.vlgmr.msra.gmra.mrb[144].mxu1 %v4029_v22  ;;  %v9857_v22 = vld [vmem:[%s13274_s1 + $0x50] sm:$0xff]  }
 0x4f1   : > { %4650 = vmatpush1.bf16.msra.mxu1 %v11777_v35  ;;  %v4000_v59 = vpop.f32.mrb[116].mxu1 }
 0x4f2   : > { %4651 = vmatprep.subr.bf16.mxu1 %v11786_v28  ;;  %v4002_v54 = vpop.f32.mrb[117].mxu1 }
 0x4f3   : > { %v4004_v3 = vpop.f32.mrb[118].mxu1 }
 0x4f4   : > { %v4031_v5 = vpack.c.bf16 %v4004_v3, %v4000_v59  ;;  %v4006_v47 = vpop.f32.mrb[119].mxu1 }
 0x4f5   : > { %v4032_v18 = vpack.c.bf16 %v4006_v47, %v4002_v54  ;;  %4652 = vmatpush1.bf16.msra.mxu1 %v11784_v1  ;;  %v9531_v54 = vld [vmem:[%s13277_s4 + $0x264] ss:$8 sps:$4 sm:$0xff]  }
 0x4f6   : > { %4653 = vmatprep.subr.bf16.mxu1 %v11792_v48 }
 0x4f7   : > { %4618 = vmatprep.mubr.bf16.mxu1 %v4032_v18 }
 0x4f8   : > { %4619 = vmatmul.mubr.bf16.gmra.mrb[148].mxu1 %v4031_v5 }
 0x4f9   : > { %4654 = vmatpush1.bf16.msra.mxu1 %v11790_v29  ;;  %v4010_v62 = vpop.f32.mrb[120].mxu1 }
 0x4fa   : > { %4655 = vmatprep.subr.bf16.mxu1 %v11798_v13  ;;  %v4012_v32 = vpop.f32.mrb[121].mxu1 }
 0x4fb   : > { %v4014_v44 = vpop.f32.mrb[122].mxu1 }
 0x4fc   : > { %v4033_v42 = vpack.c.bf16 %v4014_v44, %v4010_v62  ;;  %v4016_v60 = vpop.f32.mrb[123].mxu1  ;;  %v9529_v62 = vld [vmem:[%s13277_s4 + $0x260] ss:$8 sps:$4 sm:$0xff]   ;;  %v9532_v44 = vld [vmem:[%s13277_s4 + $0x270] ss:$8 sps:$4 sm:$0xff]  }
 0x4fd   : > { %v4034_v43 = vpack.c.bf16 %v4016_v60, %v4012_v32  ;;  %4656 = vmatpush1.bf16.msra.mxu1 %v11796_v41  ;;  %v9534_v32 = vld [vmem:[%s13277_s4 + $0x274] ss:$8 sps:$4 sm:$0xff]   ;;  %v9535_v60 = vld [vmem:[%s13277_s4 + $0x280] ss:$8 sps:$4 sm:$0xff]  }
 0x4fe   : > { %4923 = vmatprep.subr.bf16.mxu1 %v9513_v34  ;;  %v9858_v34 = vld [vmem:[%s13274_s1 + $0x58] sm:$0xff]  }
 0x4ff   : > { %4628 = vmatprep.mubr.bf16.mxu1 %v4034_v43  ;;  %v9540_v43 = vld [vmem:[%s13277_s4 + $0x294] ss:$8 sps:$4 sm:$0xff]  }
 0x500   : > { %4629 = vmatmul.mubr.bf16.gmra.mrb[152].mxu1 %v4033_v42  ;;  %v9537_v42 = vld [vmem:[%s13277_s4 + $0x284] ss:$8 sps:$4 sm:$0xff]  }
 0x501   : > { %v4020_v46 = vpop.f32.mrb[124].mxu1 }
 0x502   : > { %v4022_v56 = vpop.f32.mrb[125].mxu1 }
 0x503   : > { %v4024_v38 = vpop.f32.mrb[126].mxu1 }
 0x504   : > { %v4035_v15 = vpack.c.bf16 %v4024_v38, %v4020_v46  ;;  %v4026_v8 = vpop.f32.mrb[127].mxu1  ;;  %v9859_v46 = vld [vmem:[%s13274_s1 + $0x80] sm:$0xff]  }
 0x505   : > { %v4036_v16 = vpack.c.bf16 %v4026_v8, %v4022_v56  ;;  %v9538_v56 = vld [vmem:[%s13277_s4 + $0x290] ss:$8 sps:$4 sm:$0xff]   ;;  %v9543_v38 = vld [vmem:[%s13277_s4 + $0x2a4] ss:$8 sps:$4 sm:$0xff]   ;;  %v9546_v8 = vld [vmem:[%s13277_s4 + $0x2b4] ss:$8 sps:$4 sm:$0xff]  }
 0x507   : > { %4638 = vmatprep.mubr.bf16.mxu1 %v4036_v16  ;;  %v9860_v16 = vld [vmem:[%s13274_s1 + $0x88] sm:$0xff]  }
 0x508   : > { %4639 = vmatmul.mubr.bf16.gmra.mrb[156].mxu1 %v4035_v15  ;;  %v9541_v15 = vld [vmem:[%s13277_s4 + $0x2a0] ss:$8 sps:$4 sm:$0xff]  }
 0x509   : > { %v4103_v61 = vpop.f32.mrb[128].mxu1  ;;  %4681 = vmatprep.mubr.bf16.mxu1 %v9899_v0 }
 0x50a   : > { %v4105_v49 = vpop.f32.mrb[129].mxu1 }
 0x50b   : > { %v4107_v31 = vpop.f32.mrb[130].mxu1 }
 0x50c   : > { %v4142_v55 = vpack.c.bf16 %v4107_v31, %v4103_v61  ;;  %v4109_v20 = vpop.f32.mrb[131].mxu1  ;;  %v9544_v61 = vld [vmem:[%s13277_s4 + $0x2b0] ss:$8 sps:$4 sm:$0xff]   ;;  %v9547_v31 = vld [vmem:[%s13277_s4 + $0x2c0] ss:$8 sps:$4 sm:$0xff]  }
 0x50d   : > { %v4143_v11 = vpack.c.bf16 %v4109_v20, %v4105_v49  ;;  %v9549_v49 = vld [vmem:[%s13277_s4 + $0x2c4] ss:$8 sps:$4 sm:$0xff]   ;;  %v9861_v20 = vld [vmem:[%s13274_s1 + $0x90] sm:$0xff]  }
 0x50f   : > { %4375 = vmatprep.mubr.bf16.mxu0 %v4143_v11  ;;  %v9550_v11 = vld [vmem:[%s13277_s4 + $0x2d0] ss:$8 sps:$4 sm:$0xff]  }
 0x510   : > { %4376 = vmatmul.mubr.bf16.vlgmr.msra.gmra.mrb[48].mxu0 %v4142_v55  ;;  %8178 = vmatmul.mubr.msk.bf16.vlgmr.msra.gmra.mrb[160].mxu1 %vm329_vm0, %v9855_v21  ;;  %v9552_v55 = vld [vmem:[%s13277_s4 + $0x2d4] ss:$8 sps:$4 sm:$0xff]  }
 0x511   : > { %4924 = vmatpush1.bf16.msra.mxu1 %v9511_v7  ;;  %5376 = vmatpush1.bf16.msra.mxu0 %v11777_v35  ;;  %v4113_v4 = vpop.f32.mrb[132].mxu1  ;;  %v9555_v7 = vld [vmem:[%s13277_s4 + $0x2e4] ss:$8 sps:$4 sm:$0xff]   ;;  %v9558_v21 = vld [vmem:[%s13277_s4 + $0x2f4] ss:$8 sps:$4 sm:$0xff]  }
 0x512   : > { %5377 = vmatprep.subr.bf16.mxu0 %v11786_v28  ;;  %v4115_v30 = vpop.f32.mrb[133].mxu1  ;;  %4925 = vmatprep.subr.bf16.mxu1 %v9516_v2  ;;  %v9553_v2 = vld [vmem:[%s13277_s4 + $0x2e0] ss:$8 sps:$4 sm:$0xff]  }
 0x513   : > { %v4117_v51 = vpop.f32.mrb[134].mxu1  ;;  %4691 = vmatprep.mubr.bf16.mxu1 %v9899_v0 }
 0x514   : > { %v4144_v26 = vpack.c.bf16 %v4117_v51, %v4113_v4  ;;  %v4119_v40 = vpop.f32.mrb[135].mxu1  ;;  %v9862_v4 = vld [vmem:[%s13274_s1 + $0x98] sm:$0xff]   ;;  %v9865_v51 = vld [vmem:[%s13274_s1 + $0xb0] sm:$0xff]  }
 0x515   : > { %v4145_v33 = vpack.c.bf16 %v4119_v40, %v4115_v30  ;;  %4926 = vmatpush1.bf16.msra.mxu1 %v9514_v39  ;;  %5378 = vmatpush1.bf16.msra.mxu0 %v11784_v1  ;;  %v9556_v39 = vld [vmem:[%s13277_s4 + $0x2f0] ss:$8 sps:$4 sm:$0xff]   ;;  %v9863_v30 = vld [vmem:[%s13274_s1 + $0xa0] sm:$0xff]  }
 0x516   : > { %5379 = vmatprep.subr.bf16.mxu0 %v11792_v48  ;;  %4927 = vmatprep.subr.bf16.mxu1 %v9519_v19  ;;  %v9864_v19 = vld [vmem:[%s13274_s1 + $0xa8] sm:$0xff]   ;;  %v9867_v40 = vld [vmem:[%s13274_s1 + $0xc0] sm:$0xff]  }
 0x517   : > { %4385 = vmatprep.mubr.bf16.mxu0 %v4145_v33  ;;  %v9868_v33 = vld [vmem:[%s13274_s1 + $0xc8] sm:$0xff]  }
 0x518   : > { %4386 = vmatmul.mubr.bf16.gmra.mrb[52].mxu0 %v4144_v26  ;;  %8179 = vmatmul.mubr.msk.bf16.gmra.mrb[164].mxu1 %vm329_vm0, %v9856_v23  ;;  %v9866_v26 = vld [vmem:[%s13274_s1 + $0xb8] sm:$0xff]   ;;  %v9872_v23 = vld [vmem:[%s13274_s1 + $0xe8] sm:$0xff]  }
 0x519   : > { %4928 = vmatpush1.bf16.msra.mxu1 %v9517_v50  ;;  %5380 = vmatpush1.bf16.msra.mxu0 %v11790_v29  ;;  %v4123_v57 = vpop.f32.mrb[136].mxu1  ;;  %v9869_v50 = vld [vmem:[%s13274_s1 + $0xd0] sm:$0xff]  }
 0x51a   : > { %5381 = vmatprep.subr.bf16.mxu0 %v11798_v13  ;;  %v4125_v25 = vpop.f32.mrb[137].mxu1  ;;  %4929 = vmatprep.subr.bf16.mxu1 %v9522_v53  ;;  %v9870_v53 = vld [vmem:[%s13274_s1 + $0xd8] sm:$0xff]  }
 0x51b   : > { %v4127_v17 = vpop.f32.mrb[138].mxu1  ;;  %4701 = vmatprep.mubr.bf16.mxu1 %v9899_v0 }
 0x51c   : > { %v4146_v12 = vpack.c.bf16 %v4127_v17, %v4123_v57  ;;  %v4129_v58 = vpop.f32.mrb[139].mxu1  ;;  %v9873_v57 = vld [vmem:[%s13274_s1 + $0xf0] sm:$0xff]  }
 0x51d   : > { %v4147_v37 = vpack.c.bf16 %v4129_v58, %v4125_v25  ;;  %4930 = vmatpush1.bf16.msra.mxu1 %v9520_v14  ;;  %5382 = vmatpush1.bf16.msra.mxu0 %v11796_v41  ;;  %v9874_v14 = vld [vmem:[%s13274_s1 + $0xf8] sm:$0xff]   ;;  %v9875_v25 = vld [vmem:[%s13274_s1 + $0x100] sm:$0xff]   ;;  %v9877_v17 = vld [vmem:[%s13274_s1 + $0x110] sm:$0xff]  }
 0x51e   : > { %5738 = vmatprep.subr.bf16.mxu0 %v11779_v9  ;;  %4931 = vmatprep.subr.bf16.mxu1 %v9525_v27  ;;  %v9876_v27 = vld [vmem:[%s13274_s1 + $0x108] sm:$0xff]  }
 0x51f   : > { %4395 = vmatprep.mubr.bf16.mxu0 %v4147_v37 }
 0x520   : > { %4396 = vmatmul.mubr.bf16.gmra.mrb[56].mxu0 %v4146_v12  ;;  %8180 = vmatmul.mubr.msk.bf16.gmra.mrb[168].mxu1 %vm329_vm0, %v9857_v22  ;;  %v9878_v12 = vld [vmem:[%s13274_s1 + $0x118] sm:$0xff]  }
 0x521   : > { %4932 = vmatpush1.bf16.msra.mxu1 %v9523_v6  ;;  %v4133_v10 = vpop.f32.mrb[140].mxu1  ;;  %4711 = vmatprep.mubr.bf16.mxu1 %v9899_v0 }
 0x522   : > { %v4135_v59 = vpop.f32.mrb[141].mxu1  ;;  %4933 = vmatprep.subr.bf16.mxu1 %v9528_v45 }
 0x523   : > { %v4137_v3 = vpop.f32.mrb[142].mxu1 }
 0x524   : > { %v4148_v5 = vpack.c.bf16 %v4137_v3, %v4133_v10  ;;  %v4139_v47 = vpop.f32.mrb[143].mxu1 }
 0x525   : > { %v4149_v18 = vpack.c.bf16 %v4139_v47, %v4135_v59  ;;  %4934 = vmatpush1.bf16.msra.mxu1 %v9526_v36 }
 0x526   : > { %4935 = vmatprep.subr.bf16.mxu1 %v9531_v54 }
 0x527   : > { %4405 = vmatprep.mubr.bf16.mxu0 %v4149_v18 }
 0x528   : > { %4406 = vmatmul.mubr.bf16.gmra.mrb[60].mxu0 %v4148_v5  ;;  %8181 = vmatmul.mubr.msk.bf16.gmra.mrb[172].mxu1 %vm329_vm0, %v9858_v34 }
 0x529   : > { %4936 = vmatpush1.bf16.msra.mxu1 %v9529_v62  ;;  %5407 = vmatprep.mubr.bf16.mxu0 %v9899_v0 }
 0x52a   : > { %4937 = vmatprep.subr.bf16.mxu1 %v9534_v32 }
 0x52d   : > { %4938 = vmatpush1.bf16.msra.mxu1 %v9532_v44 }
 0x52e   : > { %4939 = vmatprep.subr.bf16.mxu1 %v9537_v42 }
 0x530   : > { %8314 = vmatmul.mubr.msk.bf16.vlgmr.msra.gmra.mrb[64].mxu0 %vm329_vm0, %v9859_v46 }
 0x531   : > { %4940 = vmatpush1.bf16.msra.mxu1 %v9535_v60  ;;  %5739 = vmatpush1.bf16.msra.mxu0 %v11777_v35 }
 0x532   : > { %5740 = vmatprep.subr.bf16.mxu0 %v11786_v28  ;;  %4941 = vmatprep.subr.bf16.mxu1 %v9540_v43 }
 0x533   : > { %5417 = vmatprep.mubr.bf16.mxu0 %v9899_v0 }
 0x535   : > { %4942 = vmatpush1.bf16.msra.mxu1 %v9538_v56  ;;  %5741 = vmatpush1.bf16.msra.mxu0 %v11784_v1 }
 0x536   : > { %5742 = vmatprep.subr.bf16.mxu0 %v11792_v48  ;;  %4943 = vmatprep.subr.bf16.mxu1 %v9543_v38  ;;  %v9561_v38 = vld [vmem:[%s13277_s4 + $0x304] ss:$8 sps:$4 sm:$0xff]  }
 0x538   : > { %8315 = vmatmul.mubr.msk.bf16.gmra.mrb[68].mxu0 %vm329_vm0, %v9860_v16 }
 0x539   : > { %4944 = vmatpush1.bf16.msra.mxu1 %v9541_v15  ;;  %5743 = vmatpush1.bf16.msra.mxu0 %v11790_v29 }
 0x53a   : > { %5744 = vmatprep.subr.bf16.mxu0 %v11798_v13  ;;  %4945 = vmatprep.subr.bf16.mxu1 %v9546_v8 }
 0x53b   : > { %5427 = vmatprep.mubr.bf16.mxu0 %v9899_v0 }
 0x53d   : > { %4946 = vmatpush1.bf16.msra.mxu1 %v9544_v61  ;;  %5745 = vmatpush1.bf16.msra.mxu0 %v11796_v41 }
 0x53e   : > { %6101 = vmatprep.subr.bf16.mxu0 %v11779_v9  ;;  %4947 = vmatprep.subr.bf16.mxu1 %v9549_v49 }
 0x540   : > { %8316 = vmatmul.mubr.msk.bf16.gmra.mrb[72].mxu0 %vm329_vm0, %v9861_v20 }
 0x541   : > { %4948 = vmatpush1.bf16.msra.mxu1 %v9547_v31  ;;  %5437 = vmatprep.mubr.bf16.mxu0 %v9899_v0 }
 0x542   : > { %4949 = vmatprep.subr.bf16.mxu1 %v9552_v55 }
 0x545   : > { %4950 = vmatpush1.bf16.msra.mxu1 %v9550_v11 }
 0x546   : > { %4951 = vmatprep.subr.bf16.mxu1 %v9555_v7 }
 0x548   : > { %8317 = vmatmul.mubr.msk.bf16.gmra.mrb[76].mxu0 %vm329_vm0, %v9862_v4  ;;  %v9564_v4 = vld [vmem:[%s13277_s4 + $0x314] ss:$8 sps:$4 sm:$0xff]  }
 0x549   : > { %4952 = vmatpush1.bf16.msra.mxu1 %v9553_v2  ;;  %5770 = vmatprep.mubr.bf16.mxu0 %v9899_v0 }
 0x54a   : > { %4953 = vmatprep.subr.bf16.mxu1 %v9558_v21 }
 0x54d   : > { %4954 = vmatpush1.bf16.msra.mxu1 %v9556_v39  ;;  %v9879_v39 = vld [vmem:[%s13274_s1 + $0x60] sm:$0xff]  }
 0x54e   : > { %5012 = vmatprep.subr.bf16.mxu1 %v11779_v9 }
 0x550   : > { %8382 = vmatmul.mubr.msk.bf16.vlgmr.msra.gmra.mrb[80].mxu0 %vm329_vm0, %v9863_v30  ;;  %v9562_v30 = vld [vmem:[%s13277_s4 + $0x310] ss:$8 sps:$4 sm:$0xff]  }
 0x551   : > { %6102 = vmatpush1.bf16.msra.mxu0 %v11777_v35  ;;  %5780 = vmatprep.mubr.bf16.mxu0 %v9899_v0 }
 0x552   : > { %6103 = vmatprep.subr.bf16.mxu0 %v11786_v28 }
 0x555   : > { %6104 = vmatpush1.bf16.msra.mxu0 %v11784_v1 }
 0x556   : > { %6105 = vmatprep.subr.bf16.mxu0 %v11792_v48 }
 0x558   : > { %8383 = vmatmul.mubr.msk.bf16.gmra.mrb[84].mxu0 %vm329_vm0, %v9864_v19  ;;  %v9567_v19 = vld [vmem:[%s13277_s4 + $0x324] ss:$8 sps:$4 sm:$0xff]  }
 0x559   : > { %6106 = vmatpush1.bf16.msra.mxu0 %v11790_v29  ;;  %5790 = vmatprep.mubr.bf16.mxu0 %v9899_v0 }
 0x55a   : > { %6107 = vmatprep.subr.bf16.mxu0 %v11798_v13 }
 0x55d   : > { %6108 = vmatpush1.bf16.msra.mxu0 %v11796_v41 }
 0x55e   : > { %6464 = vmatprep.subr.bf16.mxu0 %v11779_v9 }
 0x560   : > { %8384 = vmatmul.mubr.msk.bf16.gmra.mrb[88].mxu0 %vm329_vm0, %v9865_v51  ;;  %v9565_v51 = vld [vmem:[%s13277_s4 + $0x320] ss:$8 sps:$4 sm:$0xff]  }
 0x561   : > { %5800 = vmatprep.mubr.bf16.mxu0 %v9899_v0 }
 0x568   : > { %8385 = vmatmul.mubr.msk.bf16.gmra.mrb[92].mxu0 %vm329_vm0, %v9866_v26  ;;  %v9570_v26 = vld [vmem:[%s13277_s4 + $0x334] ss:$8 sps:$4 sm:$0xff]  }
 0x569   : > { %6133 = vmatprep.mubr.bf16.mxu0 %v9899_v0 }
 0x570   : > { %8450 = vmatmul.mubr.msk.bf16.vlgmr.msra.gmra.mrb[96].mxu0 %vm329_vm0, %v9867_v40  ;;  %v9880_v40 = vld [vmem:[%s13274_s1 + $0x68] sm:$0xff]  }
 0x571   : > { %6465 = vmatpush1.bf16.msra.mxu0 %v11777_v35  ;;  %6143 = vmatprep.mubr.bf16.mxu0 %v9899_v0 }
 0x572   : > { %6466 = vmatprep.subr.bf16.mxu0 %v11786_v28 }
 0x575   : > { %6467 = vmatpush1.bf16.msra.mxu0 %v11784_v1 }
 0x576   : > { %6468 = vmatprep.subr.bf16.mxu0 %v11792_v48 }
 0x578   : > { %8451 = vmatmul.mubr.msk.bf16.gmra.mrb[100].mxu0 %vm329_vm0, %v9868_v33  ;;  %v9568_v33 = vld [vmem:[%s13277_s4 + $0x330] ss:$8 sps:$4 sm:$0xff]  }
 0x579   : > { %6469 = vmatpush1.bf16.msra.mxu0 %v11790_v29  ;;  %6153 = vmatprep.mubr.bf16.mxu0 %v9899_v0 }
 0x57a   : > { %6470 = vmatprep.subr.bf16.mxu0 %v11798_v13 }
 0x57d   : > { %6471 = vmatpush1.bf16.msra.mxu0 %v11796_v41 }
 0x57e   : > { %6827 = vmatprep.subr.bf16.mxu0 %v11779_v9  ;;  %v9871_v9 = vld [vmem:[%s13274_s1 + $0xe0] sm:$0xff]  }
 0x580   : > { %8452 = vmatmul.mubr.msk.bf16.gmra.mrb[104].mxu0 %vm329_vm0, %v9869_v50  ;;  %v9573_v50 = vld [vmem:[%s13277_s4 + $0x344] ss:$8 sps:$4 sm:$0xff]  }
 0x581   : > { %6163 = vmatprep.mubr.bf16.mxu0 %v9899_v0 }
 0x588   : > { %8453 = vmatmul.mubr.msk.bf16.gmra.mrb[108].mxu0 %vm329_vm0, %v9870_v53  ;;  %v9571_v53 = vld [vmem:[%s13277_s4 + $0x340] ss:$8 sps:$4 sm:$0xff]  }
 0x589   : > { %6496 = vmatprep.mubr.bf16.mxu0 %v9899_v0 }
 0x590   : > { %8518 = vmatmul.mubr.msk.bf16.vlgmr.msra.gmra.mrb[112].mxu0 %vm329_vm0, %v9871_v9  ;;  %v9576_v9 = vld [vmem:[%s13277_s4 + $0x354] ss:$8 sps:$4 sm:$0xff]  }
 0x591   : > { %6828 = vmatpush1.bf16.msra.mxu0 %v11777_v35  ;;  %6506 = vmatprep.mubr.bf16.mxu0 %v9899_v0 }
 0x592   : > { %6829 = vmatprep.subr.bf16.mxu0 %v11786_v28 }
 0x595   : > { %6830 = vmatpush1.bf16.msra.mxu0 %v11784_v1 }
 0x596   : > { %6831 = vmatprep.subr.bf16.mxu0 %v11792_v48 }
 0x598   : > { %8519 = vmatmul.mubr.msk.bf16.gmra.mrb[116].mxu0 %vm329_vm0, %v9872_v23  ;;  %v9881_v23 = vld [vmem:[%s13274_s1 + $0x70] sm:$0xff]  }
 0x599   : > { %6832 = vmatpush1.bf16.msra.mxu0 %v11790_v29  ;;  %6516 = vmatprep.mubr.bf16.mxu0 %v9899_v0 }
 0x59a   : > { %6833 = vmatprep.subr.bf16.mxu0 %v11798_v13 }
 0x59d   : > { %6834 = vmatpush1.bf16.msra.mxu0 %v11796_v41 }
 0x5a0   : > { %8520 = vmatmul.mubr.msk.bf16.gmra.mrb[120].mxu0 %vm329_vm0, %v9873_v57  ;;  %v9574_v57 = vld [vmem:[%s13277_s4 + $0x350] ss:$8 sps:$4 sm:$0xff]  }
 0x5a1   : > { %6526 = vmatprep.mubr.bf16.mxu0 %v9899_v0 }
 0x5a8   : > { %8521 = vmatmul.mubr.msk.bf16.gmra.mrb[124].mxu0 %vm329_vm0, %v9874_v14  ;;  %v9579_v14 = vld [vmem:[%s13277_s4 + $0x364] ss:$8 sps:$4 sm:$0xff]  }
 0x5a9   : > { %6859 = vmatprep.mubr.bf16.mxu0 %v9899_v0 }
 0x5b0   : > { %8586 = vmatmul.mubr.msk.bf16.vlgmr.msra.gmra.mrb[128].mxu0 %vm329_vm0, %v9875_v25  ;;  %v9577_v25 = vld [vmem:[%s13277_s4 + $0x360] ss:$8 sps:$4 sm:$0xff]  }
 0x5b1   : > { %6869 = vmatprep.mubr.bf16.mxu0 %v9899_v0 }
 0x5b8   : > { %8587 = vmatmul.mubr.msk.bf16.gmra.mrb[132].mxu0 %vm329_vm0, %v9876_v27  ;;  %v9882_v27 = vld [vmem:[%s13274_s1 + $0x78] sm:$0xff]  }
 0x5b9   : > { %6879 = vmatprep.mubr.bf16.mxu0 %v9899_v0 }
 0x5c0   : > { %8588 = vmatmul.mubr.msk.bf16.gmra.mrb[136].mxu0 %vm329_vm0, %v9877_v17  ;;  %v9580_v17 = vld [vmem:[%s13277_s4 + $0x370] ss:$8 sps:$4 sm:$0xff]  }
 0x5c1   : > { %6889 = vmatprep.mubr.bf16.mxu0 %v9899_v0 }
 0x5c8   : > { %8589 = vmatmul.mubr.msk.bf16.gmra.mrb[140].mxu0 %vm329_vm0, %v9878_v12  ;;  %v9585_v12 = vld [vmem:[%s13277_s4 + $0x384] ss:$8 sps:$4 sm:$0xff]  }
 0x5e3   : > { %v4683_v58 = vpop.f32.mrb[160].mxu1  ;;  %v12209_v37 = vpop.f32.mrb[48].mxu0 }
 0x5e4   : > { %v4685_v6 = vpop.f32.mrb[161].mxu1  ;;  %v12211_v45 = vpop.f32.mrb[49].mxu0 }
 0x5e5   : > { %v4687_v22 = vpop.f32.mrb[162].mxu1  ;;  %v12213_v10 = vpop.f32.mrb[50].mxu0 }
 0x5e6   : > { %v4722_v36 = vpack.c.bf16 %v4687_v22, %v4683_v58  ;;  %v4689_v59 = vpop.f32.mrb[163].mxu1  ;;  %v12215_v54 = vpop.f32.mrb[51].mxu0  ;;  %v9583_v58 = vld [vmem:[%s13277_s4 + $0x380] ss:$8 sps:$4 sm:$0xff]   ;;  %v9586_v22 = vld [vmem:[%s13277_s4 + $0x390] ss:$8 sps:$4 sm:$0xff]  }
 0x5e7   : > { %v4723_v3 = vpack.c.bf16 %v4689_v59, %v4685_v6  ;;  %v9588_v6 = vld [vmem:[%s13277_s4 + $0x394] ss:$8 sps:$4 sm:$0xff]   ;;  %v9589_v59 = vld [vmem:[%s13277_s4 + $0x3a0] ss:$8 sps:$4 sm:$0xff]  }
 0x5e9   : > { %4955 = vmatprep.mubr.bf16.mxu1 %v4723_v3  ;;  %v9594_v3 = vld [vmem:[%s13277_s4 + $0x3b4] ss:$8 sps:$4 sm:$0xff]  }
 0x5ea   : > { %4956 = vmatmul.mubr.bf16.vlgmr.msra.gmra.mrb[144].mxu1 %v4722_v36  ;;  %v9591_v36 = vld [vmem:[%s13277_s4 + $0x3a4] ss:$8 sps:$4 sm:$0xff]  }
 0x5eb   : > { %5013 = vmatpush1.bf16.msra.mxu1 %v11777_v35  ;;  %v4693_v5 = vpop.f32.mrb[164].mxu1  ;;  %v12218_v47 = vpop.f32.mrb[52].mxu0 }
 0x5ec   : > { %5014 = vmatprep.subr.bf16.mxu1 %v11786_v28  ;;  %v4695_v18 = vpop.f32.mrb[165].mxu1  ;;  %v12221_v62 = vpop.f32.mrb[53].mxu0 }
 0x5ed   : > { %v4697_v32 = vpop.f32.mrb[166].mxu1  ;;  %v12223_v34 = vpop.f32.mrb[54].mxu0 }
 0x5ee   : > { %v4724_v44 = vpack.c.bf16 %v4697_v32, %v4693_v5  ;;  %v4699_v42 = vpop.f32.mrb[167].mxu1  ;;  %v12225_v60 = vpop.f32.mrb[55].mxu0  ;;  %v9592_v5 = vld [vmem:[%s13277_s4 + $0x3b0] ss:$8 sps:$4 sm:$0xff]   ;;  %v9595_v32 = vld [vmem:[%s13277_s4 + $0x3c0] ss:$8 sps:$4 sm:$0xff]  }
 0x5ef   : > { %v4725_v43 = vpack.c.bf16 %v4699_v42, %v4695_v18  ;;  %5015 = vmatpush1.bf16.msra.mxu1 %v11784_v1  ;;  %v9597_v18 = vld [vmem:[%s13277_s4 + $0x3c4] ss:$8 sps:$4 sm:$0xff]   ;;  %v9598_v42 = vld [vmem:[%s13277_s4 + $0x3d0] ss:$8 sps:$4 sm:$0xff]  }
 0x5f0   : > { %5016 = vmatprep.subr.bf16.mxu1 %v11792_v48 }
 0x5f1   : > { %4965 = vmatprep.mubr.bf16.mxu1 %v4725_v43  ;;  %v9603_v43 = vld [vmem:[%s13277_s4 + $0x3e4] ss:$8 sps:$4 sm:$0xff]  }
 0x5f2   : > { %4966 = vmatmul.mubr.bf16.gmra.mrb[148].mxu1 %v4724_v44  ;;  %v9600_v44 = vld [vmem:[%s13277_s4 + $0x3d4] ss:$8 sps:$4 sm:$0xff]  }
 0x5f3   : > { %5017 = vmatpush1.bf16.msra.mxu1 %v11790_v29  ;;  %v4703_v35 = vpop.f32.mrb[168].mxu1  ;;  %v12230_v28 = vpop.f32.mrb[56].mxu0 }
 0x5f4   : > { %5018 = vmatprep.subr.bf16.mxu1 %v11798_v13  ;;  %v4705_v46 = vpop.f32.mrb[169].mxu1  ;;  %v12233_v56 = vpop.f32.mrb[57].mxu0 }
 0x5f5   : > { %v4707_v15 = vpop.f32.mrb[170].mxu1  ;;  %v12238_v1 = vpop.f32.mrb[58].mxu0 }
 0x5f6   : > { %v4726_v48 = vpack.c.bf16 %v4707_v15, %v4703_v35  ;;  %v4709_v8 = vpop.f32.mrb[171].mxu1  ;;  %v12240_v16 = vpop.f32.mrb[59].mxu0  ;;  %v9601_v35 = vld [vmem:[%s13277_s4 + $0x3e0] ss:$8 sps:$4 sm:$0xff]   ;;  %v9609_v15 = vld [vmem:[%s13277_s4 + $0x404] ss:$8 sps:$4 sm:$0xff]  }
 0x5f7   : > { %v4727_v29 = vpack.c.bf16 %v4709_v8, %v4705_v46  ;;  %5019 = vmatpush1.bf16.msra.mxu1 %v11796_v41  ;;  %v9559_v41 = vld [vmem:[%s13277_s4 + $0x300] ss:$8 sps:$4 sm:$0xff]   ;;  %v9606_v46 = vld [vmem:[%s13277_s4 + $0x3f4] ss:$8 sps:$4 sm:$0xff]  }
 0x5f8   : > { %5286 = vmatprep.subr.bf16.mxu1 %v9561_v38  ;;  %v9604_v38 = vld [vmem:[%s13277_s4 + $0x3f0] ss:$8 sps:$4 sm:$0xff]  }
 0x5f9   : > { %4975 = vmatprep.mubr.bf16.mxu1 %v4727_v29 }
 0x5fa   : > { %4976 = vmatmul.mubr.bf16.gmra.mrb[152].mxu1 %v4726_v48 }
 0x5fb   : > { %v4713_v13 = vpop.f32.mrb[172].mxu1  ;;  %v12243_v61 = vpop.f32.mrb[60].mxu0 }
 0x5fc   : > { %v4715_v49 = vpop.f32.mrb[173].mxu1  ;;  %v12245_v31 = vpop.f32.mrb[61].mxu0 }
 0x5fd   : > { %v4717_v55 = vpop.f32.mrb[174].mxu1  ;;  %v12247_v20 = vpop.f32.mrb[62].mxu0 }
 0x5fe   : > { %v4728_v11 = vpack.c.bf16 %v4717_v55, %v4713_v13  ;;  %v4719_v7 = vpop.f32.mrb[175].mxu1  ;;  %v12249_v2 = vpop.f32.mrb[63].mxu0 }
 0x5ff   : > { %v4729_v21 = vpack.c.bf16 %v4719_v7, %v4715_v49 }
 0x601   : > { %4985 = vmatprep.mubr.bf16.mxu1 %v4729_v21 }
 0x602   : > { %4986 = vmatmul.mubr.bf16.gmra.mrb[156].mxu1 %v4728_v11 }
 0x603   : > { %5044 = vmatprep.mubr.bf16.mxu1 %v9899_v0  ;;  %v12367_v48 = vpop.f32.mrb[64].mxu0 }
 0x604   : > { %v12369_v8 = vpop.f32.mrb[65].mxu0 }
 0x605   : > { %v12371_v29 = vpop.f32.mrb[66].mxu0 }
 0x606   : > { %v5448_v13 = vpack.c.bf16 %v12371_v29, %v12367_v48  ;;  %v12375_v49 = vpop.f32.mrb[67].mxu0  ;;  %v9661_v48 = vld [vmem:[%s13277_s4 + $0x520] ss:$8 sps:$4 sm:$0xff]   ;;  %v9666_v29 = vld [vmem:[%s13277_s4 + $0x534] ss:$8 sps:$4 sm:$0xff]  }
 0x607   : > { %v5449_v55 = vpack.c.bf16 %v12375_v49, %v12369_v8  ;;  %v9634_v49 = vld [vmem:[%s13277_s4 + $0x490] ss:$8 sps:$4 sm:$0xff]  }
 0x60a   : > { %8246 = vmatmul.mubr.msk.bf16.vlgmr.msra.gmra.mrb[176].mxu1 %vm329_vm0, %v9879_v39 }
 0x60b   : > { %5054 = vmatprep.mubr.bf16.mxu1 %v9899_v0  ;;  %5287 = vmatpush1.bf16.msra.mxu1 %v9559_v41  ;;  %v12379_v11 = vpop.f32.mrb[68].mxu0 }
 0x60c   : > { %5288 = vmatprep.subr.bf16.mxu1 %v9564_v4  ;;  %v12381_v7 = vpop.f32.mrb[69].mxu0 }
 0x60d   : > { %v12383_v21 = vpop.f32.mrb[70].mxu0 }
 0x60e   : > { %v5450_v41 = vpack.c.bf16 %v12383_v21, %v12379_v11  ;;  %v12387_v4 = vpop.f32.mrb[71].mxu0  ;;  %v9667_v11 = vld [vmem:[%s13277_s4 + $0x540] ss:$8 sps:$4 sm:$0xff]   ;;  %v9672_v21 = vld [vmem:[%s13277_s4 + $0x554] ss:$8 sps:$4 sm:$0xff]  }
 0x60f   : > { %5289 = vmatpush1.bf16.msra.mxu1 %v9562_v30  ;;  %v5451_v39 = vpack.c.bf16 %v12387_v4, %v12381_v7  ;;  %v9669_v7 = vld [vmem:[%s13277_s4 + $0x544] ss:$8 sps:$4 sm:$0xff]  }
 0x610   : > { %5290 = vmatprep.subr.bf16.mxu1 %v9567_v19  ;;  %v9675_v4 = vld [vmem:[%s13277_s4 + $0x564] ss:$8 sps:$4 sm:$0xff]  }
 0x612   : > { %8247 = vmatmul.mubr.msk.bf16.gmra.mrb[180].mxu1 %vm329_vm0, %v9880_v40 }
 0x613   : > { %5064 = vmatprep.mubr.bf16.mxu1 %v9899_v0  ;;  %5291 = vmatpush1.bf16.msra.mxu1 %v9565_v51  ;;  %v12391_v30 = vpop.f32.mrb[72].mxu0 }
 0x614   : > { %5292 = vmatprep.subr.bf16.mxu1 %v9570_v26  ;;  %v12393_v19 = vpop.f32.mrb[73].mxu0 }
 0x615   : > { %v12395_v51 = vpop.f32.mrb[74].mxu0 }
 0x616   : > { %v5452_v26 = vpack.c.bf16 %v12395_v51, %v12391_v30  ;;  %v12399_v40 = vpop.f32.mrb[75].mxu0  ;;  %v9678_v30 = vld [vmem:[%s13277_s4 + $0x574] ss:$8 sps:$4 sm:$0xff]  }
 0x617   : > { %5293 = vmatpush1.bf16.msra.mxu1 %v9568_v33  ;;  %v5453_v33 = vpack.c.bf16 %v12399_v40, %v12393_v19  ;;  %v9676_v19 = vld [vmem:[%s13277_s4 + $0x570] ss:$8 sps:$4 sm:$0xff]   ;;  %v9679_v40 = vld [vmem:[%s13277_s4 + $0x580] ss:$8 sps:$4 sm:$0xff]  }
 0x618   : > { %5294 = vmatprep.subr.bf16.mxu1 %v9573_v50 }
 0x61a   : > { %8248 = vmatmul.mubr.msk.bf16.gmra.mrb[184].mxu1 %vm329_vm0, %v9881_v23 }
 0x61b   : > { %5074 = vmatprep.mubr.bf16.mxu1 %v9899_v0  ;;  %5295 = vmatpush1.bf16.msra.mxu1 %v9571_v53  ;;  %v9582_v0 = vld [vmem:[%s13277_s4 + $0x374] ss:$8 sps:$4 sm:$0xff]   ;;  %v12403_v50 = vpop.f32.mrb[76].mxu0 }
 0x61c   : > { %5296 = vmatprep.subr.bf16.mxu1 %v9576_v9  ;;  %v12405_v53 = vpop.f32.mrb[77].mxu0 }
 0x61d   : > { %v12407_v9 = vpop.f32.mrb[78].mxu0 }
 0x61e   : > { %v5454_v23 = vpack.c.bf16 %v12407_v9, %v12403_v50 }
 0x61f   : > { %5297 = vmatpush1.bf16.msra.mxu1 %v9574_v57  ;;  %v12411_v57 = vpop.f32.mrb[79].mxu0 }
 0x620   : > { %5298 = vmatprep.subr.bf16.mxu1 %v9579_v14  ;;  %v5455_v14 = vpack.c.bf16 %v12411_v57, %v12405_v53 }
 0x622   : > { %8249 = vmatmul.mubr.msk.bf16.gmra.mrb[188].mxu1 %vm329_vm0, %v9882_v27 }
 0x623   : > { %5299 = vmatpush1.bf16.msra.mxu1 %v9577_v25  ;;  %v12415_v25 = vpop.f32.mrb[80].mxu0 }
 0x624   : > { %5300 = vmatprep.subr.bf16.mxu1 %v9582_v0  ;;  %v12417_v0 = vpop.f32.mrb[81].mxu0 }
 0x627   : > { %5301 = vmatpush1.bf16.msra.mxu1 %v9580_v17  ;;  %v12419_v17 = vpop.f32.mrb[82].mxu0 }
 0x628   : > { %5302 = vmatprep.subr.bf16.mxu1 %v9585_v12 }
 0x62b   : > { %5303 = vmatpush1.bf16.msra.mxu1 %v9583_v58 }
 0x62c   : > { %5304 = vmatprep.subr.bf16.mxu1 %v9588_v6  ;;  %v12423_v6 = vpop.f32.mrb[83].mxu0 }
 0x62d   : > { %v13282_v51 = vpack.c.bf16 %v12423_v6, %v12417_v0  ;;  %v9687_v0 = vld [vmem:[%s13277_s4 + $0x5a4] ss:$8 sps:$4 sm:$0xff]  }
 0x62f   : > { %5305 = vmatpush1.bf16.msra.mxu1 %v9586_v22 }
 0x630   : > { %5306 = vmatprep.subr.bf16.mxu1 %v9591_v36 }
 0x633   : > { %5307 = vmatpush1.bf16.msra.mxu1 %v9589_v59 }
 0x634   : > { %5308 = vmatprep.subr.bf16.mxu1 %v9594_v3 }
 0x637   : > { %5309 = vmatpush1.bf16.msra.mxu1 %v9592_v5 }
 0x638   : > { %5310 = vmatprep.subr.bf16.mxu1 %v9597_v18  ;;  %v9607_v18 = vld [vmem:[%s13277_s4 + $0x400] ss:$8 sps:$4 sm:$0xff]  }
 0x63b   : > { %5311 = vmatpush1.bf16.msra.mxu1 %v9595_v32  ;;  %v9612_v32 = vld [vmem:[%s13277_s4 + $0x414] ss:$8 sps:$4 sm:$0xff]  }
 0x63c   : > { %5312 = vmatprep.subr.bf16.mxu1 %v9600_v44  ;;  %v9610_v44 = vld [vmem:[%s13277_s4 + $0x410] ss:$8 sps:$4 sm:$0xff]  }
 0x63f   : > { %5313 = vmatpush1.bf16.msra.mxu1 %v9598_v42 }
 0x640   : > { %5314 = vmatprep.subr.bf16.mxu1 %v9603_v43  ;;  %v9615_v43 = vld [vmem:[%s13277_s4 + $0x424] ss:$8 sps:$4 sm:$0xff]  }
 0x643   : > { %5315 = vmatpush1.bf16.msra.mxu1 %v9601_v35 }
 0x644   : > { %5316 = vmatprep.subr.bf16.mxu1 %v9606_v46 }
 0x647   : > { %5317 = vmatpush1.bf16.msra.mxu1 %v9604_v38 }
 0x648   : > { %5649 = vmatprep.subr.bf16.mxu1 %v9609_v15 }
 0x6dd   : > { %v5046_v27 = vpop.f32.mrb[176].mxu1 }
 0x6de   : > { %v5048_v12 = vpop.f32.mrb[177].mxu1 }
 0x6df   : > { %v5050_v22 = vpop.f32.mrb[178].mxu1 }
 0x6e0   : > { %v5085_v59 = vpack.c.bf16 %v5050_v22, %v5046_v27  ;;  %v5052_v3 = vpop.f32.mrb[179].mxu1  ;;  %v9613_v27 = vld [vmem:[%s13277_s4 + $0x420] ss:$8 sps:$4 sm:$0xff]   ;;  %v9618_v22 = vld [vmem:[%s13277_s4 + $0x434] ss:$8 sps:$4 sm:$0xff]  }
 0x6e1   : > { %v5086_v5 = vpack.c.bf16 %v5052_v3, %v5048_v12 }
 0x6e3   : > { %5318 = vmatprep.mubr.bf16.mxu1 %v5086_v5  ;;  %v9621_v5 = vld [vmem:[%s13277_s4 + $0x444] ss:$8 sps:$4 sm:$0xff]  }
 0x6e4   : > { %5319 = vmatmul.mubr.bf16.vlgmr.msra.gmra.mrb[144].mxu1 %v5085_v59  ;;  %v9616_v59 = vld [vmem:[%s13277_s4 + $0x430] ss:$8 sps:$4 sm:$0xff]  }
 0x6e5   : > { %5650 = vmatpush1.bf16.msra.mxu1 %v9607_v18  ;;  %v5056_v42 = vpop.f32.mrb[180].mxu1 }
 0x6e6   : > { %5651 = vmatprep.subr.bf16.mxu1 %v9612_v32  ;;  %v5058_v35 = vpop.f32.mrb[181].mxu1 }
 0x6e7   : > { %v5060_v46 = vpop.f32.mrb[182].mxu1 }
 0x6e8   : > { %v5087_v38 = vpack.c.bf16 %v5060_v46, %v5056_v42  ;;  %v5062_v15 = vpop.f32.mrb[183].mxu1  ;;  %v9624_v46 = vld [vmem:[%s13277_s4 + $0x454] ss:$8 sps:$4 sm:$0xff]  }
 0x6e9   : > { %5652 = vmatpush1.bf16.msra.mxu1 %v9610_v44  ;;  %v5088_v12 = vpack.c.bf16 %v5062_v15, %v5058_v35 }
 0x6ea   : > { %5653 = vmatprep.subr.bf16.mxu1 %v9615_v43  ;;  %v9619_v43 = vld [vmem:[%s13277_s4 + $0x440] ss:$8 sps:$4 sm:$0xff]  }
 0x6eb   : > { %5328 = vmatprep.mubr.bf16.mxu1 %v5088_v12 }
 0x6ec   : > { %5329 = vmatmul.mubr.bf16.gmra.mrb[148].mxu1 %v5087_v38  ;;  %v9622_v38 = vld [vmem:[%s13277_s4 + $0x450] ss:$8 sps:$4 sm:$0xff]  }
 0x6ed   : > { %5654 = vmatpush1.bf16.msra.mxu1 %v9613_v27  ;;  %v5066_v3 = vpop.f32.mrb[184].mxu1  ;;  %v9627_v27 = vld [vmem:[%s13277_s4 + $0x464] ss:$8 sps:$4 sm:$0xff]  }
 0x6ee   : > { %5655 = vmatprep.subr.bf16.mxu1 %v9618_v22  ;;  %v5068_v18 = vpop.f32.mrb[185].mxu1 }
 0x6ef   : > { %v5070_v32 = vpop.f32.mrb[186].mxu1 }
 0x6f0   : > { %v5089_v44 = vpack.c.bf16 %v5070_v32, %v5066_v3  ;;  %v5072_v42 = vpop.f32.mrb[187].mxu1  ;;  %v9630_v32 = vld [vmem:[%s13277_s4 + $0x474] ss:$8 sps:$4 sm:$0xff]  }
 0x6f1   : > { %5656 = vmatpush1.bf16.msra.mxu1 %v9616_v59  ;;  %v5090_v35 = vpack.c.bf16 %v5072_v42, %v5068_v18  ;;  %v9633_v42 = vld [vmem:[%s13277_s4 + $0x484] ss:$8 sps:$4 sm:$0xff]  }
 0x6f2   : > { %5657 = vmatprep.subr.bf16.mxu1 %v9621_v5  ;;  %v9625_v5 = vld [vmem:[%s13277_s4 + $0x460] ss:$8 sps:$4 sm:$0xff]  }
 0x6f3   : > { %5338 = vmatprep.mubr.bf16.mxu1 %v5090_v35  ;;  %v9636_v35 = vld [vmem:[%s13277_s4 + $0x494] ss:$8 sps:$4 sm:$0xff]  }
 0x6f4   : > { %5339 = vmatmul.mubr.bf16.gmra.mrb[152].mxu1 %v5089_v44  ;;  %v9628_v44 = vld [vmem:[%s13277_s4 + $0x470] ss:$8 sps:$4 sm:$0xff]  }
 0x6f5   : > { %5658 = vmatpush1.bf16.msra.mxu1 %v9619_v43  ;;  %v5076_v15 = vpop.f32.mrb[188].mxu1  ;;  %v9631_v43 = vld [vmem:[%s13277_s4 + $0x480] ss:$8 sps:$4 sm:$0xff]  }
 0x6f6   : > { %5659 = vmatprep.subr.bf16.mxu1 %v9624_v46  ;;  %v5078_v12 = vpop.f32.mrb[189].mxu1  ;;  %v12484_v46 = vpop.f32.mrb[84].mxu0 }
 0x6f7   : > { %v5080_v22 = vpop.f32.mrb[190].mxu1 }
 0x6f8   : > { %v5091_v59 = vpack.c.bf16 %v5080_v22, %v5076_v15  ;;  %v5082_v3 = vpop.f32.mrb[191].mxu1  ;;  %v9637_v22 = vld [vmem:[%s13277_s4 + $0x4a0] ss:$8 sps:$4 sm:$0xff]  }
 0x6f9   : > { %5660 = vmatpush1.bf16.msra.mxu1 %v9622_v38  ;;  %v5092_v18 = vpack.c.bf16 %v5082_v3, %v5078_v12  ;;  %v12486_v38 = vpop.f32.mrb[85].mxu0  ;;  %v9652_v12 = vld [vmem:[%s13277_s4 + $0x4f0] ss:$8 sps:$4 sm:$0xff]  }
 0x6fa   : > { %5661 = vmatprep.subr.bf16.mxu1 %v9627_v27  ;;  %v12488_v8 = vpop.f32.mrb[86].mxu0  ;;  %v9639_v27 = vld [vmem:[%s13277_s4 + $0x4a4] ss:$8 sps:$4 sm:$0xff]  }
 0x6fb   : > { %5348 = vmatprep.mubr.bf16.mxu1 %v5092_v18  ;;  %v12495_v15 = vpop.f32.mrb[87].mxu0 }
 0x6fc   : > { %5349 = vmatmul.mubr.bf16.gmra.mrb[156].mxu1 %v5091_v59  ;;  %v9642_v59 = vld [vmem:[%s13277_s4 + $0x4b4] ss:$8 sps:$4 sm:$0xff]   ;;  %v12508_v3 = vpop.f32.mrb[88].mxu0 }
 0x6fd   : > { %5662 = vmatpush1.bf16.msra.mxu1 %v9625_v5  ;;  %5681 = vmatprep.mubr.bf16.mxu1 %v5449_v55  ;;  %v12510_v5 = vpop.f32.mrb[89].mxu0 }
 0x6fe   : > { %5663 = vmatprep.subr.bf16.mxu1 %v9630_v32  ;;  %v12512_v18 = vpop.f32.mrb[90].mxu0  ;;  %v9640_v32 = vld [vmem:[%s13277_s4 + $0x4b0] ss:$8 sps:$4 sm:$0xff]  }
 0x701   : > { %5664 = vmatpush1.bf16.msra.mxu1 %v9628_v44 }
 0x702   : > { %5665 = vmatprep.subr.bf16.mxu1 %v9633_v42  ;;  %v12519_v42 = vpop.f32.mrb[91].mxu0 }
 0x705   : > { %5666 = vmatpush1.bf16.msra.mxu1 %v9631_v43  ;;  %v9645_v43 = vld [vmem:[%s13277_s4 + $0x4c4] ss:$8 sps:$4 sm:$0xff]  }
 0x706   : > { %5667 = vmatprep.subr.bf16.mxu1 %v9636_v35 }
 0x709   : > { %5668 = vmatpush1.bf16.msra.mxu1 %v9634_v49  ;;  %v9643_v49 = vld [vmem:[%s13277_s4 + $0x4c0] ss:$8 sps:$4 sm:$0xff]  }
 0x70a   : > { %5669 = vmatprep.subr.bf16.mxu1 %v9639_v27  ;;  %v9648_v27 = vld [vmem:[%s13277_s4 + $0x4d4] ss:$8 sps:$4 sm:$0xff]  }
 0x70d   : > { %5670 = vmatpush1.bf16.msra.mxu1 %v9637_v22  ;;  %v12532_v22 = vpop.f32.mrb[92].mxu0 }
 0x70e   : > { %5671 = vmatprep.subr.bf16.mxu1 %v9642_v59  ;;  %v12534_v59 = vpop.f32.mrb[93].mxu0 }
 0x70f   : > { %v12536_v24 = vpop.f32.mrb[94].mxu0 }
 0x710   : > { %v12543_v44 = vpop.f32.mrb[95].mxu0 }
 0x711   : > { %5672 = vmatpush1.bf16.msra.mxu1 %v9640_v32  ;;  %v9646_v32 = vld [vmem:[%s13277_s4 + $0x4d0] ss:$8 sps:$4 sm:$0xff]   ;;  %v12556_v55 = vpop.f32.mrb[96].mxu0 }
 0x712   : > { %5673 = vmatprep.subr.bf16.mxu1 %v9645_v43  ;;  %v9651_v43 = vld [vmem:[%s13277_s4 + $0x4e4] ss:$8 sps:$4 sm:$0xff]  }
 0x715   : > { %5674 = vmatpush1.bf16.msra.mxu1 %v9643_v49  ;;  %v9649_v49 = vld [vmem:[%s13277_s4 + $0x4e0] ss:$8 sps:$4 sm:$0xff]  }
 0x716   : > { %5675 = vmatprep.subr.bf16.mxu1 %v9648_v27  ;;  %v12558_v27 = vpop.f32.mrb[97].mxu0 }
 0x717   : > { %v12563_v35 = vpop.f32.mrb[98].mxu0 }
 0x718   : > { %v12570_v58 = vpop.f32.mrb[99].mxu0 }
 0x719   : > { %5676 = vmatpush1.bf16.msra.mxu1 %v9646_v32  ;;  %v9657_v32 = vld [vmem:[%s13277_s4 + $0x504] ss:$8 sps:$4 sm:$0xff]   ;;  %v6175_v36 = vpack.c.bf16 %v12570_v58, %v12558_v27  ;;  %v12652_v50 = vpop.f32.mrb[100].mxu0  ;;  %v9730_v27 = vld [vmem:[%s13277_s4 + $0x690] ss:$8 sps:$4 sm:$0xff]  }
 0x71a   : > { %5677 = vmatprep.subr.bf16.mxu1 %v9651_v43  ;;  %v9658_v43 = vld [vmem:[%s13277_s4 + $0x510] ss:$8 sps:$4 sm:$0xff]   ;;  %v12654_v53 = vpop.f32.mrb[101].mxu0 }
 0x71b   : > { %v12656_v9 = vpop.f32.mrb[102].mxu0 }
 0x71c   : > { %v6176_v57 = vpack.c.bf16 %v12656_v9, %v12652_v50  ;;  %v9765_v50 = vld [vmem:[%s13277_s4 + $0x744] ss:$8 sps:$4 sm:$0xff]  }
 0x71d   : > { %5678 = vmatpush1.bf16.msra.mxu1 %v9649_v49  ;;  %v9655_v49 = vld [vmem:[%s13277_s4 + $0x500] ss:$8 sps:$4 sm:$0xff]  }
 0x71e   : > { %5679 = vmatprep.subr.bf16.mxu1 %v9654_v52  ;;  %v9660_v52 = vld [vmem:[%s13277_s4 + $0x514] ss:$8 sps:$4 sm:$0xff]  }
 0x721   : > { %5680 = vmatpush1.bf16.msra.mxu1 %v9652_v12  ;;  %v9663_v12 = vld [vmem:[%s13277_s4 + $0x524] ss:$8 sps:$4 sm:$0xff]  }
 0x722   : > { %6012 = vmatprep.subr.bf16.mxu1 %v9657_v32  ;;  %v9685_v32 = vld [vmem:[%s13277_s4 + $0x5a0] ss:$8 sps:$4 sm:$0xff]  }
 0x724   : > { %5682 = vmatmul.mubr.bf16.vlgmr.msra.gmra.mrb[144].mxu1 %v5448_v13  ;;  %v9664_v13 = vld [vmem:[%s13277_s4 + $0x530] ss:$8 sps:$4 sm:$0xff]  }
 0x725   : > { %6013 = vmatpush1.bf16.msra.mxu1 %v9655_v49  ;;  %5691 = vmatprep.mubr.bf16.mxu1 %v5451_v39  ;;  %v9673_v39 = vld [vmem:[%s13277_s4 + $0x560] ss:$8 sps:$4 sm:$0xff]  }
 0x726   : > { %6014 = vmatprep.subr.bf16.mxu1 %v9660_v52 }
 0x729   : > { %6015 = vmatpush1.bf16.msra.mxu1 %v9658_v43  ;;  %v9690_v43 = vld [vmem:[%s13277_s4 + $0x5b4] ss:$8 sps:$4 sm:$0xff]  }
 0x72a   : > { %6016 = vmatprep.subr.bf16.mxu1 %v9663_v12 }
 0x72c   : > { %5692 = vmatmul.mubr.bf16.gmra.mrb[148].mxu1 %v5450_v41  ;;  %v9670_v41 = vld [vmem:[%s13277_s4 + $0x550] ss:$8 sps:$4 sm:$0xff]  }
 0x72d   : > { %6017 = vmatpush1.bf16.msra.mxu1 %v9661_v48  ;;  %5701 = vmatprep.mubr.bf16.mxu1 %v5453_v33  ;;  %v9684_v33 = vld [vmem:[%s13277_s4 + $0x594] ss:$8 sps:$4 sm:$0xff]   ;;  %v9688_v48 = vld [vmem:[%s13277_s4 + $0x5b0] ss:$8 sps:$4 sm:$0xff]  }
 0x72e   : > { %6018 = vmatprep.subr.bf16.mxu1 %v9666_v29 }
 0x731   : > { %6019 = vmatpush1.bf16.msra.mxu1 %v9664_v13 }
 0x732   : > { %6020 = vmatprep.subr.bf16.mxu1 %v9669_v7  ;;  %v9693_v7 = vld [vmem:[%s13277_s4 + $0x5c4] ss:$8 sps:$4 sm:$0xff]  }
 0x734   : > { %5702 = vmatmul.mubr.bf16.gmra.mrb[152].mxu1 %v5452_v26  ;;  %v9681_v26 = vld [vmem:[%s13277_s4 + $0x584] ss:$8 sps:$4 sm:$0xff]  }
 0x735   : > { %6021 = vmatpush1.bf16.msra.mxu1 %v9667_v11  ;;  %5711 = vmatprep.mubr.bf16.mxu1 %v5455_v14  ;;  %v12663_v14 = vpop.f32.mrb[103].mxu0 }
 0x736   : > { %6022 = vmatprep.subr.bf16.mxu1 %v9672_v21  ;;  %v6177_v6 = vpack.c.bf16 %v12663_v14, %v12654_v53  ;;  %v12676_v49 = vpop.f32.mrb[104].mxu0  ;;  %v9691_v21 = vld [vmem:[%s13277_s4 + $0x5c0] ss:$8 sps:$4 sm:$0xff]   ;;  %v9762_v53 = vld [vmem:[%s13277_s4 + $0x734] ss:$8 sps:$4 sm:$0xff]  }
 0x737   : > { %v12678_v52 = vpop.f32.mrb[105].mxu0 }
 0x738   : > { %v12680_v12 = vpop.f32.mrb[106].mxu0 }
 0x739   : > { %6023 = vmatpush1.bf16.msra.mxu1 %v9670_v41  ;;  %v6178_v29 = vpack.c.bf16 %v12680_v12, %v12676_v49  ;;  %v12687_v13 = vpop.f32.mrb[107].mxu0  ;;  %v9696_v41 = vld [vmem:[%s13277_s4 + $0x5d4] ss:$8 sps:$4 sm:$0xff]   ;;  %v9771_v49 = vld [vmem:[%s13277_s4 + $0x764] ss:$8 sps:$4 sm:$0xff]  }
 0x73a   : > { %6024 = vmatprep.subr.bf16.mxu1 %v9675_v4  ;;  %v6179_v11 = vpack.c.bf16 %v12687_v13, %v12678_v52  ;;  %v12700_v4 = vpop.f32.mrb[108].mxu0  ;;  %v9768_v52 = vld [vmem:[%s13277_s4 + $0x754] ss:$8 sps:$4 sm:$0xff]  }
 0x73c   : > { %5712 = vmatmul.mubr.bf16.gmra.mrb[156].mxu1 %v5454_v23  ;;  %v9682_v23 = vld [vmem:[%s13277_s4 + $0x590] ss:$8 sps:$4 sm:$0xff]  }
 0x73d   : > { %6025 = vmatpush1.bf16.msra.mxu1 %v9673_v39  ;;  %6044 = vmatprep.mubr.bf16.mxu1 %v13282_v51  ;;  %v12702_v39 = vpop.f32.mrb[109].mxu0  ;;  %v13283_v51 = vpack.c.bf16 %v12419_v17, %v12415_v25  ;;  %v9709_v25 = vld [vmem:[%s13277_s4 + $0x620] ss:$8 sps:$4 sm:$0xff]   ;;  %v9714_v17 = vld [vmem:[%s13277_s4 + $0x634] ss:$8 sps:$4 sm:$0xff]  }
 0x73e   : > { %6026 = vmatprep.subr.bf16.mxu1 %v9678_v30  ;;  %v12704_v30 = vpop.f32.mrb[110].mxu0 }
 0x741   : > { %6027 = vmatpush1.bf16.msra.mxu1 %v9676_v19  ;;  %v9694_v19 = vld [vmem:[%s13277_s4 + $0x5d0] ss:$8 sps:$4 sm:$0xff]  }
 0x742   : > { %6028 = vmatprep.subr.bf16.mxu1 %v9681_v26  ;;  %v12711_v26 = vpop.f32.mrb[111].mxu0 }
 0x745   : > { %6029 = vmatpush1.bf16.msra.mxu1 %v9679_v40  ;;  %v9699_v40 = vld [vmem:[%s13277_s4 + $0x5e4] ss:$8 sps:$4 sm:$0xff]  }
 0x746   : > { %6030 = vmatprep.subr.bf16.mxu1 %v9684_v33 }
 0x749   : > { %6031 = vmatpush1.bf16.msra.mxu1 %v9682_v23  ;;  %v9697_v23 = vld [vmem:[%s13277_s4 + $0x5e0] ss:$8 sps:$4 sm:$0xff]  }
 0x74a   : > { %6032 = vmatprep.subr.bf16.mxu1 %v9687_v0  ;;  %v9702_v0 = vld [vmem:[%s13277_s4 + $0x5f4] ss:$8 sps:$4 sm:$0xff]  }
 0x74d   : > { %6033 = vmatpush1.bf16.msra.mxu1 %v9685_v32  ;;  %v12724_v32 = vpop.f32.mrb[112].mxu0 }
 0x74e   : > { %6034 = vmatprep.subr.bf16.mxu1 %v9690_v43  ;;  %v12726_v43 = vpop.f32.mrb[113].mxu0 }
 0x751   : > { %6035 = vmatpush1.bf16.msra.mxu1 %v9688_v48  ;;  %v9700_v48 = vld [vmem:[%s13277_s4 + $0x5f0] ss:$8 sps:$4 sm:$0xff]  }
 0x752   : > { %6036 = vmatprep.subr.bf16.mxu1 %v9693_v7  ;;  %v12731_v7 = vpop.f32.mrb[114].mxu0 }
 0x755   : > { %6037 = vmatpush1.bf16.msra.mxu1 %v9691_v21  ;;  %v9705_v21 = vld [vmem:[%s13277_s4 + $0x604] ss:$8 sps:$4 sm:$0xff]  }
 0x756   : > { %6038 = vmatprep.subr.bf16.mxu1 %v9696_v41  ;;  %v9706_v41 = vld [vmem:[%s13277_s4 + $0x610] ss:$8 sps:$4 sm:$0xff]  }
 0x759   : > { %6039 = vmatpush1.bf16.msra.mxu1 %v9694_v19  ;;  %v12738_v19 = vpop.f32.mrb[115].mxu0 }
 0x75a   : > { %6040 = vmatprep.subr.bf16.mxu1 %v9699_v40  ;;  %v13290_v40 = vpack.c.bf16 %v12563_v35, %v12556_v55  ;;  %v9759_v55 = vld [vmem:[%s13277_s4 + $0x724] ss:$8 sps:$4 sm:$0xff]  }
 0x75d   : > { %6041 = vmatpush1.bf16.msra.mxu1 %v9697_v23  ;;  %v9703_v23 = vld [vmem:[%s13277_s4 + $0x600] ss:$8 sps:$4 sm:$0xff]  }
 0x75e   : > { %6042 = vmatprep.subr.bf16.mxu1 %v9702_v0  ;;  %v9708_v0 = vld [vmem:[%s13277_s4 + $0x614] ss:$8 sps:$4 sm:$0xff]  }
 0x761   : > { %6043 = vmatpush1.bf16.msra.mxu1 %v9700_v48  ;;  %v13284_v48 = vpack.c.bf16 %v12495_v15, %v12486_v38  ;;  %v9712_v38 = vld [vmem:[%s13277_s4 + $0x630] ss:$8 sps:$4 sm:$0xff]   ;;  %v13286_v15 = vpack.c.bf16 %v12519_v42, %v12510_v5  ;;  %v13288_v42 = vpack.c.bf16 %v12543_v44, %v12534_v59  ;;  %v9729_v59 = vld [vmem:[%s13277_s4 + $0x684] ss:$8 sps:$4 sm:$0xff]  }
 0x762   : > { %6375 = vmatprep.subr.bf16.mxu1 %v9705_v21  ;;  %v9711_v21 = vld [vmem:[%s13277_s4 + $0x624] ss:$8 sps:$4 sm:$0xff]   ;;  %v9718_v5 = vld [vmem:[%s13277_s4 + $0x650] ss:$8 sps:$4 sm:$0xff]  }
 0x763   : > { %v9724_v44 = vld [vmem:[%s13277_s4 + $0x670] ss:$8 sps:$4 sm:$0xff]  }
 0x764   : > { %6045 = vmatmul.mubr.bf16.vlgmr.msra.gmra.mrb[144].mxu1 %v13283_v51  ;;  %v13285_v51 = vpack.c.bf16 %v12488_v8, %v12484_v46  ;;  %v9715_v46 = vld [vmem:[%s13277_s4 + $0x640] ss:$8 sps:$4 sm:$0xff]   ;;  %v9720_v8 = vld [vmem:[%s13277_s4 + $0x654] ss:$8 sps:$4 sm:$0xff]  }
 0x765   : > { %6376 = vmatpush1.bf16.msra.mxu1 %v9703_v23  ;;  %6054 = vmatprep.mubr.bf16.mxu1 %v13284_v48  ;;  %v13287_v23 = vpack.c.bf16 %v12512_v18, %v12508_v3  ;;  %v9721_v3 = vld [vmem:[%s13277_s4 + $0x660] ss:$8 sps:$4 sm:$0xff]   ;;  %v9726_v18 = vld [vmem:[%s13277_s4 + $0x674] ss:$8 sps:$4 sm:$0xff]   ;;  %v13289_v48 = vpack.c.bf16 %v12536_v24, %v12532_v22  ;;  %v12817_v22 = vpop.f32.mrb[116].mxu0 }
 0x766   : > { %6377 = vmatprep.subr.bf16.mxu1 %v9708_v0  ;;  %v9723_v0 = vld [vmem:[%s13277_s4 + $0x664] ss:$8 sps:$4 sm:$0xff]   ;;  %v9727_v24 = vld [vmem:[%s13277_s4 + $0x680] ss:$8 sps:$4 sm:$0xff]  }
 0x769   : > { %6378 = vmatpush1.bf16.msra.mxu1 %v9706_v41  ;;  %v9717_v41 = vld [vmem:[%s13277_s4 + $0x644] ss:$8 sps:$4 sm:$0xff]  }
 0x76a   : > { %6379 = vmatprep.subr.bf16.mxu1 %v9711_v21  ;;  %v9732_v21 = vld [vmem:[%s13277_s4 + $0x694] ss:$8 sps:$4 sm:$0xff]  }
 0x76c   : > { %6055 = vmatmul.mubr.bf16.gmra.mrb[148].mxu1 %v13285_v51 }
 0x76d   : > { %6380 = vmatpush1.bf16.msra.mxu1 %v9709_v25  ;;  %6064 = vmatprep.mubr.bf16.mxu1 %v13286_v15  ;;  %v12822_v25 = vpop.f32.mrb[117].mxu0  ;;  %v9733_v15 = vld [vmem:[%s13277_s4 + $0x6a0] ss:$8 sps:$4 sm:$0xff]  }
 0x76e   : > { %6381 = vmatprep.subr.bf16.mxu1 %v9714_v17  ;;  %v12824_v58 = vpop.f32.mrb[118].mxu0 }
 0x771   : > { %6382 = vmatpush1.bf16.msra.mxu1 %v9712_v38  ;;  %v9735_v38 = vld [vmem:[%s13277_s4 + $0x6a4] ss:$8 sps:$4 sm:$0xff]  }
 0x772   : > { %6383 = vmatprep.subr.bf16.mxu1 %v9717_v41 }
 0x774   : > { %6065 = vmatmul.mubr.bf16.gmra.mrb[152].mxu1 %v13287_v23 }
 0x775   : > { %6384 = vmatpush1.bf16.msra.mxu1 %v9715_v46  ;;  %6074 = vmatprep.mubr.bf16.mxu1 %v13288_v42  ;;  %v9738_v46 = vld [vmem:[%s13277_s4 + $0x6b4] ss:$8 sps:$4 sm:$0xff]   ;;  %v9736_v42 = vld [vmem:[%s13277_s4 + $0x6b0] ss:$8 sps:$4 sm:$0xff]  }
 0x776   : > { %6385 = vmatprep.subr.bf16.mxu1 %v9720_v8 }
 0x779   : > { %6386 = vmatpush1.bf16.msra.mxu1 %v9718_v5 }
 0x77a   : > { %6387 = vmatprep.subr.bf16.mxu1 %v9723_v0 }
 0x77c   : > { %6075 = vmatmul.mubr.bf16.gmra.mrb[156].mxu1 %v13289_v48  ;;  %v9739_v48 = vld [vmem:[%s13277_s4 + $0x6c0] ss:$8 sps:$4 sm:$0xff]  }
 0x77d   : > { %6388 = vmatpush1.bf16.msra.mxu1 %v9721_v3  ;;  %6407 = vmatprep.mubr.bf16.mxu1 %v6175_v36  ;;  %v12826_v36 = vpop.f32.mrb[119].mxu0 }
 0x77e   : > { %6389 = vmatprep.subr.bf16.mxu1 %v9726_v18  ;;  %v12841_v41 = vpop.f32.mrb[120].mxu0  ;;  %v9741_v18 = vld [vmem:[%s13277_s4 + $0x6c4] ss:$8 sps:$4 sm:$0xff]  }
 0x77f   : > { %v12846_v8 = vpop.f32.mrb[121].mxu0 }
 0x780   : > { %v12848_v23 = vpop.f32.mrb[122].mxu0 }
 0x781   : > { %6390 = vmatpush1.bf16.msra.mxu1 %v9724_v44  ;;  %v12850_v5 = vpop.f32.mrb[123].mxu0 }
 0x782   : > { %6391 = vmatprep.subr.bf16.mxu1 %v9729_v59  ;;  %v12865_v44 = vpop.f32.mrb[124].mxu0  ;;  %v9744_v59 = vld [vmem:[%s13277_s4 + $0x6d4] ss:$8 sps:$4 sm:$0xff]  }
 0x785   : > { %6392 = vmatpush1.bf16.msra.mxu1 %v9727_v24  ;;  %v12870_v24 = vpop.f32.mrb[125].mxu0 }
 0x786   : > { %6393 = vmatprep.subr.bf16.mxu1 %v9732_v21  ;;  %v12872_v21 = vpop.f32.mrb[126].mxu0 }
 0x789   : > { %6394 = vmatpush1.bf16.msra.mxu1 %v9730_v27  ;;  %v12874_v27 = vpop.f32.mrb[127].mxu0 }
 0x78a   : > { %6395 = vmatprep.subr.bf16.mxu1 %v9735_v38  ;;  %v9742_v38 = vld [vmem:[%s13277_s4 + $0x6d0] ss:$8 sps:$4 sm:$0xff]   ;;  %v12892_v0 = vpop.f32.mrb[128].mxu0 }
 0x78d   : > { %6396 = vmatpush1.bf16.msra.mxu1 %v9733_v15  ;;  %v12894_v15 = vpop.f32.mrb[129].mxu0 }
 0x78e   : > { %6397 = vmatprep.subr.bf16.mxu1 %v9738_v46  ;;  %v12896_v46 = vpop.f32.mrb[130].mxu0 }
 0x78f   : > { %v12903_v3 = vpop.f32.mrb[131].mxu0 }
 0x790   : > { %v12916_v51 = vpop.f32.mrb[132].mxu0 }
 0x791   : > { %6398 = vmatpush1.bf16.msra.mxu1 %v9736_v42  ;;  %v9747_v42 = vld [vmem:[%s13277_s4 + $0x6e4] ss:$8 sps:$4 sm:$0xff]  }
 0x792   : > { %6399 = vmatprep.subr.bf16.mxu1 %v9741_v18  ;;  %v9745_v18 = vld [vmem:[%s13277_s4 + $0x6e0] ss:$8 sps:$4 sm:$0xff]  }
 0x795   : > { %6400 = vmatpush1.bf16.msra.mxu1 %v9739_v48  ;;  %v9750_v48 = vld [vmem:[%s13277_s4 + $0x6f4] ss:$8 sps:$4 sm:$0xff]  }
 0x796   : > { %6401 = vmatprep.subr.bf16.mxu1 %v9744_v59  ;;  %v9748_v59 = vld [vmem:[%s13277_s4 + $0x6f0] ss:$8 sps:$4 sm:$0xff]  }
 0x799   : > { %6402 = vmatpush1.bf16.msra.mxu1 %v9742_v38  ;;  %v9756_v38 = vld [vmem:[%s13277_s4 + $0x714] ss:$8 sps:$4 sm:$0xff]  }
 0x79a   : > { %6403 = vmatprep.subr.bf16.mxu1 %v9747_v42  ;;  %v9753_v42 = vld [vmem:[%s13277_s4 + $0x704] ss:$8 sps:$4 sm:$0xff]  }
 0x79d   : > { %6404 = vmatpush1.bf16.msra.mxu1 %v9745_v18  ;;  %v9751_v18 = vld [vmem:[%s13277_s4 + $0x700] ss:$8 sps:$4 sm:$0xff]  }
 0x79e   : > { %6405 = vmatprep.subr.bf16.mxu1 %v9750_v48  ;;  %v12918_v48 = vpop.f32.mrb[133].mxu0 }
 0x79f   : > { %v12923_v33 = vpop.f32.mrb[134].mxu0 }
 0x7a0   : > { %v12933_v17 = vpop.f32.mrb[135].mxu0 }
 0x7a1   : > { %6406 = vmatpush1.bf16.msra.mxu1 %v9748_v59  ;;  %v9754_v59 = vld [vmem:[%s13277_s4 + $0x710] ss:$8 sps:$4 sm:$0xff]   ;;  %v6903_v35 = vpack.c.bf16 %v12933_v17, %v12918_v48  ;;  %v12946_v14 = vpop.f32.mrb[136].mxu0  ;;  %v13304_v17 = vsub.s32 0, %v11766_v63 }
 0x7a2   : > { %6738 = vmatprep.subr.bf16.mxu1 %v9753_v42  ;;  %v6902_v42 = vpack.c.bf16 %v12923_v33, %v12916_v51  ;;  %v7190_v33 = vld [vmem:[%s13278_s5] sm:$0x3] }
 0x7a3   : > { %v13209_v51 = vrot.slane %v7190_v33, %v13304_v17 }
 0x7a4   : > { %6408 = vmatmul.mubr.bf16.vlgmr.msra.gmra.mrb[144].mxu1 %v13290_v40  ;;  %v9757_v40 = vld [vmem:[%s13277_s4 + $0x720] ss:$8 sps:$4 sm:$0xff]  }
 0x7a5   : > { %6739 = vmatpush1.bf16.msra.mxu1 %v9751_v18  ;;  %6417 = vmatprep.mubr.bf16.mxu1 %v6177_v6  ;;  %v12948_v6 = vpop.f32.mrb[137].mxu0  ;;  %v9760_v18 = vld [vmem:[%s13277_s4 + $0x730] ss:$8 sps:$4 sm:$0xff]  }
 0x7a6   : > { %6740 = vmatprep.subr.bf16.mxu1 %v9756_v38  ;;  %v12953_v38 = vpop.f32.mrb[138].mxu0 }
 0x7a9   : > { %6741 = vmatpush1.bf16.msra.mxu1 %v9754_v59 }
 0x7aa   : > { %6742 = vmatprep.subr.bf16.mxu1 %v9759_v55  ;;  %v12963_v55 = vpop.f32.mrb[139].mxu0 }
 0x7ab   : > { %v6905_v9 = vpack.c.bf16 %v12963_v55, %v12948_v6  ;;  %v12976_v13 = vpop.f32.mrb[140].mxu0 }
 0x7ac   : > { %6418 = vmatmul.mubr.bf16.gmra.mrb[148].mxu1 %v6176_v57  ;;  %v9763_v57 = vld [vmem:[%s13277_s4 + $0x740] ss:$8 sps:$4 sm:$0xff]  }
 0x7ad   : > { %6743 = vmatpush1.bf16.msra.mxu1 %v9757_v40  ;;  %6427 = vmatprep.mubr.bf16.mxu1 %v6179_v11  ;;  %v12978_v11 = vpop.f32.mrb[141].mxu0 }
 0x7ae   : > { %6744 = vmatprep.subr.bf16.mxu1 %v9762_v53  ;;  %v12983_v40 = vpop.f32.mrb[142].mxu0  ;;  %v9766_v53 = vld [vmem:[%s13277_s4 + $0x750] ss:$8 sps:$4 sm:$0xff]  }
 0x7af   : > { %v12993_v59 = vpop.f32.mrb[143].mxu0 }
 0x7b0   : > { %v6907_v12 = vpack.c.bf16 %v12993_v59, %v12978_v11  ;;  %v9884_v11 = vld [vmem:[%s9953_s26 + $0x8] sm:$0xff] }
 0x7b1   : > { %6745 = vmatpush1.bf16.msra.mxu1 %v9760_v18  ;;  %v13291_v18 = vpack.c.bf16 %v12711_v26, %v12702_v39  ;;  %v9774_v39 = vld [vmem:[%s13277_s4 + $0x774] ss:$8 sps:$4 sm:$0xff]   ;;  %v13292_v26 = vpack.c.bf16 %v12704_v30, %v12700_v4  ;;  %v9775_v4 = vld [vmem:[%s13277_s4 + $0x780] ss:$8 sps:$4 sm:$0xff]  }
 0x7b2   : > { %6746 = vmatprep.subr.bf16.mxu1 %v9765_v50  ;;  %v6906_v50 = vpack.c.bf16 %v12983_v40, %v12976_v13  ;;  %v9780_v30 = vld [vmem:[%s13277_s4 + $0x794] ss:$8 sps:$4 sm:$0xff]   ;;  %v7220_v40 = vunpack.c.l.bf16 %v9884_v11 }
 0x7b4   : > { %6428 = vmatmul.mubr.bf16.gmra.mrb[152].mxu1 %v6178_v29  ;;  %v9769_v29 = vld [vmem:[%s13277_s4 + $0x760] ss:$8 sps:$4 sm:$0xff]  }
 0x7b5   : > { %6747 = vmatpush1.bf16.msra.mxu1 %v9763_v57  ;;  %6437 = vmatprep.mubr.bf16.mxu1 %v13291_v18  ;;  %v9772_v57 = vld [vmem:[%s13277_s4 + $0x770] ss:$8 sps:$4 sm:$0xff]   ;;  %v9781_v18 = vld [vmem:[%s13277_s4 + $0x7a0] ss:$8 sps:$4 sm:$0xff]  }
 0x7b6   : > { %6748 = vmatprep.subr.bf16.mxu1 %v9768_v52  ;;  %v13293_v52 = vpack.c.bf16 %v12738_v19, %v12726_v43  ;;  %v9778_v43 = vld [vmem:[%s13277_s4 + $0x790] ss:$8 sps:$4 sm:$0xff]   ;;  %v9783_v19 = vld [vmem:[%s13277_s4 + $0x7a4] ss:$8 sps:$4 sm:$0xff]  }
 0x7b9   : > { %6749 = vmatpush1.bf16.msra.mxu1 %v9766_v53  ;;  %v9777_v53 = vld [vmem:[%s13277_s4 + $0x784] ss:$8 sps:$4 sm:$0xff]  }
 0x7ba   : > { %6750 = vmatprep.subr.bf16.mxu1 %v9771_v49  ;;  %v9786_v49 = vld [vmem:[%s13277_s4 + $0x7b4] ss:$8 sps:$4 sm:$0xff]  }
 0x7bc   : > { %6438 = vmatmul.mubr.bf16.gmra.mrb[156].mxu1 %v13292_v26  ;;  %v9787_v26 = vld [vmem:[%s13277_s4 + $0x7c0] ss:$8 sps:$4 sm:$0xff]  }
 0x7bd   : > { %6751 = vmatpush1.bf16.msra.mxu1 %v9769_v29  ;;  %6770 = vmatprep.mubr.bf16.mxu1 %v13293_v52  ;;  %v9784_v29 = vld [vmem:[%s13277_s4 + $0x7b0] ss:$8 sps:$4 sm:$0xff]  }
 0x7be   : > { %6752 = vmatprep.subr.bf16.mxu1 %v9774_v39  ;;  %v9789_v39 = vld [vmem:[%s13277_s4 + $0x7c4] ss:$8 sps:$4 sm:$0xff]   ;;  %v9790_v52 = vld [vmem:[%s13277_s4 + $0x7d0] ss:$8 sps:$4 sm:$0xff]  }
 0x7c1   : > { %6753 = vmatpush1.bf16.msra.mxu1 %v9772_v57  ;;  %v9792_v57 = vld [vmem:[%s13277_s4 + $0x7d4] ss:$8 sps:$4 sm:$0xff]  }
 0x7c2   : > { %6754 = vmatprep.subr.bf16.mxu1 %v9777_v53  ;;  %v9795_v53 = vld [vmem:[%s13277_s4 + $0x7e4] ss:$8 sps:$4 sm:$0xff]  }
 0x7c5   : > { %6755 = vmatpush1.bf16.msra.mxu1 %v9775_v4  ;;  %v9793_v4 = vld [vmem:[%s13277_s4 + $0x7e0] ss:$8 sps:$4 sm:$0xff]  }
 0x7c6   : > { %6756 = vmatprep.subr.bf16.mxu1 %v9780_v30  ;;  %v9798_v30 = vld [vmem:[%s13277_s4 + $0x7f4] ss:$8 sps:$4 sm:$0xff]  }
 0x7c9   : > { %6757 = vmatpush1.bf16.msra.mxu1 %v9778_v43  ;;  %v9796_v43 = vld [vmem:[%s13277_s4 + $0x7f0] ss:$8 sps:$4 sm:$0xff]  }
 0x7ca   : > { %6758 = vmatprep.subr.bf16.mxu1 %v9783_v19  ;;  %v9801_v19 = vld [vmem:[%s13277_s4 + $0x804] ss:$8 sps:$4 sm:$0xff]  }
 0x7cd   : > { %6759 = vmatpush1.bf16.msra.mxu1 %v9781_v18  ;;  %v9799_v18 = vld [vmem:[%s13277_s4 + $0x800] ss:$8 sps:$4 sm:$0xff]  }
 0x7ce   : > { %6760 = vmatprep.subr.bf16.mxu1 %v9786_v49  ;;  %v9804_v49 = vld [vmem:[%s13277_s4 + $0x814] ss:$8 sps:$4 sm:$0xff]  }
 0x7d1   : > { %6761 = vmatpush1.bf16.msra.mxu1 %v9784_v29  ;;  %v13294_v29 = vpack.c.bf16 %v12731_v7, %v12724_v32  ;;  %v9805_v32 = vld [vmem:[%s13277_s4 + $0x820] ss:$8 sps:$4 sm:$0xff]   ;;  %v9810_v7 = vld [vmem:[%s13277_s4 + $0x834] ss:$8 sps:$4 sm:$0xff]  }
 0x7d2   : > { %6762 = vmatprep.subr.bf16.mxu1 %v9789_v39  ;;  %v9802_v39 = vld [vmem:[%s13277_s4 + $0x810] ss:$8 sps:$4 sm:$0xff]  }
 0x7d5   : > { %6763 = vmatpush1.bf16.msra.mxu1 %v9787_v26  ;;  %v13295_v26 = vpack.c.bf16 %v12826_v36, %v12822_v25  ;;  %v9808_v25 = vld [vmem:[%s13277_s4 + $0x830] ss:$8 sps:$4 sm:$0xff]   ;;  %v13297_v36 = vpack.c.bf16 %v12850_v5, %v12846_v8  ;;  %v13299_v5 = vpack.c.bf16 %v12874_v27, %v12870_v24  ;;  %v13301_v27 = vpack.c.bf16 %v12903_v3, %v12894_v15  ;;  %v9831_v15 = vld [vmem:[%s13277_s4 + $0x8a4] ss:$8 sps:$4 sm:$0xff]  }
 0x7d6   : > { %6764 = vmatprep.subr.bf16.mxu1 %v9792_v57  ;;  %v9807_v57 = vld [vmem:[%s13277_s4 + $0x824] ss:$8 sps:$4 sm:$0xff]   ;;  %v9814_v8 = vld [vmem:[%s13277_s4 + $0x850] ss:$8 sps:$4 sm:$0xff]  }
 0x7d7   : > { %v9820_v24 = vld [vmem:[%s13277_s4 + $0x870] ss:$8 sps:$4 sm:$0xff]  }
 0x7d8   : > { %v9826_v3 = vld [vmem:[%s13277_s4 + $0x890] ss:$8 sps:$4 sm:$0xff]  }
 0x7d9   : > { %6765 = vmatpush1.bf16.msra.mxu1 %v9790_v52  ;;  %v13296_v52 = vpack.c.bf16 %v12824_v58, %v12817_v22  ;;  %v9811_v22 = vld [vmem:[%s13277_s4 + $0x840] ss:$8 sps:$4 sm:$0xff]   ;;  %v9816_v58 = vld [vmem:[%s13277_s4 + $0x854] ss:$8 sps:$4 sm:$0xff]  }
 0x7da   : > { %6766 = vmatprep.subr.bf16.mxu1 %v9795_v53  ;;  %v9813_v53 = vld [vmem:[%s13277_s4 + $0x844] ss:$8 sps:$4 sm:$0xff]  }
 0x7dd   : > { %6767 = vmatpush1.bf16.msra.mxu1 %v9793_v4  ;;  %v13298_v4 = vpack.c.bf16 %v12848_v23, %v12841_v41  ;;  %v9817_v41 = vld [vmem:[%s13277_s4 + $0x860] ss:$8 sps:$4 sm:$0xff]   ;;  %v9822_v23 = vld [vmem:[%s13277_s4 + $0x874] ss:$8 sps:$4 sm:$0xff]  }
 0x7de   : > { %6768 = vmatprep.subr.bf16.mxu1 %v9798_v30  ;;  %v9819_v30 = vld [vmem:[%s13277_s4 + $0x864] ss:$8 sps:$4 sm:$0xff]  }
 0x7e1   : > { %6769 = vmatpush1.bf16.msra.mxu1 %v9796_v43  ;;  %v13300_v43 = vpack.c.bf16 %v12872_v21, %v12865_v44  ;;  %v9823_v44 = vld [vmem:[%s13277_s4 + $0x880] ss:$8 sps:$4 sm:$0xff]   ;;  %v9828_v21 = vld [vmem:[%s13277_s4 + $0x894] ss:$8 sps:$4 sm:$0xff]  }
 0x7e2   : > { %7101 = vmatprep.subr.bf16.mxu1 %v9801_v19  ;;  %v9825_v19 = vld [vmem:[%s13277_s4 + $0x884] ss:$8 sps:$4 sm:$0xff]  }
 0x7e4   : > { %6771 = vmatmul.mubr.bf16.vlgmr.msra.gmra.mrb[144].mxu1 %v13294_v29  ;;  %v9832_v29 = vld [vmem:[%s13277_s4 + $0x8b0] ss:$8 sps:$4 sm:$0xff]  }
 0x7e5   : > { %7102 = vmatpush1.bf16.msra.mxu1 %v9799_v18  ;;  %6780 = vmatprep.mubr.bf16.mxu1 %v13295_v26  ;;  %v9829_v18 = vld [vmem:[%s13277_s4 + $0x8a0] ss:$8 sps:$4 sm:$0xff]  }
 0x7e6   : > { %7103 = vmatprep.subr.bf16.mxu1 %v9804_v49  ;;  %v9834_v49 = vld [vmem:[%s13277_s4 + $0x8b4] ss:$8 sps:$4 sm:$0xff]   ;;  %v9835_v26 = vld [vmem:[%s13277_s4 + $0x8c0] ss:$8 sps:$4 sm:$0xff]  }
 0x7e9   : > { %7104 = vmatpush1.bf16.msra.mxu1 %v9802_v39  ;;  %v9837_v39 = vld [vmem:[%s13277_s4 + $0x8c4] ss:$8 sps:$4 sm:$0xff]  }
 0x7ea   : > { %7105 = vmatprep.subr.bf16.mxu1 %v9807_v57  ;;  %v9840_v57 = vld [vmem:[%s13277_s4 + $0x8d4] ss:$8 sps:$4 sm:$0xff]  }
 0x7ec   : > { %6781 = vmatmul.mubr.bf16.gmra.mrb[148].mxu1 %v13296_v52  ;;  %v9841_v52 = vld [vmem:[%s13277_s4 + $0x8e0] ss:$8 sps:$4 sm:$0xff]  }
 0x7ed   : > { %7106 = vmatpush1.bf16.msra.mxu1 %v9805_v32  ;;  %6790 = vmatprep.mubr.bf16.mxu1 %v13297_v36  ;;  %v9838_v32 = vld [vmem:[%s13277_s4 + $0x8d0] ss:$8 sps:$4 sm:$0xff]  }
 0x7ee   : > { %7107 = vmatprep.subr.bf16.mxu1 %v9810_v7  ;;  %v9843_v7 = vld [vmem:[%s13277_s4 + $0x8e4] ss:$8 sps:$4 sm:$0xff]   ;;  %v9844_v36 = vld [vmem:[%s13277_s4 + $0x8f0] ss:$8 sps:$4 sm:$0xff]  }
 0x7f1   : > { %7108 = vmatpush1.bf16.msra.mxu1 %v9808_v25  ;;  %v9846_v25 = vld [vmem:[%s13277_s4 + $0x8f4] ss:$8 sps:$4 sm:$0xff]  }
 0x7f2   : > { %7109 = vmatprep.subr.bf16.mxu1 %v9813_v53  ;;  %v13302_v53 = vpack.c.bf16 %v12896_v46, %v12892_v0  ;;  %v13305_v46 = vsub.s32 1, %v11766_v63 }
 0x7f4   : > { %6791 = vmatmul.mubr.bf16.gmra.mrb[152].mxu1 %v13298_v4  ;;  %v13213_v48 = vrot.slane %v7190_v33, %v13305_v46 }
 0x7f5   : > { %7110 = vmatpush1.bf16.msra.mxu1 %v9811_v22  ;;  %6800 = vmatprep.mubr.bf16.mxu1 %v13299_v5  ;;  %v13303_v22 = vpack.c.bf16 %v12953_v38, %v12946_v14 }
 0x7f6   : > { %7111 = vmatprep.subr.bf16.mxu1 %v9816_v58 }
 0x7f9   : > { %7112 = vmatpush1.bf16.msra.mxu1 %v9814_v8 }
 0x7fa   : > { %7113 = vmatprep.subr.bf16.mxu1 %v9819_v30 }
 0x7fc   : > { %6801 = vmatmul.mubr.bf16.gmra.mrb[156].mxu1 %v13300_v43 }
 0x7fd   : > { %7114 = vmatpush1.bf16.msra.mxu1 %v9817_v41  ;;  %7133 = vmatprep.mubr.bf16.mxu1 %v13301_v27 }
 0x7fe   : > { %7115 = vmatprep.subr.bf16.mxu1 %v9822_v23 }
 0x801   : > { %7116 = vmatpush1.bf16.msra.mxu1 %v9820_v24  ;;  %v9885_v24 = vld [vmem:[%s9953_s26 + $0x10] sm:$0xff] }
 0x802   : > { %7117 = vmatprep.subr.bf16.mxu1 %v9825_v19  ;;  %v7222_v27 = vunpack.c.l.bf16 %v9885_v24 }
 0x805   : > { %7118 = vmatpush1.bf16.msra.mxu1 %v9823_v44 }
 0x806   : > { %7119 = vmatprep.subr.bf16.mxu1 %v9828_v21 }
 0x809   : > { %7120 = vmatpush1.bf16.msra.mxu1 %v9826_v3 }
 0x80a   : > { %7121 = vmatprep.subr.bf16.mxu1 %v9831_v15  ;;  %v7223_v15 = vunpack.c.h.bf16 %v9885_v24 }
 0x80d   : > { %7122 = vmatpush1.bf16.msra.mxu1 %v9829_v18 }
 0x80e   : > { %7123 = vmatprep.subr.bf16.mxu1 %v9834_v49 }
 0x811   : > { %7124 = vmatpush1.bf16.msra.mxu1 %v9832_v29 }
 0x812   : > { %7125 = vmatprep.subr.bf16.mxu1 %v9837_v39  ;;  %v9886_v39 = vld [vmem:[%s9953_s26 + $0x18] sm:$0xff] }
 0x815   : > { %7126 = vmatpush1.bf16.msra.mxu1 %v9835_v26  ;;  %v7224_v26 = vunpack.c.l.bf16 %v9886_v39 }
 0x816   : > { %7127 = vmatprep.subr.bf16.mxu1 %v9840_v57 }
 0x819   : > { %7128 = vmatpush1.bf16.msra.mxu1 %v9838_v32 }
 0x81a   : > { %7129 = vmatprep.subr.bf16.mxu1 %v9843_v7 }
 0x81d   : > { %7130 = vmatpush1.bf16.msra.mxu1 %v9841_v52  ;;  %v7225_v52 = vunpack.c.h.bf16 %v9886_v39 }
 0x81e   : > { %7131 = vmatprep.subr.bf16.mxu1 %v9846_v25 }
 0x821   : > { %7132 = vmatpush1.bf16.msra.mxu1 %v9844_v36 }
 0x824   : > { %7134 = vmatmul.mubr.bf16.vlgmr.msra.gmra.mrb[144].mxu1 %v13302_v53 }
 0x825   : > { %7143 = vmatprep.mubr.bf16.mxu1 %v6903_v35  ;;  %v9883_v35 = vld [vmem:[%s9953_s26] sm:$0xff] }
 0x826   : > { %v7218_v14 = vunpack.c.l.bf16 %v9883_v35  ;;  %v7219_v59 = vunpack.c.h.bf16 %v9883_v35  ;;  %v9887_v35 = vld [vmem:[%s9953_s26 + $0x20] sm:$0xff] }
 0x82c   : > { %7144 = vmatmul.mubr.bf16.gmra.mrb[148].mxu1 %v6902_v42 }
 0x82d   : > { %7153 = vmatprep.mubr.bf16.mxu1 %v6905_v9 }
 0x834   : > { %7154 = vmatmul.mubr.bf16.gmra.mrb[152].mxu1 %v13303_v22 }
 0x835   : > { %7163 = vmatprep.mubr.bf16.mxu1 %v6907_v12  ;;  %v7221_v12 = vunpack.c.h.bf16 %v9884_v11 }
 0x83c   : > { %7164 = vmatmul.mubr.bf16.gmra.mrb[156].mxu1 %v6906_v50 }
 0x8f7   : > { %v7135_v0 = vpop.f32.mrb[144].mxu1 }
 0x8f8   : > { %v8674_v42 = vadd.f32 %v7135_v0, %v12209_v37  ;;  %v7137_v6 = vpop.f32.mrb[145].mxu1 }
 0x8f9   : > { %v8675_v38 = vadd.f32 %v7137_v6, %v12211_v45  ;;  %v7139_v55 = vpop.f32.mrb[146].mxu1 }
 0x8fa   : > { %v7202_v9 = vadd.f32 %v8674_v42, %v13209_v51  ;;  %v8676_v13 = vadd.f32 %v7139_v55, %v12213_v10  ;;  %v7141_v50 = vpop.f32.mrb[147].mxu1  ;;  %v7227_v55 = vunpack.c.h.bf16 %v9887_v35 }
 0x8fb   : > { %v7203_v63 = vadd.f32 %v8675_v38, %v13213_v48  ;;  %v8677_v37 = vadd.f32 %v7141_v50, %v12215_v54 }
 0x8fc   : > { %v7234_v58 = vadd.f32 %v7218_v14, %v7202_v9  ;;  %v7204_v4 = vadd.f32 %v8676_v13, %v13209_v51 }
 0x8fd   : > { %v7235_v45 = vadd.f32 %v7219_v59, %v7203_v63  ;;  %v7205_v8 = vadd.f32 %v8677_v37, %v13213_v48 }
 0x8fe   : > { %v7250_v5 = vmax.f32 %v7234_v58, 0.0  ;;  %v7236_v30 = vadd.f32 %v7220_v40, %v7204_v4  ;;  %v9888_v40 = vld [vmem:[%s9953_s26 + $0x28] sm:$0xff] }
 0x8ff   : > { %v7251_v41 = vmax.f32 %v7235_v45, 0.0  ;;  %v7237_v10 = vadd.f32 %v7221_v12, %v7205_v8  ;;  %v7145_v23 = vpop.f32.mrb[148].mxu1  ;;  %v7228_v50 = vunpack.c.l.bf16 %v9888_v40  ;;  %v7229_v58 = vunpack.c.h.bf16 %v9888_v40 }
 0x900   : > { %v7252_v54 = vmax.f32 %v7236_v30, 0.0  ;;  %v8678_v43 = vadd.f32 %v7145_v23, %v12218_v47  ;;  %v7147_v19 = vpop.f32.mrb[149].mxu1 }
 0x901   : > { %v8666_v44 = vpack.c.bf16 %v7251_v41, %v7250_v5  ;;  %v7253_v21 = vmax.f32 %v7237_v10, 0.0  ;;  %v8679_v3 = vadd.f32 %v7147_v19, %v12221_v62  ;;  %v7149_v18 = vpop.f32.mrb[150].mxu1 }
 0x902   : > { %v7206_v49 = vadd.f32 %v8678_v43, %v13209_v51  ;;  %v8680_v29 = vadd.f32 %v7149_v18, %v12223_v34  ;;  %v7151_v57 = vpop.f32.mrb[151].mxu1  ;;  %v9889_v43 = vld [vmem:[%s9953_s26 + $0x30] sm:$0xff] }
 0x903   : > { %7314 = vst [vmem:[%s13230_s29] sm:$0xff] %v8666_v44  ;;  %v8667_v32 = vpack.c.bf16 %v7253_v21, %v7252_v54  ;;  %v7207_v47 = vadd.f32 %v8679_v3, %v13213_v48  ;;  %v8681_v7 = vadd.f32 %v7151_v57, %v12225_v60  ;;  %v7226_v60 = vunpack.c.l.bf16 %v9887_v35 }
 0x904   : > { %v7238_v25 = vadd.f32 %v7222_v27, %v7206_v49  ;;  %v7208_v62 = vadd.f32 %v8680_v29, %v13209_v51  ;;  %v7231_v21 = vunpack.c.h.bf16 %v9889_v43  ;;  %v9890_v49 = vld [vmem:[%s9953_s26 + $0x38] sm:$0xff] }
 0x905   : > { %7315 = vst [vmem:[%s13230_s29 + $0x8] sm:$0xff] %v8667_v32  ;;  %v7239_v36 = vadd.f32 %v7223_v15, %v7207_v47  ;;  %v7209_v53 = vadd.f32 %v8681_v7, %v13213_v48  ;;  %v7232_v29 = vunpack.c.l.bf16 %v9890_v49  ;;  %v7233_v32 = vunpack.c.h.bf16 %v9890_v49 }
 0x906   : > { %v7254_v22 = vmax.f32 %v7238_v25, 0.0  ;;  %v7240_v34 = vadd.f32 %v7224_v26, %v7208_v62 }
 0x907   : > { %v7255_v33 = vmax.f32 %v7239_v36, 0.0  ;;  %v7241_v17 = vadd.f32 %v7225_v52, %v7209_v53  ;;  %v7155_v0 = vpop.f32.mrb[152].mxu1 }
 0x908   : > { %v7256_v46 = vmax.f32 %v7240_v34, 0.0  ;;  %v8682_v42 = vadd.f32 %v7155_v0, %v12230_v28  ;;  %v7157_v14 = vpop.f32.mrb[153].mxu1 }
 0x909   : > { %v8668_v6 = vpack.c.bf16 %v7255_v33, %v7254_v22  ;;  %v7257_v38 = vmax.f32 %v7241_v17, 0.0  ;;  %v8683_v59 = vadd.f32 %v7157_v14, %v12233_v56  ;;  %v7159_v9 = vpop.f32.mrb[154].mxu1 }
 0x90a   : > { %v7210_v13 = vadd.f32 %v8682_v42, %v13209_v51  ;;  %v8684_v11 = vadd.f32 %v7159_v9, %v12238_v1  ;;  %v7161_v63 = vpop.f32.mrb[155].mxu1 }
 0x90b   : > { %7316 = vst [vmem:[%s13230_s29 + $0x10] sm:$0xff] %v8668_v6  ;;  %v8669_v37 = vpack.c.bf16 %v7257_v38, %v7256_v46  ;;  %v7211_v28 = vadd.f32 %v8683_v59, %v13213_v48  ;;  %v8685_v12 = vadd.f32 %v7161_v63, %v12240_v16  ;;  %v7230_v16 = vunpack.c.l.bf16 %v9889_v43 }
 0x90c   : > { %v7242_v4 = vadd.f32 %v7226_v60, %v7210_v13  ;;  %v7212_v56 = vadd.f32 %v8684_v11, %v13209_v51 }
 0x90d   : > { %7317 = vst [vmem:[%s13230_s29 + $0x18] sm:$0xff] %v8669_v37  ;;  %v7243_v45 = vadd.f32 %v7227_v55, %v7211_v28  ;;  %v7213_v8 = vadd.f32 %v8685_v12, %v13213_v48 }
 0x90e   : > { %v7258_v5 = vmax.f32 %v7242_v4, 0.0  ;;  %v7244_v1 = vadd.f32 %v7228_v50, %v7212_v56 }
 0x90f   : > { %v7259_v30 = vmax.f32 %v7243_v45, 0.0  ;;  %v7245_v41 = vadd.f32 %v7229_v58, %v7213_v8  ;;  %v7165_v10 = vpop.f32.mrb[156].mxu1 }
 0x910   : > { %v7260_v23 = vmax.f32 %v7244_v1, 0.0  ;;  %v8686_v54 = vadd.f32 %v7165_v10, %v12243_v61  ;;  %v7167_v24 = vpop.f32.mrb[157].mxu1 }
 0x911   : > { %v8670_v27 = vpack.c.bf16 %v7259_v30, %v7258_v5  ;;  %v7261_v19 = vmax.f32 %v7245_v41, 0.0  ;;  %v8687_v44 = vadd.f32 %v7167_v24, %v12245_v31  ;;  %v7169_v3 = vpop.f32.mrb[158].mxu1 }
 0x912   : > { %v7214_v15 = vadd.f32 %v8686_v54, %v13209_v51  ;;  %v8688_v18 = vadd.f32 %v7169_v3, %v12247_v20  ;;  %v7171_v39 = vpop.f32.mrb[159].mxu1 }
 0x913   : > { %7318 = vst [vmem:[%s13230_s29 + $0x20] sm:$0xff] %v8670_v27  ;;  %v8671_v26 = vpack.c.bf16 %v7261_v19, %v7260_v23  ;;  %v7215_v61 = vadd.f32 %v8687_v44, %v13213_v48  ;;  %v8689_v57 = vadd.f32 %v7171_v39, %v12249_v2 }
 0x914   : > { %v7246_v47 = vadd.f32 %v7230_v16, %v7214_v15  ;;  %v7216_v31 = vadd.f32 %v8688_v18, %v13209_v51 }
 0x915   : > { %7319 = vst [vmem:[%s13230_s29 + $0x28] sm:$0xff] %v8671_v26  ;;  %v7247_v7 = vadd.f32 %v7231_v21, %v7215_v61  ;;  %v7217_v52 = vadd.f32 %v8689_v57, %v13213_v48 }
 0x916   : > { %v7262_v20 = vmax.f32 %v7246_v47, 0.0  ;;  %v7248_v25 = vadd.f32 %v7232_v29, %v7216_v31 }
 0x917   : > { %v7263_v62 = vmax.f32 %v7247_v7, 0.0  ;;  %v7249_v36 = vadd.f32 %v7233_v32, %v7217_v52 }
 0x918   : > { %v7264_v53 = vmax.f32 %v7248_v25, 0.0 }
 0x919   : > { %v8672_v22 = vpack.c.bf16 %v7263_v62, %v7262_v20  ;;  %v7265_v34 = vmax.f32 %v7249_v36, 0.0 }
 0x91b   : > { %7320 = vst [vmem:[%s13230_s29 + $0x30] sm:$0xff] %v8672_v22  ;;  %v8673_v33 = vpack.c.bf16 %v7265_v34, %v7264_v53 }
 0x91d   : > { %7321 = vst [vmem:[%s13230_s29 + $0x38] sm:$0xff] %v8673_v33 }
 0x91e PF: > { %s16_s21 = sadd.s32 1, %s9897_s21  }
 0x91f   : > { %p13_p4 = scmp.ge.s32.totalorder %s16_s21, 4  }
 0x921   :  { %15 = sbr.rel (!%p13_p4) target bundleno = 1 (0x1), region = 98 }

// kernel: alphazero_forward.6
= control target key start
LH: loop header
LB: loop body
LE: loop exit
PB: predicated region body
PF: predicated region fallthrough
CT: control target
= control target key end

     0   :  { %11 = vsyncpa [#allocation3], 0  ;;  %s11247_s0 = inlined_call_operand.vmem [shape: bf16[2,64,256], index: 0, kind: input, shape index: {}]   ;;  %s11248_s1 = inlined_call_operand.hbm [shape: bf16[9,64,64], index: 1, kind: input, shape index: {}]   ;;  %s11249_s2 = inlined_call_operand.hbm [shape: bf16[9,256,256], index: 2, kind: input, shape index: {}]   ;;  %s11250_s3 = inlined_call_operand.hbm [shape: f32[1,256], index: 3, kind: input, shape index: {}]   ;;  %s11251_s4 = inlined_call_operand.hbm [shape: bf16[9,256,256], index: 4, kind: input, shape index: {}]   ;;  %s11252_s5 = inlined_call_operand.hbm [shape: f32[1,256], index: 5, kind: input, shape index: {}]   ;;  %s11253_s6 = inlined_call_operand.vmem [shape: bf16[2,64,256], index: 6, kind: output, shape index: {}]  }
   0x1   :  { %12 = vsyncpa [#allocation5], 0 }
   0x2   :  { %13 = vsyncpa [#allocation8], 0  ;;  %s9704_s21 = smov 0  }
   0x3 LB: > { %s9659_s22 = smov [#allocation4]   ;;  %s9710_s24 = sadd.s32 4294967295, %s9657_s21   ;;  %s9657_s21 = sphi %s9704_s21, %s19_s21  }
   0x4   : > { %s206_s23 = sshll.u32 %s9659_s22, 4  ;;  %p7498_p0 = scmp.ge.s32.totalorder %s9657_s21, 1  ;;  %s9715_s23 = int_to_ptr.vmem [resolvable:$true] %s206_s23 }
   0x5   : > { %p181_p1 = scmp.lt.s32.totalorder %s9657_s21, 3  ;;  %p11254_p2 = scmp.eq.s32.totalorder %s9710_s24, 0 }
   0x6   : > { %s9660_s26 = smov [#allocation7]   ;;  %s9661_s29 = smov [#allocation2]  }
   0x7   : > { %p9717_p3 = pnand %p7498_p0, %p181_p1  ;;  %s230_s27 = sshll.u32 %s9660_s26, 4  ;;  %s9723_s27 = int_to_ptr.vmem [resolvable:$true] %s230_s27 }
   0x8   : > { %s193_s30 = sshll.u32 %s9661_s29, 4  ;;  %s9499_s9 = scalar_lea.hbm %s11249_s2, 36864  ;;  %s9731_s30 = int_to_ptr.vmem [resolvable:$true] %s193_s30 }
   0x9   : > { %s11258_s25 = scalar_select %p9717_p3, 1, 0 }
   0xa   : > { %p8503_p4 = pneg %p9717_p3  ;;  %p9500_p6 = scmp.ne.s32.totalorder %s11249_s2, %s9499_s9 }
   0xb   : > { %p9506_p10 = scmp.lt.u32.totalorder %s9499_s9, %s11249_s2 }
   0xc   : > { %p9727_p5 = pnand %p11254_p2, %p8503_p4 }
   0xe   : > { %p9741_p7 = pneg %p9727_p5 }
  0x10   : > { %p9502_p8 = pnand %p9741_p7, %p9500_p6 }
  0x12   : > { %p9503_p9 = pneg %p9502_p8 }
  0x14   : > { %p9508_p11 = pnand %p9506_p10, %p9503_p9 }
  0x16   : > { %9511 = shalt.err (!%p9508_p11)
}
  0x17   : > { %s9512_s15 = scalar_lea.vmem %s9715_s23, 36864  ;;  %p9520_p1 = scmp.lt.s32.totalorder %s9715_s23, %s9715_s23 }
  0x18   : > { %p9513_p12 = scmp.ne.s32.totalorder %s9715_s23, %s9512_s15  ;;  %p9521_p4 = scmp.lt.s32.totalorder %s9512_s15, %s9512_s15 }
  0x1a   : > { %p9515_p13 = pnand %p9513_p12, %p9741_p7  ;;  %p9522_p6 = por %p9521_p4, %p9520_p1 }
  0x1c   : > { %p9516_p0 = pneg %p9515_p13 }
  0x1e   : > { %p9523_p8 = pnand %p9522_p6, %p9516_p0 }
  0x20   : > { %9526 = shalt.err (!%p9523_p8)
}
  0x21   : > { %s9662_s16 = smov 128   ;;  %s9663_s17 = smov 8  }
  0x22   : > { %8509 = dma.hbm_to_vmem [thread:$0]  (!%p9727_p5), %s11249_s2, 36864, %s9715_s23, [#allocation5], %s9662_s16, %s9662_s16, %s9663_s17  }
  0x23   : > { %s9527_s26 = scalar_lea.hbm %s11251_s4, 36864 }
  0x24   : > { %p9528_p9 = scmp.ne.s32.totalorder %s11251_s4, %s9527_s26  ;;  %p9534_p12 = scmp.lt.u32.totalorder %s9527_s26, %s11251_s4 }
  0x26   : > { %p9530_p10 = pnand %p9528_p9, %p9741_p7 }
  0x28   : > { %p9531_p11 = pneg %p9530_p10 }
  0x2a   : > { %p9536_p13 = pnand %p9534_p12, %p9531_p11 }
  0x2c   : > { %9539 = shalt.err (!%p9536_p13)
}
  0x2d   : > { %s9540_s23 = scalar_lea.vmem %s9723_s27, 36864  ;;  %p9548_p6 = scmp.lt.s32.totalorder %s9723_s27, %s9723_s27 }
  0x2e   : > { %p9541_p0 = scmp.ne.s32.totalorder %s9723_s27, %s9540_s23  ;;  %p9549_p8 = scmp.lt.s32.totalorder %s9540_s23, %s9540_s23 }
  0x30   : > { %p9543_p1 = pnand %p9541_p0, %p9741_p7  ;;  %p9550_p9 = por %p9549_p8, %p9548_p6 }
  0x32   : > { %p9544_p4 = pneg %p9543_p1 }
  0x34   : > { %p9551_p10 = pnand %p9550_p9, %p9544_p4 }
  0x36   : > { %9554 = shalt.err (!%p9551_p10)
}
  0x37   : > { %8515 = dma.hbm_to_vmem [thread:$0]  (!%p9727_p5), %s11251_s4, 36864, %s9723_s27, [#allocation8], %s9662_s16, %s9662_s16, %s9663_s17  }
  0x38   : > { %s9555_s15 = scalar_lea.hbm %s11248_s1, 4608 }
  0x39   : > { %p9556_p11 = scmp.ne.s32.totalorder %s11248_s1, %s9555_s15  ;;  %p9562_p0 = scmp.lt.u32.totalorder %s9555_s15, %s11248_s1 }
  0x3b   : > { %p9558_p12 = pnand %p9556_p11, %p9741_p7 }
  0x3d   : > { %p9559_p13 = pneg %p9558_p12 }
  0x3f   : > { %p9564_p1 = pnand %p9562_p0, %p9559_p13 }
  0x41   : > { %9567 = shalt.err (!%p9564_p1)
}
  0x42   : > { %s9568_s27 = scalar_lea.vmem %s9731_s30, 4608  ;;  %p9576_p9 = scmp.lt.s32.totalorder %s9731_s30, %s9731_s30 }
  0x43   : > { %p9569_p4 = scmp.ne.s32.totalorder %s9731_s30, %s9568_s27  ;;  %p9577_p10 = scmp.lt.s32.totalorder %s9568_s27, %s9568_s27 }
  0x45   : > { %p9571_p6 = pnand %p9569_p4, %p9741_p7  ;;  %p9578_p11 = por %p9577_p10, %p9576_p9 }
  0x47   : > { %p9572_p8 = pneg %p9571_p6 }
  0x49   : > { %p9579_p12 = pnand %p9578_p11, %p9572_p8 }
  0x4b   : > { %9582 = shalt.err (!%p9579_p12)
}
  0x4c   : > { %s9664_s16 = smov 64   ;;  %s9665_s17 = smov 4  }
  0x4d   : > { %8506 = dma.hbm_to_vmem [thread:$0]  (!%p9727_p5), %s11248_s1, 4608, %s9731_s30, [#allocation3], %s9664_s16, %s9664_s16, %s9665_s17  }
  0x4e   : > { %s9666_s7 = smov [#allocation6]   ;;  %s9667_s9 = smov [#allocation9]  }
  0x4f   : > { %s220_s8 = sshll.u32 %s9666_s7, 4  ;;  %s244_s23 = sshll.u32 %s9667_s9, 4  ;;  %s221_s8 = int_to_ptr.vmem [resolvable:$true] %s220_s8  ;;  %s9808_s23 = int_to_ptr.vmem [resolvable:$true] %s244_s23 }
  0x50   : > { %s9583_s13 = scalar_lea.hbm %s11250_s3, 32 }
  0x51   : > { %p9584_p13 = scmp.ne.s32.totalorder %s11250_s3, %s9583_s13  ;;  %p9590_p4 = scmp.lt.u32.totalorder %s9583_s13, %s11250_s3 }
  0x53   : > { %p9586_p0 = pnand %p9584_p13, %p9741_p7 }
  0x55   : > { %p9587_p1 = pneg %p9586_p0 }
  0x57   : > { %p9592_p6 = pnand %p9590_p4, %p9587_p1 }
  0x59   : > { %9595 = shalt.err (!%p9592_p6)
}
  0x5a   : > { %s9596_s19 = scalar_lea.vmem %s221_s8, 32  ;;  %p9604_p11 = scmp.lt.s32.totalorder %s221_s8, %s221_s8 }
  0x5b   : > { %p9597_p8 = scmp.ne.s32.totalorder %s221_s8, %s9596_s19  ;;  %p9605_p12 = scmp.lt.s32.totalorder %s9596_s19, %s9596_s19 }
  0x5d   : > { %p9599_p9 = pnand %p9597_p8, %p9741_p7  ;;  %p9606_p2 = por %p9605_p12, %p9604_p11 }
  0x5f   : > { %p9600_p10 = pneg %p9599_p9 }
  0x61   : > { %p9607_p3 = pnand %p9606_p2, %p9600_p10 }
  0x63   : > { %9610 = shalt.err (!%p9607_p3)
}
  0x64   : > { %8512 = dma.hbm_to_vmem [thread:$0]  (!%p9727_p5), %s11250_s3, 32, %s221_s8, [#allocation5]  }
  0x65   : > { %s9611_s17 = scalar_lea.hbm %s11252_s5, 32 }
  0x66   : > { %p9612_p13 = scmp.ne.s32.totalorder %s11252_s5, %s9611_s17  ;;  %p9618_p2 = scmp.lt.u32.totalorder %s9611_s17, %s11252_s5 }
  0x68   : > { %p9614_p0 = pnand %p9612_p13, %p9741_p7 }
  0x6a   : > { %p9615_p1 = pneg %p9614_p0 }
  0x6c   : > { %p9620_p3 = pnand %p9618_p2, %p9615_p1 }
  0x6e   : > { %9623 = shalt.err (!%p9620_p3)
}
  0x6f   : > { %s9624_s8 = scalar_lea.vmem %s9808_s23, 32  ;;  %p9632_p9 = scmp.lt.s32.totalorder %s9808_s23, %s9808_s23 }
  0x70   : > { %p9625_p4 = scmp.ne.s32.totalorder %s9808_s23, %s9624_s8  ;;  %p9633_p10 = scmp.lt.s32.totalorder %s9624_s8, %s9624_s8 }
  0x72   : > { %p9627_p6 = pnand %p9625_p4, %p9741_p7  ;;  %p9634_p11 = por %p9633_p10, %p9632_p9 }
  0x74   : > { %p9628_p8 = pneg %p9627_p6 }
  0x76   : > { %p9635_p12 = pnand %p9634_p11, %p9628_p8 }
  0x78   : > { %9638 = shalt.err (!%p9635_p12)
}
  0x79   : > { %8518 = dma.hbm_to_vmem [thread:$0]  (!%p9727_p5), %s11252_s5, 32, %s9808_s23, [#allocation8]  }
  0x7a   : > { %p11261_p13 = scmp.ne.s32.totalorder %s11258_s25, 0 }
  0x7b   : > { %p11262_p0 = scmp.eq.s32.totalorder (!%p11261_p13), %s9710_s24, 0 }
  0x7c   : > { %265 = sbr.rel (%p11261_p13) target bundleno = 2461 (0x99d), region = 44 }
  0x83   : > { %9644 = dma.done.wait (%p11262_p0), [#allocation3], 4608   ;;  %p11263_p7 = pmov %p11262_p0 }
  0x84   : > { %p11264_p1 = pmov %p11262_p0 }
  0x85   : > { %9646 = vsyncadd (%p11263_p7), [#allocation3], 4294962688 }
  0x86   : > { %9648 = dma.done.wait (%p11264_p1), [#allocation5], 36896   ;;  %p11265_p2 = pmov %p11262_p0 }
  0x87   : > { %p11266_p3 = pmov %p11262_p0 }
  0x88   : > { %9650 = vsyncadd (%p11265_p2), [#allocation5], 4294930400 }
  0x89   : > { %9652 = dma.done.wait (%p11266_p3), [#allocation8], 36896   ;;  %p11267_p5 = pmov %p11262_p0 }
  0x8a   : > { %p311_p4 = scmp.lt.s32.totalorder %s9710_s24, 1  ;;  %v9668_v0 = vmov 0   ;;  %v8555_v17 = vld [vmem:[#allocation2] sm:$0xff]   ;;  %vm398_vm0 = vcmask 523264   ;;  %v8556_v19 = vld [vmem:[#allocation2 + $0x8] sm:$0xff]   ;;  %v8557_v22 = vld [vmem:[#allocation2 + $0x10] sm:$0xff]  }
  0x8b   : > { %9654 = vsyncadd (%p11267_p5), [#allocation8], 4294930400  ;;  %443 = vmatprep.mubr.bf16.mxu0 %v9668_v0  ;;  %1218 = vmatprep.mubr.bf16.mxu1 %v9668_v0  ;;  %v8563_v18 = vld [vmem:[#allocation2 + $0x40] sm:$0xff]   ;;  %v8573_v20 = vld [vmem:[#allocation2 + $0x48] sm:$0xff]  }
  0x8c   : > { %s11304_s24 = smov (!%p311_p4, %s9710_s24), 1  ;;  %v8566_v21 = vld [vmem:[#allocation4 + $0x104] ss:$8 sps:$4 sm:$0xff]   ;;  %v8580_v23 = vld [vmem:[#allocation2 + $0x50] sm:$0xff]   ;;  %v8558_v24 = vld [vmem:[#allocation2 + $0x18] sm:$0xff]  }
  0x8d   : > { %s8217_s25 = sshll.u32 %s11304_s24, 6  ;;  %v8559_v25 = vld [vmem:[#allocation2 + $0x20] sm:$0xff]   ;;  %v8569_v27 = vld [vmem:[#allocation4 + $0x114] ss:$8 sps:$4 sm:$0xff]   ;;  %v8567_v28 = vld [vmem:[#allocation4 + $0x110] ss:$8 sps:$4 sm:$0xff]  }
  0x8e   : > { %s9877_s23 = scalar_lea.vmem %s11247_s0, %s8217_s25  ;;  %v8564_v26 = vld [vmem:[#allocation4 + $0x100] ss:$8 sps:$4 sm:$0xff]   ;;  %v8572_v29 = vld [vmem:[#allocation4 + $0x124] ss:$8 sps:$4 sm:$0xff]   ;;  %v8576_v32 = vld [vmem:[#allocation4 + $0x134] ss:$8 sps:$4 sm:$0xff]   ;;  %s11204_s15 = scalar_lea.vmem %s11253_s6, %s8217_s25 }
  0x8f   : > { %v322_v1 = vld [vmem:[%s9877_s23] sm:$0xff]  ;;  %v323_v2 = vld [vmem:[%s9877_s23 + $0x8] sm:$0xff]  ;;  %v324_v3 = vld [vmem:[%s9877_s23 + $0x10] sm:$0xff] }
  0x90   : > { %v9882_v4 = vcombine.high %v322_v1, %v323_v2  ;;  %v9884_v5 = vcombine.low %v322_v1, %v323_v2  ;;  %v325_v6 = vld [vmem:[%s9877_s23 + $0x18] sm:$0xff]  ;;  %v326_v8 = vld [vmem:[%s9877_s23 + $0x20] sm:$0xff]  ;;  %v327_v9 = vld [vmem:[%s9877_s23 + $0x28] sm:$0xff] }
  0x91   : > { %v9887_v7 = vcombine.high %v324_v3, %v325_v6  ;;  %v9894_v10 = vcombine.low %v324_v3, %v325_v6  ;;  %v9898_v11 = vcombine.high %v326_v8, %v327_v9  ;;  %v328_v12 = vld [vmem:[%s9877_s23 + $0x30] sm:$0xff]  ;;  %v329_v13 = vld [vmem:[%s9877_s23 + $0x38] sm:$0xff]  ;;  %v9904_v14 = vcombine.low %v326_v8, %v327_v9  ;;  %v8560_v30 = vld [vmem:[#allocation2 + $0x28] sm:$0xff]  }
  0x92   : > { %411 = vmatprep.subr.bf16.mxu0 %v9882_v4  ;;  %1186 = vmatprep.subr.bf16.mxu1 %v9882_v4  ;;  %v9908_v15 = vcombine.high %v328_v12, %v329_v13  ;;  %v9912_v16 = vcombine.low %v328_v12, %v329_v13  ;;  %v8570_v31 = vld [vmem:[#allocation4 + $0x120] ss:$8 sps:$4 sm:$0xff]   ;;  %v8574_v33 = vld [vmem:[#allocation4 + $0x130] ss:$8 sps:$4 sm:$0xff]   ;;  %v8579_v34 = vld [vmem:[#allocation4 + $0x144] ss:$8 sps:$4 sm:$0xff]  }
  0x93   : > { %412 = vmatpush1.bf16.msra.mxu0 %v9884_v5  ;;  %1187 = vmatpush1.bf16.msra.mxu1 %v9884_v5  ;;  %v8561_v35 = vld [vmem:[#allocation2 + $0x30] sm:$0xff]   ;;  %v8577_v36 = vld [vmem:[#allocation4 + $0x140] ss:$8 sps:$4 sm:$0xff]   ;;  %v8586_v39 = vld [vmem:[#allocation4 + $0x164] ss:$8 sps:$4 sm:$0xff]  }
  0x94   : > { %413 = vmatprep.subr.bf16.mxu0 %v9887_v7  ;;  %1188 = vmatprep.subr.bf16.mxu1 %v9887_v7  ;;  %v8583_v37 = vld [vmem:[#allocation4 + $0x154] ss:$8 sps:$4 sm:$0xff]   ;;  %v8581_v38 = vld [vmem:[#allocation4 + $0x150] ss:$8 sps:$4 sm:$0xff]   ;;  %v8584_v41 = vld [vmem:[#allocation4 + $0x160] ss:$8 sps:$4 sm:$0xff]  }
  0x95   : > { %v8562_v40 = vld [vmem:[#allocation2 + $0x38] sm:$0xff]   ;;  %v8591_v45 = vld [vmem:[#allocation4 + $0x180] ss:$8 sps:$4 sm:$0xff]   ;;  %v8593_v46 = vld [vmem:[#allocation4 + $0x184] ss:$8 sps:$4 sm:$0xff]  }
  0x96   : > { %v8587_v42 = vld [vmem:[#allocation2 + $0x58] sm:$0xff]   ;;  %v8597_v48 = vld [vmem:[#allocation2 + $0x60] sm:$0xff]   ;;  %v8625_v63 = vld [vmem:[#allocation2 + $0x68] sm:$0xff]  }
  0x97   : > { %414 = vmatpush1.bf16.msra.mxu0 %v9894_v10  ;;  %1189 = vmatpush1.bf16.msra.mxu1 %v9894_v10  ;;  %v8590_v43 = vld [vmem:[#allocation4 + $0x174] ss:$8 sps:$4 sm:$0xff]   ;;  %v8588_v44 = vld [vmem:[#allocation4 + $0x170] ss:$8 sps:$4 sm:$0xff]   ;;  %v8598_v50 = vld [vmem:[#allocation4 + $0x1a0] ss:$8 sps:$4 sm:$0xff]  }
  0x98   : > { %415 = vmatprep.subr.bf16.mxu0 %v9898_v11  ;;  %1190 = vmatprep.subr.bf16.mxu1 %v9898_v11  ;;  %v8596_v47 = vld [vmem:[#allocation4 + $0x194] ss:$8 sps:$4 sm:$0xff]   ;;  %v8594_v49 = vld [vmem:[#allocation4 + $0x190] ss:$8 sps:$4 sm:$0xff]   ;;  %v8600_v51 = vld [vmem:[#allocation4 + $0x1a4] ss:$8 sps:$4 sm:$0xff]  }
  0x99   : > { %v8603_v52 = vld [vmem:[#allocation4 + $0x1b4] ss:$8 sps:$4 sm:$0xff]   ;;  %v8601_v53 = vld [vmem:[#allocation4 + $0x1b0] ss:$8 sps:$4 sm:$0xff]   ;;  %v8604_v54 = vld [vmem:[#allocation4 + $0x1c0] ss:$8 sps:$4 sm:$0xff]  }
  0x9a   : > { %v8606_v55 = vld [vmem:[#allocation4 + $0x1c4] ss:$8 sps:$4 sm:$0xff]   ;;  %v8609_v56 = vld [vmem:[#allocation4 + $0x1d4] ss:$8 sps:$4 sm:$0xff]   ;;  %v8607_v57 = vld [vmem:[#allocation4 + $0x1d0] ss:$8 sps:$4 sm:$0xff]  }
  0x9b   : > { %416 = vmatpush1.bf16.msra.mxu0 %v9904_v14  ;;  %1191 = vmatpush1.bf16.msra.mxu1 %v9904_v14  ;;  %v8610_v58 = vld [vmem:[#allocation4 + $0x1e0] ss:$8 sps:$4 sm:$0xff]   ;;  %v8612_v59 = vld [vmem:[#allocation4 + $0x1e4] ss:$8 sps:$4 sm:$0xff]   ;;  %v8615_v60 = vld [vmem:[#allocation4 + $0x1f4] ss:$8 sps:$4 sm:$0xff]  }
  0x9c   : > { %417 = vmatprep.subr.bf16.mxu0 %v9908_v15  ;;  %1192 = vmatprep.subr.bf16.mxu1 %v9908_v15  ;;  %v8613_v61 = vld [vmem:[#allocation4 + $0x1f0] ss:$8 sps:$4 sm:$0xff]   ;;  %v8618_v62 = vld [vmem:[#allocation4 + $0x4] ss:$8 sps:$4 sm:$0xff]  }
  0x9d   : > { %v8632_v1 = vld [vmem:[#allocation2 + $0x70] sm:$0xff]   ;;  %v8639_v2 = vld [vmem:[#allocation2 + $0x78] sm:$0xff]   ;;  %v8649_v3 = vld [vmem:[#allocation2 + $0x80] sm:$0xff]  }
  0x9e   : > { %v8677_v6 = vld [vmem:[#allocation2 + $0x88] sm:$0xff]   ;;  %v8684_v8 = vld [vmem:[#allocation2 + $0x90] sm:$0xff]   ;;  %v8691_v12 = vld [vmem:[#allocation2 + $0x98] sm:$0xff]  }
  0x9f   : > { %418 = vmatpush1.bf16.msra.mxu0 %v9912_v16  ;;  %1193 = vmatpush1.bf16.msra.mxu1 %v9912_v16 }
  0xa0   : > { %565 = vmatprep.subr.bf16.mxu0 %v9882_v4  ;;  %1590 = vmatprep.subr.bf16.mxu1 %v9882_v4 }
  0xa2   : > { %7527 = vmatmul.mubr.msk.bf16.vlgmr.msra.gmra.mrb[0].mxu0 %vm398_vm0, %v8555_v17  ;;  %7607 = vmatmul.mubr.msk.bf16.vlgmr.msra.gmra.mrb[0].mxu1 %vm398_vm0, %v8563_v18 }
  0xa3   : > { %566 = vmatpush1.bf16.msra.mxu0 %v9884_v5  ;;  %453 = vmatprep.mubr.bf16.mxu0 %v9668_v0 }
  0xa4   : > { %567 = vmatprep.subr.bf16.mxu0 %v9887_v7  ;;  %1228 = vmatprep.mubr.bf16.mxu1 %v9668_v0 }
  0xa5   : > { %1591 = vmatpush1.bf16.msra.mxu1 %v9884_v5 }
  0xa6   : > { %1592 = vmatprep.subr.bf16.mxu1 %v9887_v7 }
  0xa7   : > { %568 = vmatpush1.bf16.msra.mxu0 %v9894_v10 }
  0xa8   : > { %569 = vmatprep.subr.bf16.mxu0 %v9898_v11 }
  0xa9   : > { %1593 = vmatpush1.bf16.msra.mxu1 %v9894_v10 }
  0xaa   : > { %7528 = vmatmul.mubr.msk.bf16.gmra.mrb[4].mxu0 %vm398_vm0, %v8556_v19  ;;  %7608 = vmatmul.mubr.msk.bf16.gmra.mrb[4].mxu1 %vm398_vm0, %v8573_v20 }
  0xab   : > { %463 = vmatprep.mubr.bf16.mxu0 %v9668_v0  ;;  %570 = vmatpush1.bf16.msra.mxu0 %v9904_v14 }
  0xac   : > { %571 = vmatprep.subr.bf16.mxu0 %v9908_v15  ;;  %1238 = vmatprep.mubr.bf16.mxu1 %v9668_v0 }
  0xad   : > { %1594 = vmatprep.subr.bf16.mxu1 %v9898_v11 }
  0xae   : > { %1595 = vmatpush1.bf16.msra.mxu1 %v9904_v14 }
  0xaf   : > { %572 = vmatpush1.bf16.msra.mxu0 %v9912_v16  ;;  %1596 = vmatprep.subr.bf16.mxu1 %v9908_v15 }
  0xb0   : > { %839 = vmatprep.subr.bf16.mxu0 %v8566_v21 }
  0xb2   : > { %7529 = vmatmul.mubr.msk.bf16.gmra.mrb[8].mxu0 %vm398_vm0, %v8557_v22  ;;  %7609 = vmatmul.mubr.msk.bf16.gmra.mrb[8].mxu1 %vm398_vm0, %v8580_v23  ;;  %v8701_v23 = vld [vmem:[#allocation2 + $0xa0] sm:$0xff]  }
  0xb3   : > { %473 = vmatprep.mubr.bf16.mxu0 %v9668_v0  ;;  %1248 = vmatprep.mubr.bf16.mxu1 %v9668_v0 }
  0xb4   : > { %1597 = vmatpush1.bf16.msra.mxu1 %v9912_v16 }
  0xb5   : > { %1994 = vmatprep.subr.bf16.mxu1 %v9882_v4 }
  0xba   : > { %7530 = vmatmul.mubr.msk.bf16.gmra.mrb[12].mxu0 %vm398_vm0, %v8558_v24  ;;  %7610 = vmatmul.mubr.msk.bf16.gmra.mrb[12].mxu1 %vm398_vm0, %v8587_v42 }
  0xbb   : > { %597 = vmatprep.mubr.bf16.mxu0 %v9668_v0  ;;  %1622 = vmatprep.mubr.bf16.mxu1 %v9668_v0 }
  0xc2   : > { %7535 = vmatmul.mubr.msk.bf16.vlgmr.msra.gmra.mrb[16].mxu0 %vm398_vm0, %v8559_v25  ;;  %7647 = vmatmul.mubr.msk.bf16.vlgmr.msra.gmra.mrb[16].mxu1 %vm398_vm0, %v8597_v48 }
  0xc3   : > { %607 = vmatprep.mubr.bf16.mxu0 %v9668_v0  ;;  %840 = vmatpush1.bf16.msra.mxu0 %v8564_v26 }
  0xc4   : > { %841 = vmatprep.subr.bf16.mxu0 %v8569_v27  ;;  %1632 = vmatprep.mubr.bf16.mxu1 %v9668_v0 }
  0xc5   : > { %1995 = vmatpush1.bf16.msra.mxu1 %v9884_v5 }
  0xc6   : > { %1996 = vmatprep.subr.bf16.mxu1 %v9887_v7 }
  0xc7   : > { %842 = vmatpush1.bf16.msra.mxu0 %v8567_v28 }
  0xc8   : > { %843 = vmatprep.subr.bf16.mxu0 %v8572_v29 }
  0xc9   : > { %1997 = vmatpush1.bf16.msra.mxu1 %v9894_v10 }
  0xca   : > { %7536 = vmatmul.mubr.msk.bf16.gmra.mrb[20].mxu0 %vm398_vm0, %v8560_v30  ;;  %1998 = vmatprep.subr.bf16.mxu1 %v9898_v11 }
  0xcb   : > { %617 = vmatprep.mubr.bf16.mxu0 %v9668_v0  ;;  %844 = vmatpush1.bf16.msra.mxu0 %v8570_v31 }
  0xcc   : > { %845 = vmatprep.subr.bf16.mxu0 %v8576_v32  ;;  %7648 = vmatmul.mubr.msk.bf16.gmra.mrb[20].mxu1 %vm398_vm0, %v8625_v63  ;;  %v8628_v63 = vld [vmem:[#allocation4 + $0x34] ss:$8 sps:$4 sm:$0xff]  }
  0xcd   : > { %1999 = vmatpush1.bf16.msra.mxu1 %v9904_v14  ;;  %1642 = vmatprep.mubr.bf16.mxu1 %v9668_v0 }
  0xce   : > { %2000 = vmatprep.subr.bf16.mxu1 %v9908_v15 }
  0xcf   : > { %846 = vmatpush1.bf16.msra.mxu0 %v8574_v33 }
  0xd0   : > { %847 = vmatprep.subr.bf16.mxu0 %v8579_v34 }
  0xd1   : > { %2001 = vmatpush1.bf16.msra.mxu1 %v9912_v16 }
  0xd2   : > { %7537 = vmatmul.mubr.msk.bf16.gmra.mrb[24].mxu0 %vm398_vm0, %v8561_v35  ;;  %2398 = vmatprep.subr.bf16.mxu1 %v9882_v4 }
  0xd3   : > { %627 = vmatprep.mubr.bf16.mxu0 %v9668_v0  ;;  %848 = vmatpush1.bf16.msra.mxu0 %v8577_v36 }
  0xd4   : > { %849 = vmatprep.subr.bf16.mxu0 %v8583_v37  ;;  %7649 = vmatmul.mubr.msk.bf16.gmra.mrb[24].mxu1 %vm398_vm0, %v8632_v1 }
  0xd5   : > { %1652 = vmatprep.mubr.bf16.mxu1 %v9668_v0 }
  0xd7   : > { %850 = vmatpush1.bf16.msra.mxu0 %v8581_v38 }
  0xd8   : > { %851 = vmatprep.subr.bf16.mxu0 %v8586_v39 }
  0xda   : > { %7538 = vmatmul.mubr.msk.bf16.gmra.mrb[28].mxu0 %vm398_vm0, %v8562_v40 }
  0xdb   : > { %852 = vmatpush1.bf16.msra.mxu0 %v8584_v41 }
  0xdc   : > { %853 = vmatprep.subr.bf16.mxu0 %v8590_v43  ;;  %7650 = vmatmul.mubr.msk.bf16.gmra.mrb[28].mxu1 %vm398_vm0, %v8639_v2  ;;  %v8626_v2 = vld [vmem:[#allocation4 + $0x30] ss:$8 sps:$4 sm:$0xff]  }
  0xdd   : > { %2026 = vmatprep.mubr.bf16.mxu1 %v9668_v0 }
  0xdf   : > { %854 = vmatpush1.bf16.msra.mxu0 %v8588_v44 }
  0xe0   : > { %855 = vmatprep.subr.bf16.mxu0 %v8593_v46 }
  0xe3   : > { %856 = vmatpush1.bf16.msra.mxu0 %v8591_v45 }
  0xe4   : > { %857 = vmatprep.subr.bf16.mxu0 %v8596_v47  ;;  %7687 = vmatmul.mubr.msk.bf16.vlgmr.msra.gmra.mrb[32].mxu1 %vm398_vm0, %v8649_v3  ;;  %v8729_v3 = vld [vmem:[#allocation2 + $0xa8] sm:$0xff]  }
  0xe5   : > { %2036 = vmatprep.mubr.bf16.mxu1 %v9668_v0  ;;  %2399 = vmatpush1.bf16.msra.mxu1 %v9884_v5 }
  0xe6   : > { %2400 = vmatprep.subr.bf16.mxu1 %v9887_v7 }
  0xe7   : > { %858 = vmatpush1.bf16.msra.mxu0 %v8594_v49 }
  0xe8   : > { %859 = vmatprep.subr.bf16.mxu0 %v8600_v51 }
  0xe9   : > { %2401 = vmatpush1.bf16.msra.mxu1 %v9894_v10 }
  0xea   : > { %2402 = vmatprep.subr.bf16.mxu1 %v9898_v11 }
  0xeb   : > { %860 = vmatpush1.bf16.msra.mxu0 %v8598_v50 }
  0xec   : > { %861 = vmatprep.subr.bf16.mxu0 %v8603_v52  ;;  %7688 = vmatmul.mubr.msk.bf16.gmra.mrb[36].mxu1 %vm398_vm0, %v8677_v6  ;;  %v8616_v52 = vld [vmem:[#allocation4] ss:$8 sps:$4 sm:$0xff]  }
  0xed   : > { %2403 = vmatpush1.bf16.msra.mxu1 %v9904_v14  ;;  %2046 = vmatprep.mubr.bf16.mxu1 %v9668_v0 }
  0xee   : > { %2404 = vmatprep.subr.bf16.mxu1 %v9908_v15 }
  0xef   : > { %862 = vmatpush1.bf16.msra.mxu0 %v8601_v53  ;;  %v8621_v53 = vld [vmem:[#allocation4 + $0x14] ss:$8 sps:$4 sm:$0xff]  }
  0xf0   : > { %863 = vmatprep.subr.bf16.mxu0 %v8606_v55  ;;  %v8619_v55 = vld [vmem:[#allocation4 + $0x10] ss:$8 sps:$4 sm:$0xff]  }
  0xf1   : > { %2405 = vmatpush1.bf16.msra.mxu1 %v9912_v16 }
  0xf2   : > { %2802 = vmatprep.subr.bf16.mxu1 %v9882_v4 }
  0xf3   : > { %864 = vmatpush1.bf16.msra.mxu0 %v8604_v54 }
  0xf4   : > { %865 = vmatprep.subr.bf16.mxu0 %v8609_v56  ;;  %7689 = vmatmul.mubr.msk.bf16.gmra.mrb[40].mxu1 %vm398_vm0, %v8684_v8  ;;  %v8631_v8 = vld [vmem:[#allocation4 + $0x44] ss:$8 sps:$4 sm:$0xff]  }
  0xf5   : > { %2056 = vmatprep.mubr.bf16.mxu1 %v9668_v0 }
  0xf7   : > { %866 = vmatpush1.bf16.msra.mxu0 %v8607_v57  ;;  %v8624_v57 = vld [vmem:[#allocation4 + $0x24] ss:$8 sps:$4 sm:$0xff]  }
  0xf8   : > { %867 = vmatprep.subr.bf16.mxu0 %v8612_v59 }
  0xfb   : > { %868 = vmatpush1.bf16.msra.mxu0 %v8610_v58 }
  0xfc   : > { %869 = vmatprep.subr.bf16.mxu0 %v8615_v60  ;;  %7690 = vmatmul.mubr.msk.bf16.gmra.mrb[44].mxu1 %vm398_vm0, %v8691_v12 }
  0xfd   : > { %2430 = vmatprep.mubr.bf16.mxu1 %v9668_v0 }
  0xff   : > { %870 = vmatpush1.bf16.msra.mxu0 %v8613_v61 }
 0x100   : > { %1072 = vmatprep.subr.bf16.mxu0 %v8618_v62  ;;  %v8622_v62 = vld [vmem:[#allocation4 + $0x20] ss:$8 sps:$4 sm:$0xff]  }
 0x104   : > { %7727 = vmatmul.mubr.msk.bf16.vlgmr.msra.gmra.mrb[48].mxu1 %vm398_vm0, %v8701_v23 }
 0x105   : > { %2440 = vmatprep.mubr.bf16.mxu1 %v9668_v0  ;;  %2803 = vmatpush1.bf16.msra.mxu1 %v9884_v5 }
 0x106   : > { %2804 = vmatprep.subr.bf16.mxu1 %v9887_v7 }
 0x109   : > { %2805 = vmatpush1.bf16.msra.mxu1 %v9894_v10 }
 0x10a   : > { %2806 = vmatprep.subr.bf16.mxu1 %v9898_v11 }
 0x10c   : > { %7728 = vmatmul.mubr.msk.bf16.gmra.mrb[52].mxu1 %vm398_vm0, %v8729_v3  ;;  %v8648_v3 = vld [vmem:[#allocation4 + $0x94] ss:$8 sps:$4 sm:$0xff]  }
 0x10d   : > { %2807 = vmatpush1.bf16.msra.mxu1 %v9904_v14  ;;  %2450 = vmatprep.mubr.bf16.mxu1 %v9668_v0 }
 0x10e   : > { %2808 = vmatprep.subr.bf16.mxu1 %v9908_v15 }
 0x111   : > { %2809 = vmatpush1.bf16.msra.mxu1 %v9912_v16 }
 0x112   : > { %3206 = vmatprep.subr.bf16.mxu1 %v9882_v4 }
 0x175   : > { %v9989_v9 = vpop.f32.mrb[0].mxu0  ;;  %v10049_v40 = vpop.f32.mrb[0].mxu1 }
 0x176   : > { %v9991_v13 = vpop.f32.mrb[1].mxu0  ;;  %v10051_v41 = vpop.f32.mrb[1].mxu1 }
 0x177   : > { %v9993_v17 = vpop.f32.mrb[2].mxu0  ;;  %v10053_v42 = vpop.f32.mrb[2].mxu1 }
 0x178   : > { %v484_v18 = vpack.c.bf16 %v9993_v17, %v9989_v9  ;;  %v9998_v19 = vpop.f32.mrb[3].mxu0  ;;  %v1259_v43 = vpack.c.bf16 %v10053_v42, %v10049_v40  ;;  %v10057_v45 = vpop.f32.mrb[3].mxu1  ;;  %v8678_v9 = vld [vmem:[#allocation4 + $0x230] ss:$8 sps:$4 sm:$0xff]   ;;  %v8781_v17 = vld [vmem:[#allocation2 + $0xc8] sm:$0xff]  }
 0x179   : > { %v485_v20 = vpack.c.bf16 %v9998_v19, %v9991_v13  ;;  %v1260_v47 = vpack.c.bf16 %v10057_v45, %v10051_v41  ;;  %v8704_v41 = vld [vmem:[#allocation4 + $0x2a4] ss:$8 sps:$4 sm:$0xff]   ;;  %v8730_v40 = vld [vmem:[#allocation4 + $0x330] ss:$8 sps:$4 sm:$0xff]  }
 0x17a   : > { %v8735_v42 = vld [vmem:[#allocation4 + $0x344] ss:$8 sps:$4 sm:$0xff]  }
 0x17d   : > { %v10003_v21 = vpop.f32.mrb[4].mxu0 }
 0x17e   : > { %v10005_v22 = vpop.f32.mrb[5].mxu0 }
 0x17f   : > { %v10007_v24 = vpop.f32.mrb[6].mxu0 }
 0x180   : > { %v486_v25 = vpack.c.bf16 %v10007_v24, %v10003_v21  ;;  %v10011_v26 = vpop.f32.mrb[7].mxu0  ;;  %v8685_v21 = vld [vmem:[#allocation4 + $0x250] ss:$8 sps:$4 sm:$0xff]  }
 0x181   : > { %v487_v27 = vpack.c.bf16 %v10011_v26, %v10005_v22  ;;  %v8681_v22 = vld [vmem:[#allocation4 + $0x240] ss:$8 sps:$4 sm:$0xff]   ;;  %v8687_v26 = vld [vmem:[#allocation4 + $0x254] ss:$8 sps:$4 sm:$0xff]  }
 0x182   : > { %v8788_v24 = vld [vmem:[#allocation2 + $0xd0] sm:$0xff]  }
 0x185   : > { %v10019_v28 = vpop.f32.mrb[8].mxu0 }
 0x186   : > { %v10022_v29 = vpop.f32.mrb[9].mxu0 }
 0x187   : > { %v10025_v30 = vpop.f32.mrb[10].mxu0 }
 0x188   : > { %v488_v31 = vpack.c.bf16 %v10025_v30, %v10019_v28  ;;  %v10029_v32 = vpop.f32.mrb[11].mxu0  ;;  %v8692_v28 = vld [vmem:[#allocation4 + $0x270] ss:$8 sps:$4 sm:$0xff]  }
 0x189   : > { %v489_v33 = vpack.c.bf16 %v10029_v32, %v10022_v29  ;;  %v8694_v29 = vld [vmem:[#allocation4 + $0x274] ss:$8 sps:$4 sm:$0xff]   ;;  %v8695_v32 = vld [vmem:[#allocation4 + $0x280] ss:$8 sps:$4 sm:$0xff]  }
 0x18a   : > { %v8795_v30 = vld [vmem:[#allocation2 + $0xd8] sm:$0xff]  }
 0x18d   : > { %v10035_v34 = vpop.f32.mrb[12].mxu0 }
 0x18e   : > { %v10038_v35 = vpop.f32.mrb[13].mxu0 }
 0x18f   : > { %v10041_v36 = vpop.f32.mrb[14].mxu0 }
 0x190   : > { %v490_v37 = vpack.c.bf16 %v10041_v36, %v10035_v34  ;;  %v10045_v38 = vpop.f32.mrb[15].mxu0 }
 0x191   : > { %v491_v39 = vpack.c.bf16 %v10045_v38, %v10038_v35 }
 0x195   : > { %v599_v44 = vpop.f32.mrb[16].mxu0 }
 0x196   : > { %v601_v46 = vpop.f32.mrb[17].mxu0 }
 0x197   : > { %v603_v48 = vpop.f32.mrb[18].mxu0 }
 0x198   : > { %v638_v49 = vpack.c.bf16 %v603_v48, %v599_v44  ;;  %v605_v50 = vpop.f32.mrb[19].mxu0  ;;  %v8629_v48 = vld [vmem:[#allocation4 + $0x40] ss:$8 sps:$4 sm:$0xff]  }
 0x199   : > { %v639_v51 = vpack.c.bf16 %v605_v50, %v601_v46 }
 0x19b   : > { %871 = vmatprep.mubr.bf16.mxu0 %v639_v51  ;;  %v8633_v51 = vld [vmem:[#allocation4 + $0x50] ss:$8 sps:$4 sm:$0xff]  }
 0x19c   : > { %872 = vmatmul.mubr.bf16.vlgmr.msra.gmra.mrb[32].mxu0 %v638_v49  ;;  %v8635_v49 = vld [vmem:[#allocation4 + $0x54] ss:$8 sps:$4 sm:$0xff]  }
 0x19d   : > { %1073 = vmatpush1.bf16.msra.mxu0 %v8616_v52  ;;  %v609_v54 = vpop.f32.mrb[20].mxu0  ;;  %v8736_v52 = vld [vmem:[#allocation2 + $0xb0] sm:$0xff]  }
 0x19e   : > { %v611_v56 = vpop.f32.mrb[21].mxu0  ;;  %1074 = vmatprep.subr.bf16.mxu0 %v8621_v53  ;;  %7729 = vmatmul.mubr.msk.bf16.gmra.mrb[56].mxu1 %vm398_vm0, %v8736_v52 }
 0x19f   : > { %v613_v58 = vpop.f32.mrb[22].mxu0  ;;  %2460 = vmatprep.mubr.bf16.mxu1 %v9668_v0 }
 0x1a0   : > { %v640_v59 = vpack.c.bf16 %v613_v58, %v609_v54  ;;  %v615_v60 = vpop.f32.mrb[23].mxu0  ;;  %v8638_v54 = vld [vmem:[#allocation4 + $0x64] ss:$8 sps:$4 sm:$0xff]  }
 0x1a1   : > { %v641_v61 = vpack.c.bf16 %v615_v60, %v611_v56  ;;  %1075 = vmatpush1.bf16.msra.mxu0 %v8619_v55  ;;  %v8642_v60 = vld [vmem:[#allocation4 + $0x74] ss:$8 sps:$4 sm:$0xff]  }
 0x1a2   : > { %1076 = vmatprep.subr.bf16.mxu0 %v8624_v57 }
 0x1a3   : > { %881 = vmatprep.mubr.bf16.mxu0 %v641_v61  ;;  %v8640_v61 = vld [vmem:[#allocation4 + $0x70] ss:$8 sps:$4 sm:$0xff]  }
 0x1a4   : > { %882 = vmatmul.mubr.bf16.gmra.mrb[36].mxu0 %v640_v59  ;;  %v8636_v59 = vld [vmem:[#allocation4 + $0x60] ss:$8 sps:$4 sm:$0xff]  }
 0x1a5   : > { %1077 = vmatpush1.bf16.msra.mxu0 %v8622_v62  ;;  %v619_v1 = vpop.f32.mrb[24].mxu0  ;;  %v8743_v62 = vld [vmem:[#allocation2 + $0xb8] sm:$0xff]  }
 0x1a6   : > { %v621_v6 = vpop.f32.mrb[25].mxu0  ;;  %1078 = vmatprep.subr.bf16.mxu0 %v8628_v63  ;;  %v8645_v63 = vld [vmem:[#allocation4 + $0x84] ss:$8 sps:$4 sm:$0xff]   ;;  %7730 = vmatmul.mubr.msk.bf16.gmra.mrb[60].mxu1 %vm398_vm0, %v8743_v62 }
 0x1a7   : > { %v623_v12 = vpop.f32.mrb[26].mxu0  ;;  %2834 = vmatprep.mubr.bf16.mxu1 %v9668_v0  ;;  %v8670_v62 = vld [vmem:[#allocation4 + $0x204] ss:$8 sps:$4 sm:$0xff]  }
 0x1a8   : > { %v642_v23 = vpack.c.bf16 %v623_v12, %v619_v1  ;;  %v625_v44 = vpop.f32.mrb[27].mxu0  ;;  %v8643_v1 = vld [vmem:[#allocation4 + $0x80] ss:$8 sps:$4 sm:$0xff]  }
 0x1a9   : > { %v643_v46 = vpack.c.bf16 %v625_v44, %v621_v6  ;;  %1079 = vmatpush1.bf16.msra.mxu0 %v8626_v2  ;;  %v10070_v2 = vpop.f32.mrb[4].mxu1  ;;  %v8753_v44 = vld [vmem:[#allocation2 + $0xc0] sm:$0xff]  }
 0x1aa   : > { %1080 = vmatprep.subr.bf16.mxu0 %v8631_v8  ;;  %v10072_v6 = vpop.f32.mrb[5].mxu1 }
 0x1ab   : > { %891 = vmatprep.mubr.bf16.mxu0 %v643_v46  ;;  %v10074_v8 = vpop.f32.mrb[6].mxu1  ;;  %v8650_v46 = vld [vmem:[#allocation4 + $0xa0] ss:$8 sps:$4 sm:$0xff]  }
 0x1ac   : > { %892 = vmatmul.mubr.bf16.gmra.mrb[40].mxu0 %v642_v23  ;;  %v1261_v13 = vpack.c.bf16 %v10074_v8, %v10070_v2  ;;  %v10078_v19 = vpop.f32.mrb[7].mxu1  ;;  %v8652_v23 = vld [vmem:[#allocation4 + $0xa4] ss:$8 sps:$4 sm:$0xff]   ;;  %v8840_v2 = vld [vmem:[#allocation2 + $0xf0] sm:$0xff]  }
 0x1ad   : > { %1081 = vmatpush1.bf16.msra.mxu0 %v8629_v48  ;;  %v629_v50 = vpop.f32.mrb[28].mxu0  ;;  %v1262_v12 = vpack.c.bf16 %v10078_v19, %v10072_v6  ;;  %v10083_v48 = vpop.f32.mrb[8].mxu1  ;;  %v8739_v6 = vld [vmem:[#allocation4 + $0x354] ss:$8 sps:$4 sm:$0xff]   ;;  %v8737_v8 = vld [vmem:[#allocation4 + $0x350] ss:$8 sps:$4 sm:$0xff]  }
 0x1ae   : > { %v631_v53 = vpop.f32.mrb[29].mxu0  ;;  %1082 = vmatprep.subr.bf16.mxu0 %v8635_v49  ;;  %7767 = vmatmul.mubr.msk.bf16.vlgmr.msra.gmra.mrb[64].mxu1 %vm398_vm0, %v8753_v44  ;;  %v8655_v49 = vld [vmem:[#allocation4 + $0xb4] ss:$8 sps:$4 sm:$0xff]   ;;  %v8740_v19 = vld [vmem:[#allocation4 + $0x360] ss:$8 sps:$4 sm:$0xff]  }
 0x1af   : > { %v633_v55 = vpop.f32.mrb[30].mxu0  ;;  %2844 = vmatprep.mubr.bf16.mxu1 %v9668_v0  ;;  %3207 = vmatpush1.bf16.msra.mxu1 %v9884_v5  ;;  %v8667_v44 = vld [vmem:[#allocation4 + $0xf4] ss:$8 sps:$4 sm:$0xff]  }
 0x1b0   : > { %v644_v56 = vpack.c.bf16 %v633_v55, %v629_v50  ;;  %v635_v57 = vpop.f32.mrb[31].mxu0  ;;  %v10086_v50 = vpop.f32.mrb[9].mxu1  ;;  %3208 = vmatprep.subr.bf16.mxu1 %v9887_v7 }
 0x1b1   : > { %v645_v58 = vpack.c.bf16 %v635_v57, %v631_v53  ;;  %1083 = vmatpush1.bf16.msra.mxu0 %v8633_v51  ;;  %v10089_v51 = vpop.f32.mrb[10].mxu1  ;;  %v8656_v57 = vld [vmem:[#allocation4 + $0xc0] ss:$8 sps:$4 sm:$0xff]  }
 0x1b2   : > { %1084 = vmatprep.subr.bf16.mxu0 %v8638_v54  ;;  %v1263_v52 = vpack.c.bf16 %v10089_v51, %v10083_v48  ;;  %v10094_v53 = vpop.f32.mrb[11].mxu1  ;;  %v8653_v54 = vld [vmem:[#allocation4 + $0xb0] ss:$8 sps:$4 sm:$0xff]  }
 0x1b3   : > { %901 = vmatprep.mubr.bf16.mxu0 %v645_v58  ;;  %v1264_v55 = vpack.c.bf16 %v10094_v53, %v10086_v50  ;;  %3209 = vmatpush1.bf16.msra.mxu1 %v9894_v10  ;;  %v10100_v58 = vpop.f32.mrb[12].mxu1  ;;  %v8847_v50 = vld [vmem:[#allocation2 + $0xf8] sm:$0xff]   ;;  %v8749_v53 = vld [vmem:[#allocation4 + $0x384] ss:$8 sps:$4 sm:$0xff]  }
 0x1b4   : > { %902 = vmatmul.mubr.bf16.gmra.mrb[44].mxu0 %v644_v56  ;;  %v8658_v56 = vld [vmem:[#allocation4 + $0xc4] ss:$8 sps:$4 sm:$0xff]   ;;  %3210 = vmatprep.subr.bf16.mxu1 %v9898_v11  ;;  %v8744_v51 = vld [vmem:[#allocation4 + $0x370] ss:$8 sps:$4 sm:$0xff]  }
 0x1b5   : > { %1085 = vmatpush1.bf16.msra.mxu0 %v8636_v59  ;;  %1104 = vmatprep.mubr.bf16.mxu0 %v485_v20  ;;  %v8646_v20 = vld [vmem:[#allocation4 + $0x90] ss:$8 sps:$4 sm:$0xff]   ;;  %v8661_v59 = vld [vmem:[#allocation4 + $0xd4] ss:$8 sps:$4 sm:$0xff]  }
 0x1b6   : > { %1086 = vmatprep.subr.bf16.mxu0 %v8642_v60  ;;  %v10102_v60 = vpop.f32.mrb[13].mxu1  ;;  %7768 = vmatmul.mubr.msk.bf16.gmra.mrb[68].mxu1 %vm398_vm0, %v8781_v17 }
 0x1b7   : > { %3211 = vmatpush1.bf16.msra.mxu1 %v9904_v14  ;;  %2854 = vmatprep.mubr.bf16.mxu1 %v9668_v0 }
 0x1b8   : > { %3212 = vmatprep.subr.bf16.mxu1 %v9908_v15 }
 0x1b9   : > { %1087 = vmatpush1.bf16.msra.mxu0 %v8640_v61  ;;  %v10105_v61 = vpop.f32.mrb[14].mxu1 }
 0x1ba   : > { %1088 = vmatprep.subr.bf16.mxu0 %v8645_v63  ;;  %v10110_v63 = vpop.f32.mrb[15].mxu1  ;;  %v11268_v48 = vpack.c.bf16 %v10105_v61, %v10100_v58 }
 0x1bb   : > { %3213 = vmatpush1.bf16.msra.mxu1 %v9912_v16 }
 0x1bc   : > { %3610 = vmatprep.subr.bf16.mxu1 %v9882_v4  ;;  %v8680_v4 = vld [vmem:[#allocation4 + $0x234] ss:$8 sps:$4 sm:$0xff]  }
 0x1bd   : > { %1089 = vmatpush1.bf16.msra.mxu0 %v8643_v1  ;;  %v8659_v1 = vld [vmem:[#allocation4 + $0xd0] ss:$8 sps:$4 sm:$0xff]  }
 0x1be   : > { %1090 = vmatprep.subr.bf16.mxu0 %v8648_v3  ;;  %v1266_v3 = vpack.c.bf16 %v10110_v63, %v10102_v60  ;;  %7769 = vmatmul.mubr.msk.bf16.gmra.mrb[72].mxu1 %vm398_vm0, %v8788_v24  ;;  %v8716_v24 = vld [vmem:[#allocation4 + $0x2e4] ss:$8 sps:$4 sm:$0xff]   ;;  %v8752_v60 = vld [vmem:[#allocation4 + $0x394] ss:$8 sps:$4 sm:$0xff]  }
 0x1bf   : > { %2864 = vmatprep.mubr.bf16.mxu1 %v9668_v0 }
 0x1c1   : > { %1091 = vmatpush1.bf16.msra.mxu0 %v8646_v20  ;;  %v8664_v20 = vld [vmem:[#allocation4 + $0xe4] ss:$8 sps:$4 sm:$0xff]  }
 0x1c2   : > { %1092 = vmatprep.subr.bf16.mxu0 %v8652_v23  ;;  %v8662_v23 = vld [vmem:[#allocation4 + $0xe0] ss:$8 sps:$4 sm:$0xff]  }
 0x1c5   : > { %1093 = vmatpush1.bf16.msra.mxu0 %v8650_v46  ;;  %v10116_v46 = vpop.f32.mrb[16].mxu1 }
 0x1c6   : > { %1094 = vmatprep.subr.bf16.mxu0 %v8655_v49  ;;  %v10118_v49 = vpop.f32.mrb[17].mxu1  ;;  %7770 = vmatmul.mubr.msk.bf16.gmra.mrb[76].mxu1 %vm398_vm0, %v8795_v30 }
 0x1c7   : > { %3238 = vmatprep.mubr.bf16.mxu1 %v9668_v0 }
 0x1c9   : > { %1095 = vmatpush1.bf16.msra.mxu0 %v8653_v54  ;;  %v10120_v54 = vpop.f32.mrb[18].mxu1 }
 0x1ca   : > { %1096 = vmatprep.subr.bf16.mxu0 %v8658_v56  ;;  %v8665_v56 = vld [vmem:[#allocation4 + $0xf0] ss:$8 sps:$4 sm:$0xff]  }
 0x1cd   : > { %1097 = vmatpush1.bf16.msra.mxu0 %v8656_v57  ;;  %v8674_v57 = vld [vmem:[#allocation4 + $0x220] ss:$8 sps:$4 sm:$0xff]  }
 0x1ce   : > { %1098 = vmatprep.subr.bf16.mxu0 %v8661_v59  ;;  %v10124_v59 = vpop.f32.mrb[19].mxu1 }
 0x1cf   : > { %v10158_v35 = vpop.f32.mrb[20].mxu1 }
 0x1d0   : > { %v10160_v34 = vpop.f32.mrb[21].mxu1 }
 0x1d1   : > { %1099 = vmatpush1.bf16.msra.mxu0 %v8659_v1  ;;  %v8668_v1 = vld [vmem:[#allocation4 + $0x200] ss:$8 sps:$4 sm:$0xff]   ;;  %v10162_v36 = vpop.f32.mrb[22].mxu1 }
 0x1d2   : > { %1100 = vmatprep.subr.bf16.mxu0 %v8664_v20  ;;  %v8673_v20 = vld [vmem:[#allocation4 + $0x214] ss:$8 sps:$4 sm:$0xff]   ;;  %v1665_v38 = vpack.c.bf16 %v10162_v36, %v10158_v35  ;;  %v8794_v35 = vld [vmem:[#allocation4 + $0x464] ss:$8 sps:$4 sm:$0xff]   ;;  %v8792_v36 = vld [vmem:[#allocation4 + $0x460] ss:$8 sps:$4 sm:$0xff]  }
 0x1d5   : > { %1101 = vmatpush1.bf16.msra.mxu0 %v8662_v23  ;;  %v8671_v23 = vld [vmem:[#allocation4 + $0x210] ss:$8 sps:$4 sm:$0xff]  }
 0x1d6   : > { %1102 = vmatprep.subr.bf16.mxu0 %v8667_v44  ;;  %v8676_v44 = vld [vmem:[#allocation4 + $0x224] ss:$8 sps:$4 sm:$0xff]  }
 0x1d9   : > { %1103 = vmatpush1.bf16.msra.mxu0 %v8665_v56  ;;  %v8707_v56 = vld [vmem:[#allocation4 + $0x2b4] ss:$8 sps:$4 sm:$0xff]  }
 0x1da   : > { %1460 = vmatprep.subr.bf16.mxu0 %v8670_v62  ;;  %v8702_v62 = vld [vmem:[#allocation4 + $0x2a0] ss:$8 sps:$4 sm:$0xff]  }
 0x1dc   : > { %1105 = vmatmul.mubr.bf16.vlgmr.msra.gmra.mrb[32].mxu0 %v484_v18  ;;  %v8683_v18 = vld [vmem:[#allocation4 + $0x244] ss:$8 sps:$4 sm:$0xff]  }
 0x1dd   : > { %1114 = vmatprep.mubr.bf16.mxu0 %v487_v27  ;;  %1461 = vmatpush1.bf16.msra.mxu0 %v8668_v1  ;;  %v8688_v27 = vld [vmem:[#allocation4 + $0x260] ss:$8 sps:$4 sm:$0xff]  }
 0x1de   : > { %1462 = vmatprep.subr.bf16.mxu0 %v8673_v20  ;;  %v8705_v20 = vld [vmem:[#allocation4 + $0x2b0] ss:$8 sps:$4 sm:$0xff]  }
 0x1e1   : > { %1463 = vmatpush1.bf16.msra.mxu0 %v8671_v23 }
 0x1e2   : > { %1464 = vmatprep.subr.bf16.mxu0 %v8676_v44 }
 0x1e4   : > { %1115 = vmatmul.mubr.bf16.gmra.mrb[36].mxu0 %v486_v25  ;;  %v8690_v25 = vld [vmem:[#allocation4 + $0x264] ss:$8 sps:$4 sm:$0xff]  }
 0x1e5   : > { %1124 = vmatprep.mubr.bf16.mxu0 %v489_v33  ;;  %1465 = vmatpush1.bf16.msra.mxu0 %v8674_v57  ;;  %v8700_v33 = vld [vmem:[#allocation4 + $0x294] ss:$8 sps:$4 sm:$0xff]  }
 0x1e6   : > { %1466 = vmatprep.subr.bf16.mxu0 %v8680_v4 }
 0x1e9   : > { %1467 = vmatpush1.bf16.msra.mxu0 %v8678_v9  ;;  %v8710_v9 = vld [vmem:[#allocation4 + $0x2c4] ss:$8 sps:$4 sm:$0xff]  }
 0x1ea   : > { %1468 = vmatprep.subr.bf16.mxu0 %v8683_v18 }
 0x1ec   : > { %1125 = vmatmul.mubr.bf16.gmra.mrb[40].mxu0 %v488_v31  ;;  %v8697_v31 = vld [vmem:[#allocation4 + $0x284] ss:$8 sps:$4 sm:$0xff]  }
 0x1ed   : > { %1134 = vmatprep.mubr.bf16.mxu0 %v491_v39  ;;  %1469 = vmatpush1.bf16.msra.mxu0 %v8681_v22  ;;  %v10166_v39 = vpop.f32.mrb[23].mxu1 }
 0x1ee   : > { %1470 = vmatprep.subr.bf16.mxu0 %v8687_v26  ;;  %v1666_v45 = vpack.c.bf16 %v10166_v39, %v10160_v34  ;;  %v10172_v57 = vpop.f32.mrb[24].mxu1  ;;  %v8791_v34 = vld [vmem:[#allocation4 + $0x454] ss:$8 sps:$4 sm:$0xff]   ;;  %v8789_v39 = vld [vmem:[#allocation4 + $0x450] ss:$8 sps:$4 sm:$0xff]  }
 0x1ef   : > { %v10175_v4 = vpop.f32.mrb[25].mxu1 }
 0x1f0   : > { %v10178_v1 = vpop.f32.mrb[26].mxu1 }
 0x1f1   : > { %1471 = vmatpush1.bf16.msra.mxu0 %v8685_v21  ;;  %v1667_v23 = vpack.c.bf16 %v10178_v1, %v10172_v57  ;;  %v10182_v44 = vpop.f32.mrb[27].mxu1  ;;  %v8711_v21 = vld [vmem:[#allocation4 + $0x2d0] ss:$8 sps:$4 sm:$0xff]   ;;  %v8801_v57 = vld [vmem:[#allocation4 + $0x484] ss:$8 sps:$4 sm:$0xff]  }
 0x1f2   : > { %1472 = vmatprep.subr.bf16.mxu0 %v8690_v25  ;;  %v1668_v17 = vpack.c.bf16 %v10182_v44, %v10175_v4  ;;  %v10188_v18 = vpop.f32.mrb[28].mxu1  ;;  %v8799_v4 = vld [vmem:[#allocation4 + $0x480] ss:$8 sps:$4 sm:$0xff]   ;;  %v8804_v1 = vld [vmem:[#allocation4 + $0x494] ss:$8 sps:$4 sm:$0xff]  }
 0x1f3   : > { %v10191_v22 = vpop.f32.mrb[29].mxu1 }
 0x1f4   : > { %1135 = vmatmul.mubr.bf16.gmra.mrb[44].mxu0 %v490_v37  ;;  %v8698_v37 = vld [vmem:[#allocation4 + $0x290] ss:$8 sps:$4 sm:$0xff]   ;;  %v10194_v26 = vpop.f32.mrb[30].mxu1 }
 0x1f5   : > { %1473 = vmatpush1.bf16.msra.mxu0 %v8688_v27  ;;  %1492 = vmatprep.mubr.bf16.mxu0 %v1260_v47  ;;  %v8805_v47 = vld [vmem:[#allocation2 + $0xe0] sm:$0xff]  }
 0x1f6   : > { %1474 = vmatprep.subr.bf16.mxu0 %v8694_v29  ;;  %7807 = vmatmul.mubr.msk.bf16.vlgmr.msra.gmra.mrb[80].mxu1 %vm398_vm0, %v8805_v47  ;;  %v8723_v47 = vld [vmem:[#allocation4 + $0x310] ss:$8 sps:$4 sm:$0xff]  }
 0x1f7   : > { %3248 = vmatprep.mubr.bf16.mxu1 %v9668_v0  ;;  %3611 = vmatpush1.bf16.msra.mxu1 %v9884_v5  ;;  %v8708_v5 = vld [vmem:[#allocation4 + $0x2c0] ss:$8 sps:$4 sm:$0xff]  }
 0x1f8   : > { %3612 = vmatprep.subr.bf16.mxu1 %v9887_v7  ;;  %v8713_v7 = vld [vmem:[#allocation4 + $0x2d4] ss:$8 sps:$4 sm:$0xff]  }
 0x1f9   : > { %1475 = vmatpush1.bf16.msra.mxu0 %v8692_v28  ;;  %v8717_v28 = vld [vmem:[#allocation4 + $0x2f0] ss:$8 sps:$4 sm:$0xff]  }
 0x1fa   : > { %1476 = vmatprep.subr.bf16.mxu0 %v8697_v31  ;;  %v8722_v31 = vld [vmem:[#allocation4 + $0x304] ss:$8 sps:$4 sm:$0xff]  }
 0x1fb   : > { %3613 = vmatpush1.bf16.msra.mxu1 %v9894_v10  ;;  %v1669_v10 = vpack.c.bf16 %v10194_v26, %v10188_v18  ;;  %v8802_v18 = vld [vmem:[#allocation4 + $0x490] ss:$8 sps:$4 sm:$0xff]  }
 0x1fc   : > { %3614 = vmatprep.subr.bf16.mxu1 %v9898_v11  ;;  %v10198_v11 = vpop.f32.mrb[31].mxu1 }
 0x1fd   : > { %1477 = vmatpush1.bf16.msra.mxu0 %v8695_v32  ;;  %v1670_v25 = vpack.c.bf16 %v10198_v11, %v10191_v22  ;;  %v10203_v27 = vpop.f32.mrb[32].mxu1 }
 0x1fe   : > { %1478 = vmatprep.subr.bf16.mxu0 %v8700_v33  ;;  %v10205_v29 = vpop.f32.mrb[33].mxu1 }
 0x1ff   : > { %3615 = vmatpush1.bf16.msra.mxu1 %v9904_v14  ;;  %v8714_v14 = vld [vmem:[#allocation4 + $0x2e0] ss:$8 sps:$4 sm:$0xff]   ;;  %v10207_v30 = vpop.f32.mrb[34].mxu1 }
 0x200   : > { %3616 = vmatprep.subr.bf16.mxu1 %v9908_v15  ;;  %v8719_v15 = vld [vmem:[#allocation4 + $0x2f4] ss:$8 sps:$4 sm:$0xff]   ;;  %v2067_v32 = vpack.c.bf16 %v10207_v30, %v10203_v27  ;;  %v10211_v33 = vpop.f32.mrb[35].mxu1  ;;  %v8839_v27 = vld [vmem:[#allocation4 + $0x544] ss:$8 sps:$4 sm:$0xff]  }
 0x201   : > { %1479 = vmatpush1.bf16.msra.mxu0 %v8698_v37  ;;  %v8720_v37 = vld [vmem:[#allocation4 + $0x300] ss:$8 sps:$4 sm:$0xff]   ;;  %v10245_v63 = vpop.f32.mrb[36].mxu1 }
 0x202   : > { %1480 = vmatprep.subr.bf16.mxu0 %v8704_v41  ;;  %v8725_v41 = vld [vmem:[#allocation4 + $0x314] ss:$8 sps:$4 sm:$0xff]   ;;  %v10247_v58 = vpop.f32.mrb[37].mxu1  ;;  %v8837_v30 = vld [vmem:[#allocation4 + $0x540] ss:$8 sps:$4 sm:$0xff]  }
 0x203   : > { %3617 = vmatpush1.bf16.msra.mxu1 %v9912_v16  ;;  %v2068_v16 = vpack.c.bf16 %v10211_v33, %v10205_v29  ;;  %v10249_v61 = vpop.f32.mrb[38].mxu1  ;;  %v8811_v29 = vld [vmem:[#allocation4 + $0x4b4] ss:$8 sps:$4 sm:$0xff]  }
 0x205   : > { %1481 = vmatpush1.bf16.msra.mxu0 %v8702_v62  ;;  %v8728_v62 = vld [vmem:[#allocation4 + $0x324] ss:$8 sps:$4 sm:$0xff]  }
 0x206   : > { %1482 = vmatprep.subr.bf16.mxu0 %v8707_v56  ;;  %v8726_v56 = vld [vmem:[#allocation4 + $0x320] ss:$8 sps:$4 sm:$0xff]  }
 0x209   : > { %1483 = vmatpush1.bf16.msra.mxu0 %v8705_v20  ;;  %v8732_v20 = vld [vmem:[#allocation4 + $0x334] ss:$8 sps:$4 sm:$0xff]  }
 0x20a   : > { %1484 = vmatprep.subr.bf16.mxu0 %v8710_v9  ;;  %v8833_v9 = vld [vmem:[#allocation2 + $0xe8] sm:$0xff]  }
 0x20b   : > { %7808 = vmatmul.mubr.msk.bf16.gmra.mrb[84].mxu1 %vm398_vm0, %v8833_v9  ;;  %v8760_v9 = vld [vmem:[#allocation4 + $0x3c0] ss:$8 sps:$4 sm:$0xff]  }
 0x20c   : > { %3258 = vmatprep.mubr.bf16.mxu1 %v9668_v0 }
 0x20d   : > { %1485 = vmatpush1.bf16.msra.mxu0 %v8708_v5  ;;  %v8854_v5 = vld [vmem:[#allocation2 + $0x100] sm:$0xff]  }
 0x20e   : > { %1486 = vmatprep.subr.bf16.mxu0 %v8713_v7  ;;  %v8756_v7 = vld [vmem:[#allocation4 + $0x3a4] ss:$8 sps:$4 sm:$0xff]  }
 0x211   : > { %1487 = vmatpush1.bf16.msra.mxu0 %v8711_v21 }
 0x212   : > { %1488 = vmatprep.subr.bf16.mxu0 %v8716_v24  ;;  %v8754_v24 = vld [vmem:[#allocation4 + $0x3a0] ss:$8 sps:$4 sm:$0xff]  }
 0x213   : > { %7809 = vmatmul.mubr.msk.bf16.gmra.mrb[88].mxu1 %vm398_vm0, %v8840_v2  ;;  %v8763_v2 = vld [vmem:[#allocation4 + $0x3d0] ss:$8 sps:$4 sm:$0xff]  }
 0x214   : > { %3268 = vmatprep.mubr.bf16.mxu1 %v9668_v0 }
 0x215   : > { %1489 = vmatpush1.bf16.msra.mxu0 %v8714_v14  ;;  %v8759_v14 = vld [vmem:[#allocation4 + $0x3b4] ss:$8 sps:$4 sm:$0xff]  }
 0x216   : > { %1490 = vmatprep.subr.bf16.mxu0 %v8719_v15 }
 0x219   : > { %1491 = vmatpush1.bf16.msra.mxu0 %v8717_v28 }
 0x21a   : > { %1864 = vmatprep.subr.bf16.mxu0 %v8722_v31 }
 0x21b   : > { %7810 = vmatmul.mubr.msk.bf16.gmra.mrb[92].mxu1 %vm398_vm0, %v8847_v50  ;;  %v8766_v50 = vld [vmem:[#allocation4 + $0x3e0] ss:$8 sps:$4 sm:$0xff]  }
 0x21c   : > { %1493 = vmatmul.mubr.bf16.vlgmr.msra.gmra.mrb[32].mxu0 %v1259_v43  ;;  %v8733_v43 = vld [vmem:[#allocation4 + $0x340] ss:$8 sps:$4 sm:$0xff]   ;;  %3642 = vmatprep.mubr.bf16.mxu1 %v9668_v0 }
 0x21d   : > { %1865 = vmatpush1.bf16.msra.mxu0 %v8720_v37  ;;  %1502 = vmatprep.mubr.bf16.mxu0 %v1262_v12  ;;  %v8746_v12 = vld [vmem:[#allocation4 + $0x374] ss:$8 sps:$4 sm:$0xff]   ;;  %v8757_v37 = vld [vmem:[#allocation4 + $0x3b0] ss:$8 sps:$4 sm:$0xff]  }
 0x21e   : > { %1866 = vmatprep.subr.bf16.mxu0 %v8725_v41 }
 0x221   : > { %1867 = vmatpush1.bf16.msra.mxu0 %v8723_v47 }
 0x222   : > { %1868 = vmatprep.subr.bf16.mxu0 %v8728_v62  ;;  %v8861_v62 = vld [vmem:[#allocation2 + $0x108] sm:$0xff]  }
 0x223   : > { %7847 = vmatmul.mubr.msk.bf16.vlgmr.msra.gmra.mrb[96].mxu1 %vm398_vm0, %v8854_v5  ;;  %v8774_v5 = vld [vmem:[#allocation4 + $0x404] ss:$8 sps:$4 sm:$0xff]  }
 0x224   : > { %1503 = vmatmul.mubr.bf16.gmra.mrb[36].mxu0 %v1261_v13  ;;  %v8742_v13 = vld [vmem:[#allocation4 + $0x364] ss:$8 sps:$4 sm:$0xff]   ;;  %3652 = vmatprep.mubr.bf16.mxu1 %v9668_v0 }
 0x225   : > { %1869 = vmatpush1.bf16.msra.mxu0 %v8726_v56  ;;  %1512 = vmatprep.mubr.bf16.mxu0 %v1264_v55  ;;  %v8747_v55 = vld [vmem:[#allocation4 + $0x380] ss:$8 sps:$4 sm:$0xff]   ;;  %v8762_v56 = vld [vmem:[#allocation4 + $0x3c4] ss:$8 sps:$4 sm:$0xff]  }
 0x226   : > { %1870 = vmatprep.subr.bf16.mxu0 %v8732_v20 }
 0x229   : > { %1871 = vmatpush1.bf16.msra.mxu0 %v8730_v40  ;;  %v8765_v40 = vld [vmem:[#allocation4 + $0x3d4] ss:$8 sps:$4 sm:$0xff]  }
 0x22a   : > { %1872 = vmatprep.subr.bf16.mxu0 %v8735_v42 }
 0x22b   : > { %7848 = vmatmul.mubr.msk.bf16.gmra.mrb[100].mxu1 %vm398_vm0, %v8861_v62  ;;  %v8777_v62 = vld [vmem:[#allocation4 + $0x414] ss:$8 sps:$4 sm:$0xff]  }
 0x22c   : > { %1513 = vmatmul.mubr.bf16.gmra.mrb[40].mxu0 %v1263_v52  ;;  %v11269_v52 = vpack.c.bf16 %v10124_v59, %v10118_v49  ;;  %v2069_v49 = vpack.c.bf16 %v10249_v61, %v10245_v63  ;;  %v10253_v59 = vpop.f32.mrb[39].mxu1  ;;  %3662 = vmatprep.mubr.bf16.mxu1 %v9668_v0  ;;  %v8846_v63 = vld [vmem:[#allocation4 + $0x564] ss:$8 sps:$4 sm:$0xff]   ;;  %v8844_v61 = vld [vmem:[#allocation4 + $0x560] ss:$8 sps:$4 sm:$0xff]  }
 0x22d   : > { %1873 = vmatpush1.bf16.msra.mxu0 %v8733_v43  ;;  %1522 = vmatprep.mubr.bf16.mxu0 %v1266_v3  ;;  %v8750_v3 = vld [vmem:[#allocation4 + $0x390] ss:$8 sps:$4 sm:$0xff]   ;;  %v2070_v21 = vpack.c.bf16 %v10253_v59, %v10247_v58  ;;  %v10259_v15 = vpop.f32.mrb[40].mxu1 }
 0x22e   : > { %1874 = vmatprep.subr.bf16.mxu0 %v8739_v6  ;;  %v10261_v28 = vpop.f32.mrb[41].mxu1  ;;  %v8841_v58 = vld [vmem:[#allocation4 + $0x550] ss:$8 sps:$4 sm:$0xff]  }
 0x22f   : > { %v10263_v31 = vpop.f32.mrb[42].mxu1  ;;  %v8848_v59 = vld [vmem:[#allocation4 + $0x570] ss:$8 sps:$4 sm:$0xff]  }
 0x230   : > { %v2071_v41 = vpack.c.bf16 %v10263_v31, %v10259_v15  ;;  %v10267_v47 = vpop.f32.mrb[43].mxu1  ;;  %v8851_v15 = vld [vmem:[#allocation4 + $0x580] ss:$8 sps:$4 sm:$0xff]  }
 0x231   : > { %1875 = vmatpush1.bf16.msra.mxu0 %v8737_v8  ;;  %v2072_v20 = vpack.c.bf16 %v10267_v47, %v10261_v28  ;;  %v10273_v42 = vpop.f32.mrb[44].mxu1  ;;  %v8857_v28 = vld [vmem:[#allocation4 + $0x594] ss:$8 sps:$4 sm:$0xff]  }
 0x232   : > { %1876 = vmatprep.subr.bf16.mxu0 %v8742_v13  ;;  %v10275_v43 = vpop.f32.mrb[45].mxu1 }
 0x233   : > { %v10277_v6 = vpop.f32.mrb[46].mxu1 }
 0x234   : > { %1523 = vmatmul.mubr.bf16.gmra.mrb[44].mxu0 %v11268_v48  ;;  %v2073_v8 = vpack.c.bf16 %v10277_v6, %v10273_v42  ;;  %v10281_v13 = vpop.f32.mrb[47].mxu1  ;;  %v8860_v6 = vld [vmem:[#allocation4 + $0x5a4] ss:$8 sps:$4 sm:$0xff]  }
 0x235   : > { %1877 = vmatpush1.bf16.msra.mxu0 %v8740_v19  ;;  %1896 = vmatprep.mubr.bf16.mxu0 %v11269_v52  ;;  %v8868_v19 = vld [vmem:[#allocation2 + $0x110] sm:$0xff]   ;;  %v2074_v48 = vpack.c.bf16 %v10281_v13, %v10275_v43  ;;  %v10287_v52 = vpop.f32.mrb[48].mxu1  ;;  %v8858_v13 = vld [vmem:[#allocation4 + $0x5a0] ss:$8 sps:$4 sm:$0xff]  }
 0x236   : > { %1878 = vmatprep.subr.bf16.mxu0 %v8746_v12  ;;  %v8768_v12 = vld [vmem:[#allocation4 + $0x3e4] ss:$8 sps:$4 sm:$0xff]   ;;  %7849 = vmatmul.mubr.msk.bf16.gmra.mrb[104].mxu1 %vm398_vm0, %v8868_v19  ;;  %v8784_v19 = vld [vmem:[#allocation4 + $0x434] ss:$8 sps:$4 sm:$0xff]  }
 0x237   : > { %3672 = vmatprep.mubr.bf16.mxu1 %v9668_v0 }
 0x239   : > { %1879 = vmatpush1.bf16.msra.mxu0 %v8744_v51  ;;  %v8771_v51 = vld [vmem:[#allocation4 + $0x3f4] ss:$8 sps:$4 sm:$0xff]  }
 0x23a   : > { %1880 = vmatprep.subr.bf16.mxu0 %v8749_v53  ;;  %v10289_v53 = vpop.f32.mrb[49].mxu1 }
 0x23d   : > { %1881 = vmatpush1.bf16.msra.mxu0 %v8747_v55  ;;  %v8769_v55 = vld [vmem:[#allocation4 + $0x3f0] ss:$8 sps:$4 sm:$0xff]  }
 0x23e   : > { %1882 = vmatprep.subr.bf16.mxu0 %v8752_v60  ;;  %v10291_v60 = vpop.f32.mrb[50].mxu1 }
 0x241   : > { %1883 = vmatpush1.bf16.msra.mxu0 %v8750_v3  ;;  %v8875_v3 = vld [vmem:[#allocation2 + $0x118] sm:$0xff]  }
 0x242   : > { %1884 = vmatprep.subr.bf16.mxu0 %v8756_v7  ;;  %v2471_v7 = vpack.c.bf16 %v10291_v60, %v10287_v52  ;;  %7850 = vmatmul.mubr.msk.bf16.gmra.mrb[108].mxu1 %vm398_vm0, %v8875_v3  ;;  %v8893_v52 = vld [vmem:[#allocation4 + $0x644] ss:$8 sps:$4 sm:$0xff]   ;;  %v8891_v60 = vld [vmem:[#allocation4 + $0x640] ss:$8 sps:$4 sm:$0xff]  }
 0x243   : > { %4057 = vmatprep.mubr.bf16.mxu1 %v9668_v0 }
 0x245   : > { %1885 = vmatpush1.bf16.msra.mxu0 %v8754_v24  ;;  %v10295_v24 = vpop.f32.mrb[51].mxu1 }
 0x246   : > { %1886 = vmatprep.subr.bf16.mxu0 %v8759_v14  ;;  %v2472_v14 = vpack.c.bf16 %v10295_v24, %v10289_v53 }
 0x249   : > { %1887 = vmatpush1.bf16.msra.mxu0 %v8757_v37  ;;  %v8772_v37 = vld [vmem:[#allocation4 + $0x400] ss:$8 sps:$4 sm:$0xff]  }
 0x24a   : > { %1888 = vmatprep.subr.bf16.mxu0 %v8762_v56  ;;  %v11270_v56 = vpack.c.bf16 %v10120_v54, %v10116_v46  ;;  %v8787_v46 = vld [vmem:[#allocation4 + $0x444] ss:$8 sps:$4 sm:$0xff]   ;;  %v8785_v54 = vld [vmem:[#allocation4 + $0x440] ss:$8 sps:$4 sm:$0xff]  }
 0x24d   : > { %1889 = vmatpush1.bf16.msra.mxu0 %v8760_v9  ;;  %v8775_v9 = vld [vmem:[#allocation4 + $0x410] ss:$8 sps:$4 sm:$0xff]  }
 0x24e   : > { %1890 = vmatprep.subr.bf16.mxu0 %v8765_v40  ;;  %v8780_v40 = vld [vmem:[#allocation4 + $0x424] ss:$8 sps:$4 sm:$0xff]  }
 0x251   : > { %1891 = vmatpush1.bf16.msra.mxu0 %v8763_v2  ;;  %v8778_v2 = vld [vmem:[#allocation4 + $0x420] ss:$8 sps:$4 sm:$0xff]  }
 0x252   : > { %1892 = vmatprep.subr.bf16.mxu0 %v8768_v12  ;;  %v8782_v12 = vld [vmem:[#allocation4 + $0x430] ss:$8 sps:$4 sm:$0xff]  }
 0x255   : > { %1893 = vmatpush1.bf16.msra.mxu0 %v8766_v50 }
 0x256   : > { %1894 = vmatprep.subr.bf16.mxu0 %v8771_v51  ;;  %v8809_v51 = vld [vmem:[#allocation4 + $0x4b0] ss:$8 sps:$4 sm:$0xff]  }
 0x259   : > { %1895 = vmatpush1.bf16.msra.mxu0 %v8769_v55 }
 0x25a   : > { %2268 = vmatprep.subr.bf16.mxu0 %v8774_v5  ;;  %v8814_v5 = vld [vmem:[#allocation4 + $0x4c4] ss:$8 sps:$4 sm:$0xff]  }
 0x25c   : > { %1897 = vmatmul.mubr.bf16.vlgmr.msra.gmra.mrb[32].mxu0 %v11270_v56  ;;  %v8817_v56 = vld [vmem:[#allocation4 + $0x4d4] ss:$8 sps:$4 sm:$0xff]  }
 0x25d   : > { %2269 = vmatpush1.bf16.msra.mxu0 %v8772_v37  ;;  %1906 = vmatprep.mubr.bf16.mxu0 %v1666_v45  ;;  %v8796_v45 = vld [vmem:[#allocation4 + $0x470] ss:$8 sps:$4 sm:$0xff]  }
 0x25e   : > { %2270 = vmatprep.subr.bf16.mxu0 %v8777_v62  ;;  %v8812_v62 = vld [vmem:[#allocation4 + $0x4c0] ss:$8 sps:$4 sm:$0xff]  }
 0x261   : > { %2271 = vmatpush1.bf16.msra.mxu0 %v8775_v9 }
 0x262   : > { %2272 = vmatprep.subr.bf16.mxu0 %v8780_v40 }
 0x264   : > { %1907 = vmatmul.mubr.bf16.gmra.mrb[36].mxu0 %v1665_v38  ;;  %v8798_v38 = vld [vmem:[#allocation4 + $0x474] ss:$8 sps:$4 sm:$0xff]  }
 0x265   : > { %2273 = vmatpush1.bf16.msra.mxu0 %v8778_v2  ;;  %1916 = vmatprep.mubr.bf16.mxu0 %v1668_v17 }
 0x266   : > { %2274 = vmatprep.subr.bf16.mxu0 %v8784_v19  ;;  %v8815_v19 = vld [vmem:[#allocation4 + $0x4d0] ss:$8 sps:$4 sm:$0xff]  }
 0x269   : > { %2275 = vmatpush1.bf16.msra.mxu0 %v8782_v12 }
 0x26a   : > { %2276 = vmatprep.subr.bf16.mxu0 %v8787_v46 }
 0x26c   : > { %1917 = vmatmul.mubr.bf16.gmra.mrb[40].mxu0 %v1667_v23  ;;  %v10325_v23 = vpop.f32.mrb[52].mxu1 }
 0x26d   : > { %2277 = vmatpush1.bf16.msra.mxu0 %v8785_v54  ;;  %1926 = vmatprep.mubr.bf16.mxu0 %v1670_v25  ;;  %v10327_v44 = vpop.f32.mrb[53].mxu1  ;;  %v8806_v25 = vld [vmem:[#allocation4 + $0x4a0] ss:$8 sps:$4 sm:$0xff]   ;;  %v8820_v54 = vld [vmem:[#allocation4 + $0x4e4] ss:$8 sps:$4 sm:$0xff]  }
 0x26e   : > { %2278 = vmatprep.subr.bf16.mxu0 %v8791_v34  ;;  %v10329_v17 = vpop.f32.mrb[54].mxu1 }
 0x26f   : > { %v2473_v22 = vpack.c.bf16 %v10329_v17, %v10325_v23  ;;  %v10333_v26 = vpop.f32.mrb[55].mxu1  ;;  %v8899_v23 = vld [vmem:[#allocation4 + $0x664] ss:$8 sps:$4 sm:$0xff]   ;;  %v8897_v17 = vld [vmem:[#allocation4 + $0x660] ss:$8 sps:$4 sm:$0xff]  }
 0x270   : > { %v2474_v11 = vpack.c.bf16 %v10333_v26, %v10327_v44  ;;  %v8894_v44 = vld [vmem:[#allocation4 + $0x650] ss:$8 sps:$4 sm:$0xff]  }
 0x271   : > { %2279 = vmatpush1.bf16.msra.mxu0 %v8789_v39  ;;  %v10337_v33 = vpop.f32.mrb[56].mxu1  ;;  %v8818_v39 = vld [vmem:[#allocation4 + $0x4e0] ss:$8 sps:$4 sm:$0xff]   ;;  %v8900_v26 = vld [vmem:[#allocation4 + $0x670] ss:$8 sps:$4 sm:$0xff]  }
 0x272   : > { %2280 = vmatprep.subr.bf16.mxu0 %v8794_v35  ;;  %v8823_v35 = vld [vmem:[#allocation4 + $0x4f4] ss:$8 sps:$4 sm:$0xff]  }
 0x274   : > { %1927 = vmatmul.mubr.bf16.gmra.mrb[44].mxu0 %v1669_v10  ;;  %v8808_v10 = vld [vmem:[#allocation4 + $0x4a4] ss:$8 sps:$4 sm:$0xff]  }
 0x275   : > { %2281 = vmatpush1.bf16.msra.mxu0 %v8792_v36  ;;  %2300 = vmatprep.mubr.bf16.mxu0 %v2068_v16  ;;  %v10339_v16 = vpop.f32.mrb[57].mxu1 }
 0x276   : > { %2282 = vmatprep.subr.bf16.mxu0 %v8798_v38  ;;  %v10341_v50 = vpop.f32.mrb[58].mxu1 }
 0x277   : > { %v2475_v55 = vpack.c.bf16 %v10341_v50, %v10337_v33  ;;  %v10345_v3 = vpop.f32.mrb[59].mxu1  ;;  %v8903_v33 = vld [vmem:[#allocation4 + $0x680] ss:$8 sps:$4 sm:$0xff]   ;;  %v8908_v50 = vld [vmem:[#allocation4 + $0x694] ss:$8 sps:$4 sm:$0xff]  }
 0x278   : > { %v2476_v37 = vpack.c.bf16 %v10345_v3, %v10339_v16 }
 0x279   : > { %2283 = vmatpush1.bf16.msra.mxu0 %v8796_v45  ;;  %v10349_v9 = vpop.f32.mrb[60].mxu1  ;;  %v8821_v45 = vld [vmem:[#allocation4 + $0x4f0] ss:$8 sps:$4 sm:$0xff]  }
 0x27a   : > { %2284 = vmatprep.subr.bf16.mxu0 %v8801_v57  ;;  %v10351_v40 = vpop.f32.mrb[61].mxu1 }
 0x27b   : > { %v10353_v2 = vpop.f32.mrb[62].mxu1 }
 0x27c   : > { %v2477_v12 = vpack.c.bf16 %v10353_v2, %v10349_v9  ;;  %v10357_v46 = vpop.f32.mrb[63].mxu1 }
 0x27d   : > { %2285 = vmatpush1.bf16.msra.mxu0 %v8799_v4  ;;  %v2478_v34 = vpack.c.bf16 %v10357_v46, %v10351_v40  ;;  %v8826_v4 = vld [vmem:[#allocation4 + $0x504] ss:$8 sps:$4 sm:$0xff]   ;;  %v8906_v40 = vld [vmem:[#allocation4 + $0x690] ss:$8 sps:$4 sm:$0xff]   ;;  %v8909_v46 = vld [vmem:[#allocation4 + $0x6a0] ss:$8 sps:$4 sm:$0xff]  }
 0x27e   : > { %2286 = vmatprep.subr.bf16.mxu0 %v8804_v1 }
 0x281   : > { %2287 = vmatpush1.bf16.msra.mxu0 %v8802_v18  ;;  %v10361_v36 = vpop.f32.mrb[64].mxu1 }
 0x282   : > { %2288 = vmatprep.subr.bf16.mxu0 %v8808_v10  ;;  %v10363_v38 = vpop.f32.mrb[65].mxu1 }
 0x283   : > { %v10365_v57 = vpop.f32.mrb[66].mxu1 }
 0x284   : > { %v2875_v1 = vpack.c.bf16 %v10365_v57, %v10361_v36  ;;  %v10369_v18 = vpop.f32.mrb[67].mxu1  ;;  %v8933_v36 = vld [vmem:[#allocation4 + $0x720] ss:$8 sps:$4 sm:$0xff]   ;;  %v8938_v57 = vld [vmem:[#allocation4 + $0x734] ss:$8 sps:$4 sm:$0xff]  }
 0x285   : > { %2289 = vmatpush1.bf16.msra.mxu0 %v8806_v25  ;;  %v2876_v10 = vpack.c.bf16 %v10369_v18, %v10363_v38  ;;  %v8824_v25 = vld [vmem:[#allocation4 + $0x500] ss:$8 sps:$4 sm:$0xff]   ;;  %v8914_v38 = vld [vmem:[#allocation4 + $0x6b4] ss:$8 sps:$4 sm:$0xff]  }
 0x286   : > { %2290 = vmatprep.subr.bf16.mxu0 %v8811_v29  ;;  %v8829_v29 = vld [vmem:[#allocation4 + $0x514] ss:$8 sps:$4 sm:$0xff]  }
 0x289   : > { %2291 = vmatpush1.bf16.msra.mxu0 %v8809_v51  ;;  %v8827_v51 = vld [vmem:[#allocation4 + $0x510] ss:$8 sps:$4 sm:$0xff]   ;;  %v10397_v31 = vpop.f32.mrb[68].mxu1 }
 0x28a   : > { %2292 = vmatprep.subr.bf16.mxu0 %v8814_v5  ;;  %v8832_v5 = vld [vmem:[#allocation4 + $0x524] ss:$8 sps:$4 sm:$0xff]  }
 0x28d   : > { %2293 = vmatpush1.bf16.msra.mxu0 %v8812_v62  ;;  %v8830_v62 = vld [vmem:[#allocation4 + $0x520] ss:$8 sps:$4 sm:$0xff]  }
 0x28e   : > { %2294 = vmatprep.subr.bf16.mxu0 %v8817_v56  ;;  %v8836_v56 = vld [vmem:[#allocation4 + $0x534] ss:$8 sps:$4 sm:$0xff]  }
 0x291   : > { %2295 = vmatpush1.bf16.msra.mxu0 %v8815_v19  ;;  %v8834_v19 = vld [vmem:[#allocation4 + $0x530] ss:$8 sps:$4 sm:$0xff]  }
 0x292   : > { %2296 = vmatprep.subr.bf16.mxu0 %v8820_v54  ;;  %v8862_v54 = vld [vmem:[#allocation4 + $0x5b0] ss:$8 sps:$4 sm:$0xff]  }
 0x295   : > { %2297 = vmatpush1.bf16.msra.mxu0 %v8818_v39 }
 0x296   : > { %2298 = vmatprep.subr.bf16.mxu0 %v8823_v35 }
 0x299   : > { %2299 = vmatpush1.bf16.msra.mxu0 %v8821_v45  ;;  %v8867_v45 = vld [vmem:[#allocation4 + $0x5c4] ss:$8 sps:$4 sm:$0xff]  }
 0x29a   : > { %2672 = vmatprep.subr.bf16.mxu0 %v8826_v4 }
 0x29c   : > { %2301 = vmatmul.mubr.bf16.vlgmr.msra.gmra.mrb[32].mxu0 %v2067_v32  ;;  %v8843_v32 = vld [vmem:[#allocation4 + $0x554] ss:$8 sps:$4 sm:$0xff]  }
 0x29d   : > { %2673 = vmatpush1.bf16.msra.mxu0 %v8824_v25  ;;  %2310 = vmatprep.mubr.bf16.mxu0 %v2070_v21  ;;  %v8853_v21 = vld [vmem:[#allocation4 + $0x584] ss:$8 sps:$4 sm:$0xff]   ;;  %v8865_v25 = vld [vmem:[#allocation4 + $0x5c0] ss:$8 sps:$4 sm:$0xff]  }
 0x29e   : > { %2674 = vmatprep.subr.bf16.mxu0 %v8829_v29  ;;  %v8871_v29 = vld [vmem:[#allocation4 + $0x5d4] ss:$8 sps:$4 sm:$0xff]  }
 0x2a1   : > { %2675 = vmatpush1.bf16.msra.mxu0 %v8827_v51 }
 0x2a2   : > { %2676 = vmatprep.subr.bf16.mxu0 %v8832_v5 }
 0x2a4   : > { %2311 = vmatmul.mubr.bf16.gmra.mrb[36].mxu0 %v2069_v49  ;;  %v8850_v49 = vld [vmem:[#allocation4 + $0x574] ss:$8 sps:$4 sm:$0xff]  }
 0x2a5   : > { %2677 = vmatpush1.bf16.msra.mxu0 %v8830_v62  ;;  %2320 = vmatprep.mubr.bf16.mxu0 %v2072_v20  ;;  %v8855_v20 = vld [vmem:[#allocation4 + $0x590] ss:$8 sps:$4 sm:$0xff]  }
 0x2a6   : > { %2678 = vmatprep.subr.bf16.mxu0 %v8836_v56  ;;  %v8869_v56 = vld [vmem:[#allocation4 + $0x5d0] ss:$8 sps:$4 sm:$0xff]  }
 0x2a9   : > { %2679 = vmatpush1.bf16.msra.mxu0 %v8834_v19 }
 0x2aa   : > { %2680 = vmatprep.subr.bf16.mxu0 %v8839_v27 }
 0x2ac   : > { %2321 = vmatmul.mubr.bf16.gmra.mrb[40].mxu0 %v2071_v41  ;;  %v10399_v41 = vpop.f32.mrb[69].mxu1 }
 0x2ad   : > { %2681 = vmatpush1.bf16.msra.mxu0 %v8837_v30  ;;  %2330 = vmatprep.mubr.bf16.mxu0 %v2074_v48  ;;  %v10401_v47 = vpop.f32.mrb[70].mxu1  ;;  %v8864_v48 = vld [vmem:[#allocation4 + $0x5b4] ss:$8 sps:$4 sm:$0xff]   ;;  %v8874_v30 = vld [vmem:[#allocation4 + $0x5e4] ss:$8 sps:$4 sm:$0xff]  }
 0x2ae   : > { %2682 = vmatprep.subr.bf16.mxu0 %v8843_v32  ;;  %v2877_v42 = vpack.c.bf16 %v10401_v47, %v10397_v31  ;;  %v10405_v43 = vpop.f32.mrb[71].mxu1  ;;  %v8939_v31 = vld [vmem:[#allocation4 + $0x740] ss:$8 sps:$4 sm:$0xff]   ;;  %v8944_v47 = vld [vmem:[#allocation4 + $0x754] ss:$8 sps:$4 sm:$0xff]  }
 0x2af   : > { %v10409_v53 = vpop.f32.mrb[72].mxu1 }
 0x2b0   : > { %v10411_v24 = vpop.f32.mrb[73].mxu1 }
 0x2b1   : > { %2683 = vmatpush1.bf16.msra.mxu0 %v8841_v58  ;;  %v8872_v58 = vld [vmem:[#allocation4 + $0x5e0] ss:$8 sps:$4 sm:$0xff]  }
 0x2b2   : > { %2684 = vmatprep.subr.bf16.mxu0 %v8846_v63  ;;  %v8878_v63 = vld [vmem:[#allocation4 + $0x5f4] ss:$8 sps:$4 sm:$0xff]  }
 0x2b4   : > { %2331 = vmatmul.mubr.bf16.gmra.mrb[44].mxu0 %v2073_v8  ;;  %v2878_v8 = vpack.c.bf16 %v10405_v43, %v10399_v41  ;;  %v8936_v43 = vld [vmem:[#allocation4 + $0x730] ss:$8 sps:$4 sm:$0xff]  }
 0x2b5   : > { %2685 = vmatpush1.bf16.msra.mxu0 %v8844_v61  ;;  %2704 = vmatprep.mubr.bf16.mxu0 %v2472_v14  ;;  %v10413_v14 = vpop.f32.mrb[74].mxu1 }
 0x2b6   : > { %2686 = vmatprep.subr.bf16.mxu0 %v8850_v49  ;;  %v2879_v39 = vpack.c.bf16 %v10413_v14, %v10409_v53  ;;  %v10417_v35 = vpop.f32.mrb[75].mxu1  ;;  %v8945_v53 = vld [vmem:[#allocation4 + $0x760] ss:$8 sps:$4 sm:$0xff]   ;;  %v8950_v14 = vld [vmem:[#allocation4 + $0x774] ss:$8 sps:$4 sm:$0xff]  }
 0x2b7   : > { %v2880_v4 = vpack.c.bf16 %v10417_v35, %v10411_v24  ;;  %v10421_v51 = vpop.f32.mrb[76].mxu1  ;;  %v8942_v35 = vld [vmem:[#allocation4 + $0x750] ss:$8 sps:$4 sm:$0xff]  }
 0x2b8   : > { %v10423_v5 = vpop.f32.mrb[77].mxu1 }
 0x2b9   : > { %2687 = vmatpush1.bf16.msra.mxu0 %v8848_v59  ;;  %v10425_v62 = vpop.f32.mrb[78].mxu1  ;;  %v8876_v59 = vld [vmem:[#allocation4 + $0x5f0] ss:$8 sps:$4 sm:$0xff]  }
 0x2ba   : > { %2688 = vmatprep.subr.bf16.mxu0 %v8853_v21  ;;  %v2881_v19 = vpack.c.bf16 %v10425_v62, %v10421_v51  ;;  %v10429_v27 = vpop.f32.mrb[79].mxu1  ;;  %v8962_v51 = vld [vmem:[#allocation4 + $0x7b4] ss:$8 sps:$4 sm:$0xff]   ;;  %v8960_v62 = vld [vmem:[#allocation4 + $0x7b0] ss:$8 sps:$4 sm:$0xff]  }
 0x2bb   : > { %v2882_v32 = vpack.c.bf16 %v10429_v27, %v10423_v5  ;;  %v8953_v5 = vld [vmem:[#allocation4 + $0x784] ss:$8 sps:$4 sm:$0xff]   ;;  %v8951_v27 = vld [vmem:[#allocation4 + $0x780] ss:$8 sps:$4 sm:$0xff]  }
 0x2bd   : > { %2689 = vmatpush1.bf16.msra.mxu0 %v8851_v15  ;;  %v8881_v15 = vld [vmem:[#allocation4 + $0x604] ss:$8 sps:$4 sm:$0xff]  }
 0x2be   : > { %2690 = vmatprep.subr.bf16.mxu0 %v8857_v28 }
 0x2c1   : > { %2691 = vmatpush1.bf16.msra.mxu0 %v8855_v20 }
 0x2c2   : > { %2692 = vmatprep.subr.bf16.mxu0 %v8860_v6 }
 0x2c5   : > { %2693 = vmatpush1.bf16.msra.mxu0 %v8858_v13  ;;  %v8879_v13 = vld [vmem:[#allocation4 + $0x600] ss:$8 sps:$4 sm:$0xff]  }
 0x2c6   : > { %2694 = vmatprep.subr.bf16.mxu0 %v8864_v48  ;;  %v8884_v48 = vld [vmem:[#allocation4 + $0x614] ss:$8 sps:$4 sm:$0xff]  }
 0x2c9   : > { %2695 = vmatpush1.bf16.msra.mxu0 %v8862_v54  ;;  %v10433_v61 = vpop.f32.mrb[80].mxu1  ;;  %v8882_v54 = vld [vmem:[#allocation4 + $0x610] ss:$8 sps:$4 sm:$0xff]  }
 0x2ca   : > { %2696 = vmatprep.subr.bf16.mxu0 %v8867_v45  ;;  %v10435_v49 = vpop.f32.mrb[81].mxu1  ;;  %v8887_v45 = vld [vmem:[#allocation4 + $0x624] ss:$8 sps:$4 sm:$0xff]  }
 0x2cb   : > { %v10437_v21 = vpop.f32.mrb[82].mxu1 }
 0x2cc   : > { %v3279_v28 = vpack.c.bf16 %v10437_v21, %v10433_v61  ;;  %v10441_v20 = vpop.f32.mrb[83].mxu1  ;;  %v8989_v61 = vld [vmem:[#allocation4 + $0x844] ss:$8 sps:$4 sm:$0xff]   ;;  %v8987_v21 = vld [vmem:[#allocation4 + $0x840] ss:$8 sps:$4 sm:$0xff]  }
 0x2cd   : > { %2697 = vmatpush1.bf16.msra.mxu0 %v8865_v25  ;;  %v3280_v6 = vpack.c.bf16 %v10441_v20, %v10435_v49  ;;  %v8885_v25 = vld [vmem:[#allocation4 + $0x620] ss:$8 sps:$4 sm:$0xff]   ;;  %v8968_v20 = vld [vmem:[#allocation4 + $0x7d4] ss:$8 sps:$4 sm:$0xff]  }
 0x2ce   : > { %2698 = vmatprep.subr.bf16.mxu0 %v8871_v29  ;;  %v8890_v29 = vld [vmem:[#allocation4 + $0x634] ss:$8 sps:$4 sm:$0xff]   ;;  %v8963_v49 = vld [vmem:[#allocation4 + $0x7c0] ss:$8 sps:$4 sm:$0xff]  }
 0x2d1   : > { %2699 = vmatpush1.bf16.msra.mxu0 %v8869_v56  ;;  %v8888_v56 = vld [vmem:[#allocation4 + $0x630] ss:$8 sps:$4 sm:$0xff]  }
 0x2d2   : > { %2700 = vmatprep.subr.bf16.mxu0 %v8874_v30 }
 0x2d5   : > { %2701 = vmatpush1.bf16.msra.mxu0 %v8872_v58 }
 0x2d6   : > { %2702 = vmatprep.subr.bf16.mxu0 %v8878_v63  ;;  %v8912_v63 = vld [vmem:[#allocation4 + $0x6b0] ss:$8 sps:$4 sm:$0xff]  }
 0x2d9   : > { %2703 = vmatpush1.bf16.msra.mxu0 %v8876_v59 }
 0x2da   : > { %3076 = vmatprep.subr.bf16.mxu0 %v8881_v15  ;;  %v8917_v15 = vld [vmem:[#allocation4 + $0x6c4] ss:$8 sps:$4 sm:$0xff]  }
 0x2dc   : > { %2705 = vmatmul.mubr.bf16.vlgmr.msra.gmra.mrb[32].mxu0 %v2471_v7  ;;  %v8896_v7 = vld [vmem:[#allocation4 + $0x654] ss:$8 sps:$4 sm:$0xff]  }
 0x2dd   : > { %3077 = vmatpush1.bf16.msra.mxu0 %v8879_v13  ;;  %2714 = vmatprep.mubr.bf16.mxu0 %v2474_v11  ;;  %v8905_v11 = vld [vmem:[#allocation4 + $0x684] ss:$8 sps:$4 sm:$0xff]   ;;  %v8915_v13 = vld [vmem:[#allocation4 + $0x6c0] ss:$8 sps:$4 sm:$0xff]  }
 0x2de   : > { %3078 = vmatprep.subr.bf16.mxu0 %v8884_v48  ;;  %v10469_v16 = vpop.f32.mrb[84].mxu1 }
 0x2e1   : > { %3079 = vmatpush1.bf16.msra.mxu0 %v8882_v54  ;;  %v8920_v54 = vld [vmem:[#allocation4 + $0x6d4] ss:$8 sps:$4 sm:$0xff]  }
 0x2e2   : > { %3080 = vmatprep.subr.bf16.mxu0 %v8887_v45 }
 0x2e4   : > { %2715 = vmatmul.mubr.bf16.gmra.mrb[36].mxu0 %v2473_v22  ;;  %v8902_v22 = vld [vmem:[#allocation4 + $0x674] ss:$8 sps:$4 sm:$0xff]  }
 0x2e5   : > { %3081 = vmatpush1.bf16.msra.mxu0 %v8885_v25  ;;  %2724 = vmatprep.mubr.bf16.mxu0 %v2476_v37 }
 0x2e6   : > { %3082 = vmatprep.subr.bf16.mxu0 %v8890_v29 }
 0x2e9   : > { %3083 = vmatpush1.bf16.msra.mxu0 %v8888_v56 }
 0x2ea   : > { %3084 = vmatprep.subr.bf16.mxu0 %v8893_v52  ;;  %v8918_v52 = vld [vmem:[#allocation4 + $0x6d0] ss:$8 sps:$4 sm:$0xff]  }
 0x2ec   : > { %2725 = vmatmul.mubr.bf16.gmra.mrb[40].mxu0 %v2475_v55  ;;  %v10471_v55 = vpop.f32.mrb[85].mxu1 }
 0x2ed   : > { %3085 = vmatpush1.bf16.msra.mxu0 %v8891_v60  ;;  %2734 = vmatprep.mubr.bf16.mxu0 %v2478_v34  ;;  %v10473_v3 = vpop.f32.mrb[86].mxu1 }
 0x2ee   : > { %3086 = vmatprep.subr.bf16.mxu0 %v8896_v7  ;;  %v3281_v37 = vpack.c.bf16 %v10473_v3, %v10469_v16  ;;  %v10477_v9 = vpop.f32.mrb[87].mxu1  ;;  %v8923_v7 = vld [vmem:[#allocation4 + $0x6e4] ss:$8 sps:$4 sm:$0xff]   ;;  %v8993_v3 = vld [vmem:[#allocation4 + $0x860] ss:$8 sps:$4 sm:$0xff]  }
 0x2ef   : > { %v3282_v2 = vpack.c.bf16 %v10477_v9, %v10471_v55  ;;  %v10481_v34 = vpop.f32.mrb[88].mxu1  ;;  %v8990_v55 = vld [vmem:[#allocation4 + $0x850] ss:$8 sps:$4 sm:$0xff]   ;;  %v8995_v16 = vld [vmem:[#allocation4 + $0x864] ss:$8 sps:$4 sm:$0xff]  }
 0x2f0   : > { %v10483_v18 = vpop.f32.mrb[89].mxu1  ;;  %v8996_v9 = vld [vmem:[#allocation4 + $0x870] ss:$8 sps:$4 sm:$0xff]  }
 0x2f1   : > { %3087 = vmatpush1.bf16.msra.mxu0 %v8894_v44  ;;  %v8921_v44 = vld [vmem:[#allocation4 + $0x6e0] ss:$8 sps:$4 sm:$0xff]  }
 0x2f2   : > { %3088 = vmatprep.subr.bf16.mxu0 %v8899_v23  ;;  %v8926_v23 = vld [vmem:[#allocation4 + $0x6f4] ss:$8 sps:$4 sm:$0xff]  }
 0x2f4   : > { %2735 = vmatmul.mubr.bf16.gmra.mrb[44].mxu0 %v2477_v12  ;;  %v8911_v12 = vld [vmem:[#allocation4 + $0x6a4] ss:$8 sps:$4 sm:$0xff]  }
 0x2f5   : > { %3089 = vmatpush1.bf16.msra.mxu0 %v8897_v17  ;;  %3108 = vmatprep.mubr.bf16.mxu0 %v2876_v10  ;;  %v10485_v10 = vpop.f32.mrb[90].mxu1 }
 0x2f6   : > { %3090 = vmatprep.subr.bf16.mxu0 %v8902_v22  ;;  %v3283_v30 = vpack.c.bf16 %v10485_v10, %v10481_v34  ;;  %v10489_v58 = vpop.f32.mrb[91].mxu1  ;;  %v8999_v34 = vld [vmem:[#allocation4 + $0x880] ss:$8 sps:$4 sm:$0xff]   ;;  %v9002_v10 = vld [vmem:[#allocation4 + $0x890] ss:$8 sps:$4 sm:$0xff]  }
 0x2f7   : > { %v3284_v59 = vpack.c.bf16 %v10489_v58, %v10483_v18  ;;  %v10493_v48 = vpop.f32.mrb[92].mxu1  ;;  %v9004_v18 = vld [vmem:[#allocation4 + $0x894] ss:$8 sps:$4 sm:$0xff]   ;;  %v9005_v58 = vld [vmem:[#allocation4 + $0x8a0] ss:$8 sps:$4 sm:$0xff]  }
 0x2f8   : > { %v10495_v45 = vpop.f32.mrb[93].mxu1 }
 0x2f9   : > { %3091 = vmatpush1.bf16.msra.mxu0 %v8900_v26  ;;  %v10497_v25 = vpop.f32.mrb[94].mxu1 }
 0x2fa   : > { %3092 = vmatprep.subr.bf16.mxu0 %v8905_v11  ;;  %v3285_v29 = vpack.c.bf16 %v10497_v25, %v10493_v48  ;;  %v10501_v56 = vpop.f32.mrb[95].mxu1  ;;  %v8924_v11 = vld [vmem:[#allocation4 + $0x6f0] ss:$8 sps:$4 sm:$0xff]   ;;  %v9011_v25 = vld [vmem:[#allocation4 + $0x8c0] ss:$8 sps:$4 sm:$0xff]  }
 0x2fb   : > { %v3286_v60 = vpack.c.bf16 %v10501_v56, %v10495_v45  ;;  %v10505_v17 = vpop.f32.mrb[96].mxu1  ;;  %v9008_v48 = vld [vmem:[#allocation4 + $0x8b0] ss:$8 sps:$4 sm:$0xff]   ;;  %v9013_v45 = vld [vmem:[#allocation4 + $0x8c4] ss:$8 sps:$4 sm:$0xff]  }
 0x2fc   : > { %v10507_v22 = vpop.f32.mrb[97].mxu1  ;;  %v9014_v56 = vld [vmem:[#allocation4 + $0x8d0] ss:$8 sps:$4 sm:$0xff]  }
 0x2fd   : > { %3093 = vmatpush1.bf16.msra.mxu0 %v8903_v33  ;;  %v10509_v26 = vpop.f32.mrb[98].mxu1 }
 0x2fe   : > { %3094 = vmatprep.subr.bf16.mxu0 %v8908_v50  ;;  %v3683_v33 = vpack.c.bf16 %v10509_v26, %v10505_v17  ;;  %v10513_v50 = vpop.f32.mrb[99].mxu1  ;;  %v9032_v17 = vld [vmem:[#allocation7 + $0x130] ss:$8 sps:$4 sm:$0xff]   ;;  %v9037_v26 = vld [vmem:[#allocation7 + $0x144] ss:$8 sps:$4 sm:$0xff]  }
 0x301   : > { %3095 = vmatpush1.bf16.msra.mxu0 %v8906_v40  ;;  %v8929_v40 = vld [vmem:[#allocation4 + $0x704] ss:$8 sps:$4 sm:$0xff]  }
 0x302   : > { %3096 = vmatprep.subr.bf16.mxu0 %v8911_v12  ;;  %v3684_v12 = vpack.c.bf16 %v10513_v50, %v10507_v22  ;;  %v9017_v22 = vld [vmem:[#allocation4 + $0x8e0] ss:$8 sps:$4 sm:$0xff]   ;;  %v9022_v50 = vld [vmem:[#allocation4 + $0x8f4] ss:$8 sps:$4 sm:$0xff]  }
 0x305   : > { %3097 = vmatpush1.bf16.msra.mxu0 %v8909_v46  ;;  %v8927_v46 = vld [vmem:[#allocation4 + $0x700] ss:$8 sps:$4 sm:$0xff]  }
 0x306   : > { %3098 = vmatprep.subr.bf16.mxu0 %v8914_v38  ;;  %v8932_v38 = vld [vmem:[#allocation4 + $0x714] ss:$8 sps:$4 sm:$0xff]  }
 0x309   : > { %3099 = vmatpush1.bf16.msra.mxu0 %v8912_v63  ;;  %v10517_v63 = vpop.f32.mrb[100].mxu1 }
 0x30a   : > { %3100 = vmatprep.subr.bf16.mxu0 %v8917_v15  ;;  %v10519_v15 = vpop.f32.mrb[101].mxu1 }
 0x30d   : > { %3101 = vmatpush1.bf16.msra.mxu0 %v8915_v13  ;;  %v10524_v13 = vpop.f32.mrb[102].mxu1 }
 0x30e   : > { %3102 = vmatprep.subr.bf16.mxu0 %v8920_v54  ;;  %v8930_v54 = vld [vmem:[#allocation4 + $0x710] ss:$8 sps:$4 sm:$0xff]  }
 0x311   : > { %3103 = vmatpush1.bf16.msra.mxu0 %v8918_v52  ;;  %v3685_v52 = vpack.c.bf16 %v10524_v13, %v10517_v63  ;;  %v9038_v63 = vld [vmem:[#allocation7 + $0x150] ss:$8 sps:$4 sm:$0xff]   ;;  %v9043_v13 = vld [vmem:[#allocation7 + $0x164] ss:$8 sps:$4 sm:$0xff]  }
 0x312   : > { %3104 = vmatprep.subr.bf16.mxu0 %v8923_v7  ;;  %v10531_v7 = vpop.f32.mrb[103].mxu1 }
 0x315   : > { %3105 = vmatpush1.bf16.msra.mxu0 %v8921_v44  ;;  %v8935_v44 = vld [vmem:[#allocation4 + $0x724] ss:$8 sps:$4 sm:$0xff]  }
 0x316   : > { %3106 = vmatprep.subr.bf16.mxu0 %v8926_v23  ;;  %v3686_v23 = vpack.c.bf16 %v10531_v7, %v10519_v15  ;;  %v9040_v15 = vld [vmem:[#allocation7 + $0x154] ss:$8 sps:$4 sm:$0xff]  }
 0x317   : > { %v9046_v7 = vld [vmem:[#allocation7 + $0x174] ss:$8 sps:$4 sm:$0xff]  }
 0x319   : > { %3107 = vmatpush1.bf16.msra.mxu0 %v8924_v11 }
 0x31a   : > { %3480 = vmatprep.subr.bf16.mxu0 %v8929_v40 }
 0x31c   : > { %3109 = vmatmul.mubr.bf16.vlgmr.msra.gmra.mrb[32].mxu0 %v2875_v1  ;;  %v10535_v1 = vpop.f32.mrb[104].mxu1 }
 0x31d   : > { %3481 = vmatpush1.bf16.msra.mxu0 %v8927_v46  ;;  %3118 = vmatprep.mubr.bf16.mxu0 %v2878_v8  ;;  %v10537_v11 = vpop.f32.mrb[105].mxu1  ;;  %v8941_v46 = vld [vmem:[#allocation4 + $0x744] ss:$8 sps:$4 sm:$0xff]  }
 0x31e   : > { %3482 = vmatprep.subr.bf16.mxu0 %v8932_v38  ;;  %v10542_v41 = vpop.f32.mrb[106].mxu1 }
 0x31f   : > { %v3687_v8 = vpack.c.bf16 %v10542_v41, %v10535_v1  ;;  %v10549_v40 = vpop.f32.mrb[107].mxu1  ;;  %v9049_v1 = vld [vmem:[#allocation7 + $0x184] ss:$8 sps:$4 sm:$0xff]   ;;  %v9052_v41 = vld [vmem:[#allocation7 + $0x194] ss:$8 sps:$4 sm:$0xff]  }
 0x320   : > { %v3688_v38 = vpack.c.bf16 %v10549_v40, %v10537_v11  ;;  %v9047_v11 = vld [vmem:[#allocation7 + $0x180] ss:$8 sps:$4 sm:$0xff]   ;;  %v9055_v40 = vld [vmem:[#allocation7 + $0x1a4] ss:$8 sps:$4 sm:$0xff]  }
 0x321   : > { %3483 = vmatpush1.bf16.msra.mxu0 %v8930_v54 }
 0x322   : > { %3484 = vmatprep.subr.bf16.mxu0 %v8935_v44 }
 0x324   : > { %3119 = vmatmul.mubr.bf16.gmra.mrb[36].mxu0 %v2877_v42  ;;  %v10553_v42 = vpop.f32.mrb[108].mxu1 }
 0x325   : > { %3485 = vmatpush1.bf16.msra.mxu0 %v8933_v36  ;;  %3128 = vmatprep.mubr.bf16.mxu0 %v2880_v4  ;;  %v10555_v54 = vpop.f32.mrb[109].mxu1  ;;  %v8947_v36 = vld [vmem:[#allocation4 + $0x764] ss:$8 sps:$4 sm:$0xff]  }
 0x326   : > { %3486 = vmatprep.subr.bf16.mxu0 %v8938_v57  ;;  %v10560_v24 = vpop.f32.mrb[110].mxu1 }
 0x327   : > { %v3689_v4 = vpack.c.bf16 %v10560_v24, %v10553_v42  ;;  %v10567_v44 = vpop.f32.mrb[111].mxu1  ;;  %v9061_v42 = vld [vmem:[#allocation7 + $0x1c4] ss:$8 sps:$4 sm:$0xff]   ;;  %v9059_v24 = vld [vmem:[#allocation7 + $0x1c0] ss:$8 sps:$4 sm:$0xff]  }
 0x328   : > { %v3690_v57 = vpack.c.bf16 %v10567_v44, %v10555_v54  ;;  %v9058_v54 = vld [vmem:[#allocation7 + $0x1b4] ss:$8 sps:$4 sm:$0xff]   ;;  %v9056_v44 = vld [vmem:[#allocation7 + $0x1b0] ss:$8 sps:$4 sm:$0xff]  }
 0x329   : > { %3487 = vmatpush1.bf16.msra.mxu0 %v8936_v43  ;;  %v8954_v43 = vld [vmem:[#allocation4 + $0x790] ss:$8 sps:$4 sm:$0xff]  }
 0x32a   : > { %3488 = vmatprep.subr.bf16.mxu0 %v8941_v46  ;;  %v8959_v46 = vld [vmem:[#allocation4 + $0x7a4] ss:$8 sps:$4 sm:$0xff]  }
 0x32c   : > { %3129 = vmatmul.mubr.bf16.gmra.mrb[40].mxu0 %v2879_v39  ;;  %v8948_v39 = vld [vmem:[#allocation4 + $0x770] ss:$8 sps:$4 sm:$0xff]  }
 0x32d   : > { %3489 = vmatpush1.bf16.msra.mxu0 %v8939_v31  ;;  %3138 = vmatprep.mubr.bf16.mxu0 %v2882_v32  ;;  %v8956_v32 = vld [vmem:[#allocation4 + $0x794] ss:$8 sps:$4 sm:$0xff]   ;;  %v8957_v31 = vld [vmem:[#allocation4 + $0x7a0] ss:$8 sps:$4 sm:$0xff]  }
 0x32e   : > { %3490 = vmatprep.subr.bf16.mxu0 %v8944_v47  ;;  %v8971_v47 = vld [vmem:[#allocation4 + $0x7e4] ss:$8 sps:$4 sm:$0xff]  }
 0x331   : > { %3491 = vmatpush1.bf16.msra.mxu0 %v8942_v35  ;;  %v8969_v35 = vld [vmem:[#allocation4 + $0x7e0] ss:$8 sps:$4 sm:$0xff]  }
 0x332   : > { %3492 = vmatprep.subr.bf16.mxu0 %v8947_v36  ;;  %v8974_v36 = vld [vmem:[#allocation4 + $0x7f4] ss:$8 sps:$4 sm:$0xff]  }
 0x334   : > { %3139 = vmatmul.mubr.bf16.gmra.mrb[44].mxu0 %v2881_v19  ;;  %v8965_v19 = vld [vmem:[#allocation4 + $0x7c4] ss:$8 sps:$4 sm:$0xff]  }
 0x335   : > { %3493 = vmatpush1.bf16.msra.mxu0 %v8945_v53  ;;  %3512 = vmatprep.mubr.bf16.mxu0 %v3280_v6  ;;  %v8966_v6 = vld [vmem:[#allocation4 + $0x7d0] ss:$8 sps:$4 sm:$0xff]  }
 0x336   : > { %3494 = vmatprep.subr.bf16.mxu0 %v8950_v14  ;;  %v8972_v53 = vld [vmem:[#allocation4 + $0x7f0] ss:$8 sps:$4 sm:$0xff]   ;;  %v8977_v14 = vld [vmem:[#allocation4 + $0x804] ss:$8 sps:$4 sm:$0xff]  }
 0x339   : > { %3495 = vmatpush1.bf16.msra.mxu0 %v8948_v39  ;;  %v8975_v39 = vld [vmem:[#allocation4 + $0x800] ss:$8 sps:$4 sm:$0xff]  }
 0x33a   : > { %3496 = vmatprep.subr.bf16.mxu0 %v8953_v5  ;;  %v8980_v5 = vld [vmem:[#allocation4 + $0x814] ss:$8 sps:$4 sm:$0xff]  }
 0x33d   : > { %3497 = vmatpush1.bf16.msra.mxu0 %v8951_v27  ;;  %v8978_v27 = vld [vmem:[#allocation4 + $0x810] ss:$8 sps:$4 sm:$0xff]  }
 0x33e   : > { %3498 = vmatprep.subr.bf16.mxu0 %v8956_v32  ;;  %v8983_v32 = vld [vmem:[#allocation4 + $0x824] ss:$8 sps:$4 sm:$0xff]  }
 0x341   : > { %3499 = vmatpush1.bf16.msra.mxu0 %v8954_v43  ;;  %v8981_v43 = vld [vmem:[#allocation4 + $0x820] ss:$8 sps:$4 sm:$0xff]  }
 0x342   : > { %3500 = vmatprep.subr.bf16.mxu0 %v8959_v46  ;;  %v8986_v46 = vld [vmem:[#allocation4 + $0x834] ss:$8 sps:$4 sm:$0xff]  }
 0x345   : > { %3501 = vmatpush1.bf16.msra.mxu0 %v8957_v31  ;;  %v8984_v31 = vld [vmem:[#allocation4 + $0x830] ss:$8 sps:$4 sm:$0xff]  }
 0x346   : > { %3502 = vmatprep.subr.bf16.mxu0 %v8962_v51  ;;  %v9025_v51 = vld [vmem:[#allocation7 + $0x104] ss:$8 sps:$4 sm:$0xff]  }
 0x349   : > { %3503 = vmatpush1.bf16.msra.mxu0 %v8960_v62  ;;  %v9023_v62 = vld [vmem:[#allocation7 + $0x100] ss:$8 sps:$4 sm:$0xff]  }
 0x34a   : > { %3504 = vmatprep.subr.bf16.mxu0 %v8965_v19  ;;  %v9028_v19 = vld [vmem:[#allocation7 + $0x114] ss:$8 sps:$4 sm:$0xff]  }
 0x34d   : > { %3505 = vmatpush1.bf16.msra.mxu0 %v8963_v49  ;;  %v9026_v49 = vld [vmem:[#allocation7 + $0x110] ss:$8 sps:$4 sm:$0xff]  }
 0x34e   : > { %3506 = vmatprep.subr.bf16.mxu0 %v8968_v20  ;;  %v9031_v20 = vld [vmem:[#allocation7 + $0x124] ss:$8 sps:$4 sm:$0xff]  }
 0x351   : > { %3507 = vmatpush1.bf16.msra.mxu0 %v8966_v6  ;;  %v9029_v6 = vld [vmem:[#allocation7 + $0x120] ss:$8 sps:$4 sm:$0xff]  }
 0x352   : > { %3508 = vmatprep.subr.bf16.mxu0 %v8971_v47  ;;  %v9034_v47 = vld [vmem:[#allocation7 + $0x134] ss:$8 sps:$4 sm:$0xff]  }
 0x355   : > { %3509 = vmatpush1.bf16.msra.mxu0 %v8969_v35  ;;  %v9067_v35 = vld [vmem:[#allocation7 + $0x1e4] ss:$8 sps:$4 sm:$0xff]  }
 0x356   : > { %3510 = vmatprep.subr.bf16.mxu0 %v8974_v36  ;;  %v9065_v36 = vld [vmem:[#allocation7 + $0x1e0] ss:$8 sps:$4 sm:$0xff]  }
 0x359   : > { %3511 = vmatpush1.bf16.msra.mxu0 %v8972_v53  ;;  %v9070_v53 = vld [vmem:[#allocation7 + $0x1f4] ss:$8 sps:$4 sm:$0xff]  }
 0x35a   : > { %3884 = vmatprep.subr.bf16.mxu0 %v8977_v14  ;;  %v9068_v14 = vld [vmem:[#allocation7 + $0x1f0] ss:$8 sps:$4 sm:$0xff]  }
 0x35c   : > { %3513 = vmatmul.mubr.bf16.vlgmr.msra.gmra.mrb[32].mxu0 %v3279_v28  ;;  %v8992_v28 = vld [vmem:[#allocation4 + $0x854] ss:$8 sps:$4 sm:$0xff]  }
 0x35d   : > { %3885 = vmatpush1.bf16.msra.mxu0 %v8975_v39  ;;  %3522 = vmatprep.mubr.bf16.mxu0 %v3282_v2  ;;  %v9001_v2 = vld [vmem:[#allocation4 + $0x884] ss:$8 sps:$4 sm:$0xff]   ;;  %v3975_v39 = vlaneseq }
 0x35e   : > { %3886 = vmatprep.subr.bf16.mxu0 %v8980_v5 }
 0x35f   : > { %v10622_v5 = vshrl.u32 %v3975_v39, 7  ;;  %v9455_v39 = vld [vmem:[#allocation2] sm:$0xff]  }
 0x361   : > { %3887 = vmatpush1.bf16.msra.mxu0 %v8978_v27  ;;  %v11257_v27 = vsub.s32 0, %v10622_v5 }
 0x362   : > { %3888 = vmatprep.subr.bf16.mxu0 %v8983_v32  ;;  %v3973_v32 = vld [vmem:[#allocation6] sm:$0x3] }
 0x364   : > { %3523 = vmatmul.mubr.bf16.gmra.mrb[36].mxu0 %v3281_v37  ;;  %v8998_v37 = vld [vmem:[#allocation4 + $0x874] ss:$8 sps:$4 sm:$0xff]  }
 0x365   : > { %3889 = vmatpush1.bf16.msra.mxu0 %v8981_v43  ;;  %3532 = vmatprep.mubr.bf16.mxu0 %v3284_v59  ;;  %v9010_v59 = vld [vmem:[#allocation4 + $0x8b4] ss:$8 sps:$4 sm:$0xff]   ;;  %v11256_v43 = vsub.s32 1, %v10622_v5 }
 0x366   : > { %3890 = vmatprep.subr.bf16.mxu0 %v8986_v46  ;;  %v3978_v46 = vrot.slane %v3973_v32, %v11257_v27 }
 0x369   : > { %3891 = vmatpush1.bf16.msra.mxu0 %v8984_v31  ;;  %v3982_v31 = vrot.slane %v3973_v32, %v11256_v43  ;;  %v9456_v32 = vld [vmem:[#allocation2 + $0x8] sm:$0xff]  }
 0x36a   : > { %3892 = vmatprep.subr.bf16.mxu0 %v8989_v61  ;;  %v9221_v43 = vld [vmem:[#allocation7 + $0x420] ss:$8 sps:$4 sm:$0xff]  }
 0x36c   : > { %3533 = vmatmul.mubr.bf16.gmra.mrb[40].mxu0 %v3283_v30  ;;  %v9007_v30 = vld [vmem:[#allocation4 + $0x8a4] ss:$8 sps:$4 sm:$0xff]  }
 0x36d   : > { %3893 = vmatpush1.bf16.msra.mxu0 %v8987_v21  ;;  %3542 = vmatprep.mubr.bf16.mxu0 %v3286_v60  ;;  %v9019_v60 = vld [vmem:[#allocation4 + $0x8e4] ss:$8 sps:$4 sm:$0xff]  }
 0x36e   : > { %3894 = vmatprep.subr.bf16.mxu0 %v8992_v28 }
 0x371   : > { %3895 = vmatpush1.bf16.msra.mxu0 %v8990_v55 }
 0x372   : > { %3896 = vmatprep.subr.bf16.mxu0 %v8995_v16 }
 0x374   : > { %3543 = vmatmul.mubr.bf16.gmra.mrb[44].mxu0 %v3285_v29  ;;  %v9016_v29 = vld [vmem:[#allocation4 + $0x8d4] ss:$8 sps:$4 sm:$0xff]  }
 0x375   : > { %3897 = vmatpush1.bf16.msra.mxu0 %v8993_v3  ;;  %3916 = vmatprep.mubr.bf16.mxu0 %v3684_v12  ;;  %v9020_v12 = vld [vmem:[#allocation4 + $0x8f0] ss:$8 sps:$4 sm:$0xff]  }
 0x376   : > { %3898 = vmatprep.subr.bf16.mxu0 %v8998_v37 }
 0x379   : > { %3899 = vmatpush1.bf16.msra.mxu0 %v8996_v9 }
 0x37a   : > { %3900 = vmatprep.subr.bf16.mxu0 %v9001_v2 }
 0x37d   : > { %3901 = vmatpush1.bf16.msra.mxu0 %v8999_v34 }
 0x37e   : > { %3902 = vmatprep.subr.bf16.mxu0 %v9004_v18 }
 0x381   : > { %3903 = vmatpush1.bf16.msra.mxu0 %v9002_v10 }
 0x382   : > { %3904 = vmatprep.subr.bf16.mxu0 %v9007_v30 }
 0x385   : > { %3905 = vmatpush1.bf16.msra.mxu0 %v9005_v58 }
 0x386   : > { %3906 = vmatprep.subr.bf16.mxu0 %v9010_v59 }
 0x389   : > { %3907 = vmatpush1.bf16.msra.mxu0 %v9008_v48 }
 0x38a   : > { %3908 = vmatprep.subr.bf16.mxu0 %v9013_v45 }
 0x38d   : > { %3909 = vmatpush1.bf16.msra.mxu0 %v9011_v25 }
 0x38e   : > { %3910 = vmatprep.subr.bf16.mxu0 %v9016_v29 }
 0x391   : > { %3911 = vmatpush1.bf16.msra.mxu0 %v9014_v56 }
 0x392   : > { %3912 = vmatprep.subr.bf16.mxu0 %v9019_v60 }
 0x395   : > { %3913 = vmatpush1.bf16.msra.mxu0 %v9017_v22 }
 0x396   : > { %3914 = vmatprep.subr.bf16.mxu0 %v9022_v50 }
 0x399   : > { %3915 = vmatpush1.bf16.msra.mxu0 %v9020_v12 }
 0x39a   : > { %4412 = vmatprep.subr.bf16.mxu0 %v9025_v51 }
 0x39c   : > { %3917 = vmatmul.mubr.bf16.vlgmr.msra.gmra.mrb[32].mxu0 %v3683_v33  ;;  %v9035_v33 = vld [vmem:[#allocation7 + $0x140] ss:$8 sps:$4 sm:$0xff]  }
 0x39d   : > { %3926 = vmatprep.mubr.bf16.mxu0 %v3686_v23  ;;  %4413 = vmatpush1.bf16.msra.mxu0 %v9023_v62  ;;  %v9044_v23 = vld [vmem:[#allocation7 + $0x170] ss:$8 sps:$4 sm:$0xff]  }
 0x39e   : > { %4414 = vmatprep.subr.bf16.mxu0 %v9028_v19 }
 0x3a1   : > { %4415 = vmatpush1.bf16.msra.mxu0 %v9026_v49 }
 0x3a2   : > { %4416 = vmatprep.subr.bf16.mxu0 %v9031_v20 }
 0x3a4   : > { %3927 = vmatmul.mubr.bf16.gmra.mrb[36].mxu0 %v3685_v52  ;;  %v9041_v52 = vld [vmem:[#allocation7 + $0x160] ss:$8 sps:$4 sm:$0xff]  }
 0x3a5   : > { %3936 = vmatprep.mubr.bf16.mxu0 %v3688_v38  ;;  %4417 = vmatpush1.bf16.msra.mxu0 %v9029_v6  ;;  %v9053_v38 = vld [vmem:[#allocation7 + $0x1a0] ss:$8 sps:$4 sm:$0xff]  }
 0x3a6   : > { %4418 = vmatprep.subr.bf16.mxu0 %v9034_v47 }
 0x3a9   : > { %4419 = vmatpush1.bf16.msra.mxu0 %v9032_v17 }
 0x3aa   : > { %4420 = vmatprep.subr.bf16.mxu0 %v9037_v26 }
 0x3ac   : > { %3937 = vmatmul.mubr.bf16.gmra.mrb[40].mxu0 %v3687_v8  ;;  %v9050_v8 = vld [vmem:[#allocation7 + $0x190] ss:$8 sps:$4 sm:$0xff]  }
 0x3ad   : > { %3946 = vmatprep.mubr.bf16.mxu0 %v3690_v57  ;;  %4421 = vmatpush1.bf16.msra.mxu0 %v9035_v33  ;;  %v9062_v57 = vld [vmem:[#allocation7 + $0x1d0] ss:$8 sps:$4 sm:$0xff]  }
 0x3ae   : > { %4422 = vmatprep.subr.bf16.mxu0 %v9040_v15 }
 0x3b1   : > { %4423 = vmatpush1.bf16.msra.mxu0 %v9038_v63 }
 0x3b2   : > { %4424 = vmatprep.subr.bf16.mxu0 %v9043_v13 }
 0x3b4   : > { %3947 = vmatmul.mubr.bf16.gmra.mrb[44].mxu0 %v3689_v4  ;;  %v9064_v4 = vld [vmem:[#allocation7 + $0x1d4] ss:$8 sps:$4 sm:$0xff]  }
 0x3b5   : > { %4425 = vmatpush1.bf16.msra.mxu0 %v9041_v52 }
 0x3b6   : > { %4426 = vmatprep.subr.bf16.mxu0 %v9046_v7 }
 0x3b9   : > { %4427 = vmatpush1.bf16.msra.mxu0 %v9044_v23 }
 0x3ba   : > { %4428 = vmatprep.subr.bf16.mxu0 %v9049_v1 }
 0x3bd   : > { %4429 = vmatpush1.bf16.msra.mxu0 %v9047_v11 }
 0x3be   : > { %4430 = vmatprep.subr.bf16.mxu0 %v9052_v41 }
 0x3c1   : > { %4431 = vmatpush1.bf16.msra.mxu0 %v9050_v8 }
 0x3c2   : > { %4432 = vmatprep.subr.bf16.mxu0 %v9055_v40 }
 0x3c5   : > { %4433 = vmatpush1.bf16.msra.mxu0 %v9053_v38 }
 0x3c6   : > { %4434 = vmatprep.subr.bf16.mxu0 %v9058_v54 }
 0x3c9   : > { %4435 = vmatpush1.bf16.msra.mxu0 %v9056_v44 }
 0x3ca   : > { %4436 = vmatprep.subr.bf16.mxu0 %v9061_v42 }
 0x3cd   : > { %4437 = vmatpush1.bf16.msra.mxu0 %v9059_v24 }
 0x3ce   : > { %4438 = vmatprep.subr.bf16.mxu0 %v9064_v4 }
 0x3d1   : > { %4439 = vmatpush1.bf16.msra.mxu0 %v9062_v57 }
 0x3d2   : > { %4440 = vmatprep.subr.bf16.mxu0 %v9067_v35 }
 0x3d5   : > { %4441 = vmatpush1.bf16.msra.mxu0 %v9065_v36 }
 0x3d6   : > { %4442 = vmatprep.subr.bf16.mxu0 %v9070_v53 }
 0x3d9   : > { %4443 = vmatpush1.bf16.msra.mxu0 %v9068_v14 }
 0x46f   : > { %v3918_v61 = vpop.f32.mrb[32].mxu0 }
 0x470   : > { %v3985_v21 = vadd.f32 %v3978_v46, %v3918_v61  ;;  %v3920_v28 = vpop.f32.mrb[33].mxu0  ;;  %v9458_v61 = vld [vmem:[#allocation2 + $0x18] sm:$0xff]  }
 0x471   : > { %v3986_v55 = vadd.f32 %v3982_v31, %v3920_v28  ;;  %v3922_v16 = vpop.f32.mrb[34].mxu0  ;;  %v9076_v28 = vld [vmem:[#allocation7 + $0x14] ss:$8 sps:$4 sm:$0xff]  }
 0x472   : > { %v3987_v3 = vadd.f32 %v3978_v46, %v3922_v16  ;;  %v3924_v37 = vpop.f32.mrb[35].mxu0  ;;  %v4001_v2 = vmax.f32 %v3985_v21, 0.0  ;;  %v9071_v21 = vld [vmem:[#allocation7] ss:$8 sps:$4 sm:$0xff]   ;;  %v9074_v16 = vld [vmem:[#allocation7 + $0x10] ss:$8 sps:$4 sm:$0xff]  }
 0x473   : > { %v3988_v9 = vadd.f32 %v3982_v31, %v3924_v37  ;;  %v4002_v18 = vmax.f32 %v3986_v55, 0.0  ;;  %v9459_v55 = vld [vmem:[#allocation2 + $0x20] sm:$0xff]  }
 0x474   : > { %v4003_v34 = vmax.f32 %v3987_v3, 0.0  ;;  %v9079_v3 = vld [vmem:[#allocation7 + $0x24] ss:$8 sps:$4 sm:$0xff]   ;;  %v9077_v37 = vld [vmem:[#allocation7 + $0x20] ss:$8 sps:$4 sm:$0xff]  }
 0x475   : > { %v4004_v10 = vmax.f32 %v3988_v9, 0.0  ;;  %v9082_v9 = vld [vmem:[#allocation7 + $0x34] ss:$8 sps:$4 sm:$0xff]  }
 0x476   : > { %v10630_v30 = vpack.c.bf16 %v4003_v34, %v4001_v2  ;;  %v9460_v2 = vld [vmem:[#allocation2 + $0x28] sm:$0xff]   ;;  %v9080_v34 = vld [vmem:[#allocation7 + $0x30] ss:$8 sps:$4 sm:$0xff]  }
 0x477   : > { %v10632_v58 = vpack.c.bf16 %v4004_v10, %v4002_v18  ;;  %v3928_v59 = vpop.f32.mrb[36].mxu0  ;;  %v9085_v18 = vld [vmem:[#allocation7 + $0x44] ss:$8 sps:$4 sm:$0xff]   ;;  %v9083_v10 = vld [vmem:[#allocation7 + $0x40] ss:$8 sps:$4 sm:$0xff]  }
 0x478   : > { %v3989_v48 = vadd.f32 %v3978_v46, %v3928_v59  ;;  %v3930_v45 = vpop.f32.mrb[37].mxu0  ;;  %v9088_v59 = vld [vmem:[#allocation7 + $0x54] ss:$8 sps:$4 sm:$0xff]  }
 0x479   : > { %v3990_v25 = vadd.f32 %v3982_v31, %v3930_v45  ;;  %v3932_v29 = vpop.f32.mrb[38].mxu0  ;;  %4025 = vmatprep.subr.bf16.mxu1 %v10632_v58  ;;  %5444 = vmatprep.subr.bf16.mxu0 %v10632_v58  ;;  %v9086_v45 = vld [vmem:[#allocation7 + $0x50] ss:$8 sps:$4 sm:$0xff]  }
 0x47a   : > { %v3991_v56 = vadd.f32 %v3978_v46, %v3932_v29  ;;  %v3934_v60 = vpop.f32.mrb[39].mxu0  ;;  %4026 = vmatpush1.bf16.msra.mxu1 %v10630_v30  ;;  %v4005_v50 = vmax.f32 %v3989_v48, 0.0  ;;  %v9461_v48 = vld [vmem:[#allocation2 + $0x30] sm:$0xff]   ;;  %v9089_v29 = vld [vmem:[#allocation7 + $0x60] ss:$8 sps:$4 sm:$0xff]  }
 0x47b   : > { %v3992_v22 = vadd.f32 %v3982_v31, %v3934_v60  ;;  %v4006_v51 = vmax.f32 %v3990_v25, 0.0  ;;  %v9091_v25 = vld [vmem:[#allocation7 + $0x64] ss:$8 sps:$4 sm:$0xff]   ;;  %v9462_v60 = vld [vmem:[#allocation2 + $0x38] sm:$0xff]  }
 0x47c   : > { %v4007_v12 = vmax.f32 %v3991_v56, 0.0  ;;  %v9094_v56 = vld [vmem:[#allocation7 + $0x74] ss:$8 sps:$4 sm:$0xff]  }
 0x47d   : > { %v4008_v62 = vmax.f32 %v3992_v22, 0.0  ;;  %v9092_v22 = vld [vmem:[#allocation7 + $0x70] ss:$8 sps:$4 sm:$0xff]  }
 0x47e   : > { %v10637_v19 = vpack.c.bf16 %v4007_v12, %v4005_v50  ;;  %v9097_v50 = vld [vmem:[#allocation7 + $0x84] ss:$8 sps:$4 sm:$0xff]   ;;  %v9095_v12 = vld [vmem:[#allocation7 + $0x80] ss:$8 sps:$4 sm:$0xff]  }
 0x47f   : > { %v10639_v49 = vpack.c.bf16 %v4008_v62, %v4006_v51  ;;  %v3938_v20 = vpop.f32.mrb[40].mxu0  ;;  %v9100_v51 = vld [vmem:[#allocation7 + $0x94] ss:$8 sps:$4 sm:$0xff]   ;;  %v9098_v62 = vld [vmem:[#allocation7 + $0x90] ss:$8 sps:$4 sm:$0xff]  }
 0x480   : > { %v3993_v6 = vadd.f32 %v3978_v46, %v3938_v20  ;;  %v3940_v47 = vpop.f32.mrb[41].mxu0  ;;  %v9103_v20 = vld [vmem:[#allocation7 + $0xa4] ss:$8 sps:$4 sm:$0xff]  }
 0x481   : > { %v3994_v17 = vadd.f32 %v3982_v31, %v3940_v47  ;;  %v3942_v26 = vpop.f32.mrb[42].mxu0  ;;  %4027 = vmatprep.subr.bf16.mxu1 %v10639_v49  ;;  %v9106_v47 = vld [vmem:[#allocation7 + $0xb4] ss:$8 sps:$4 sm:$0xff]  }
 0x482   : > { %v3995_v33 = vadd.f32 %v3978_v46, %v3942_v26  ;;  %v3944_v15 = vpop.f32.mrb[43].mxu0  ;;  %4028 = vmatpush1.bf16.msra.mxu1 %v10637_v19  ;;  %v4009_v13 = vmax.f32 %v3993_v6, 0.0  ;;  %v9101_v6 = vld [vmem:[#allocation7 + $0xa0] ss:$8 sps:$4 sm:$0xff]   ;;  %v9109_v26 = vld [vmem:[#allocation7 + $0xc4] ss:$8 sps:$4 sm:$0xff]  }
 0x483   : > { %v3996_v63 = vadd.f32 %v3982_v31, %v3944_v15  ;;  %v4010_v7 = vmax.f32 %v3994_v17, 0.0  ;;  %v9104_v17 = vld [vmem:[#allocation7 + $0xb0] ss:$8 sps:$4 sm:$0xff]   ;;  %v9112_v15 = vld [vmem:[#allocation7 + $0xd4] ss:$8 sps:$4 sm:$0xff]  }
 0x484   : > { %v4011_v52 = vmax.f32 %v3995_v33, 0.0  ;;  %v9107_v33 = vld [vmem:[#allocation7 + $0xc0] ss:$8 sps:$4 sm:$0xff]  }
 0x485   : > { %v4012_v23 = vmax.f32 %v3996_v63, 0.0  ;;  %v9110_v63 = vld [vmem:[#allocation7 + $0xd0] ss:$8 sps:$4 sm:$0xff]  }
 0x486   : > { %v10643_v1 = vpack.c.bf16 %v4011_v52, %v4009_v13  ;;  %v9115_v13 = vld [vmem:[#allocation7 + $0xe4] ss:$8 sps:$4 sm:$0xff]   ;;  %v9113_v52 = vld [vmem:[#allocation7 + $0xe0] ss:$8 sps:$4 sm:$0xff]  }
 0x487   : > { %v10645_v11 = vpack.c.bf16 %v4012_v23, %v4010_v7  ;;  %v3948_v41 = vpop.f32.mrb[44].mxu0  ;;  %v9118_v7 = vld [vmem:[#allocation7 + $0xf4] ss:$8 sps:$4 sm:$0xff]   ;;  %v9116_v23 = vld [vmem:[#allocation7 + $0xf0] ss:$8 sps:$4 sm:$0xff]  }
 0x488   : > { %v3997_v8 = vadd.f32 %v3978_v46, %v3948_v41  ;;  %v3950_v40 = vpop.f32.mrb[45].mxu0 }
 0x489   : > { %v3998_v38 = vadd.f32 %v3982_v31, %v3950_v40  ;;  %v3952_v54 = vpop.f32.mrb[46].mxu0  ;;  %4029 = vmatprep.subr.bf16.mxu1 %v10645_v11 }
 0x48a   : > { %v3999_v44 = vadd.f32 %v3978_v46, %v3952_v54  ;;  %v3954_v42 = vpop.f32.mrb[47].mxu0  ;;  %4030 = vmatpush1.bf16.msra.mxu1 %v10643_v1  ;;  %v4013_v4 = vmax.f32 %v3997_v8, 0.0  ;;  %v9073_v46 = vld [vmem:[#allocation7 + $0x4] ss:$8 sps:$4 sm:$0xff]  }
 0x48b   : > { %v4000_v24 = vadd.f32 %v3982_v31, %v3954_v42  ;;  %v4014_v35 = vmax.f32 %v3998_v38, 0.0  ;;  %v9457_v31 = vld [vmem:[#allocation2 + $0x10] sm:$0xff]  }
 0x48c   : > { %v4015_v57 = vmax.f32 %v3999_v44, 0.0 }
 0x48d   : > { %v4016_v36 = vmax.f32 %v4000_v24, 0.0 }
 0x48e   : > { %v10649_v53 = vpack.c.bf16 %v4015_v57, %v4013_v4 }
 0x48f   : > { %v10651_v14 = vpack.c.bf16 %v4016_v36, %v4014_v35 }
 0x491   : > { %4031 = vmatprep.subr.bf16.mxu1 %v10651_v14 }
 0x492   : > { %4032 = vmatpush1.bf16.msra.mxu1 %v10649_v53 }
 0x493   : > { %4138 = vmatprep.subr.bf16.mxu1 %v10632_v58 }
 0x495   : > { %7883 = vmatmul.mubr.msk.bf16.vlgmr.msra.gmra.mrb[112].mxu1 %vm398_vm0, %v9455_v39 }
 0x496   : > { %4139 = vmatpush1.bf16.msra.mxu1 %v10630_v30  ;;  %4067 = vmatprep.mubr.bf16.mxu1 %v9668_v0 }
 0x497   : > { %4140 = vmatprep.subr.bf16.mxu1 %v10639_v49 }
 0x49a   : > { %4141 = vmatpush1.bf16.msra.mxu1 %v10637_v19 }
 0x49b   : > { %4142 = vmatprep.subr.bf16.mxu1 %v10645_v11 }
 0x49d   : > { %7884 = vmatmul.mubr.msk.bf16.gmra.mrb[116].mxu1 %vm398_vm0, %v9456_v32 }
 0x49e   : > { %4143 = vmatpush1.bf16.msra.mxu1 %v10643_v1  ;;  %4077 = vmatprep.mubr.bf16.mxu1 %v9668_v0 }
 0x49f   : > { %4144 = vmatprep.subr.bf16.mxu1 %v10651_v14 }
 0x4a2   : > { %4145 = vmatpush1.bf16.msra.mxu1 %v10649_v53 }
 0x4a3   : > { %4645 = vmatprep.subr.bf16.mxu1 %v9073_v46  ;;  %v9121_v46 = vld [vmem:[#allocation7 + $0x204] ss:$8 sps:$4 sm:$0xff]  }
 0x4a5   : > { %7885 = vmatmul.mubr.msk.bf16.gmra.mrb[120].mxu1 %vm398_vm0, %v9457_v31 }
 0x4a6   : > { %4087 = vmatprep.mubr.bf16.mxu1 %v9668_v0 }
 0x4ad   : > { %7886 = vmatmul.mubr.msk.bf16.gmra.mrb[124].mxu1 %vm398_vm0, %v9458_v61 }
 0x4ae   : > { %4170 = vmatprep.mubr.bf16.mxu1 %v9668_v0 }
 0x4b5   : > { %7887 = vmatmul.mubr.msk.bf16.vlgmr.msra.gmra.mrb[128].mxu1 %vm398_vm0, %v9459_v55 }
 0x4b6   : > { %4646 = vmatpush1.bf16.msra.mxu1 %v9071_v21  ;;  %4180 = vmatprep.mubr.bf16.mxu1 %v9668_v0 }
 0x4b7   : > { %4647 = vmatprep.subr.bf16.mxu1 %v9076_v28 }
 0x4ba   : > { %4648 = vmatpush1.bf16.msra.mxu1 %v9074_v16 }
 0x4bb   : > { %4649 = vmatprep.subr.bf16.mxu1 %v9079_v3 }
 0x4bd   : > { %7888 = vmatmul.mubr.msk.bf16.gmra.mrb[132].mxu1 %vm398_vm0, %v9460_v2 }
 0x4be   : > { %4650 = vmatpush1.bf16.msra.mxu1 %v9077_v37  ;;  %4190 = vmatprep.mubr.bf16.mxu1 %v9668_v0 }
 0x4bf   : > { %4651 = vmatprep.subr.bf16.mxu1 %v9082_v9 }
 0x4c2   : > { %4652 = vmatpush1.bf16.msra.mxu1 %v9080_v34 }
 0x4c3   : > { %4653 = vmatprep.subr.bf16.mxu1 %v9085_v18 }
 0x4c5   : > { %7889 = vmatmul.mubr.msk.bf16.gmra.mrb[136].mxu1 %vm398_vm0, %v9461_v48 }
 0x4c6   : > { %4654 = vmatpush1.bf16.msra.mxu1 %v9083_v10  ;;  %4200 = vmatprep.mubr.bf16.mxu1 %v9668_v0 }
 0x4c7   : > { %4655 = vmatprep.subr.bf16.mxu1 %v9088_v59 }
 0x4ca   : > { %4656 = vmatpush1.bf16.msra.mxu1 %v9086_v45 }
 0x4cb   : > { %4657 = vmatprep.subr.bf16.mxu1 %v9091_v25  ;;  %v9119_v25 = vld [vmem:[#allocation7 + $0x200] ss:$8 sps:$4 sm:$0xff]  }
 0x4cd   : > { %7890 = vmatmul.mubr.msk.bf16.gmra.mrb[140].mxu1 %vm398_vm0, %v9462_v60 }
 0x4ce   : > { %4658 = vmatpush1.bf16.msra.mxu1 %v9089_v29  ;;  %v9124_v29 = vld [vmem:[#allocation7 + $0x214] ss:$8 sps:$4 sm:$0xff]  }
 0x4cf   : > { %4659 = vmatprep.subr.bf16.mxu1 %v9094_v56  ;;  %v9463_v56 = vld [vmem:[#allocation2 + $0x40] sm:$0xff]  }
 0x4d2   : > { %4660 = vmatpush1.bf16.msra.mxu1 %v9092_v22  ;;  %v9122_v22 = vld [vmem:[#allocation7 + $0x210] ss:$8 sps:$4 sm:$0xff]  }
 0x4d3   : > { %4661 = vmatprep.subr.bf16.mxu1 %v9097_v50 }
 0x4d6   : > { %4662 = vmatpush1.bf16.msra.mxu1 %v9095_v12  ;;  %v9127_v12 = vld [vmem:[#allocation7 + $0x224] ss:$8 sps:$4 sm:$0xff]  }
 0x4d7   : > { %4663 = vmatprep.subr.bf16.mxu1 %v9100_v51 }
 0x4da   : > { %4664 = vmatpush1.bf16.msra.mxu1 %v9098_v62 }
 0x4db   : > { %4665 = vmatprep.subr.bf16.mxu1 %v9103_v20 }
 0x4de   : > { %4666 = vmatpush1.bf16.msra.mxu1 %v9101_v6 }
 0x4df   : > { %4667 = vmatprep.subr.bf16.mxu1 %v9106_v47  ;;  %v9125_v47 = vld [vmem:[#allocation7 + $0x220] ss:$8 sps:$4 sm:$0xff]  }
 0x4e2   : > { %4668 = vmatpush1.bf16.msra.mxu1 %v9104_v17  ;;  %v9130_v17 = vld [vmem:[#allocation7 + $0x234] ss:$8 sps:$4 sm:$0xff]  }
 0x4e3   : > { %4669 = vmatprep.subr.bf16.mxu1 %v9109_v26  ;;  %v9464_v26 = vld [vmem:[#allocation2 + $0x48] sm:$0xff]  }
 0x4e6   : > { %4670 = vmatpush1.bf16.msra.mxu1 %v9107_v33 }
 0x4e7   : > { %4671 = vmatprep.subr.bf16.mxu1 %v9112_v15  ;;  %v9128_v15 = vld [vmem:[#allocation7 + $0x230] ss:$8 sps:$4 sm:$0xff]  }
 0x4ea   : > { %4672 = vmatpush1.bf16.msra.mxu1 %v9110_v63 }
 0x4eb   : > { %4673 = vmatprep.subr.bf16.mxu1 %v9115_v13  ;;  %v9133_v13 = vld [vmem:[#allocation7 + $0x244] ss:$8 sps:$4 sm:$0xff]  }
 0x4ee   : > { %4674 = vmatpush1.bf16.msra.mxu1 %v9113_v52 }
 0x4ef   : > { %4675 = vmatprep.subr.bf16.mxu1 %v9118_v7 }
 0x4f2   : > { %4676 = vmatpush1.bf16.msra.mxu1 %v9116_v23 }
 0x4f3   : > { %4718 = vmatprep.subr.bf16.mxu1 %v10632_v58 }
 0x568   : > { %v4059_v41 = vpop.f32.mrb[112].mxu1 }
 0x569   : > { %v4061_v8 = vpop.f32.mrb[113].mxu1 }
 0x56a   : > { %v4063_v40 = vpop.f32.mrb[114].mxu1 }
 0x56b   : > { %v4098_v38 = vpack.c.bf16 %v4063_v40, %v4059_v41  ;;  %v4065_v54 = vpop.f32.mrb[115].mxu1  ;;  %v9136_v40 = vld [vmem:[#allocation7 + $0x254] ss:$8 sps:$4 sm:$0xff]  }
 0x56c   : > { %v4099_v44 = vpack.c.bf16 %v4065_v54, %v4061_v8  ;;  %v9131_v8 = vld [vmem:[#allocation7 + $0x240] ss:$8 sps:$4 sm:$0xff]  }
 0x56e   : > { %4677 = vmatprep.mubr.bf16.mxu1 %v4099_v44  ;;  %v9134_v44 = vld [vmem:[#allocation7 + $0x250] ss:$8 sps:$4 sm:$0xff]  }
 0x56f   : > { %4678 = vmatmul.mubr.bf16.vlgmr.msra.gmra.mrb[144].mxu1 %v4098_v38  ;;  %v9465_v38 = vld [vmem:[#allocation2 + $0x50] sm:$0xff]  }
 0x570   : > { %4719 = vmatpush1.bf16.msra.mxu1 %v10630_v30  ;;  %v4069_v42 = vpop.f32.mrb[116].mxu1 }
 0x571   : > { %4720 = vmatprep.subr.bf16.mxu1 %v10639_v49  ;;  %v4071_v24 = vpop.f32.mrb[117].mxu1 }
 0x572   : > { %v4073_v4 = vpop.f32.mrb[118].mxu1 }
 0x573   : > { %v4100_v57 = vpack.c.bf16 %v4073_v4, %v4069_v42  ;;  %v4075_v35 = vpop.f32.mrb[119].mxu1 }
 0x574   : > { %v4101_v36 = vpack.c.bf16 %v4075_v35, %v4071_v24  ;;  %4721 = vmatpush1.bf16.msra.mxu1 %v10637_v19  ;;  %v9139_v24 = vld [vmem:[#allocation7 + $0x264] ss:$8 sps:$4 sm:$0xff]  }
 0x575   : > { %4722 = vmatprep.subr.bf16.mxu1 %v10645_v11 }
 0x576   : > { %4687 = vmatprep.mubr.bf16.mxu1 %v4101_v36 }
 0x577   : > { %4688 = vmatmul.mubr.bf16.gmra.mrb[148].mxu1 %v4100_v57 }
 0x578   : > { %4723 = vmatpush1.bf16.msra.mxu1 %v10643_v1  ;;  %v4079_v39 = vpop.f32.mrb[120].mxu1 }
 0x579   : > { %4724 = vmatprep.subr.bf16.mxu1 %v10651_v14  ;;  %v4081_v32 = vpop.f32.mrb[121].mxu1 }
 0x57a   : > { %v4083_v31 = vpop.f32.mrb[122].mxu1 }
 0x57b   : > { %v4102_v61 = vpack.c.bf16 %v4083_v31, %v4079_v39  ;;  %v4085_v21 = vpop.f32.mrb[123].mxu1  ;;  %v9137_v39 = vld [vmem:[#allocation7 + $0x260] ss:$8 sps:$4 sm:$0xff]   ;;  %v9140_v31 = vld [vmem:[#allocation7 + $0x270] ss:$8 sps:$4 sm:$0xff]  }
 0x57c   : > { %v4103_v28 = vpack.c.bf16 %v4085_v21, %v4081_v32  ;;  %4725 = vmatpush1.bf16.msra.mxu1 %v10649_v53  ;;  %v9142_v32 = vld [vmem:[#allocation7 + $0x274] ss:$8 sps:$4 sm:$0xff]   ;;  %v9143_v21 = vld [vmem:[#allocation7 + $0x280] ss:$8 sps:$4 sm:$0xff]  }
 0x57d   : > { %4992 = vmatprep.subr.bf16.mxu1 %v9121_v46  ;;  %v9466_v46 = vld [vmem:[#allocation2 + $0x58] sm:$0xff]  }
 0x57e   : > { %4697 = vmatprep.mubr.bf16.mxu1 %v4103_v28  ;;  %v9148_v28 = vld [vmem:[#allocation7 + $0x294] ss:$8 sps:$4 sm:$0xff]  }
 0x57f   : > { %4698 = vmatmul.mubr.bf16.gmra.mrb[152].mxu1 %v4102_v61  ;;  %v9145_v61 = vld [vmem:[#allocation7 + $0x284] ss:$8 sps:$4 sm:$0xff]  }
 0x580   : > { %v4089_v55 = vpop.f32.mrb[124].mxu1 }
 0x581   : > { %v4091_v16 = vpop.f32.mrb[125].mxu1 }
 0x582   : > { %v4093_v3 = vpop.f32.mrb[126].mxu1 }
 0x583   : > { %v4104_v37 = vpack.c.bf16 %v4093_v3, %v4089_v55  ;;  %v4095_v9 = vpop.f32.mrb[127].mxu1  ;;  %v9467_v55 = vld [vmem:[#allocation2 + $0x80] sm:$0xff]  }
 0x584   : > { %v4105_v2 = vpack.c.bf16 %v4095_v9, %v4091_v16  ;;  %v9146_v16 = vld [vmem:[#allocation7 + $0x290] ss:$8 sps:$4 sm:$0xff]   ;;  %v9151_v3 = vld [vmem:[#allocation7 + $0x2a4] ss:$8 sps:$4 sm:$0xff]   ;;  %v9154_v9 = vld [vmem:[#allocation7 + $0x2b4] ss:$8 sps:$4 sm:$0xff]  }
 0x586   : > { %4707 = vmatprep.mubr.bf16.mxu1 %v4105_v2  ;;  %v9468_v2 = vld [vmem:[#allocation2 + $0x88] sm:$0xff]  }
 0x587   : > { %4708 = vmatmul.mubr.bf16.gmra.mrb[156].mxu1 %v4104_v37  ;;  %v9149_v37 = vld [vmem:[#allocation7 + $0x2a0] ss:$8 sps:$4 sm:$0xff]  }
 0x588   : > { %v4172_v34 = vpop.f32.mrb[128].mxu1  ;;  %4750 = vmatprep.mubr.bf16.mxu1 %v9668_v0 }
 0x589   : > { %v4174_v18 = vpop.f32.mrb[129].mxu1 }
 0x58a   : > { %v4176_v10 = vpop.f32.mrb[130].mxu1 }
 0x58b   : > { %v4211_v59 = vpack.c.bf16 %v4176_v10, %v4172_v34  ;;  %v4178_v48 = vpop.f32.mrb[131].mxu1  ;;  %v9152_v34 = vld [vmem:[#allocation7 + $0x2b0] ss:$8 sps:$4 sm:$0xff]   ;;  %v9155_v10 = vld [vmem:[#allocation7 + $0x2c0] ss:$8 sps:$4 sm:$0xff]  }
 0x58c   : > { %v4212_v45 = vpack.c.bf16 %v4178_v48, %v4174_v18  ;;  %v9157_v18 = vld [vmem:[#allocation7 + $0x2c4] ss:$8 sps:$4 sm:$0xff]  }
 0x58d   : > { %v9469_v48 = vld [vmem:[#allocation2 + $0x90] sm:$0xff]  }
 0x58e   : > { %4444 = vmatprep.mubr.bf16.mxu0 %v4212_v45  ;;  %v9158_v45 = vld [vmem:[#allocation7 + $0x2d0] ss:$8 sps:$4 sm:$0xff]  }
 0x58f   : > { %4445 = vmatmul.mubr.bf16.vlgmr.msra.gmra.mrb[48].mxu0 %v4211_v59  ;;  %7955 = vmatmul.mubr.msk.bf16.vlgmr.msra.gmra.mrb[160].mxu1 %vm398_vm0, %v9463_v56  ;;  %v9160_v59 = vld [vmem:[#allocation7 + $0x2d4] ss:$8 sps:$4 sm:$0xff]  }
 0x590   : > { %4993 = vmatpush1.bf16.msra.mxu1 %v9119_v25  ;;  %5445 = vmatpush1.bf16.msra.mxu0 %v10630_v30  ;;  %v4182_v60 = vpop.f32.mrb[132].mxu1  ;;  %v9163_v25 = vld [vmem:[#allocation7 + $0x2e4] ss:$8 sps:$4 sm:$0xff]   ;;  %v9166_v56 = vld [vmem:[#allocation7 + $0x2f4] ss:$8 sps:$4 sm:$0xff]  }
 0x591   : > { %5446 = vmatprep.subr.bf16.mxu0 %v10639_v49  ;;  %v4184_v50 = vpop.f32.mrb[133].mxu1  ;;  %4994 = vmatprep.subr.bf16.mxu1 %v9124_v29  ;;  %v9161_v29 = vld [vmem:[#allocation7 + $0x2e0] ss:$8 sps:$4 sm:$0xff]  }
 0x592   : > { %v4186_v51 = vpop.f32.mrb[134].mxu1  ;;  %4760 = vmatprep.mubr.bf16.mxu1 %v9668_v0 }
 0x593   : > { %v4213_v62 = vpack.c.bf16 %v4186_v51, %v4182_v60  ;;  %v4188_v20 = vpop.f32.mrb[135].mxu1  ;;  %v9470_v60 = vld [vmem:[#allocation2 + $0x98] sm:$0xff]   ;;  %v9473_v51 = vld [vmem:[#allocation2 + $0xb0] sm:$0xff]  }
 0x594   : > { %v4214_v6 = vpack.c.bf16 %v4188_v20, %v4184_v50  ;;  %4995 = vmatpush1.bf16.msra.mxu1 %v9122_v22  ;;  %5447 = vmatpush1.bf16.msra.mxu0 %v10637_v19  ;;  %v9164_v22 = vld [vmem:[#allocation7 + $0x2f0] ss:$8 sps:$4 sm:$0xff]   ;;  %v9471_v50 = vld [vmem:[#allocation2 + $0xa0] sm:$0xff]  }
 0x595   : > { %5448 = vmatprep.subr.bf16.mxu0 %v10645_v11  ;;  %4996 = vmatprep.subr.bf16.mxu1 %v9127_v12  ;;  %v9472_v12 = vld [vmem:[#allocation2 + $0xa8] sm:$0xff]   ;;  %v9475_v20 = vld [vmem:[#allocation2 + $0xc0] sm:$0xff]  }
 0x596   : > { %4454 = vmatprep.mubr.bf16.mxu0 %v4214_v6  ;;  %v9476_v6 = vld [vmem:[#allocation2 + $0xc8] sm:$0xff]  }
 0x597   : > { %4455 = vmatmul.mubr.bf16.gmra.mrb[52].mxu0 %v4213_v62  ;;  %7956 = vmatmul.mubr.msk.bf16.gmra.mrb[164].mxu1 %vm398_vm0, %v9464_v26  ;;  %v9474_v62 = vld [vmem:[#allocation2 + $0xb8] sm:$0xff]   ;;  %v9479_v26 = vld [vmem:[#allocation2 + $0xe0] sm:$0xff]  }
 0x598   : > { %4997 = vmatpush1.bf16.msra.mxu1 %v9125_v47  ;;  %5449 = vmatpush1.bf16.msra.mxu0 %v10643_v1  ;;  %v4192_v33 = vpop.f32.mrb[136].mxu1  ;;  %v9477_v47 = vld [vmem:[#allocation2 + $0xd0] sm:$0xff]  }
 0x599   : > { %5450 = vmatprep.subr.bf16.mxu0 %v10651_v14  ;;  %v4194_v63 = vpop.f32.mrb[137].mxu1  ;;  %4998 = vmatprep.subr.bf16.mxu1 %v9130_v17  ;;  %v9478_v17 = vld [vmem:[#allocation2 + $0xd8] sm:$0xff]  }
 0x59a   : > { %v4196_v52 = vpop.f32.mrb[138].mxu1  ;;  %4770 = vmatprep.mubr.bf16.mxu1 %v9668_v0 }
 0x59b   : > { %v4215_v7 = vpack.c.bf16 %v4196_v52, %v4192_v33  ;;  %v4198_v23 = vpop.f32.mrb[139].mxu1  ;;  %v9481_v33 = vld [vmem:[#allocation2 + $0xf0] sm:$0xff]  }
 0x59c   : > { %v4216_v41 = vpack.c.bf16 %v4198_v23, %v4194_v63  ;;  %4999 = vmatpush1.bf16.msra.mxu1 %v9128_v15  ;;  %5451 = vmatpush1.bf16.msra.mxu0 %v10649_v53  ;;  %v9482_v15 = vld [vmem:[#allocation2 + $0xf8] sm:$0xff]   ;;  %v9483_v63 = vld [vmem:[#allocation2 + $0x100] sm:$0xff]   ;;  %v9485_v52 = vld [vmem:[#allocation2 + $0x110] sm:$0xff]  }
 0x59d   : > { %5807 = vmatprep.subr.bf16.mxu0 %v10632_v58  ;;  %5000 = vmatprep.subr.bf16.mxu1 %v9133_v13  ;;  %v9484_v13 = vld [vmem:[#allocation2 + $0x108] sm:$0xff]  }
 0x59e   : > { %4464 = vmatprep.mubr.bf16.mxu0 %v4216_v41 }
 0x59f   : > { %4465 = vmatmul.mubr.bf16.gmra.mrb[56].mxu0 %v4215_v7  ;;  %7957 = vmatmul.mubr.msk.bf16.gmra.mrb[168].mxu1 %vm398_vm0, %v9465_v38  ;;  %v9486_v7 = vld [vmem:[#allocation2 + $0x118] sm:$0xff]  }
 0x5a0   : > { %5001 = vmatpush1.bf16.msra.mxu1 %v9131_v8  ;;  %v4202_v54 = vpop.f32.mrb[140].mxu1  ;;  %4780 = vmatprep.mubr.bf16.mxu1 %v9668_v0 }
 0x5a1   : > { %v4204_v42 = vpop.f32.mrb[141].mxu1  ;;  %5002 = vmatprep.subr.bf16.mxu1 %v9136_v40 }
 0x5a2   : > { %v4206_v4 = vpop.f32.mrb[142].mxu1 }
 0x5a3   : > { %v4217_v57 = vpack.c.bf16 %v4206_v4, %v4202_v54  ;;  %v4208_v35 = vpop.f32.mrb[143].mxu1 }
 0x5a4   : > { %v4218_v36 = vpack.c.bf16 %v4208_v35, %v4204_v42  ;;  %5003 = vmatpush1.bf16.msra.mxu1 %v9134_v44 }
 0x5a5   : > { %5004 = vmatprep.subr.bf16.mxu1 %v9139_v24 }
 0x5a6   : > { %4474 = vmatprep.mubr.bf16.mxu0 %v4218_v36 }
 0x5a7   : > { %4475 = vmatmul.mubr.bf16.gmra.mrb[60].mxu0 %v4217_v57  ;;  %7958 = vmatmul.mubr.msk.bf16.gmra.mrb[172].mxu1 %vm398_vm0, %v9466_v46 }
 0x5a8   : > { %5005 = vmatpush1.bf16.msra.mxu1 %v9137_v39  ;;  %5476 = vmatprep.mubr.bf16.mxu0 %v9668_v0 }
 0x5a9   : > { %5006 = vmatprep.subr.bf16.mxu1 %v9142_v32 }
 0x5ac   : > { %5007 = vmatpush1.bf16.msra.mxu1 %v9140_v31 }
 0x5ad   : > { %5008 = vmatprep.subr.bf16.mxu1 %v9145_v61 }
 0x5af   : > { %8027 = vmatmul.mubr.msk.bf16.vlgmr.msra.gmra.mrb[64].mxu0 %vm398_vm0, %v9467_v55 }
 0x5b0   : > { %5009 = vmatpush1.bf16.msra.mxu1 %v9143_v21  ;;  %5808 = vmatpush1.bf16.msra.mxu0 %v10630_v30 }
 0x5b1   : > { %5809 = vmatprep.subr.bf16.mxu0 %v10639_v49  ;;  %5010 = vmatprep.subr.bf16.mxu1 %v9148_v28 }
 0x5b2   : > { %5486 = vmatprep.mubr.bf16.mxu0 %v9668_v0 }
 0x5b4   : > { %5011 = vmatpush1.bf16.msra.mxu1 %v9146_v16  ;;  %5810 = vmatpush1.bf16.msra.mxu0 %v10637_v19 }
 0x5b5   : > { %5811 = vmatprep.subr.bf16.mxu0 %v10645_v11  ;;  %5012 = vmatprep.subr.bf16.mxu1 %v9151_v3  ;;  %v9169_v3 = vld [vmem:[#allocation7 + $0x304] ss:$8 sps:$4 sm:$0xff]  }
 0x5b7   : > { %8028 = vmatmul.mubr.msk.bf16.gmra.mrb[68].mxu0 %vm398_vm0, %v9468_v2 }
 0x5b8   : > { %5013 = vmatpush1.bf16.msra.mxu1 %v9149_v37  ;;  %5812 = vmatpush1.bf16.msra.mxu0 %v10643_v1 }
 0x5b9   : > { %5813 = vmatprep.subr.bf16.mxu0 %v10651_v14  ;;  %5014 = vmatprep.subr.bf16.mxu1 %v9154_v9 }
 0x5ba   : > { %5496 = vmatprep.mubr.bf16.mxu0 %v9668_v0 }
 0x5bc   : > { %5015 = vmatpush1.bf16.msra.mxu1 %v9152_v34  ;;  %5814 = vmatpush1.bf16.msra.mxu0 %v10649_v53 }
 0x5bd   : > { %6170 = vmatprep.subr.bf16.mxu0 %v10632_v58  ;;  %5016 = vmatprep.subr.bf16.mxu1 %v9157_v18 }
 0x5bf   : > { %8029 = vmatmul.mubr.msk.bf16.gmra.mrb[72].mxu0 %vm398_vm0, %v9469_v48 }
 0x5c0   : > { %5017 = vmatpush1.bf16.msra.mxu1 %v9155_v10  ;;  %5506 = vmatprep.mubr.bf16.mxu0 %v9668_v0 }
 0x5c1   : > { %5018 = vmatprep.subr.bf16.mxu1 %v9160_v59 }
 0x5c4   : > { %5019 = vmatpush1.bf16.msra.mxu1 %v9158_v45 }
 0x5c5   : > { %5020 = vmatprep.subr.bf16.mxu1 %v9163_v25 }
 0x5c7   : > { %8030 = vmatmul.mubr.msk.bf16.gmra.mrb[76].mxu0 %vm398_vm0, %v9470_v60  ;;  %v9172_v60 = vld [vmem:[#allocation7 + $0x314] ss:$8 sps:$4 sm:$0xff]  }
 0x5c8   : > { %5021 = vmatpush1.bf16.msra.mxu1 %v9161_v29  ;;  %5839 = vmatprep.mubr.bf16.mxu0 %v9668_v0 }
 0x5c9   : > { %5022 = vmatprep.subr.bf16.mxu1 %v9166_v56 }
 0x5cc   : > { %5023 = vmatpush1.bf16.msra.mxu1 %v9164_v22  ;;  %v9487_v22 = vld [vmem:[#allocation2 + $0x60] sm:$0xff]  }
 0x5cd   : > { %5081 = vmatprep.subr.bf16.mxu1 %v10632_v58 }
 0x5cf   : > { %8063 = vmatmul.mubr.msk.bf16.vlgmr.msra.gmra.mrb[80].mxu0 %vm398_vm0, %v9471_v50  ;;  %v9170_v50 = vld [vmem:[#allocation7 + $0x310] ss:$8 sps:$4 sm:$0xff]  }
 0x5d0   : > { %6171 = vmatpush1.bf16.msra.mxu0 %v10630_v30  ;;  %5849 = vmatprep.mubr.bf16.mxu0 %v9668_v0 }
 0x5d1   : > { %6172 = vmatprep.subr.bf16.mxu0 %v10639_v49 }
 0x5d4   : > { %6173 = vmatpush1.bf16.msra.mxu0 %v10637_v19 }
 0x5d5   : > { %6174 = vmatprep.subr.bf16.mxu0 %v10645_v11 }
 0x5d7   : > { %8064 = vmatmul.mubr.msk.bf16.gmra.mrb[84].mxu0 %vm398_vm0, %v9472_v12  ;;  %v9175_v12 = vld [vmem:[#allocation7 + $0x324] ss:$8 sps:$4 sm:$0xff]  }
 0x5d8   : > { %6175 = vmatpush1.bf16.msra.mxu0 %v10643_v1  ;;  %5859 = vmatprep.mubr.bf16.mxu0 %v9668_v0 }
 0x5d9   : > { %6176 = vmatprep.subr.bf16.mxu0 %v10651_v14 }
 0x5dc   : > { %6177 = vmatpush1.bf16.msra.mxu0 %v10649_v53 }
 0x5dd   : > { %6533 = vmatprep.subr.bf16.mxu0 %v10632_v58 }
 0x5df   : > { %8065 = vmatmul.mubr.msk.bf16.gmra.mrb[88].mxu0 %vm398_vm0, %v9473_v51  ;;  %v9173_v51 = vld [vmem:[#allocation7 + $0x320] ss:$8 sps:$4 sm:$0xff]  }
 0x5e0   : > { %5869 = vmatprep.mubr.bf16.mxu0 %v9668_v0 }
 0x5e7   : > { %8066 = vmatmul.mubr.msk.bf16.gmra.mrb[92].mxu0 %vm398_vm0, %v9474_v62  ;;  %v9178_v62 = vld [vmem:[#allocation7 + $0x334] ss:$8 sps:$4 sm:$0xff]  }
 0x5e8   : > { %6202 = vmatprep.mubr.bf16.mxu0 %v9668_v0 }
 0x5ef   : > { %8099 = vmatmul.mubr.msk.bf16.vlgmr.msra.gmra.mrb[96].mxu0 %vm398_vm0, %v9475_v20  ;;  %v9488_v20 = vld [vmem:[#allocation2 + $0x68] sm:$0xff]  }
 0x5f0   : > { %6534 = vmatpush1.bf16.msra.mxu0 %v10630_v30  ;;  %6212 = vmatprep.mubr.bf16.mxu0 %v9668_v0 }
 0x5f1   : > { %6535 = vmatprep.subr.bf16.mxu0 %v10639_v49 }
 0x5f4   : > { %6536 = vmatpush1.bf16.msra.mxu0 %v10637_v19 }
 0x5f5   : > { %6537 = vmatprep.subr.bf16.mxu0 %v10645_v11 }
 0x5f7   : > { %8100 = vmatmul.mubr.msk.bf16.gmra.mrb[100].mxu0 %vm398_vm0, %v9476_v6  ;;  %v9176_v6 = vld [vmem:[#allocation7 + $0x330] ss:$8 sps:$4 sm:$0xff]  }
 0x5f8   : > { %6538 = vmatpush1.bf16.msra.mxu0 %v10643_v1  ;;  %6222 = vmatprep.mubr.bf16.mxu0 %v9668_v0 }
 0x5f9   : > { %6539 = vmatprep.subr.bf16.mxu0 %v10651_v14 }
 0x5fc   : > { %6540 = vmatpush1.bf16.msra.mxu0 %v10649_v53 }
 0x5fd   : > { %6896 = vmatprep.subr.bf16.mxu0 %v10632_v58  ;;  %v9480_v58 = vld [vmem:[#allocation2 + $0xe8] sm:$0xff]  }
 0x5ff   : > { %8101 = vmatmul.mubr.msk.bf16.gmra.mrb[104].mxu0 %vm398_vm0, %v9477_v47  ;;  %v9181_v47 = vld [vmem:[#allocation7 + $0x344] ss:$8 sps:$4 sm:$0xff]  }
 0x600   : > { %6232 = vmatprep.mubr.bf16.mxu0 %v9668_v0 }
 0x607   : > { %8102 = vmatmul.mubr.msk.bf16.gmra.mrb[108].mxu0 %vm398_vm0, %v9478_v17  ;;  %v9179_v17 = vld [vmem:[#allocation7 + $0x340] ss:$8 sps:$4 sm:$0xff]  }
 0x608   : > { %6565 = vmatprep.mubr.bf16.mxu0 %v9668_v0 }
 0x60f   : > { %8135 = vmatmul.mubr.msk.bf16.vlgmr.msra.gmra.mrb[112].mxu0 %vm398_vm0, %v9479_v26  ;;  %v9184_v26 = vld [vmem:[#allocation7 + $0x354] ss:$8 sps:$4 sm:$0xff]  }
 0x610   : > { %6897 = vmatpush1.bf16.msra.mxu0 %v10630_v30  ;;  %6575 = vmatprep.mubr.bf16.mxu0 %v9668_v0 }
 0x611   : > { %6898 = vmatprep.subr.bf16.mxu0 %v10639_v49 }
 0x614   : > { %6899 = vmatpush1.bf16.msra.mxu0 %v10637_v19 }
 0x615   : > { %6900 = vmatprep.subr.bf16.mxu0 %v10645_v11 }
 0x617   : > { %8136 = vmatmul.mubr.msk.bf16.gmra.mrb[116].mxu0 %vm398_vm0, %v9480_v58  ;;  %v9489_v58 = vld [vmem:[#allocation2 + $0x70] sm:$0xff]  }
 0x618   : > { %6901 = vmatpush1.bf16.msra.mxu0 %v10643_v1  ;;  %6585 = vmatprep.mubr.bf16.mxu0 %v9668_v0 }
 0x619   : > { %6902 = vmatprep.subr.bf16.mxu0 %v10651_v14 }
 0x61c   : > { %6903 = vmatpush1.bf16.msra.mxu0 %v10649_v53 }
 0x61f   : > { %8137 = vmatmul.mubr.msk.bf16.gmra.mrb[120].mxu0 %vm398_vm0, %v9481_v33  ;;  %v9182_v33 = vld [vmem:[#allocation7 + $0x350] ss:$8 sps:$4 sm:$0xff]  }
 0x620   : > { %6595 = vmatprep.mubr.bf16.mxu0 %v9668_v0 }
 0x627   : > { %8138 = vmatmul.mubr.msk.bf16.gmra.mrb[124].mxu0 %vm398_vm0, %v9482_v15  ;;  %v9187_v15 = vld [vmem:[#allocation7 + $0x364] ss:$8 sps:$4 sm:$0xff]  }
 0x628   : > { %6928 = vmatprep.mubr.bf16.mxu0 %v9668_v0 }
 0x62f   : > { %8171 = vmatmul.mubr.msk.bf16.vlgmr.msra.gmra.mrb[128].mxu0 %vm398_vm0, %v9483_v63  ;;  %v9185_v63 = vld [vmem:[#allocation7 + $0x360] ss:$8 sps:$4 sm:$0xff]  }
 0x630   : > { %6938 = vmatprep.mubr.bf16.mxu0 %v9668_v0 }
 0x637   : > { %8172 = vmatmul.mubr.msk.bf16.gmra.mrb[132].mxu0 %vm398_vm0, %v9484_v13  ;;  %v9190_v13 = vld [vmem:[#allocation7 + $0x374] ss:$8 sps:$4 sm:$0xff]  }
 0x638   : > { %6948 = vmatprep.mubr.bf16.mxu0 %v9668_v0 }
 0x63f   : > { %8173 = vmatmul.mubr.msk.bf16.gmra.mrb[136].mxu0 %vm398_vm0, %v9485_v52  ;;  %v9490_v52 = vld [vmem:[#allocation2 + $0x78] sm:$0xff]  }
 0x640   : > { %6958 = vmatprep.mubr.bf16.mxu0 %v9668_v0 }
 0x647   : > { %8174 = vmatmul.mubr.msk.bf16.gmra.mrb[140].mxu0 %vm398_vm0, %v9486_v7  ;;  %v9188_v7 = vld [vmem:[#allocation7 + $0x370] ss:$8 sps:$4 sm:$0xff]  }
 0x662   : > { %v4752_v23 = vpop.f32.mrb[160].mxu1  ;;  %v10774_v41 = vpop.f32.mrb[48].mxu0 }
 0x663   : > { %v4754_v8 = vpop.f32.mrb[161].mxu1  ;;  %v10776_v40 = vpop.f32.mrb[49].mxu0 }
 0x664   : > { %v4756_v38 = vpop.f32.mrb[162].mxu1  ;;  %v10778_v54 = vpop.f32.mrb[50].mxu0 }
 0x665   : > { %v4791_v44 = vpack.c.bf16 %v4756_v38, %v4752_v23  ;;  %v4758_v42 = vpop.f32.mrb[163].mxu1  ;;  %v10780_v24 = vpop.f32.mrb[51].mxu0  ;;  %v9193_v23 = vld [vmem:[#allocation7 + $0x384] ss:$8 sps:$4 sm:$0xff]   ;;  %v9196_v38 = vld [vmem:[#allocation7 + $0x394] ss:$8 sps:$4 sm:$0xff]  }
 0x666   : > { %v4792_v4 = vpack.c.bf16 %v4758_v42, %v4754_v8  ;;  %v9191_v8 = vld [vmem:[#allocation7 + $0x380] ss:$8 sps:$4 sm:$0xff]  }
 0x667   : > { %v9197_v42 = vld [vmem:[#allocation7 + $0x3a0] ss:$8 sps:$4 sm:$0xff]  }
 0x668   : > { %5024 = vmatprep.mubr.bf16.mxu1 %v4792_v4  ;;  %v9202_v4 = vld [vmem:[#allocation7 + $0x3b4] ss:$8 sps:$4 sm:$0xff]  }
 0x669   : > { %5025 = vmatmul.mubr.bf16.vlgmr.msra.gmra.mrb[144].mxu1 %v4791_v44  ;;  %v9199_v44 = vld [vmem:[#allocation7 + $0x3a4] ss:$8 sps:$4 sm:$0xff]  }
 0x66a   : > { %5082 = vmatpush1.bf16.msra.mxu1 %v10630_v30  ;;  %v4762_v57 = vpop.f32.mrb[164].mxu1  ;;  %v10783_v35 = vpop.f32.mrb[52].mxu0 }
 0x66b   : > { %5083 = vmatprep.subr.bf16.mxu1 %v10639_v49  ;;  %v4764_v36 = vpop.f32.mrb[165].mxu1  ;;  %v10786_v39 = vpop.f32.mrb[53].mxu0 }
 0x66c   : > { %v4766_v32 = vpop.f32.mrb[166].mxu1  ;;  %v10788_v46 = vpop.f32.mrb[54].mxu0 }
 0x66d   : > { %v4793_v31 = vpack.c.bf16 %v4766_v32, %v4762_v57  ;;  %v4768_v61 = vpop.f32.mrb[167].mxu1  ;;  %v10790_v21 = vpop.f32.mrb[55].mxu0  ;;  %v9200_v57 = vld [vmem:[#allocation7 + $0x3b0] ss:$8 sps:$4 sm:$0xff]   ;;  %v9203_v32 = vld [vmem:[#allocation7 + $0x3c0] ss:$8 sps:$4 sm:$0xff]  }
 0x66e   : > { %v4794_v28 = vpack.c.bf16 %v4768_v61, %v4764_v36  ;;  %5084 = vmatpush1.bf16.msra.mxu1 %v10637_v19  ;;  %v9205_v36 = vld [vmem:[#allocation7 + $0x3c4] ss:$8 sps:$4 sm:$0xff]   ;;  %v9206_v61 = vld [vmem:[#allocation7 + $0x3d0] ss:$8 sps:$4 sm:$0xff]  }
 0x66f   : > { %5085 = vmatprep.subr.bf16.mxu1 %v10645_v11 }
 0x670   : > { %5034 = vmatprep.mubr.bf16.mxu1 %v4794_v28  ;;  %v9211_v28 = vld [vmem:[#allocation7 + $0x3e4] ss:$8 sps:$4 sm:$0xff]  }
 0x671   : > { %5035 = vmatmul.mubr.bf16.gmra.mrb[148].mxu1 %v4793_v31  ;;  %v9208_v31 = vld [vmem:[#allocation7 + $0x3d4] ss:$8 sps:$4 sm:$0xff]  }
 0x672   : > { %5086 = vmatpush1.bf16.msra.mxu1 %v10643_v1  ;;  %v4772_v30 = vpop.f32.mrb[168].mxu1  ;;  %v10795_v49 = vpop.f32.mrb[56].mxu0 }
 0x673   : > { %5087 = vmatprep.subr.bf16.mxu1 %v10651_v14  ;;  %v4774_v55 = vpop.f32.mrb[169].mxu1  ;;  %v10798_v16 = vpop.f32.mrb[57].mxu0 }
 0x674   : > { %v4776_v37 = vpop.f32.mrb[170].mxu1  ;;  %v10800_v9 = vpop.f32.mrb[58].mxu0 }
 0x675   : > { %v4795_v2 = vpack.c.bf16 %v4776_v37, %v4772_v30  ;;  %v4778_v19 = vpop.f32.mrb[171].mxu1  ;;  %v10802_v34 = vpop.f32.mrb[59].mxu0  ;;  %v9209_v30 = vld [vmem:[#allocation7 + $0x3e0] ss:$8 sps:$4 sm:$0xff]   ;;  %v9217_v37 = vld [vmem:[#allocation7 + $0x404] ss:$8 sps:$4 sm:$0xff]  }
 0x676   : > { %v4796_v11 = vpack.c.bf16 %v4778_v19, %v4774_v55  ;;  %5088 = vmatpush1.bf16.msra.mxu1 %v10649_v53  ;;  %v9167_v53 = vld [vmem:[#allocation7 + $0x300] ss:$8 sps:$4 sm:$0xff]   ;;  %v9214_v55 = vld [vmem:[#allocation7 + $0x3f4] ss:$8 sps:$4 sm:$0xff]  }
 0x677   : > { %5355 = vmatprep.subr.bf16.mxu1 %v9169_v3  ;;  %v9212_v3 = vld [vmem:[#allocation7 + $0x3f0] ss:$8 sps:$4 sm:$0xff]  }
 0x678   : > { %5044 = vmatprep.mubr.bf16.mxu1 %v4796_v11 }
 0x679   : > { %5045 = vmatmul.mubr.bf16.gmra.mrb[152].mxu1 %v4795_v2 }
 0x67a   : > { %v4782_v1 = vpop.f32.mrb[172].mxu1  ;;  %v10805_v18 = vpop.f32.mrb[60].mxu0 }
 0x67b   : > { %v4784_v14 = vpop.f32.mrb[173].mxu1  ;;  %v10807_v10 = vpop.f32.mrb[61].mxu0 }
 0x67c   : > { %v4786_v59 = vpop.f32.mrb[174].mxu1  ;;  %v10809_v48 = vpop.f32.mrb[62].mxu0 }
 0x67d   : > { %v4797_v45 = vpack.c.bf16 %v4786_v59, %v4782_v1  ;;  %v4788_v25 = vpop.f32.mrb[175].mxu1  ;;  %v10811_v29 = vpop.f32.mrb[63].mxu0 }
 0x67e   : > { %v4798_v56 = vpack.c.bf16 %v4788_v25, %v4784_v14 }
 0x680   : > { %5054 = vmatprep.mubr.bf16.mxu1 %v4798_v56 }
 0x681   : > { %5055 = vmatmul.mubr.bf16.gmra.mrb[156].mxu1 %v4797_v45 }
 0x682   : > { %5113 = vmatprep.mubr.bf16.mxu1 %v9668_v0  ;;  %v10821_v2 = vpop.f32.mrb[64].mxu0 }
 0x683   : > { %v10823_v19 = vpop.f32.mrb[65].mxu0 }
 0x684   : > { %v10825_v11 = vpop.f32.mrb[66].mxu0 }
 0x685   : > { %v5517_v1 = vpack.c.bf16 %v10825_v11, %v10821_v2  ;;  %v10829_v14 = vpop.f32.mrb[67].mxu0  ;;  %v9277_v2 = vld [vmem:[#allocation7 + $0x544] ss:$8 sps:$4 sm:$0xff]   ;;  %v9275_v11 = vld [vmem:[#allocation7 + $0x540] ss:$8 sps:$4 sm:$0xff]  }
 0x686   : > { %v5518_v59 = vpack.c.bf16 %v10829_v14, %v10823_v19  ;;  %v9247_v19 = vld [vmem:[#allocation7 + $0x4a4] ss:$8 sps:$4 sm:$0xff]  }
 0x689   : > { %7991 = vmatmul.mubr.msk.bf16.vlgmr.msra.gmra.mrb[176].mxu1 %vm398_vm0, %v9487_v22 }
 0x68a   : > { %5123 = vmatprep.mubr.bf16.mxu1 %v9668_v0  ;;  %5356 = vmatpush1.bf16.msra.mxu1 %v9167_v53  ;;  %v10833_v45 = vpop.f32.mrb[68].mxu0 }
 0x68b   : > { %5357 = vmatprep.subr.bf16.mxu1 %v9172_v60  ;;  %v10835_v25 = vpop.f32.mrb[69].mxu0 }
 0x68c   : > { %v10837_v56 = vpop.f32.mrb[70].mxu0 }
 0x68d   : > { %v5519_v53 = vpack.c.bf16 %v10837_v56, %v10833_v45  ;;  %v10841_v60 = vpop.f32.mrb[71].mxu0  ;;  %v9283_v56 = vld [vmem:[#allocation7 + $0x564] ss:$8 sps:$4 sm:$0xff]  }
 0x68e   : > { %5358 = vmatpush1.bf16.msra.mxu1 %v9170_v50  ;;  %v5520_v22 = vpack.c.bf16 %v10841_v60, %v10835_v25  ;;  %v9278_v25 = vld [vmem:[#allocation7 + $0x550] ss:$8 sps:$4 sm:$0xff]   ;;  %v9286_v60 = vld [vmem:[#allocation7 + $0x574] ss:$8 sps:$4 sm:$0xff]  }
 0x68f   : > { %5359 = vmatprep.subr.bf16.mxu1 %v9175_v12 }
 0x691   : > { %7992 = vmatmul.mubr.msk.bf16.gmra.mrb[180].mxu1 %vm398_vm0, %v9488_v20 }
 0x692   : > { %5133 = vmatprep.mubr.bf16.mxu1 %v9668_v0  ;;  %5360 = vmatpush1.bf16.msra.mxu1 %v9173_v51  ;;  %v10845_v50 = vpop.f32.mrb[72].mxu0 }
 0x693   : > { %5361 = vmatprep.subr.bf16.mxu1 %v9178_v62  ;;  %v10847_v12 = vpop.f32.mrb[73].mxu0 }
 0x694   : > { %v10849_v51 = vpop.f32.mrb[74].mxu0 }
 0x695   : > { %v5521_v62 = vpack.c.bf16 %v10849_v51, %v10845_v50  ;;  %v10853_v20 = vpop.f32.mrb[75].mxu0  ;;  %v9289_v51 = vld [vmem:[#allocation7 + $0x584] ss:$8 sps:$4 sm:$0xff]  }
 0x696   : > { %5362 = vmatpush1.bf16.msra.mxu1 %v9176_v6  ;;  %v5522_v6 = vpack.c.bf16 %v10853_v20, %v10847_v12  ;;  %v9284_v12 = vld [vmem:[#allocation7 + $0x570] ss:$8 sps:$4 sm:$0xff]   ;;  %v9292_v20 = vld [vmem:[#allocation7 + $0x594] ss:$8 sps:$4 sm:$0xff]  }
 0x697   : > { %5363 = vmatprep.subr.bf16.mxu1 %v9181_v47 }
 0x699   : > { %7993 = vmatmul.mubr.msk.bf16.gmra.mrb[184].mxu1 %vm398_vm0, %v9489_v58 }
 0x69a   : > { %5143 = vmatprep.mubr.bf16.mxu1 %v9668_v0  ;;  %5364 = vmatpush1.bf16.msra.mxu1 %v9179_v17  ;;  %v9194_v0 = vld [vmem:[#allocation7 + $0x390] ss:$8 sps:$4 sm:$0xff]   ;;  %v10857_v47 = vpop.f32.mrb[76].mxu0 }
 0x69b   : > { %5365 = vmatprep.subr.bf16.mxu1 %v9184_v26  ;;  %v10859_v17 = vpop.f32.mrb[77].mxu0 }
 0x69c   : > { %v10861_v26 = vpop.f32.mrb[78].mxu0 }
 0x69e   : > { %5366 = vmatpush1.bf16.msra.mxu1 %v9182_v33  ;;  %v10865_v33 = vpop.f32.mrb[79].mxu0 }
 0x69f   : > { %5367 = vmatprep.subr.bf16.mxu1 %v9187_v15  ;;  %v11271_v45 = vpack.c.bf16 %v10865_v33, %v10859_v17 }
 0x6a1   : > { %7994 = vmatmul.mubr.msk.bf16.gmra.mrb[188].mxu1 %vm398_vm0, %v9490_v52 }
 0x6a2   : > { %5368 = vmatpush1.bf16.msra.mxu1 %v9185_v63  ;;  %v10869_v63 = vpop.f32.mrb[80].mxu0 }
 0x6a3   : > { %5369 = vmatprep.subr.bf16.mxu1 %v9190_v13  ;;  %v10871_v13 = vpop.f32.mrb[81].mxu0 }
 0x6a6   : > { %5370 = vmatpush1.bf16.msra.mxu1 %v9188_v7  ;;  %v10873_v7 = vpop.f32.mrb[82].mxu0 }
 0x6a7   : > { %5371 = vmatprep.subr.bf16.mxu1 %v9193_v23 }
 0x6aa   : > { %5372 = vmatpush1.bf16.msra.mxu1 %v9191_v8  ;;  %v9227_v8 = vld [vmem:[#allocation7 + $0x440] ss:$8 sps:$4 sm:$0xff]  }
 0x6ab   : > { %5373 = vmatprep.subr.bf16.mxu1 %v9196_v38  ;;  %v10877_v38 = vpop.f32.mrb[83].mxu0 }
 0x6ac   : > { %v11273_v50 = vpack.c.bf16 %v10877_v38, %v10871_v13  ;;  %v9295_v13 = vld [vmem:[#allocation7 + $0x5a4] ss:$8 sps:$4 sm:$0xff]  }
 0x6ae   : > { %5374 = vmatpush1.bf16.msra.mxu1 %v9194_v0 }
 0x6af   : > { %5375 = vmatprep.subr.bf16.mxu1 %v9199_v44 }
 0x6b2   : > { %5376 = vmatpush1.bf16.msra.mxu1 %v9197_v42 }
 0x6b3   : > { %5377 = vmatprep.subr.bf16.mxu1 %v9202_v4 }
 0x6b6   : > { %5378 = vmatpush1.bf16.msra.mxu1 %v9200_v57 }
 0x6b7   : > { %5379 = vmatprep.subr.bf16.mxu1 %v9205_v36  ;;  %v9215_v36 = vld [vmem:[#allocation7 + $0x400] ss:$8 sps:$4 sm:$0xff]  }
 0x6ba   : > { %5380 = vmatpush1.bf16.msra.mxu1 %v9203_v32  ;;  %v9220_v32 = vld [vmem:[#allocation7 + $0x414] ss:$8 sps:$4 sm:$0xff]  }
 0x6bb   : > { %5381 = vmatprep.subr.bf16.mxu1 %v9208_v31  ;;  %v9218_v31 = vld [vmem:[#allocation7 + $0x410] ss:$8 sps:$4 sm:$0xff]  }
 0x6be   : > { %5382 = vmatpush1.bf16.msra.mxu1 %v9206_v61 }
 0x6bf   : > { %5383 = vmatprep.subr.bf16.mxu1 %v9211_v28  ;;  %v9223_v28 = vld [vmem:[#allocation7 + $0x424] ss:$8 sps:$4 sm:$0xff]  }
 0x6c2   : > { %5384 = vmatpush1.bf16.msra.mxu1 %v9209_v30 }
 0x6c3   : > { %5385 = vmatprep.subr.bf16.mxu1 %v9214_v55 }
 0x6c6   : > { %5386 = vmatpush1.bf16.msra.mxu1 %v9212_v3 }
 0x6c7   : > { %5718 = vmatprep.subr.bf16.mxu1 %v9217_v37 }
 0x75c   : > { %v5115_v52 = vpop.f32.mrb[176].mxu1 }
 0x75d   : > { %v5117_v23 = vpop.f32.mrb[177].mxu1 }
 0x75e   : > { %v5119_v0 = vpop.f32.mrb[178].mxu1 }
 0x75f   : > { %v5154_v42 = vpack.c.bf16 %v5119_v0, %v5115_v52  ;;  %v5121_v4 = vpop.f32.mrb[179].mxu1  ;;  %v9226_v52 = vld [vmem:[#allocation7 + $0x434] ss:$8 sps:$4 sm:$0xff]  }
 0x760   : > { %v5155_v57 = vpack.c.bf16 %v5121_v4, %v5117_v23  ;;  %v9224_v23 = vld [vmem:[#allocation7 + $0x430] ss:$8 sps:$4 sm:$0xff]  }
 0x762   : > { %5387 = vmatprep.mubr.bf16.mxu1 %v5155_v57 }
 0x763   : > { %5388 = vmatmul.mubr.bf16.vlgmr.msra.gmra.mrb[144].mxu1 %v5154_v42  ;;  %v9229_v42 = vld [vmem:[#allocation7 + $0x444] ss:$8 sps:$4 sm:$0xff]  }
 0x764   : > { %5719 = vmatpush1.bf16.msra.mxu1 %v9215_v36  ;;  %v5125_v61 = vpop.f32.mrb[180].mxu1 }
 0x765   : > { %5720 = vmatprep.subr.bf16.mxu1 %v9220_v32  ;;  %v5127_v30 = vpop.f32.mrb[181].mxu1 }
 0x766   : > { %v5129_v55 = vpop.f32.mrb[182].mxu1 }
 0x767   : > { %v5156_v3 = vpack.c.bf16 %v5129_v55, %v5125_v61  ;;  %v5131_v37 = vpop.f32.mrb[183].mxu1 }
 0x768   : > { %5721 = vmatpush1.bf16.msra.mxu1 %v9218_v31  ;;  %v5157_v27 = vpack.c.bf16 %v5131_v37, %v5127_v30  ;;  %v9232_v31 = vld [vmem:[#allocation7 + $0x454] ss:$8 sps:$4 sm:$0xff]  }
 0x769   : > { %5722 = vmatprep.subr.bf16.mxu1 %v9223_v28  ;;  %v9230_v28 = vld [vmem:[#allocation7 + $0x450] ss:$8 sps:$4 sm:$0xff]  }
 0x76a   : > { %5397 = vmatprep.mubr.bf16.mxu1 %v5157_v27 }
 0x76b   : > { %5398 = vmatmul.mubr.bf16.gmra.mrb[148].mxu1 %v5156_v3 }
 0x76c   : > { %5723 = vmatpush1.bf16.msra.mxu1 %v9221_v43  ;;  %v5135_v0 = vpop.f32.mrb[184].mxu1  ;;  %v9235_v43 = vld [vmem:[#allocation7 + $0x464] ss:$8 sps:$4 sm:$0xff]  }
 0x76d   : > { %5724 = vmatprep.subr.bf16.mxu1 %v9226_v52  ;;  %v5137_v4 = vpop.f32.mrb[185].mxu1  ;;  %v9233_v52 = vld [vmem:[#allocation7 + $0x460] ss:$8 sps:$4 sm:$0xff]  }
 0x76e   : > { %v5139_v57 = vpop.f32.mrb[186].mxu1 }
 0x76f   : > { %v5158_v36 = vpack.c.bf16 %v5139_v57, %v5135_v0  ;;  %v5141_v32 = vpop.f32.mrb[187].mxu1  ;;  %v9244_v57 = vld [vmem:[#allocation7 + $0x494] ss:$8 sps:$4 sm:$0xff]  }
 0x770   : > { %5725 = vmatpush1.bf16.msra.mxu1 %v9224_v23  ;;  %v5159_v61 = vpack.c.bf16 %v5141_v32, %v5137_v4  ;;  %v9238_v23 = vld [vmem:[#allocation7 + $0x474] ss:$8 sps:$4 sm:$0xff]   ;;  %v9239_v4 = vld [vmem:[#allocation7 + $0x480] ss:$8 sps:$4 sm:$0xff]  }
 0x771   : > { %5726 = vmatprep.subr.bf16.mxu1 %v9229_v42  ;;  %v9236_v42 = vld [vmem:[#allocation7 + $0x470] ss:$8 sps:$4 sm:$0xff]  }
 0x772   : > { %5407 = vmatprep.mubr.bf16.mxu1 %v5159_v61 }
 0x773   : > { %5408 = vmatmul.mubr.bf16.gmra.mrb[152].mxu1 %v5158_v36  ;;  %v10884_v36 = vpop.f32.mrb[84].mxu0 }
 0x774   : > { %5727 = vmatpush1.bf16.msra.mxu1 %v9227_v8  ;;  %v5145_v27 = vpop.f32.mrb[188].mxu1  ;;  %v9241_v8 = vld [vmem:[#allocation7 + $0x484] ss:$8 sps:$4 sm:$0xff]   ;;  %v10886_v32 = vpop.f32.mrb[85].mxu0 }
 0x775   : > { %5728 = vmatprep.subr.bf16.mxu1 %v9232_v31  ;;  %v5147_v30 = vpop.f32.mrb[189].mxu1  ;;  %v10888_v61 = vpop.f32.mrb[86].mxu0  ;;  %v9242_v31 = vld [vmem:[#allocation7 + $0x490] ss:$8 sps:$4 sm:$0xff]  }
 0x776   : > { %v5149_v55 = vpop.f32.mrb[190].mxu1 }
 0x777   : > { %v5160_v3 = vpack.c.bf16 %v5149_v55, %v5145_v27  ;;  %v5151_v37 = vpop.f32.mrb[191].mxu1  ;;  %v10892_v27 = vpop.f32.mrb[87].mxu0 }
 0x778   : > { %5729 = vmatpush1.bf16.msra.mxu1 %v9230_v28  ;;  %v5161_v0 = vpack.c.bf16 %v5151_v37, %v5147_v30  ;;  %v10896_v30 = vpop.f32.mrb[88].mxu0  ;;  %v9248_v37 = vld [vmem:[#allocation7 + $0x4b0] ss:$8 sps:$4 sm:$0xff]   ;;  %v9259_v28 = vld [vmem:[#allocation7 + $0x4e4] ss:$8 sps:$4 sm:$0xff]  }
 0x779   : > { %5730 = vmatprep.subr.bf16.mxu1 %v9235_v43  ;;  %v9250_v43 = vld [vmem:[#allocation7 + $0x4b4] ss:$8 sps:$4 sm:$0xff]   ;;  %v10898_v55 = vpop.f32.mrb[89].mxu0 }
 0x77a   : > { %5417 = vmatprep.mubr.bf16.mxu1 %v5161_v0 }
 0x77b   : > { %5418 = vmatmul.mubr.bf16.gmra.mrb[156].mxu1 %v5160_v3  ;;  %v10900_v3 = vpop.f32.mrb[90].mxu0 }
 0x77c   : > { %5731 = vmatpush1.bf16.msra.mxu1 %v9233_v52  ;;  %5750 = vmatprep.mubr.bf16.mxu1 %v5518_v59  ;;  %v9245_v59 = vld [vmem:[#allocation7 + $0x4a0] ss:$8 sps:$4 sm:$0xff]   ;;  %v10904_v0 = vpop.f32.mrb[91].mxu0  ;;  %v9265_v52 = vld [vmem:[#allocation7 + $0x504] ss:$8 sps:$4 sm:$0xff]  }
 0x77d   : > { %5732 = vmatprep.subr.bf16.mxu1 %v9238_v23  ;;  %v9253_v23 = vld [vmem:[#allocation7 + $0x4c4] ss:$8 sps:$4 sm:$0xff]  }
 0x780   : > { %5733 = vmatpush1.bf16.msra.mxu1 %v9236_v42  ;;  %v9262_v42 = vld [vmem:[#allocation7 + $0x4f4] ss:$8 sps:$4 sm:$0xff]  }
 0x781   : > { %5734 = vmatprep.subr.bf16.mxu1 %v9241_v8  ;;  %v9251_v8 = vld [vmem:[#allocation7 + $0x4c0] ss:$8 sps:$4 sm:$0xff]  }
 0x784   : > { %5735 = vmatpush1.bf16.msra.mxu1 %v9239_v4  ;;  %v9256_v4 = vld [vmem:[#allocation7 + $0x4d4] ss:$8 sps:$4 sm:$0xff]  }
 0x785   : > { %5736 = vmatprep.subr.bf16.mxu1 %v9244_v57  ;;  %v10908_v57 = vpop.f32.mrb[92].mxu0 }
 0x788   : > { %5737 = vmatpush1.bf16.msra.mxu1 %v9242_v31  ;;  %v10910_v31 = vpop.f32.mrb[93].mxu0 }
 0x789   : > { %5738 = vmatprep.subr.bf16.mxu1 %v9247_v19  ;;  %v10912_v19 = vpop.f32.mrb[94].mxu0 }
 0x78c   : > { %5739 = vmatpush1.bf16.msra.mxu1 %v9245_v59  ;;  %v9254_v59 = vld [vmem:[#allocation7 + $0x4d0] ss:$8 sps:$4 sm:$0xff]  }
 0x78d   : > { %5740 = vmatprep.subr.bf16.mxu1 %v9250_v43  ;;  %v10916_v43 = vpop.f32.mrb[95].mxu0 }
 0x78e   : > { %v10920_v14 = vpop.f32.mrb[96].mxu0 }
 0x78f   : > { %v10922_v44 = vpop.f32.mrb[97].mxu0 }
 0x790   : > { %5741 = vmatpush1.bf16.msra.mxu1 %v9248_v37  ;;  %v10924_v58 = vpop.f32.mrb[98].mxu0  ;;  %v9268_v37 = vld [vmem:[#allocation7 + $0x514] ss:$8 sps:$4 sm:$0xff]  }
 0x791   : > { %5742 = vmatprep.subr.bf16.mxu1 %v9253_v23  ;;  %v9257_v23 = vld [vmem:[#allocation7 + $0x4e0] ss:$8 sps:$4 sm:$0xff]   ;;  %v10928_v15 = vpop.f32.mrb[99].mxu0 }
 0x794   : > { %5743 = vmatpush1.bf16.msra.mxu1 %v9251_v8  ;;  %v9260_v8 = vld [vmem:[#allocation7 + $0x4f0] ss:$8 sps:$4 sm:$0xff]  }
 0x795   : > { %5744 = vmatprep.subr.bf16.mxu1 %v9256_v4  ;;  %v9269_v4 = vld [vmem:[#allocation7 + $0x520] ss:$8 sps:$4 sm:$0xff]  }
 0x798   : > { %5745 = vmatpush1.bf16.msra.mxu1 %v9254_v59  ;;  %v9274_v59 = vld [vmem:[#allocation7 + $0x534] ss:$8 sps:$4 sm:$0xff]  }
 0x799   : > { %5746 = vmatprep.subr.bf16.mxu1 %v9259_v28  ;;  %v9263_v28 = vld [vmem:[#allocation7 + $0x500] ss:$8 sps:$4 sm:$0xff]  }
 0x79c   : > { %5747 = vmatpush1.bf16.msra.mxu1 %v9257_v23  ;;  %v9266_v23 = vld [vmem:[#allocation7 + $0x510] ss:$8 sps:$4 sm:$0xff]  }
 0x79d   : > { %5748 = vmatprep.subr.bf16.mxu1 %v9262_v42  ;;  %v9271_v42 = vld [vmem:[#allocation7 + $0x524] ss:$8 sps:$4 sm:$0xff]  }
 0x7a0   : > { %5749 = vmatpush1.bf16.msra.mxu1 %v9260_v8  ;;  %v9293_v8 = vld [vmem:[#allocation7 + $0x5a0] ss:$8 sps:$4 sm:$0xff]  }
 0x7a1   : > { %6081 = vmatprep.subr.bf16.mxu1 %v9265_v52  ;;  %v9272_v52 = vld [vmem:[#allocation7 + $0x530] ss:$8 sps:$4 sm:$0xff]  }
 0x7a3   : > { %5751 = vmatmul.mubr.bf16.vlgmr.msra.gmra.mrb[144].mxu1 %v5517_v1  ;;  %v9280_v1 = vld [vmem:[#allocation7 + $0x554] ss:$8 sps:$4 sm:$0xff]  }
 0x7a4   : > { %6082 = vmatpush1.bf16.msra.mxu1 %v9263_v28  ;;  %5760 = vmatprep.mubr.bf16.mxu1 %v5520_v22  ;;  %v11272_v22 = vpack.c.bf16 %v10861_v26, %v10857_v47  ;;  %v9290_v47 = vld [vmem:[#allocation7 + $0x590] ss:$8 sps:$4 sm:$0xff]  }
 0x7a5   : > { %6083 = vmatprep.subr.bf16.mxu1 %v9268_v37 }
 0x7a8   : > { %6084 = vmatpush1.bf16.msra.mxu1 %v9266_v23 }
 0x7a9   : > { %6085 = vmatprep.subr.bf16.mxu1 %v9271_v42  ;;  %v9296_v42 = vld [vmem:[#allocation7 + $0x5b0] ss:$8 sps:$4 sm:$0xff]  }
 0x7ab   : > { %5761 = vmatmul.mubr.bf16.gmra.mrb[148].mxu1 %v5519_v53  ;;  %v9281_v53 = vld [vmem:[#allocation7 + $0x560] ss:$8 sps:$4 sm:$0xff]  }
 0x7ac   : > { %6086 = vmatpush1.bf16.msra.mxu1 %v9269_v4  ;;  %5770 = vmatprep.mubr.bf16.mxu1 %v5522_v6  ;;  %v10956_v6 = vpop.f32.mrb[100].mxu0  ;;  %v9298_v4 = vld [vmem:[#allocation7 + $0x5b4] ss:$8 sps:$4 sm:$0xff]  }
 0x7ad   : > { %6087 = vmatprep.subr.bf16.mxu1 %v9274_v59  ;;  %v10958_v17 = vpop.f32.mrb[101].mxu0 }
 0x7ae   : > { %v10960_v33 = vpop.f32.mrb[102].mxu0 }
 0x7af   : > { %v6245_v26 = vpack.c.bf16 %v10960_v33, %v10956_v6  ;;  %v10964_v37 = vpop.f32.mrb[103].mxu0  ;;  %v9371_v6 = vld [vmem:[#allocation7 + $0x740] ss:$8 sps:$4 sm:$0xff]   ;;  %v9376_v33 = vld [vmem:[#allocation7 + $0x754] ss:$8 sps:$4 sm:$0xff]  }
 0x7b0   : > { %6088 = vmatpush1.bf16.msra.mxu1 %v9272_v52  ;;  %v6246_v38 = vpack.c.bf16 %v10964_v37, %v10958_v17  ;;  %v10968_v59 = vpop.f32.mrb[104].mxu0  ;;  %v9317_v52 = vld [vmem:[#allocation7 + $0x620] ss:$8 sps:$4 sm:$0xff]   ;;  %v9368_v37 = vld [vmem:[#allocation7 + $0x730] ss:$8 sps:$4 sm:$0xff]  }
 0x7b1   : > { %6089 = vmatprep.subr.bf16.mxu1 %v9277_v2  ;;  %v10970_v28 = vpop.f32.mrb[105].mxu0 }
 0x7b2   : > { %v10972_v23 = vpop.f32.mrb[106].mxu0 }
 0x7b3   : > { %5771 = vmatmul.mubr.bf16.gmra.mrb[152].mxu1 %v5521_v62  ;;  %v9287_v62 = vld [vmem:[#allocation7 + $0x580] ss:$8 sps:$4 sm:$0xff]   ;;  %v10976_v2 = vpop.f32.mrb[107].mxu0 }
 0x7b4   : > { %6090 = vmatpush1.bf16.msra.mxu1 %v9275_v11  ;;  %5780 = vmatprep.mubr.bf16.mxu1 %v11271_v45  ;;  %v9301_v11 = vld [vmem:[#allocation7 + $0x5c4] ss:$8 sps:$4 sm:$0xff]   ;;  %v9304_v45 = vld [vmem:[#allocation7 + $0x5d4] ss:$8 sps:$4 sm:$0xff]  }
 0x7b5   : > { %6091 = vmatprep.subr.bf16.mxu1 %v9280_v1 }
 0x7b8   : > { %6092 = vmatpush1.bf16.msra.mxu1 %v9278_v25  ;;  %v9299_v25 = vld [vmem:[#allocation7 + $0x5c0] ss:$8 sps:$4 sm:$0xff]  }
 0x7b9   : > { %6093 = vmatprep.subr.bf16.mxu1 %v9283_v56  ;;  %v10980_v56 = vpop.f32.mrb[108].mxu0 }
 0x7bb   : > { %5781 = vmatmul.mubr.bf16.gmra.mrb[156].mxu1 %v11272_v22  ;;  %v9302_v22 = vld [vmem:[#allocation7 + $0x5d0] ss:$8 sps:$4 sm:$0xff]  }
 0x7bc   : > { %6094 = vmatpush1.bf16.msra.mxu1 %v9281_v53  ;;  %6113 = vmatprep.mubr.bf16.mxu1 %v11273_v50  ;;  %v10982_v53 = vpop.f32.mrb[109].mxu0 }
 0x7bd   : > { %6095 = vmatprep.subr.bf16.mxu1 %v9286_v60  ;;  %v10984_v60 = vpop.f32.mrb[110].mxu0 }
 0x7be   : > { %v10988_v50 = vpop.f32.mrb[111].mxu0 }
 0x7c0   : > { %6096 = vmatpush1.bf16.msra.mxu1 %v9284_v12  ;;  %v9316_v12 = vld [vmem:[#allocation7 + $0x614] ss:$8 sps:$4 sm:$0xff]  }
 0x7c1   : > { %6097 = vmatprep.subr.bf16.mxu1 %v9289_v51  ;;  %v9307_v51 = vld [vmem:[#allocation7 + $0x5e4] ss:$8 sps:$4 sm:$0xff]  }
 0x7c4   : > { %6098 = vmatpush1.bf16.msra.mxu1 %v9287_v62  ;;  %v9314_v62 = vld [vmem:[#allocation7 + $0x610] ss:$8 sps:$4 sm:$0xff]  }
 0x7c5   : > { %6099 = vmatprep.subr.bf16.mxu1 %v9292_v20  ;;  %v9305_v20 = vld [vmem:[#allocation7 + $0x5e0] ss:$8 sps:$4 sm:$0xff]  }
 0x7c8   : > { %6100 = vmatpush1.bf16.msra.mxu1 %v9290_v47  ;;  %v9310_v47 = vld [vmem:[#allocation7 + $0x5f4] ss:$8 sps:$4 sm:$0xff]  }
 0x7c9   : > { %6101 = vmatprep.subr.bf16.mxu1 %v9295_v13  ;;  %v10992_v13 = vpop.f32.mrb[112].mxu0 }
 0x7cc   : > { %6102 = vmatpush1.bf16.msra.mxu1 %v9293_v8  ;;  %v10994_v8 = vpop.f32.mrb[113].mxu0 }
 0x7cd   : > { %6103 = vmatprep.subr.bf16.mxu1 %v9298_v4  ;;  %v9308_v4 = vld [vmem:[#allocation7 + $0x5f0] ss:$8 sps:$4 sm:$0xff]  }
 0x7d0   : > { %6104 = vmatpush1.bf16.msra.mxu1 %v9296_v42  ;;  %v10996_v42 = vpop.f32.mrb[114].mxu0 }
 0x7d1   : > { %6105 = vmatprep.subr.bf16.mxu1 %v9301_v11  ;;  %v9313_v11 = vld [vmem:[#allocation7 + $0x604] ss:$8 sps:$4 sm:$0xff]  }
 0x7d4   : > { %6106 = vmatpush1.bf16.msra.mxu1 %v9299_v25  ;;  %v9319_v25 = vld [vmem:[#allocation7 + $0x624] ss:$8 sps:$4 sm:$0xff]  }
 0x7d5   : > { %6107 = vmatprep.subr.bf16.mxu1 %v9304_v45  ;;  %v11000_v45 = vpop.f32.mrb[115].mxu0 }
 0x7d8   : > { %6108 = vmatpush1.bf16.msra.mxu1 %v9302_v22  ;;  %v9322_v22 = vld [vmem:[#allocation7 + $0x634] ss:$8 sps:$4 sm:$0xff]  }
 0x7d9   : > { %6109 = vmatprep.subr.bf16.mxu1 %v9307_v51  ;;  %v9311_v51 = vld [vmem:[#allocation7 + $0x600] ss:$8 sps:$4 sm:$0xff]  }
 0x7dc   : > { %6110 = vmatpush1.bf16.msra.mxu1 %v9305_v20  ;;  %v11274_v20 = vpack.c.bf16 %v10873_v7, %v10869_v63  ;;  %v11277_v63 = vpack.c.bf16 %v10904_v0, %v10898_v55  ;;  %v9325_v7 = vld [vmem:[#allocation7 + $0x644] ss:$8 sps:$4 sm:$0xff]   ;;  %v9329_v55 = vld [vmem:[#allocation7 + $0x660] ss:$8 sps:$4 sm:$0xff]   ;;  %v9334_v0 = vld [vmem:[#allocation7 + $0x674] ss:$8 sps:$4 sm:$0xff]  }
 0x7dd   : > { %6111 = vmatprep.subr.bf16.mxu1 %v9310_v47  ;;  %v11275_v47 = vpack.c.bf16 %v10892_v27, %v10886_v32  ;;  %v9323_v32 = vld [vmem:[#allocation7 + $0x640] ss:$8 sps:$4 sm:$0xff]   ;;  %v9328_v27 = vld [vmem:[#allocation7 + $0x654] ss:$8 sps:$4 sm:$0xff]  }
 0x7e0   : > { %6112 = vmatpush1.bf16.msra.mxu1 %v9308_v4  ;;  %v11276_v4 = vpack.c.bf16 %v10888_v61, %v10884_v36  ;;  %v11279_v36 = vpack.c.bf16 %v10916_v43, %v10910_v31  ;;  %v9331_v61 = vld [vmem:[#allocation7 + $0x664] ss:$8 sps:$4 sm:$0xff]   ;;  %v9335_v31 = vld [vmem:[#allocation7 + $0x680] ss:$8 sps:$4 sm:$0xff]   ;;  %v11028_v43 = vpop.f32.mrb[116].mxu0 }
 0x7e1   : > { %6444 = vmatprep.subr.bf16.mxu1 %v9313_v11  ;;  %v9320_v11 = vld [vmem:[#allocation7 + $0x630] ss:$8 sps:$4 sm:$0xff]  }
 0x7e3   : > { %6114 = vmatmul.mubr.bf16.vlgmr.msra.gmra.mrb[144].mxu1 %v11274_v20 }
 0x7e4   : > { %6445 = vmatpush1.bf16.msra.mxu1 %v9311_v51  ;;  %6123 = vmatprep.mubr.bf16.mxu1 %v11275_v47  ;;  %v11030_v51 = vpop.f32.mrb[117].mxu0  ;;  %v9343_v47 = vld [vmem:[#allocation7 + $0x6a4] ss:$8 sps:$4 sm:$0xff]  }
 0x7e5   : > { %6446 = vmatprep.subr.bf16.mxu1 %v9316_v12  ;;  %v11278_v12 = vpack.c.bf16 %v10900_v3, %v10896_v30  ;;  %v11281_v30 = vpack.c.bf16 %v10928_v15, %v10922_v44  ;;  %v9337_v3 = vld [vmem:[#allocation7 + $0x684] ss:$8 sps:$4 sm:$0xff]   ;;  %v11032_v20 = vpop.f32.mrb[118].mxu0 }
 0x7e8   : > { %6447 = vmatpush1.bf16.msra.mxu1 %v9314_v62  ;;  %v9326_v62 = vld [vmem:[#allocation7 + $0x650] ss:$8 sps:$4 sm:$0xff]  }
 0x7e9   : > { %6448 = vmatprep.subr.bf16.mxu1 %v9319_v25  ;;  %v9332_v25 = vld [vmem:[#allocation7 + $0x670] ss:$8 sps:$4 sm:$0xff]  }
 0x7eb   : > { %6124 = vmatmul.mubr.bf16.gmra.mrb[148].mxu1 %v11276_v4  ;;  %v9341_v4 = vld [vmem:[#allocation7 + $0x6a0] ss:$8 sps:$4 sm:$0xff]  }
 0x7ec   : > { %6449 = vmatpush1.bf16.msra.mxu1 %v9317_v52  ;;  %6133 = vmatprep.mubr.bf16.mxu1 %v11277_v63  ;;  %v11280_v52 = vpack.c.bf16 %v10912_v19, %v10908_v57  ;;  %v11034_v57 = vpop.f32.mrb[119].mxu0  ;;  %v9338_v19 = vld [vmem:[#allocation7 + $0x690] ss:$8 sps:$4 sm:$0xff]   ;;  %v9346_v63 = vld [vmem:[#allocation7 + $0x6b4] ss:$8 sps:$4 sm:$0xff]  }
 0x7ed   : > { %6450 = vmatprep.subr.bf16.mxu1 %v9322_v22  ;;  %v9340_v22 = vld [vmem:[#allocation7 + $0x694] ss:$8 sps:$4 sm:$0xff]  }
 0x7f0   : > { %6451 = vmatpush1.bf16.msra.mxu1 %v9320_v11  ;;  %v11040_v11 = vpop.f32.mrb[120].mxu0 }
 0x7f1   : > { %6452 = vmatprep.subr.bf16.mxu1 %v9325_v7  ;;  %v11042_v7 = vpop.f32.mrb[121].mxu0 }
 0x7f3   : > { %6134 = vmatmul.mubr.bf16.gmra.mrb[152].mxu1 %v11278_v12  ;;  %v9344_v12 = vld [vmem:[#allocation7 + $0x6b0] ss:$8 sps:$4 sm:$0xff]  }
 0x7f4   : > { %6453 = vmatpush1.bf16.msra.mxu1 %v9323_v32  ;;  %6143 = vmatprep.mubr.bf16.mxu1 %v11279_v36  ;;  %v11044_v32 = vpop.f32.mrb[122].mxu0 }
 0x7f5   : > { %6454 = vmatprep.subr.bf16.mxu1 %v9328_v27  ;;  %v11046_v27 = vpop.f32.mrb[123].mxu0 }
 0x7f8   : > { %6455 = vmatpush1.bf16.msra.mxu1 %v9326_v62 }
 0x7f9   : > { %6456 = vmatprep.subr.bf16.mxu1 %v9331_v61  ;;  %v9349_v61 = vld [vmem:[#allocation7 + $0x6c4] ss:$8 sps:$4 sm:$0xff]  }
 0x7fb   : > { %6144 = vmatmul.mubr.bf16.gmra.mrb[156].mxu1 %v11280_v52  ;;  %v9352_v52 = vld [vmem:[#allocation7 + $0x6d4] ss:$8 sps:$4 sm:$0xff]  }
 0x7fc   : > { %6457 = vmatpush1.bf16.msra.mxu1 %v9329_v55  ;;  %6476 = vmatprep.mubr.bf16.mxu1 %v11281_v30  ;;  %v9347_v55 = vld [vmem:[#allocation7 + $0x6c0] ss:$8 sps:$4 sm:$0xff]  }
 0x7fd   : > { %6458 = vmatprep.subr.bf16.mxu1 %v9334_v0  ;;  %v11052_v0 = vpop.f32.mrb[124].mxu0 }
 0x800   : > { %6459 = vmatpush1.bf16.msra.mxu1 %v9332_v25  ;;  %v11054_v25 = vpop.f32.mrb[125].mxu0 }
 0x801   : > { %6460 = vmatprep.subr.bf16.mxu1 %v9337_v3  ;;  %v11056_v30 = vpop.f32.mrb[126].mxu0 }
 0x802   : > { %v11058_v3 = vpop.f32.mrb[127].mxu0 }
 0x804   : > { %6461 = vmatpush1.bf16.msra.mxu1 %v9335_v31  ;;  %v9350_v31 = vld [vmem:[#allocation7 + $0x6d0] ss:$8 sps:$4 sm:$0xff]  }
 0x805   : > { %6462 = vmatprep.subr.bf16.mxu1 %v9340_v22 }
 0x808   : > { %6463 = vmatpush1.bf16.msra.mxu1 %v9338_v19  ;;  %v9364_v19 = vld [vmem:[#allocation7 + $0x714] ss:$8 sps:$4 sm:$0xff]  }
 0x809   : > { %6464 = vmatprep.subr.bf16.mxu1 %v9343_v47  ;;  %v9355_v47 = vld [vmem:[#allocation7 + $0x6e4] ss:$8 sps:$4 sm:$0xff]  }
 0x80c   : > { %6465 = vmatpush1.bf16.msra.mxu1 %v9341_v4  ;;  %v9353_v4 = vld [vmem:[#allocation7 + $0x6e0] ss:$8 sps:$4 sm:$0xff]  }
 0x80d   : > { %6466 = vmatprep.subr.bf16.mxu1 %v9346_v63  ;;  %v9358_v63 = vld [vmem:[#allocation7 + $0x6f4] ss:$8 sps:$4 sm:$0xff]  }
 0x810   : > { %6467 = vmatpush1.bf16.msra.mxu1 %v9344_v12  ;;  %v11064_v12 = vpop.f32.mrb[128].mxu0 }
 0x811   : > { %6468 = vmatprep.subr.bf16.mxu1 %v9349_v61  ;;  %v11066_v61 = vpop.f32.mrb[129].mxu0 }
 0x812   : > { %v11068_v62 = vpop.f32.mrb[130].mxu0 }
 0x813   : > { %v11072_v36 = vpop.f32.mrb[131].mxu0 }
 0x814   : > { %6469 = vmatpush1.bf16.msra.mxu1 %v9347_v55  ;;  %v9356_v55 = vld [vmem:[#allocation7 + $0x6f0] ss:$8 sps:$4 sm:$0xff]   ;;  %v11076_v15 = vpop.f32.mrb[132].mxu0 }
 0x815   : > { %6470 = vmatprep.subr.bf16.mxu1 %v9352_v52  ;;  %v9361_v52 = vld [vmem:[#allocation7 + $0x704] ss:$8 sps:$4 sm:$0xff]   ;;  %v11078_v44 = vpop.f32.mrb[133].mxu0 }
 0x816   : > { %v11083_v22 = vpop.f32.mrb[134].mxu0 }
 0x818   : > { %6471 = vmatpush1.bf16.msra.mxu1 %v9350_v31  ;;  %v9367_v31 = vld [vmem:[#allocation7 + $0x724] ss:$8 sps:$4 sm:$0xff]  }
 0x819   : > { %6472 = vmatprep.subr.bf16.mxu1 %v9355_v47  ;;  %v9359_v47 = vld [vmem:[#allocation7 + $0x700] ss:$8 sps:$4 sm:$0xff]  }
 0x81c   : > { %6473 = vmatpush1.bf16.msra.mxu1 %v9353_v4  ;;  %v11282_v4 = vpack.c.bf16 %v10924_v58, %v10920_v14  ;;  %v9365_v58 = vld [vmem:[#allocation7 + $0x720] ss:$8 sps:$4 sm:$0xff]   ;;  %v9370_v14 = vld [vmem:[#allocation7 + $0x734] ss:$8 sps:$4 sm:$0xff]  }
 0x81d   : > { %6474 = vmatprep.subr.bf16.mxu1 %v9358_v63  ;;  %v9362_v63 = vld [vmem:[#allocation7 + $0x710] ss:$8 sps:$4 sm:$0xff]  }
 0x820   : > { %6475 = vmatpush1.bf16.msra.mxu1 %v9356_v55 }
 0x821   : > { %6807 = vmatprep.subr.bf16.mxu1 %v9361_v52  ;;  %v11090_v52 = vpop.f32.mrb[135].mxu0 }
 0x822   : > { %v6972_v1 = vpack.c.bf16 %v11090_v52, %v11078_v44  ;;  %v7259_v44 = vld [vmem:[#allocation9] sm:$0x3] }
 0x823   : > { %6477 = vmatmul.mubr.bf16.vlgmr.msra.gmra.mrb[144].mxu1 %v11282_v4 }
 0x824   : > { %6808 = vmatpush1.bf16.msra.mxu1 %v9359_v47  ;;  %6486 = vmatprep.mubr.bf16.mxu1 %v6246_v38  ;;  %v11094_v47 = vpop.f32.mrb[136].mxu0  ;;  %v11283_v38 = vpack.c.bf16 %v10976_v2, %v10970_v28  ;;  %v11284_v28 = vpack.c.bf16 %v10972_v23, %v10968_v59  ;;  %v9377_v59 = vld [vmem:[#allocation7 + $0x760] ss:$8 sps:$4 sm:$0xff]   ;;  %v9382_v23 = vld [vmem:[#allocation7 + $0x774] ss:$8 sps:$4 sm:$0xff]  }
 0x825   : > { %6809 = vmatprep.subr.bf16.mxu1 %v9364_v19  ;;  %v11096_v4 = vpop.f32.mrb[137].mxu0  ;;  %v9379_v19 = vld [vmem:[#allocation7 + $0x764] ss:$8 sps:$4 sm:$0xff]  }
 0x826   : > { %v11101_v17 = vpop.f32.mrb[138].mxu0 }
 0x828   : > { %6810 = vmatpush1.bf16.msra.mxu1 %v9362_v63  ;;  %v9373_v63 = vld [vmem:[#allocation7 + $0x744] ss:$8 sps:$4 sm:$0xff]  }
 0x829   : > { %6811 = vmatprep.subr.bf16.mxu1 %v9367_v31  ;;  %v11108_v31 = vpop.f32.mrb[139].mxu0 }
 0x82b   : > { %6487 = vmatmul.mubr.bf16.gmra.mrb[148].mxu1 %v6245_v26  ;;  %v11112_v26 = vpop.f32.mrb[140].mxu0 }
 0x82c   : > { %6812 = vmatpush1.bf16.msra.mxu1 %v9365_v58  ;;  %6496 = vmatprep.mubr.bf16.mxu1 %v11283_v38  ;;  %v11114_v58 = vpop.f32.mrb[141].mxu0  ;;  %v11285_v38 = vpack.c.bf16 %v10988_v50, %v10982_v53  ;;  %v9380_v53 = vld [vmem:[#allocation7 + $0x770] ss:$8 sps:$4 sm:$0xff]   ;;  %v11287_v50 = vpack.c.bf16 %v11000_v45, %v10994_v8  ;;  %v9395_v8 = vld [vmem:[#allocation7 + $0x7c0] ss:$8 sps:$4 sm:$0xff]  }
 0x82d   : > { %6813 = vmatprep.subr.bf16.mxu1 %v9370_v14  ;;  %v11119_v2 = vpop.f32.mrb[142].mxu0  ;;  %v9374_v14 = vld [vmem:[#allocation7 + $0x750] ss:$8 sps:$4 sm:$0xff]   ;;  %v9400_v45 = vld [vmem:[#allocation7 + $0x7d4] ss:$8 sps:$4 sm:$0xff]  }
 0x830   : > { %6814 = vmatpush1.bf16.msra.mxu1 %v9368_v37  ;;  %v9389_v37 = vld [vmem:[#allocation7 + $0x7a0] ss:$8 sps:$4 sm:$0xff]  }
 0x831   : > { %6815 = vmatprep.subr.bf16.mxu1 %v9373_v63  ;;  %v11126_v63 = vpop.f32.mrb[143].mxu0 }
 0x832   : > { %v6976_v55 = vpack.c.bf16 %v11126_v63, %v11114_v58 }
 0x833   : > { %6497 = vmatmul.mubr.bf16.gmra.mrb[152].mxu1 %v11284_v28  ;;  %v9383_v28 = vld [vmem:[#allocation7 + $0x780] ss:$8 sps:$4 sm:$0xff]  }
 0x834   : > { %6816 = vmatpush1.bf16.msra.mxu1 %v9371_v6  ;;  %6506 = vmatprep.mubr.bf16.mxu1 %v11285_v38  ;;  %v11286_v6 = vpack.c.bf16 %v10984_v60, %v10980_v56  ;;  %v9388_v38 = vld [vmem:[#allocation7 + $0x794] ss:$8 sps:$4 sm:$0xff]   ;;  %v9392_v60 = vld [vmem:[#allocation7 + $0x7b0] ss:$8 sps:$4 sm:$0xff]  }
 0x835   : > { %6817 = vmatprep.subr.bf16.mxu1 %v9376_v33  ;;  %v9385_v33 = vld [vmem:[#allocation7 + $0x784] ss:$8 sps:$4 sm:$0xff]   ;;  %v9394_v56 = vld [vmem:[#allocation7 + $0x7b4] ss:$8 sps:$4 sm:$0xff]  }
 0x838   : > { %6818 = vmatpush1.bf16.msra.mxu1 %v9374_v14  ;;  %v9386_v14 = vld [vmem:[#allocation7 + $0x790] ss:$8 sps:$4 sm:$0xff]  }
 0x839   : > { %6819 = vmatprep.subr.bf16.mxu1 %v9379_v19  ;;  %v9391_v19 = vld [vmem:[#allocation7 + $0x7a4] ss:$8 sps:$4 sm:$0xff]  }
 0x83b   : > { %6507 = vmatmul.mubr.bf16.gmra.mrb[156].mxu1 %v11286_v6  ;;  %v9403_v6 = vld [vmem:[#allocation7 + $0x7e4] ss:$8 sps:$4 sm:$0xff]  }
 0x83c   : > { %6820 = vmatpush1.bf16.msra.mxu1 %v9377_v59  ;;  %6839 = vmatprep.mubr.bf16.mxu1 %v11287_v50  ;;  %v9397_v59 = vld [vmem:[#allocation7 + $0x7c4] ss:$8 sps:$4 sm:$0xff]   ;;  %v9406_v50 = vld [vmem:[#allocation7 + $0x7f4] ss:$8 sps:$4 sm:$0xff]  }
 0x83d   : > { %6821 = vmatprep.subr.bf16.mxu1 %v9382_v23  ;;  %v9398_v23 = vld [vmem:[#allocation7 + $0x7d0] ss:$8 sps:$4 sm:$0xff]  }
 0x840   : > { %6822 = vmatpush1.bf16.msra.mxu1 %v9380_v53  ;;  %v9401_v53 = vld [vmem:[#allocation7 + $0x7e0] ss:$8 sps:$4 sm:$0xff]  }
 0x841   : > { %6823 = vmatprep.subr.bf16.mxu1 %v9385_v33  ;;  %v9404_v33 = vld [vmem:[#allocation7 + $0x7f0] ss:$8 sps:$4 sm:$0xff]  }
 0x844   : > { %6824 = vmatpush1.bf16.msra.mxu1 %v9383_v28  ;;  %v9409_v28 = vld [vmem:[#allocation7 + $0x804] ss:$8 sps:$4 sm:$0xff]  }
 0x845   : > { %6825 = vmatprep.subr.bf16.mxu1 %v9388_v38  ;;  %v9412_v38 = vld [vmem:[#allocation7 + $0x814] ss:$8 sps:$4 sm:$0xff]  }
 0x848   : > { %6826 = vmatpush1.bf16.msra.mxu1 %v9386_v14  ;;  %v11288_v14 = vpack.c.bf16 %v10996_v42, %v10992_v13  ;;  %v11291_v13 = vpack.c.bf16 %v11046_v27, %v11042_v7  ;;  %v9421_v42 = vld [vmem:[#allocation7 + $0x844] ss:$8 sps:$4 sm:$0xff]   ;;  %v9425_v7 = vld [vmem:[#allocation7 + $0x860] ss:$8 sps:$4 sm:$0xff]   ;;  %v9430_v27 = vld [vmem:[#allocation7 + $0x874] ss:$8 sps:$4 sm:$0xff]  }
 0x849   : > { %6827 = vmatprep.subr.bf16.mxu1 %v9391_v19  ;;  %v9410_v19 = vld [vmem:[#allocation7 + $0x810] ss:$8 sps:$4 sm:$0xff]  }
 0x84c   : > { %6828 = vmatpush1.bf16.msra.mxu1 %v9389_v37  ;;  %v9407_v37 = vld [vmem:[#allocation7 + $0x800] ss:$8 sps:$4 sm:$0xff]  }
 0x84d   : > { %6829 = vmatprep.subr.bf16.mxu1 %v9394_v56  ;;  %v11289_v56 = vpack.c.bf16 %v11034_v57, %v11030_v51  ;;  %v9419_v51 = vld [vmem:[#allocation7 + $0x840] ss:$8 sps:$4 sm:$0xff]   ;;  %v9424_v57 = vld [vmem:[#allocation7 + $0x854] ss:$8 sps:$4 sm:$0xff]  }
 0x850   : > { %6830 = vmatpush1.bf16.msra.mxu1 %v9392_v60  ;;  %v9415_v60 = vld [vmem:[#allocation7 + $0x824] ss:$8 sps:$4 sm:$0xff]  }
 0x851   : > { %6831 = vmatprep.subr.bf16.mxu1 %v9397_v59  ;;  %v9413_v59 = vld [vmem:[#allocation7 + $0x820] ss:$8 sps:$4 sm:$0xff]  }
 0x854   : > { %6832 = vmatpush1.bf16.msra.mxu1 %v9395_v8  ;;  %v9418_v8 = vld [vmem:[#allocation7 + $0x834] ss:$8 sps:$4 sm:$0xff]  }
 0x855   : > { %6833 = vmatprep.subr.bf16.mxu1 %v9400_v45  ;;  %v11290_v45 = vpack.c.bf16 %v11032_v20, %v11028_v43  ;;  %v11293_v43 = vpack.c.bf16 %v11058_v3, %v11054_v25  ;;  %v9427_v20 = vld [vmem:[#allocation7 + $0x864] ss:$8 sps:$4 sm:$0xff]   ;;  %v9431_v25 = vld [vmem:[#allocation7 + $0x880] ss:$8 sps:$4 sm:$0xff]   ;;  %v9436_v3 = vld [vmem:[#allocation7 + $0x894] ss:$8 sps:$4 sm:$0xff]  }
 0x858   : > { %6834 = vmatpush1.bf16.msra.mxu1 %v9398_v23  ;;  %v9416_v23 = vld [vmem:[#allocation7 + $0x830] ss:$8 sps:$4 sm:$0xff]  }
 0x859   : > { %6835 = vmatprep.subr.bf16.mxu1 %v9403_v6  ;;  %v11292_v6 = vpack.c.bf16 %v11044_v32, %v11040_v11  ;;  %v11295_v11 = vpack.c.bf16 %v11072_v36, %v11066_v61  ;;  %v9433_v32 = vld [vmem:[#allocation7 + $0x884] ss:$8 sps:$4 sm:$0xff]   ;;  %v9443_v36 = vld [vmem:[#allocation7 + $0x8c0] ss:$8 sps:$4 sm:$0xff]   ;;  %v9448_v61 = vld [vmem:[#allocation7 + $0x8d4] ss:$8 sps:$4 sm:$0xff]  }
 0x85c   : > { %6836 = vmatpush1.bf16.msra.mxu1 %v9401_v53  ;;  %v9422_v53 = vld [vmem:[#allocation7 + $0x850] ss:$8 sps:$4 sm:$0xff]  }
 0x85d   : > { %6837 = vmatprep.subr.bf16.mxu1 %v9406_v50  ;;  %v11294_v50 = vpack.c.bf16 %v11056_v30, %v11052_v0  ;;  %v9442_v0 = vld [vmem:[#allocation7 + $0x8b4] ss:$8 sps:$4 sm:$0xff]   ;;  %v9440_v30 = vld [vmem:[#allocation7 + $0x8b0] ss:$8 sps:$4 sm:$0xff]  }
 0x860   : > { %6838 = vmatpush1.bf16.msra.mxu1 %v9404_v33  ;;  %v9428_v33 = vld [vmem:[#allocation7 + $0x870] ss:$8 sps:$4 sm:$0xff]  }
 0x861   : > { %7170 = vmatprep.subr.bf16.mxu1 %v9409_v28  ;;  %v9434_v28 = vld [vmem:[#allocation7 + $0x890] ss:$8 sps:$4 sm:$0xff]  }
 0x863   : > { %6840 = vmatmul.mubr.bf16.vlgmr.msra.gmra.mrb[144].mxu1 %v11288_v14  ;;  %v9445_v14 = vld [vmem:[#allocation7 + $0x8c4] ss:$8 sps:$4 sm:$0xff]  }
 0x864   : > { %7171 = vmatpush1.bf16.msra.mxu1 %v9407_v37  ;;  %6849 = vmatprep.mubr.bf16.mxu1 %v11289_v56  ;;  %v9439_v37 = vld [vmem:[#allocation7 + $0x8a4] ss:$8 sps:$4 sm:$0xff]  }
 0x865   : > { %7172 = vmatprep.subr.bf16.mxu1 %v9412_v38  ;;  %v9437_v38 = vld [vmem:[#allocation7 + $0x8a0] ss:$8 sps:$4 sm:$0xff]   ;;  %v9451_v56 = vld [vmem:[#allocation7 + $0x8e4] ss:$8 sps:$4 sm:$0xff]  }
 0x868   : > { %7173 = vmatpush1.bf16.msra.mxu1 %v9410_v19  ;;  %v9446_v19 = vld [vmem:[#allocation7 + $0x8d0] ss:$8 sps:$4 sm:$0xff]  }
 0x869   : > { %7174 = vmatprep.subr.bf16.mxu1 %v9415_v60  ;;  %v9449_v60 = vld [vmem:[#allocation7 + $0x8e0] ss:$8 sps:$4 sm:$0xff]  }
 0x86b   : > { %6850 = vmatmul.mubr.bf16.gmra.mrb[148].mxu1 %v11290_v45  ;;  %v11296_v45 = vpack.c.bf16 %v11068_v62, %v11064_v12  ;;  %v11302_v12 = vsub.s32 1, %v10622_v5 }
 0x86c   : > { %7175 = vmatpush1.bf16.msra.mxu1 %v9413_v59  ;;  %6859 = vmatprep.mubr.bf16.mxu1 %v11291_v13  ;;  %v9454_v59 = vld [vmem:[#allocation7 + $0x8f4] ss:$8 sps:$4 sm:$0xff]   ;;  %v11298_v13 = vpack.c.bf16 %v11108_v31, %v11096_v4 }
 0x86d   : > { %7176 = vmatprep.subr.bf16.mxu1 %v9418_v8  ;;  %v9452_v8 = vld [vmem:[#allocation7 + $0x8f0] ss:$8 sps:$4 sm:$0xff]   ;;  %v11187_v52 = vrot.slane %v7259_v44, %v11302_v12  ;;  %v9491_v4 = vld [vmem:[%s9877_s23] sm:$0xff] }
 0x86e   : > { %v7288_v58 = vunpack.c.h.bf16 %v9491_v4 }
 0x870   : > { %7177 = vmatpush1.bf16.msra.mxu1 %v9416_v23  ;;  %v11297_v23 = vpack.c.bf16 %v11083_v22, %v11076_v15  ;;  %v11301_v15 = vsub.s32 0, %v10622_v5 }
 0x871   : > { %7178 = vmatprep.subr.bf16.mxu1 %v9421_v42  ;;  %v11299_v42 = vpack.c.bf16 %v11101_v17, %v11094_v47  ;;  %v7287_v17 = vunpack.c.l.bf16 %v9491_v4  ;;  %v9495_v4 = vld [vmem:[%s9877_s23 + $0x20] sm:$0xff] }
 0x872   : > { %v11183_v62 = vrot.slane %v7259_v44, %v11301_v15 }
 0x873   : > { %6860 = vmatmul.mubr.bf16.gmra.mrb[152].mxu1 %v11292_v6 }
 0x874   : > { %7179 = vmatpush1.bf16.msra.mxu1 %v9419_v51  ;;  %6869 = vmatprep.mubr.bf16.mxu1 %v11293_v43  ;;  %v9492_v51 = vld [vmem:[%s9877_s23 + $0x8] sm:$0xff] }
 0x875   : > { %7180 = vmatprep.subr.bf16.mxu1 %v9424_v57  ;;  %v7289_v57 = vunpack.c.l.bf16 %v9492_v51 }
 0x878   : > { %7181 = vmatpush1.bf16.msra.mxu1 %v9422_v53  ;;  %v7290_v53 = vunpack.c.h.bf16 %v9492_v51 }
 0x879   : > { %7182 = vmatprep.subr.bf16.mxu1 %v9427_v20 }
 0x87b   : > { %6870 = vmatmul.mubr.bf16.gmra.mrb[156].mxu1 %v11294_v50 }
 0x87c   : > { %7183 = vmatpush1.bf16.msra.mxu1 %v9425_v7  ;;  %7202 = vmatprep.mubr.bf16.mxu1 %v11295_v11 }
 0x87d   : > { %7184 = vmatprep.subr.bf16.mxu1 %v9430_v27 }
 0x880   : > { %7185 = vmatpush1.bf16.msra.mxu1 %v9428_v33 }
 0x881   : > { %7186 = vmatprep.subr.bf16.mxu1 %v9433_v32 }
 0x884   : > { %7187 = vmatpush1.bf16.msra.mxu1 %v9431_v25  ;;  %v9493_v25 = vld [vmem:[%s9877_s23 + $0x10] sm:$0xff] }
 0x885   : > { %7188 = vmatprep.subr.bf16.mxu1 %v9436_v3  ;;  %v7291_v3 = vunpack.c.l.bf16 %v9493_v25 }
 0x888   : > { %7189 = vmatpush1.bf16.msra.mxu1 %v9434_v28 }
 0x889   : > { %7190 = vmatprep.subr.bf16.mxu1 %v9439_v37 }
 0x88c   : > { %7191 = vmatpush1.bf16.msra.mxu1 %v9437_v38 }
 0x88d   : > { %7192 = vmatprep.subr.bf16.mxu1 %v9442_v0 }
 0x890   : > { %7193 = vmatpush1.bf16.msra.mxu1 %v9440_v30  ;;  %v7292_v30 = vunpack.c.h.bf16 %v9493_v25 }
 0x891   : > { %7194 = vmatprep.subr.bf16.mxu1 %v9445_v14 }
 0x894   : > { %7195 = vmatpush1.bf16.msra.mxu1 %v9443_v36 }
 0x895   : > { %7196 = vmatprep.subr.bf16.mxu1 %v9448_v61 }
 0x898   : > { %7197 = vmatpush1.bf16.msra.mxu1 %v9446_v19  ;;  %v9494_v19 = vld [vmem:[%s9877_s23 + $0x18] sm:$0xff] }
 0x899   : > { %7198 = vmatprep.subr.bf16.mxu1 %v9451_v56  ;;  %v7293_v56 = vunpack.c.l.bf16 %v9494_v19 }
 0x89c   : > { %7199 = vmatpush1.bf16.msra.mxu1 %v9449_v60 }
 0x89d   : > { %7200 = vmatprep.subr.bf16.mxu1 %v9454_v59 }
 0x8a0   : > { %7201 = vmatpush1.bf16.msra.mxu1 %v9452_v8 }
 0x8a3   : > { %7203 = vmatmul.mubr.bf16.vlgmr.msra.gmra.mrb[144].mxu1 %v11296_v45  ;;  %v7294_v45 = vunpack.c.h.bf16 %v9494_v19 }
 0x8a4   : > { %7212 = vmatprep.mubr.bf16.mxu1 %v6972_v1  ;;  %v11300_v1 = vpack.c.bf16 %v11119_v2, %v11112_v26 }
 0x8ab   : > { %7213 = vmatmul.mubr.bf16.gmra.mrb[148].mxu1 %v11297_v23 }
 0x8ac   : > { %7222 = vmatprep.mubr.bf16.mxu1 %v11298_v13 }
 0x8b3   : > { %7223 = vmatmul.mubr.bf16.gmra.mrb[152].mxu1 %v11299_v42 }
 0x8b4   : > { %7232 = vmatprep.mubr.bf16.mxu1 %v6976_v55 }
 0x8bb   : > { %7233 = vmatmul.mubr.bf16.gmra.mrb[156].mxu1 %v11300_v1 }
 0x976   : > { %v7204_v22 = vpop.f32.mrb[144].mxu1 }
 0x977   : > { %v8227_v47 = vadd.f32 %v7204_v22, %v10774_v41  ;;  %v7206_v31 = vpop.f32.mrb[145].mxu1 }
 0x978   : > { %v8228_v55 = vadd.f32 %v7206_v31, %v10776_v40  ;;  %v7208_v26 = vpop.f32.mrb[146].mxu1 }
 0x979   : > { %v7271_v2 = vadd.f32 %v8227_v47, %v11183_v62  ;;  %v8229_v63 = vadd.f32 %v7208_v26, %v10778_v54  ;;  %v7210_v6 = vpop.f32.mrb[147].mxu1  ;;  %v7296_v26 = vunpack.c.h.bf16 %v9495_v4 }
 0x97a   : > { %v7272_v5 = vadd.f32 %v8228_v55, %v11187_v52  ;;  %v8230_v41 = vadd.f32 %v7210_v6, %v10780_v24 }
 0x97b   : > { %v7303_v43 = vadd.f32 %v7287_v17, %v7271_v2  ;;  %v7273_v20 = vadd.f32 %v8229_v63, %v11183_v62 }
 0x97c   : > { %v7304_v40 = vadd.f32 %v7288_v58, %v7272_v5  ;;  %v7274_v7 = vadd.f32 %v8230_v41, %v11187_v52 }
 0x97d   : > { %v7319_v27 = vmax.f32 %v7303_v43, 0.0  ;;  %v7305_v50 = vadd.f32 %v7289_v57, %v7273_v20  ;;  %v9496_v57 = vld [vmem:[%s9877_s23 + $0x28] sm:$0xff] }
 0x97e   : > { %v7320_v33 = vmax.f32 %v7304_v40, 0.0  ;;  %v7306_v54 = vadd.f32 %v7290_v53, %v7274_v7  ;;  %v7214_v11 = vpop.f32.mrb[148].mxu1  ;;  %v7297_v6 = vunpack.c.l.bf16 %v9496_v57  ;;  %v7298_v43 = vunpack.c.h.bf16 %v9496_v57 }
 0x97f   : > { %v7321_v24 = vmax.f32 %v7305_v50, 0.0  ;;  %v8231_v32 = vadd.f32 %v7214_v11, %v10783_v35  ;;  %v7216_v28 = vpop.f32.mrb[149].mxu1 }
 0x980   : > { %v8219_v37 = vpack.c.bf16 %v7320_v33, %v7319_v27  ;;  %v7322_v38 = vmax.f32 %v7306_v54, 0.0  ;;  %v8232_v0 = vadd.f32 %v7216_v28, %v10786_v39  ;;  %v7218_v14 = vpop.f32.mrb[150].mxu1 }
 0x981   : > { %v7275_v36 = vadd.f32 %v8231_v32, %v11183_v62  ;;  %v8233_v61 = vadd.f32 %v7218_v14, %v10788_v46  ;;  %v7220_v60 = vpop.f32.mrb[151].mxu1  ;;  %v9497_v32 = vld [vmem:[%s9877_s23 + $0x30] sm:$0xff] }
 0x982   : > { %7383 = vst [vmem:[%s11204_s15] sm:$0xff] %v8219_v37  ;;  %v8220_v59 = vpack.c.bf16 %v7322_v38, %v7321_v24  ;;  %v7276_v35 = vadd.f32 %v8232_v0, %v11187_v52  ;;  %v8234_v8 = vadd.f32 %v7220_v60, %v10790_v21  ;;  %v7295_v21 = vunpack.c.l.bf16 %v9495_v4 }
 0x983   : > { %v7307_v23 = vadd.f32 %v7291_v3, %v7275_v36  ;;  %v7277_v39 = vadd.f32 %v8233_v61, %v11183_v62  ;;  %v7300_v38 = vunpack.c.h.bf16 %v9497_v32  ;;  %v9498_v36 = vld [vmem:[%s9877_s23 + $0x38] sm:$0xff] }
 0x984   : > { %7384 = vst [vmem:[%s11204_s15 + $0x8] sm:$0xff] %v8220_v59  ;;  %v7308_v13 = vadd.f32 %v7292_v30, %v7276_v35  ;;  %v7278_v42 = vadd.f32 %v8234_v8, %v11187_v52  ;;  %v7301_v61 = vunpack.c.l.bf16 %v9498_v36  ;;  %v7302_v59 = vunpack.c.h.bf16 %v9498_v36 }
 0x985   : > { %v7323_v1 = vmax.f32 %v7307_v23, 0.0  ;;  %v7309_v46 = vadd.f32 %v7293_v56, %v7277_v39 }
 0x986   : > { %v7324_v44 = vmax.f32 %v7308_v13, 0.0  ;;  %v7310_v15 = vadd.f32 %v7294_v45, %v7278_v42  ;;  %v7224_v22 = vpop.f32.mrb[152].mxu1 }
 0x987   : > { %v7325_v12 = vmax.f32 %v7309_v46, 0.0  ;;  %v8235_v47 = vadd.f32 %v7224_v22, %v10795_v49  ;;  %v7226_v17 = vpop.f32.mrb[153].mxu1 }
 0x988   : > { %v8221_v31 = vpack.c.bf16 %v7324_v44, %v7323_v1  ;;  %v7326_v55 = vmax.f32 %v7310_v15, 0.0  ;;  %v8236_v58 = vadd.f32 %v7226_v17, %v10798_v16  ;;  %v7228_v2 = vpop.f32.mrb[154].mxu1 }
 0x989   : > { %v7279_v63 = vadd.f32 %v8235_v47, %v11183_v62  ;;  %v8237_v51 = vadd.f32 %v7228_v2, %v10800_v9  ;;  %v7230_v5 = vpop.f32.mrb[155].mxu1 }
 0x98a   : > { %7385 = vst [vmem:[%s11204_s15 + $0x10] sm:$0xff] %v8221_v31  ;;  %v8222_v41 = vpack.c.bf16 %v7326_v55, %v7325_v12  ;;  %v7280_v49 = vadd.f32 %v8236_v58, %v11187_v52  ;;  %v8238_v53 = vadd.f32 %v7230_v5, %v10802_v34  ;;  %v7299_v34 = vunpack.c.l.bf16 %v9497_v32 }
 0x98b   : > { %v7311_v20 = vadd.f32 %v7295_v21, %v7279_v63  ;;  %v7281_v16 = vadd.f32 %v8237_v51, %v11183_v62 }
 0x98c   : > { %7386 = vst [vmem:[%s11204_s15 + $0x18] sm:$0xff] %v8222_v41  ;;  %v7312_v40 = vadd.f32 %v7296_v26, %v7280_v49  ;;  %v7282_v7 = vadd.f32 %v8238_v53, %v11187_v52 }
 0x98d   : > { %v7327_v27 = vmax.f32 %v7311_v20, 0.0  ;;  %v7313_v9 = vadd.f32 %v7297_v6, %v7281_v16 }
 0x98e   : > { %v7328_v50 = vmax.f32 %v7312_v40, 0.0  ;;  %v7314_v33 = vadd.f32 %v7298_v43, %v7282_v7  ;;  %v7234_v54 = vpop.f32.mrb[156].mxu1 }
 0x98f   : > { %v7329_v11 = vmax.f32 %v7313_v9, 0.0  ;;  %v8239_v24 = vadd.f32 %v7234_v54, %v10805_v18  ;;  %v7236_v25 = vpop.f32.mrb[157].mxu1 }
 0x990   : > { %v8223_v3 = vpack.c.bf16 %v7328_v50, %v7327_v27  ;;  %v7330_v28 = vmax.f32 %v7314_v33, 0.0  ;;  %v8240_v37 = vadd.f32 %v7236_v25, %v10807_v10  ;;  %v7238_v0 = vpop.f32.mrb[158].mxu1 }
 0x991   : > { %v7283_v30 = vadd.f32 %v8239_v24, %v11183_v62  ;;  %v8241_v14 = vadd.f32 %v7238_v0, %v10809_v48  ;;  %v7240_v19 = vpop.f32.mrb[159].mxu1 }
 0x992   : > { %7387 = vst [vmem:[%s11204_s15 + $0x20] sm:$0xff] %v8223_v3  ;;  %v8224_v56 = vpack.c.bf16 %v7330_v28, %v7329_v11  ;;  %v7284_v18 = vadd.f32 %v8240_v37, %v11187_v52  ;;  %v8242_v60 = vadd.f32 %v7240_v19, %v10811_v29 }
 0x993   : > { %v7315_v35 = vadd.f32 %v7299_v34, %v7283_v30  ;;  %v7285_v10 = vadd.f32 %v8241_v14, %v11183_v62 }
 0x994   : > { %7388 = vst [vmem:[%s11204_s15 + $0x28] sm:$0xff] %v8224_v56  ;;  %v7316_v8 = vadd.f32 %v7300_v38, %v7284_v18  ;;  %v7286_v45 = vadd.f32 %v8242_v60, %v11187_v52 }
 0x995   : > { %v7331_v48 = vmax.f32 %v7315_v35, 0.0  ;;  %v7317_v23 = vadd.f32 %v7301_v61, %v7285_v10 }
 0x996   : > { %v7332_v39 = vmax.f32 %v7316_v8, 0.0  ;;  %v7318_v13 = vadd.f32 %v7302_v59, %v7286_v45 }
 0x997   : > { %v7333_v42 = vmax.f32 %v7317_v23, 0.0 }
 0x998   : > { %v8225_v1 = vpack.c.bf16 %v7332_v39, %v7331_v48  ;;  %v7334_v46 = vmax.f32 %v7318_v13, 0.0 }
 0x99a   : > { %7389 = vst [vmem:[%s11204_s15 + $0x30] sm:$0xff] %v8225_v1  ;;  %v8226_v44 = vpack.c.bf16 %v7334_v46, %v7333_v42 }
 0x99c   : > { %7390 = vst [vmem:[%s11204_s15 + $0x38] sm:$0xff] %v8226_v44 }
 0x99d PF: > { %s19_s21 = sadd.s32 1, %s9657_s21  }
 0x99e   : > { %p16_p6 = scmp.ge.s32.totalorder %s19_s21, 4  }
 0x9a0   :  { %18 = sbr.rel (!%p16_p6) target bundleno = 3 (0x3), region = 119 }
 0x9a7   :  { %7412 = vsyncpa [#allocation3], 1 }
 0x9a8   :  { %7414 = vsyncpa [#allocation3 + $0x1], 1 }
 0x9a9   :  { %7415 = vsyncpa [#allocation5], 1 }
 0x9aa   :  { %7416 = vsyncpa [#allocation8], 1 }

</bundles_post_ra>
